<compile_context>
chip_gen: v7x
topology: tpu7x:2x2x1
jax: 0.10.0
libtpu: 0.0.40
codegen_flags: <defaults>
</compile_context>

<pallas_src>
import functools

import jax
import jax.numpy as jnp
from jax.experimental import pallas as pl
from jax.experimental.pallas import tpu as pltpu

BN_EPS = 1e-5
TOPK = 2
NODES = 4
# (op_name, input_state_index) pairs: topk=2 per node, 4 nodes -> 8 entries.
GENOTYPE_FIRST = [
    ("skip_connect", 0), ("conv_3x3", 1),      # node 3
    ("max_pool_3x3", 2), ("skip_connect", 3),  # node 4
    ("conv_3x3", 0), ("avg_pool_3x3", 4),      # node 5
    ("skip_connect", 2), ("conv_3x3", 5),      # node 6
]
GENOTYPE_CONCAT = [3, 4, 5, 6]
NCAT = len(GENOTYPE_CONCAT)

_CONV_POSITIONS = [k for k, (name, _) in enumerate(GENOTYPE_FIRST) if name == "conv_3x3"]
CONV_SLOT = {k: i for i, k in enumerate(_CONV_POSITIONS)}
NUM_CONV = len(_CONV_POSITIONS)

WOFF = 8  # sublane-aligned left halo offset inside the padded VMEM scratch


# ----------------------------------------------------------------------------
# Single fused kernel: whole Cell_topk forward for one batch element.
# ----------------------------------------------------------------------------
def _cell_kernel(s1_ref, s2_ref, s3_ref,
                 w1_ref, w2_ref, w3_ref, psc_ref, pbi_ref,
                 cw_ref, csc_ref, cbi_ref, inv_ref,
                 o_ref, pad_ref, *, H, W, C):
    padw = W + 2 * WOFF

    def halo(x, fill):
        # Padded (H+2, padw, C) copy of x in VMEM scratch.  The interior is
        # stored at sublane-aligned column offset WOFF (aligned, unmasked
        # store); taps then read at static column offsets WOFF-1+dx.
        pad_ref[...] = jnp.full((H + 2, padw, C), fill, jnp.float32)
        pad_ref[1:H + 1, WOFF:WOFF + W, :] = x
        return pad_ref[...]

    def tap(xp, dy, dx):
        # Tap (dy, dx) of the 3x3 stencil: reads input (y+dy-1, w+dx-1).
        return xp[dy:dy + H, WOFF - 1 + dx:WOFF - 1 + dx + W, :]

    def preprocess(x, w):
        # ReLU -> 1x1 conv (channel matmul on the MXU) -> folded BN.
        y = jnp.dot(jnp.maximum(x, 0.0), w, preferred_element_type=jnp.float32)
        return y * psc_ref[...] + pbi_ref[...]

    def conv_3x3(x, slot):
        # ReLU -> 3x3 conv (stride 1, pad 1) -> folded BN.
        xp = halo(jnp.maximum(x, 0.0), 0.0)  # relu(pad0(x)) == pad0(relu(x))
        acc = jnp.zeros((H, W, C), jnp.float32)
        t = 0
        for dy in range(3):
            for dx in range(3):
                acc = acc + jnp.dot(tap(xp, dy, dx), cw_ref[slot * 9 + t],
                                    preferred_element_type=jnp.float32)
                t += 1
        return acc * csc_ref[slot] + cbi_ref[slot]

    def max_pool_3x3(x):
        xp = halo(x, -jnp.inf)
        m = tap(xp, 1, 1)  # center tap == x, guarantees a finite value
        for dy in range(3):
            for dx in range(3):
                if dy == 1 and dx == 1:
                    continue
                m = jnp.maximum(m, tap(xp, dy, dx))
        return m

    def avg_pool_3x3(x):
        # count_include_pad=False: multiply by precomputed reciprocal counts.
        xp = halo(x, 0.0)
        s = jnp.zeros((H, W, C), jnp.float32)
        for dy in range(3):
            for dx in range(3):
                s = s + tap(xp, dy, dx)
        return s * inv_ref[...]

    states = [
        preprocess(s1_ref[0], w1_ref[...]),
        preprocess(s2_ref[0], w2_ref[...]),
        preprocess(s3_ref[0], w3_ref[...]),
    ]
    for i in range(NODES):
        acc = None
        for j in range(TOPK):
            k = TOPK * i + j
            name, idx = GENOTYPE_FIRST[k]
            x = states[idx]
            if name == "skip_connect":
                y = x
            elif name == "conv_3x3":
                y = conv_3x3(x, CONV_SLOT[k])
            elif name == "max_pool_3x3":
                y = max_pool_3x3(x)
            elif name == "avg_pool_3x3":
                y = avg_pool_3x3(x)
            else:
                raise ValueError(name)
            acc = y if acc is None else acc + y  # per-node topk sum, in-register
        states.append(acc)

    # Fused channel concat: write each concatenated node into its slot.
    for oi, si in enumerate(GENOTYPE_CONCAT):
        o_ref[oi] = states[si]


# ----------------------------------------------------------------------------
# Wrapper: NCHW in / NCHW out, single pallas_call over the batch.
# ----------------------------------------------------------------------------
def cell_topk_forward(s1_nchw, s2_nchw, s3_nchw, params):
    N, C1, H, W = s1_nchw.shape
    C2, C3 = s2_nchw.shape[1], s3_nchw.shape[1]
    C = params["pre1_w"].shape[1]

    # NCHW -> NHWC once at the boundary (channels on the lane axis in-kernel).
    s1 = jnp.transpose(s1_nchw, (0, 2, 3, 1))
    s2 = jnp.transpose(s2_nchw, (0, 2, 3, 1))
    s3 = jnp.transpose(s3_nchw, (0, 2, 3, 1))

    # Reciprocal valid-count plane for 3x3 avg pool (count_include_pad=False).
    r = jnp.arange(H, dtype=jnp.float32)[:, None]
    c = jnp.arange(W, dtype=jnp.float32)[None, :]
    cnt = ((jnp.minimum(r + 1.0, H - 1.0) - jnp.maximum(r - 1.0, 0.0) + 1.0)
           * (jnp.minimum(c + 1.0, W - 1.0) - jnp.maximum(c - 1.0, 0.0) + 1.0))
    inv_cnt = jnp.broadcast_to((1.0 / cnt)[:, :, None], (H, W, C)).astype(jnp.float32)

    kern = functools.partial(_cell_kernel, H=H, W=W, C=C)
    out = pl.pallas_call(
        kern,
        out_shape=jax.ShapeDtypeStruct((N * NCAT, H, W, C), jnp.float32),
        grid=(N,),
        in_specs=[
            pl.BlockSpec((1, H, W, C1), lambda n: (n, 0, 0, 0)),
            pl.BlockSpec((1, H, W, C2), lambda n: (n, 0, 0, 0)),
            pl.BlockSpec((1, H, W, C3), lambda n: (n, 0, 0, 0)),
            pl.BlockSpec((C1, C), lambda n: (0, 0)),
            pl.BlockSpec((C2, C), lambda n: (0, 0)),
            pl.BlockSpec((C3, C), lambda n: (0, 0)),
            pl.BlockSpec((1, C), lambda n: (0, 0)),
            pl.BlockSpec((1, C), lambda n: (0, 0)),
            pl.BlockSpec((NUM_CONV * 9, C, C), lambda n: (0, 0, 0)),
            pl.BlockSpec((NUM_CONV, C), lambda n: (0, 0)),
            pl.BlockSpec((NUM_CONV, C), lambda n: (0, 0)),
            pl.BlockSpec((H, W, C), lambda n: (0, 0, 0)),
        ],
        out_specs=pl.BlockSpec((NCAT, H, W, C), lambda n: (n, 0, 0, 0)),
        scratch_shapes=[pltpu.VMEM((H + 2, W + 2 * WOFF, C), jnp.float32)],
        compiler_params=pltpu.CompilerParams(dimension_semantics=("parallel",)),
    )(s1, s2, s3,
      params["pre1_w"], params["pre2_w"], params["pre3_w"],
      params["pre_scale"], params["pre_bias"],
      params["conv_w"], params["conv_scale"], params["conv_bias"],
      inv_cnt)

    # (N*NCAT, H, W, C) -> (N, NCAT, H, W, C) -> NCHW channel concat.
    out = out.reshape(N, NCAT, H, W, C)
    return jnp.transpose(out, (0, 1, 4, 2, 3)).reshape(N, NCAT * C, H, W)


# ----------------------------------------------------------------------------
# Parameters (eval-mode folded BatchNorm) and pure-JAX reference for checking.
# ----------------------------------------------------------------------------
def make_params(key, C1, C2, C3, C):
    ks = jax.random.split(key, 4)
    # Folded BN (eval): running_mean=0, running_var=1, gamma=1, beta=0
    #   -> scale = 1/sqrt(1+eps), bias = 0.
    scale = jnp.full((C,), 1.0 / jnp.sqrt(1.0 + BN_EPS), jnp.float32)
    bias = jnp.zeros((C,), jnp.float32)
    return {
        "pre1_w": 0.1 * jax.random.normal(ks[0], (C1, C), jnp.float32),
        "pre2_w": 0.1 * jax.random.normal(ks[1], (C2, C), jnp.float32),
        "pre3_w": 0.1 * jax.random.normal(ks[2], (C3, C), jnp.float32),
        "pre_scale": scale.reshape(1, C),
        "pre_bias": bias.reshape(1, C),
        "conv_w": 0.1 * jax.random.normal(ks[3], (NUM_CONV * 9, C, C), jnp.float32),
        "conv_scale": jnp.tile(scale[None, :], (NUM_CONV, 1)),
        "conv_bias": jnp.tile(bias[None, :], (NUM_CONV, 1)),
    }


def _reference_forward(s1_nchw, s2_nchw, s3_nchw, params):
    """Pure-JAX (XLA) reference with identical semantics, used for verification."""
    def nhwc(x):
        return jnp.transpose(x, (0, 2, 3, 1))

    def pre(x, w):
        y = jnp.einsum("nhwc,cd->nhwd", jnp.maximum(x, 0.0), w)
        return y * params["pre_scale"] + params["pre_bias"]

    def conv3x3(x, slot):
        n, h, w, c = x.shape
        xp = jnp.pad(jnp.maximum(x, 0.0), ((0, 0), (1, 1), (1, 1), (0, 0)))
        acc = jnp.zeros_like(x)
        t = 0
        for dy in range(3):
            for dx in range(3):
                acc = acc + jnp.einsum("nhwc,cd->nhwd",
                                       xp[:, dy:dy + h, dx:dx + w, :],
                                       params["conv_w"][slot * 9 + t])
                t += 1
        return acc * params["conv_scale"][slot] + params["conv_bias"][slot]

    def maxpool(x):
        n, h, w, c = x.shape
        xp = jnp.pad(x, ((0, 0), (1, 1), (1, 1), (0, 0)), constant_values=-jnp.inf)
        m = xp[:, 1:1 + h, 1:1 + w, :]
        for dy in range(3):
            for dx in range(3):
                if dy == 1 and dx == 1:
                    continue
                m = jnp.maximum(m, xp[:, dy:dy + h, dx:dx + w, :])
        return m

    def avgpool(x):
        n, h, w, c = x.shape
        xp = jnp.pad(x, ((0, 0), (1, 1), (1, 1), (0, 0)))
        s = jnp.zeros_like(x)
        for dy in range(3):
            for dx in range(3):
                s = s + xp[:, dy:dy + h, dx:dx + w, :]
        r = jnp.arange(h, dtype=jnp.float32)[:, None]
        cc = jnp.arange(w, dtype=jnp.float32)[None, :]
        cnt = ((jnp.minimum(r + 1.0, h - 1.0) - jnp.maximum(r - 1.0, 0.0) + 1.0)
               * (jnp.minimum(cc + 1.0, w - 1.0) - jnp.maximum(cc - 1.0, 0.0) + 1.0))
        return s / cnt[None, :, :, None]

    s1, s2, s3 = nhwc(s1_nchw), nhwc(s2_nchw), nhwc(s3_nchw)
    states = [pre(s1, params["pre1_w"]), pre(s2, params["pre2_w"]), pre(s3, params["pre3_w"])]
    for i in range(NODES):
        acc = None
        for j in range(TOPK):
            k = TOPK * i + j
            name, idx = GENOTYPE_FIRST[k]
            x = states[idx]
            if name == "skip_connect":
                y = x
            elif name == "conv_3x3":
                y = conv3x3(x, CONV_SLOT[k])
            elif name == "max_pool_3x3":
                y = maxpool(x)
            else:
                y = avgpool(x)
            acc = y if acc is None else acc + y
        states.append(acc)
    out = jnp.stack([states[i] for i in GENOTYPE_CONCAT], axis=1)  # (N, NCAT, H, W, C)
    n, _, h, w, c = out.shape
    return jnp.transpose(out, (0, 1, 4, 2, 3)).reshape(n, NCAT * c, h, w)


if __name__ == "__main__":
    # TODO(synk): drop_path (training-only stochastic depth) is not implemented;
    # eval-mode forward (drop_prob=0) is reproduced exactly.
    N, C1, C2, C3, C, H, W = 2, 4, 6, 8, 8, 16, 16
    key = jax.random.PRNGKey(0)
    k1, k2, k3, kp = jax.random.split(key, 4)
    s1 = jax.random.normal(k1, (N, C1, H, W), jnp.float32)
    s2 = jax.random.normal(k2, (N, C2, H, W), jnp.float32)
    s3 = jax.random.normal(k3, (N, C3, H, W), jnp.float32)
    params = make_params(kp, C1, C2, C3, C)

    out = jax.block_until_ready(cell_topk_forward(s1, s2, s3, params))
    assert out.shape == (N, NCAT * C, H, W)

    ref = jax.block_until_ready(_reference_forward(s1, s2, s3, params))
    max_err = float(jnp.max(jnp.abs(out - ref)))
    assert max_err < 5e-2, f"mismatch vs reference: {max_err}"

    print("KERNEL_OK")
</pallas_src>

<mosaic_0001>
module attributes {stable_mosaic.version = 11 : i64} {
  func.func @_cell_kernel(%arg0: i32, %arg1: memref<1x16x16x4xf32, #tpu.memory_space<vmem>>, %arg2: memref<1x16x16x6xf32, #tpu.memory_space<vmem>>, %arg3: memref<1x16x16x8xf32, #tpu.memory_space<vmem>>, %arg4: memref<4x8xf32, #tpu.memory_space<vmem>>, %arg5: memref<6x8xf32, #tpu.memory_space<vmem>>, %arg6: memref<8x8xf32, #tpu.memory_space<vmem>>, %arg7: memref<1x8xf32, #tpu.memory_space<vmem>>, %arg8: memref<1x8xf32, #tpu.memory_space<vmem>>, %arg9: memref<27x8x8xf32, #tpu.memory_space<vmem>>, %arg10: memref<3x8xf32, #tpu.memory_space<vmem>>, %arg11: memref<3x8xf32, #tpu.memory_space<vmem>>, %arg12: memref<16x16x8xf32, #tpu.memory_space<vmem>>, %arg13: memref<4x16x16x8xf32, #tpu.memory_space<vmem>>, %arg14: memref<18x32x8xf32, #tpu.memory_space<vmem>>) attributes {dimension_semantics = [#tpu.dimension_semantics<parallel>], iteration_bounds = array<i64: 2>, scalar_prefetch = 0 : i64, scratch_operands = 1 : i64, tpu.core_type = #tpu.core_type<tc>, window_params = [{transform_indices = @transform_0, window_bounds = array<i64: 1, 16, 16, 4>}, {transform_indices = @transform_1, window_bounds = array<i64: 1, 16, 16, 6>}, {transform_indices = @transform_2, window_bounds = array<i64: 1, 16, 16, 8>}, {pipeline_mode = #tpu.pipeline_mode<synchronous>, transform_indices = @transform_3, window_bounds = array<i64: 4, 8>}, {pipeline_mode = #tpu.pipeline_mode<synchronous>, transform_indices = @transform_4, window_bounds = array<i64: 6, 8>}, {pipeline_mode = #tpu.pipeline_mode<synchronous>, transform_indices = @transform_5, window_bounds = array<i64: 8, 8>}, {pipeline_mode = #tpu.pipeline_mode<synchronous>, transform_indices = @transform_6, window_bounds = array<i64: 1, 8>}, {pipeline_mode = #tpu.pipeline_mode<synchronous>, transform_indices = @transform_7, window_bounds = array<i64: 1, 8>}, {pipeline_mode = #tpu.pipeline_mode<synchronous>, transform_indices = @transform_8, window_bounds = array<i64: 27, 8, 8>}, {pipeline_mode = #tpu.pipeline_mode<synchronous>, transform_indices = @transform_9, window_bounds = array<i64: 3, 8>}, {pipeline_mode = #tpu.pipeline_mode<synchronous>, transform_indices = @transform_10, window_bounds = array<i64: 3, 8>}, {pipeline_mode = #tpu.pipeline_mode<synchronous>, transform_indices = @transform_11, window_bounds = array<i64: 16, 16, 8>}, {transform_indices = @transform_12, window_bounds = array<i64: 4, 16, 16, 8>}]} {
    %c0 = arith.constant 0 : index
    %c0_0 = arith.constant 0 : index
    %c0_1 = arith.constant 0 : index
    %c0_2 = arith.constant 0 : index
    %0 = vector.load %arg1[%c0, %c0_0, %c0_1, %c0_2] : memref<1x16x16x4xf32, #tpu.memory_space<vmem>>, vector<1x16x16x4xf32>
    %1 = vector.shape_cast %0 : vector<1x16x16x4xf32> to vector<16x16x4xf32>
    %c0_3 = arith.constant 0 : index
    %c0_4 = arith.constant 0 : index
    %2 = vector.load %arg4[%c0_3, %c0_4] : memref<4x8xf32, #tpu.memory_space<vmem>>, vector<4x8xf32>
    %cst = arith.constant 0.000000e+00 : f32
    %3 = vector.broadcast %cst : f32 to vector<16x16x4xf32>
    %4 = arith.maximumf %1, %3 : vector<16x16x4xf32>
    %cst_5 = arith.constant dense<0.000000e+00> : vector<16x16x8xf32>
    %5 = tpu.matmul %4, %2, %cst_5 {dimension_numbers = #tpu.dot_dimension_numbers<[2], [0], [0, 1], [1], [0, 0, 0, 1, 1, 1], [], []>} : vector<16x16x4xf32>, vector<4x8xf32>, vector<16x16x8xf32> -> vector<16x16x8xf32>
    %c0_6 = arith.constant 0 : index
    %c0_7 = arith.constant 0 : index
    %6 = vector.load %arg7[%c0_6, %c0_7] : memref<1x8xf32, #tpu.memory_space<vmem>>, vector<1x8xf32>
    %7 = vector.shape_cast %6 : vector<1x8xf32> to vector<1x1x8xf32>
    %8 = vector.broadcast %7 : vector<1x1x8xf32> to vector<16x16x8xf32>
    %9 = arith.mulf %5, %8 : vector<16x16x8xf32>
    %c0_8 = arith.constant 0 : index
    %c0_9 = arith.constant 0 : index
    %10 = vector.load %arg8[%c0_8, %c0_9] : memref<1x8xf32, #tpu.memory_space<vmem>>, vector<1x8xf32>
    %11 = vector.shape_cast %10 : vector<1x8xf32> to vector<1x1x8xf32>
    %12 = vector.broadcast %11 : vector<1x1x8xf32> to vector<16x16x8xf32>
    %13 = arith.addf %9, %12 : vector<16x16x8xf32>
    %c0_10 = arith.constant 0 : index
    %c0_11 = arith.constant 0 : index
    %c0_12 = arith.constant 0 : index
    %c0_13 = arith.constant 0 : index
    %14 = vector.load %arg2[%c0_10, %c0_11, %c0_12, %c0_13] : memref<1x16x16x6xf32, #tpu.memory_space<vmem>>, vector<1x16x16x6xf32>
    %15 = vector.shape_cast %14 : vector<1x16x16x6xf32> to vector<16x16x6xf32>
    %c0_14 = arith.constant 0 : index
    %c0_15 = arith.constant 0 : index
    %16 = vector.load %arg5[%c0_14, %c0_15] : memref<6x8xf32, #tpu.memory_space<vmem>>, vector<6x8xf32>
    %cst_16 = arith.constant 0.000000e+00 : f32
    %17 = vector.broadcast %cst_16 : f32 to vector<16x16x6xf32>
    %18 = arith.maximumf %15, %17 : vector<16x16x6xf32>
    %cst_17 = arith.constant dense<0.000000e+00> : vector<16x16x8xf32>
    %19 = tpu.matmul %18, %16, %cst_17 {dimension_numbers = #tpu.dot_dimension_numbers<[2], [0], [0, 1], [1], [0, 0, 0, 1, 1, 1], [], []>} : vector<16x16x6xf32>, vector<6x8xf32>, vector<16x16x8xf32> -> vector<16x16x8xf32>
    %c0_18 = arith.constant 0 : index
    %c0_19 = arith.constant 0 : index
    %20 = vector.load %arg7[%c0_18, %c0_19] : memref<1x8xf32, #tpu.memory_space<vmem>>, vector<1x8xf32>
    %21 = vector.shape_cast %20 : vector<1x8xf32> to vector<1x1x8xf32>
    %22 = vector.broadcast %21 : vector<1x1x8xf32> to vector<16x16x8xf32>
    %23 = arith.mulf %19, %22 : vector<16x16x8xf32>
    %c0_20 = arith.constant 0 : index
    %c0_21 = arith.constant 0 : index
    %24 = vector.load %arg8[%c0_20, %c0_21] : memref<1x8xf32, #tpu.memory_space<vmem>>, vector<1x8xf32>
    %25 = vector.shape_cast %24 : vector<1x8xf32> to vector<1x1x8xf32>
    %26 = vector.broadcast %25 : vector<1x1x8xf32> to vector<16x16x8xf32>
    %27 = arith.addf %23, %26 : vector<16x16x8xf32>
    %c0_22 = arith.constant 0 : index
    %c0_23 = arith.constant 0 : index
    %c0_24 = arith.constant 0 : index
    %c0_25 = arith.constant 0 : index
    %28 = vector.load %arg3[%c0_22, %c0_23, %c0_24, %c0_25] : memref<1x16x16x8xf32, #tpu.memory_space<vmem>>, vector<1x16x16x8xf32>
    %29 = vector.shape_cast %28 : vector<1x16x16x8xf32> to vector<16x16x8xf32>
    %c0_26 = arith.constant 0 : index
    %c0_27 = arith.constant 0 : index
    %30 = vector.load %arg6[%c0_26, %c0_27] : memref<8x8xf32, #tpu.memory_space<vmem>>, vector<8x8xf32>
    %cst_28 = arith.constant 0.000000e+00 : f32
    %31 = vector.broadcast %cst_28 : f32 to vector<16x16x8xf32>
    %32 = arith.maximumf %29, %31 : vector<16x16x8xf32>
    %cst_29 = arith.constant dense<0.000000e+00> : vector<16x16x8xf32>
    %33 = tpu.matmul %32, %30, %cst_29 {dimension_numbers = #tpu.dot_dimension_numbers<[2], [0], [0, 1], [1], [0, 0, 0, 1, 1, 1], [], []>} : vector<16x16x8xf32>, vector<8x8xf32>, vector<16x16x8xf32> -> vector<16x16x8xf32>
    %c0_30 = arith.constant 0 : index
    %c0_31 = arith.constant 0 : index
    %34 = vector.load %arg7[%c0_30, %c0_31] : memref<1x8xf32, #tpu.memory_space<vmem>>, vector<1x8xf32>
    %35 = vector.shape_cast %34 : vector<1x8xf32> to vector<1x1x8xf32>
    %36 = vector.broadcast %35 : vector<1x1x8xf32> to vector<16x16x8xf32>
    %37 = arith.mulf %33, %36 : vector<16x16x8xf32>
    %c0_32 = arith.constant 0 : index
    %c0_33 = arith.constant 0 : index
    %38 = vector.load %arg8[%c0_32, %c0_33] : memref<1x8xf32, #tpu.memory_space<vmem>>, vector<1x8xf32>
    %39 = vector.shape_cast %38 : vector<1x8xf32> to vector<1x1x8xf32>
    %40 = vector.broadcast %39 : vector<1x1x8xf32> to vector<16x16x8xf32>
    %41 = arith.addf %37, %40 : vector<16x16x8xf32>
    %cst_34 = arith.constant 0.000000e+00 : f32
    %42 = vector.broadcast %cst_34 : f32 to vector<16x16x8xf32>
    %43 = arith.maximumf %27, %42 : vector<16x16x8xf32>
    %cst_35 = arith.constant 0.000000e+00 : f32
    %44 = vector.broadcast %cst_35 : f32 to vector<18x32x8xf32>
    %c0_36 = arith.constant 0 : index
    %c0_37 = arith.constant 0 : index
    %c0_38 = arith.constant 0 : index
    %45 = vector.load %arg14[%c0_36, %c0_37, %c0_38] : memref<18x32x8xf32, #tpu.memory_space<vmem>>, vector<18x32x8xf32>
    tpu.vector_store %arg14[%c0_36, %c0_37, %c0_38], %44 {strides = array<i32>} : memref<18x32x8xf32, #tpu.memory_space<vmem>>, vector<18x32x8xf32>,
    %c1 = arith.constant 1 : index
    %c8 = arith.constant 8 : index
    %c0_39 = arith.constant 0 : index
    %46 = vector.load %arg14[%c1, %c8, %c0_39] : memref<18x32x8xf32, #tpu.memory_space<vmem>>, vector<16x16x8xf32>
    tpu.vector_store %arg14[%c1, %c8, %c0_39], %43 {strides = array<i32>} : memref<18x32x8xf32, #tpu.memory_space<vmem>>, vector<16x16x8xf32>,
    %c0_40 = arith.constant 0 : index
    %c0_41 = arith.constant 0 : index
    %c0_42 = arith.constant 0 : index
    %47 = vector.load %arg14[%c0_40, %c0_41, %c0_42] : memref<18x32x8xf32, #tpu.memory_space<vmem>>, vector<18x32x8xf32>
    %cst_43 = arith.constant 0.000000e+00 : f32
    %48 = vector.broadcast %cst_43 : f32 to vector<16x16x8xf32>
    %49 = vector.extract_strided_slice %47 {offsets = [0, 7, 0], sizes = [16, 16, 8], strides = [1, 1, 1]} : vector<18x32x8xf32> to vector<16x16x8xf32>
    %c0_44 = arith.constant 0 : index
    %c0_45 = arith.constant 0 : index
    %c0_46 = arith.constant 0 : index
    %50 = vector.load %arg9[%c0_44, %c0_45, %c0_46] : memref<27x8x8xf32, #tpu.memory_space<vmem>>, vector<1x8x8xf32>
    %51 = vector.shape_cast %50 : vector<1x8x8xf32> to vector<8x8xf32>
    %cst_47 = arith.constant dense<0.000000e+00> : vector<16x16x8xf32>
    %52 = tpu.matmul %49, %51, %cst_47 {dimension_numbers = #tpu.dot_dimension_numbers<[2], [0], [0, 1], [1], [0, 0, 0, 1, 1, 1], [], []>} : vector<16x16x8xf32>, vector<8x8xf32>, vector<16x16x8xf32> -> vector<16x16x8xf32>
    %53 = arith.addf %48, %52 : vector<16x16x8xf32>
    %54 = vector.extract_strided_slice %47 {offsets = [0, 8, 0], sizes = [16, 16, 8], strides = [1, 1, 1]} : vector<18x32x8xf32> to vector<16x16x8xf32>
    %c1_48 = arith.constant 1 : index
    %c0_49 = arith.constant 0 : index
    %c0_50 = arith.constant 0 : index
    %55 = vector.load %arg9[%c1_48, %c0_49, %c0_50] : memref<27x8x8xf32, #tpu.memory_space<vmem>>, vector<1x8x8xf32>
    %56 = vector.shape_cast %55 : vector<1x8x8xf32> to vector<8x8xf32>
    %cst_51 = arith.constant dense<0.000000e+00> : vector<16x16x8xf32>
    %57 = tpu.matmul %54, %56, %cst_51 {dimension_numbers = #tpu.dot_dimension_numbers<[2], [0], [0, 1], [1], [0, 0, 0, 1, 1, 1], [], []>} : vector<16x16x8xf32>, vector<8x8xf32>, vector<16x16x8xf32> -> vector<16x16x8xf32>
    %58 = arith.addf %53, %57 : vector<16x16x8xf32>
    %59 = vector.extract_strided_slice %47 {offsets = [0, 9, 0], sizes = [16, 16, 8], strides = [1, 1, 1]} : vector<18x32x8xf32> to vector<16x16x8xf32>
    %c2 = arith.constant 2 : index
    %c0_52 = arith.constant 0 : index
    %c0_53 = arith.constant 0 : index
    %60 = vector.load %arg9[%c2, %c0_52, %c0_53] : memref<27x8x8xf32, #tpu.memory_space<vmem>>, vector<1x8x8xf32>
    %61 = vector.shape_cast %60 : vector<1x8x8xf32> to vector<8x8xf32>
    %cst_54 = arith.constant dense<0.000000e+00> : vector<16x16x8xf32>
    %62 = tpu.matmul %59, %61, %cst_54 {dimension_numbers = #tpu.dot_dimension_numbers<[2], [0], [0, 1], [1], [0, 0, 0, 1, 1, 1], [], []>} : vector<16x16x8xf32>, vector<8x8xf32>, vector<16x16x8xf32> -> vector<16x16x8xf32>
    %63 = arith.addf %58, %62 : vector<16x16x8xf32>
    %64 = vector.extract_strided_slice %47 {offsets = [1, 7, 0], sizes = [16, 16, 8], strides = [1, 1, 1]} : vector<18x32x8xf32> to vector<16x16x8xf32>
    %c3 = arith.constant 3 : index
    %c0_55 = arith.constant 0 : index
    %c0_56 = arith.constant 0 : index
    %65 = vector.load %arg9[%c3, %c0_55, %c0_56] : memref<27x8x8xf32, #tpu.memory_space<vmem>>, vector<1x8x8xf32>
    %66 = vector.shape_cast %65 : vector<1x8x8xf32> to vector<8x8xf32>
    %cst_57 = arith.constant dense<0.000000e+00> : vector<16x16x8xf32>
    %67 = tpu.matmul %64, %66, %cst_57 {dimension_numbers = #tpu.dot_dimension_numbers<[2], [0], [0, 1], [1], [0, 0, 0, 1, 1, 1], [], []>} : vector<16x16x8xf32>, vector<8x8xf32>, vector<16x16x8xf32> -> vector<16x16x8xf32>
    %68 = arith.addf %63, %67 : vector<16x16x8xf32>
    %69 = vector.extract_strided_slice %47 {offsets = [1, 8, 0], sizes = [16, 16, 8], strides = [1, 1, 1]} : vector<18x32x8xf32> to vector<16x16x8xf32>
    %c4 = arith.constant 4 : index
    %c0_58 = arith.constant 0 : index
    %c0_59 = arith.constant 0 : index
    %70 = vector.load %arg9[%c4, %c0_58, %c0_59] : memref<27x8x8xf32, #tpu.memory_space<vmem>>, vector<1x8x8xf32>
    %71 = vector.shape_cast %70 : vector<1x8x8xf32> to vector<8x8xf32>
    %cst_60 = arith.constant dense<0.000000e+00> : vector<16x16x8xf32>
    %72 = tpu.matmul %69, %71, %cst_60 {dimension_numbers = #tpu.dot_dimension_numbers<[2], [0], [0, 1], [1], [0, 0, 0, 1, 1, 1], [], []>} : vector<16x16x8xf32>, vector<8x8xf32>, vector<16x16x8xf32> -> vector<16x16x8xf32>
    %73 = arith.addf %68, %72 : vector<16x16x8xf32>
    %74 = vector.extract_strided_slice %47 {offsets = [1, 9, 0], sizes = [16, 16, 8], strides = [1, 1, 1]} : vector<18x32x8xf32> to vector<16x16x8xf32>
    %c5 = arith.constant 5 : index
    %c0_61 = arith.constant 0 : index
    %c0_62 = arith.constant 0 : index
    %75 = vector.load %arg9[%c5, %c0_61, %c0_62] : memref<27x8x8xf32, #tpu.memory_space<vmem>>, vector<1x8x8xf32>
    %76 = vector.shape_cast %75 : vector<1x8x8xf32> to vector<8x8xf32>
    %cst_63 = arith.constant dense<0.000000e+00> : vector<16x16x8xf32>
    %77 = tpu.matmul %74, %76, %cst_63 {dimension_numbers = #tpu.dot_dimension_numbers<[2], [0], [0, 1], [1], [0, 0, 0, 1, 1, 1], [], []>} : vector<16x16x8xf32>, vector<8x8xf32>, vector<16x16x8xf32> -> vector<16x16x8xf32>
    %78 = arith.addf %73, %77 : vector<16x16x8xf32>
    %79 = vector.extract_strided_slice %47 {offsets = [2, 7, 0], sizes = [16, 16, 8], strides = [1, 1, 1]} : vector<18x32x8xf32> to vector<16x16x8xf32>
    %c6 = arith.constant 6 : index
    %c0_64 = arith.constant 0 : index
    %c0_65 = arith.constant 0 : index
    %80 = vector.load %arg9[%c6, %c0_64, %c0_65] : memref<27x8x8xf32, #tpu.memory_space<vmem>>, vector<1x8x8xf32>
    %81 = vector.shape_cast %80 : vector<1x8x8xf32> to vector<8x8xf32>
    %cst_66 = arith.constant dense<0.000000e+00> : vector<16x16x8xf32>
    %82 = tpu.matmul %79, %81, %cst_66 {dimension_numbers = #tpu.dot_dimension_numbers<[2], [0], [0, 1], [1], [0, 0, 0, 1, 1, 1], [], []>} : vector<16x16x8xf32>, vector<8x8xf32>, vector<16x16x8xf32> -> vector<16x16x8xf32>
    %83 = arith.addf %78, %82 : vector<16x16x8xf32>
    %84 = vector.extract_strided_slice %47 {offsets = [2, 8, 0], sizes = [16, 16, 8], strides = [1, 1, 1]} : vector<18x32x8xf32> to vector<16x16x8xf32>
    %c7 = arith.constant 7 : index
    %c0_67 = arith.constant 0 : index
    %c0_68 = arith.constant 0 : index
    %85 = vector.load %arg9[%c7, %c0_67, %c0_68] : memref<27x8x8xf32, #tpu.memory_space<vmem>>, vector<1x8x8xf32>
    %86 = vector.shape_cast %85 : vector<1x8x8xf32> to vector<8x8xf32>
    %cst_69 = arith.constant dense<0.000000e+00> : vector<16x16x8xf32>
    %87 = tpu.matmul %84, %86, %cst_69 {dimension_numbers = #tpu.dot_dimension_numbers<[2], [0], [0, 1], [1], [0, 0, 0, 1, 1, 1], [], []>} : vector<16x16x8xf32>, vector<8x8xf32>, vector<16x16x8xf32> -> vector<16x16x8xf32>
    %88 = arith.addf %83, %87 : vector<16x16x8xf32>
    %89 = vector.extract_strided_slice %47 {offsets = [2, 9, 0], sizes = [16, 16, 8], strides = [1, 1, 1]} : vector<18x32x8xf32> to vector<16x16x8xf32>
    %c8_70 = arith.constant 8 : index
    %c0_71 = arith.constant 0 : index
    %c0_72 = arith.constant 0 : index
    %90 = vector.load %arg9[%c8_70, %c0_71, %c0_72] : memref<27x8x8xf32, #tpu.memory_space<vmem>>, vector<1x8x8xf32>
    %91 = vector.shape_cast %90 : vector<1x8x8xf32> to vector<8x8xf32>
    %cst_73 = arith.constant dense<0.000000e+00> : vector<16x16x8xf32>
    %92 = tpu.matmul %89, %91, %cst_73 {dimension_numbers = #tpu.dot_dimension_numbers<[2], [0], [0, 1], [1], [0, 0, 0, 1, 1, 1], [], []>} : vector<16x16x8xf32>, vector<8x8xf32>, vector<16x16x8xf32> -> vector<16x16x8xf32>
    %93 = arith.addf %88, %92 : vector<16x16x8xf32>
    %c0_74 = arith.constant 0 : index
    %c0_75 = arith.constant 0 : index
    %94 = vector.load %arg10[%c0_74, %c0_75] : memref<3x8xf32, #tpu.memory_space<vmem>>, vector<1x8xf32>
    %95 = vector.shape_cast %94 : vector<1x8xf32> to vector<8xf32>
    %96 = vector.shape_cast %95 : vector<8xf32> to vector<1x1x8xf32>
    %97 = vector.broadcast %96 : vector<1x1x8xf32> to vector<16x16x8xf32>
    %98 = arith.mulf %93, %97 : vector<16x16x8xf32>
    %c0_76 = arith.constant 0 : index
    %c0_77 = arith.constant 0 : index
    %99 = vector.load %arg11[%c0_76, %c0_77] : memref<3x8xf32, #tpu.memory_space<vmem>>, vector<1x8xf32>
    %100 = vector.shape_cast %99 : vector<1x8xf32> to vector<8xf32>
    %101 = vector.shape_cast %100 : vector<8xf32> to vector<1x1x8xf32>
    %102 = vector.broadcast %101 : vector<1x1x8xf32> to vector<16x16x8xf32>
    %103 = arith.addf %98, %102 : vector<16x16x8xf32>
    %104 = arith.addf %13, %103 : vector<16x16x8xf32>
    %cst_78 = arith.constant 0xFF800000 : f32
    %105 = vector.broadcast %cst_78 : f32 to vector<18x32x8xf32>
    %c0_79 = arith.constant 0 : index
    %c0_80 = arith.constant 0 : index
    %c0_81 = arith.constant 0 : index
    %106 = vector.load %arg14[%c0_79, %c0_80, %c0_81] : memref<18x32x8xf32, #tpu.memory_space<vmem>>, vector<18x32x8xf32>
    tpu.vector_store %arg14[%c0_79, %c0_80, %c0_81], %105 {strides = array<i32>} : memref<18x32x8xf32, #tpu.memory_space<vmem>>, vector<18x32x8xf32>,
    %c1_82 = arith.constant 1 : index
    %c8_83 = arith.constant 8 : index
    %c0_84 = arith.constant 0 : index
    %107 = vector.load %arg14[%c1_82, %c8_83, %c0_84] : memref<18x32x8xf32, #tpu.memory_space<vmem>>, vector<16x16x8xf32>
    tpu.vector_store %arg14[%c1_82, %c8_83, %c0_84], %41 {strides = array<i32>} : memref<18x32x8xf32, #tpu.memory_space<vmem>>, vector<16x16x8xf32>,
    %c0_85 = arith.constant 0 : index
    %c0_86 = arith.constant 0 : index
    %c0_87 = arith.constant 0 : index
    %108 = vector.load %arg14[%c0_85, %c0_86, %c0_87] : memref<18x32x8xf32, #tpu.memory_space<vmem>>, vector<18x32x8xf32>
    %109 = vector.extract_strided_slice %108 {offsets = [1, 8, 0], sizes = [16, 16, 8], strides = [1, 1, 1]} : vector<18x32x8xf32> to vector<16x16x8xf32>
    %110 = vector.extract_strided_slice %108 {offsets = [0, 7, 0], sizes = [16, 16, 8], strides = [1, 1, 1]} : vector<18x32x8xf32> to vector<16x16x8xf32>
    %111 = arith.maximumf %109, %110 : vector<16x16x8xf32>
    %112 = vector.extract_strided_slice %108 {offsets = [0, 8, 0], sizes = [16, 16, 8], strides = [1, 1, 1]} : vector<18x32x8xf32> to vector<16x16x8xf32>
    %113 = arith.maximumf %111, %112 : vector<16x16x8xf32>
    %114 = vector.extract_strided_slice %108 {offsets = [0, 9, 0], sizes = [16, 16, 8], strides = [1, 1, 1]} : vector<18x32x8xf32> to vector<16x16x8xf32>
    %115 = arith.maximumf %113, %114 : vector<16x16x8xf32>
    %116 = vector.extract_strided_slice %108 {offsets = [1, 7, 0], sizes = [16, 16, 8], strides = [1, 1, 1]} : vector<18x32x8xf32> to vector<16x16x8xf32>
    %117 = arith.maximumf %115, %116 : vector<16x16x8xf32>
    %118 = vector.extract_strided_slice %108 {offsets = [1, 9, 0], sizes = [16, 16, 8], strides = [1, 1, 1]} : vector<18x32x8xf32> to vector<16x16x8xf32>
    %119 = arith.maximumf %117, %118 : vector<16x16x8xf32>
    %120 = vector.extract_strided_slice %108 {offsets = [2, 7, 0], sizes = [16, 16, 8], strides = [1, 1, 1]} : vector<18x32x8xf32> to vector<16x16x8xf32>
    %121 = arith.maximumf %119, %120 : vector<16x16x8xf32>
    %122 = vector.extract_strided_slice %108 {offsets = [2, 8, 0], sizes = [16, 16, 8], strides = [1, 1, 1]} : vector<18x32x8xf32> to vector<16x16x8xf32>
    %123 = arith.maximumf %121, %122 : vector<16x16x8xf32>
    %124 = vector.extract_strided_slice %108 {offsets = [2, 9, 0], sizes = [16, 16, 8], strides = [1, 1, 1]} : vector<18x32x8xf32> to vector<16x16x8xf32>
    %125 = arith.maximumf %123, %124 : vector<16x16x8xf32>
    %126 = arith.addf %125, %104 : vector<16x16x8xf32>
    %cst_88 = arith.constant 0.000000e+00 : f32
    %127 = vector.broadcast %cst_88 : f32 to vector<16x16x8xf32>
    %128 = arith.maximumf %13, %127 : vector<16x16x8xf32>
    %cst_89 = arith.constant 0.000000e+00 : f32
    %129 = vector.broadcast %cst_89 : f32 to vector<18x32x8xf32>
    %c0_90 = arith.constant 0 : index
    %c0_91 = arith.constant 0 : index
    %c0_92 = arith.constant 0 : index
    %130 = vector.load %arg14[%c0_90, %c0_91, %c0_92] : memref<18x32x8xf32, #tpu.memory_space<vmem>>, vector<18x32x8xf32>
    tpu.vector_store %arg14[%c0_90, %c0_91, %c0_92], %129 {strides = array<i32>} : memref<18x32x8xf32, #tpu.memory_space<vmem>>, vector<18x32x8xf32>,
    %c1_93 = arith.constant 1 : index
    %c8_94 = arith.constant 8 : index
    %c0_95 = arith.constant 0 : index
    %131 = vector.load %arg14[%c1_93, %c8_94, %c0_95] : memref<18x32x8xf32, #tpu.memory_space<vmem>>, vector<16x16x8xf32>
    tpu.vector_store %arg14[%c1_93, %c8_94, %c0_95], %128 {strides = array<i32>} : memref<18x32x8xf32, #tpu.memory_space<vmem>>, vector<16x16x8xf32>,
    %c0_96 = arith.constant 0 : index
    %c0_97 = arith.constant 0 : index
    %c0_98 = arith.constant 0 : index
    %132 = vector.load %arg14[%c0_96, %c0_97, %c0_98] : memref<18x32x8xf32, #tpu.memory_space<vmem>>, vector<18x32x8xf32>
    %cst_99 = arith.constant 0.000000e+00 : f32
    %133 = vector.broadcast %cst_99 : f32 to vector<16x16x8xf32>
    %134 = vector.extract_strided_slice %132 {offsets = [0, 7, 0], sizes = [16, 16, 8], strides = [1, 1, 1]} : vector<18x32x8xf32> to vector<16x16x8xf32>
    %c9 = arith.constant 9 : index
    %c0_100 = arith.constant 0 : index
    %c0_101 = arith.constant 0 : index
    %135 = vector.load %arg9[%c9, %c0_100, %c0_101] : memref<27x8x8xf32, #tpu.memory_space<vmem>>, vector<1x8x8xf32>
    %136 = vector.shape_cast %135 : vector<1x8x8xf32> to vector<8x8xf32>
    %cst_102 = arith.constant dense<0.000000e+00> : vector<16x16x8xf32>
    %137 = tpu.matmul %134, %136, %cst_102 {dimension_numbers = #tpu.dot_dimension_numbers<[2], [0], [0, 1], [1], [0, 0, 0, 1, 1, 1], [], []>} : vector<16x16x8xf32>, vector<8x8xf32>, vector<16x16x8xf32> -> vector<16x16x8xf32>
    %138 = arith.addf %133, %137 : vector<16x16x8xf32>
    %139 = vector.extract_strided_slice %132 {offsets = [0, 8, 0], sizes = [16, 16, 8], strides = [1, 1, 1]} : vector<18x32x8xf32> to vector<16x16x8xf32>
    %c10 = arith.constant 10 : index
    %c0_103 = arith.constant 0 : index
    %c0_104 = arith.constant 0 : index
    %140 = vector.load %arg9[%c10, %c0_103, %c0_104] : memref<27x8x8xf32, #tpu.memory_space<vmem>>, vector<1x8x8xf32>
    %141 = vector.shape_cast %140 : vector<1x8x8xf32> to vector<8x8xf32>
    %cst_105 = arith.constant dense<0.000000e+00> : vector<16x16x8xf32>
    %142 = tpu.matmul %139, %141, %cst_105 {dimension_numbers = #tpu.dot_dimension_numbers<[2], [0], [0, 1], [1], [0, 0, 0, 1, 1, 1], [], []>} : vector<16x16x8xf32>, vector<8x8xf32>, vector<16x16x8xf32> -> vector<16x16x8xf32>
    %143 = arith.addf %138, %142 : vector<16x16x8xf32>
    %144 = vector.extract_strided_slice %132 {offsets = [0, 9, 0], sizes = [16, 16, 8], strides = [1, 1, 1]} : vector<18x32x8xf32> to vector<16x16x8xf32>
    %c11 = arith.constant 11 : index
    %c0_106 = arith.constant 0 : index
    %c0_107 = arith.constant 0 : index
    %145 = vector.load %arg9[%c11, %c0_106, %c0_107] : memref<27x8x8xf32, #tpu.memory_space<vmem>>, vector<1x8x8xf32>
    %146 = vector.shape_cast %145 : vector<1x8x8xf32> to vector<8x8xf32>
    %cst_108 = arith.constant dense<0.000000e+00> : vector<16x16x8xf32>
    %147 = tpu.matmul %144, %146, %cst_108 {dimension_numbers = #tpu.dot_dimension_numbers<[2], [0], [0, 1], [1], [0, 0, 0, 1, 1, 1], [], []>} : vector<16x16x8xf32>, vector<8x8xf32>, vector<16x16x8xf32> -> vector<16x16x8xf32>
    %148 = arith.addf %143, %147 : vector<16x16x8xf32>
    %149 = vector.extract_strided_slice %132 {offsets = [1, 7, 0], sizes = [16, 16, 8], strides = [1, 1, 1]} : vector<18x32x8xf32> to vector<16x16x8xf32>
    %c12 = arith.constant 12 : index
    %c0_109 = arith.constant 0 : index
    %c0_110 = arith.constant 0 : index
    %150 = vector.load %arg9[%c12, %c0_109, %c0_110] : memref<27x8x8xf32, #tpu.memory_space<vmem>>, vector<1x8x8xf32>
    %151 = vector.shape_cast %150 : vector<1x8x8xf32> to vector<8x8xf32>
    %cst_111 = arith.constant dense<0.000000e+00> : vector<16x16x8xf32>
    %152 = tpu.matmul %149, %151, %cst_111 {dimension_numbers = #tpu.dot_dimension_numbers<[2], [0], [0, 1], [1], [0, 0, 0, 1, 1, 1], [], []>} : vector<16x16x8xf32>, vector<8x8xf32>, vector<16x16x8xf32> -> vector<16x16x8xf32>
    %153 = arith.addf %148, %152 : vector<16x16x8xf32>
    %154 = vector.extract_strided_slice %132 {offsets = [1, 8, 0], sizes = [16, 16, 8], strides = [1, 1, 1]} : vector<18x32x8xf32> to vector<16x16x8xf32>
    %c13 = arith.constant 13 : index
    %c0_112 = arith.constant 0 : index
    %c0_113 = arith.constant 0 : index
    %155 = vector.load %arg9[%c13, %c0_112, %c0_113] : memref<27x8x8xf32, #tpu.memory_space<vmem>>, vector<1x8x8xf32>
    %156 = vector.shape_cast %155 : vector<1x8x8xf32> to vector<8x8xf32>
    %cst_114 = arith.constant dense<0.000000e+00> : vector<16x16x8xf32>
    %157 = tpu.matmul %154, %156, %cst_114 {dimension_numbers = #tpu.dot_dimension_numbers<[2], [0], [0, 1], [1], [0, 0, 0, 1, 1, 1], [], []>} : vector<16x16x8xf32>, vector<8x8xf32>, vector<16x16x8xf32> -> vector<16x16x8xf32>
    %158 = arith.addf %153, %157 : vector<16x16x8xf32>
    %159 = vector.extract_strided_slice %132 {offsets = [1, 9, 0], sizes = [16, 16, 8], strides = [1, 1, 1]} : vector<18x32x8xf32> to vector<16x16x8xf32>
    %c14 = arith.constant 14 : index
    %c0_115 = arith.constant 0 : index
    %c0_116 = arith.constant 0 : index
    %160 = vector.load %arg9[%c14, %c0_115, %c0_116] : memref<27x8x8xf32, #tpu.memory_space<vmem>>, vector<1x8x8xf32>
    %161 = vector.shape_cast %160 : vector<1x8x8xf32> to vector<8x8xf32>
    %cst_117 = arith.constant dense<0.000000e+00> : vector<16x16x8xf32>
    %162 = tpu.matmul %159, %161, %cst_117 {dimension_numbers = #tpu.dot_dimension_numbers<[2], [0], [0, 1], [1], [0, 0, 0, 1, 1, 1], [], []>} : vector<16x16x8xf32>, vector<8x8xf32>, vector<16x16x8xf32> -> vector<16x16x8xf32>
    %163 = arith.addf %158, %162 : vector<16x16x8xf32>
    %164 = vector.extract_strided_slice %132 {offsets = [2, 7, 0], sizes = [16, 16, 8], strides = [1, 1, 1]} : vector<18x32x8xf32> to vector<16x16x8xf32>
    %c15 = arith.constant 15 : index
    %c0_118 = arith.constant 0 : index
    %c0_119 = arith.constant 0 : index
    %165 = vector.load %arg9[%c15, %c0_118, %c0_119] : memref<27x8x8xf32, #tpu.memory_space<vmem>>, vector<1x8x8xf32>
    %166 = vector.shape_cast %165 : vector<1x8x8xf32> to vector<8x8xf32>
    %cst_120 = arith.constant dense<0.000000e+00> : vector<16x16x8xf32>
    %167 = tpu.matmul %164, %166, %cst_120 {dimension_numbers = #tpu.dot_dimension_numbers<[2], [0], [0, 1], [1], [0, 0, 0, 1, 1, 1], [], []>} : vector<16x16x8xf32>, vector<8x8xf32>, vector<16x16x8xf32> -> vector<16x16x8xf32>
    %168 = arith.addf %163, %167 : vector<16x16x8xf32>
    %169 = vector.extract_strided_slice %132 {offsets = [2, 8, 0], sizes = [16, 16, 8], strides = [1, 1, 1]} : vector<18x32x8xf32> to vector<16x16x8xf32>
    %c16 = arith.constant 16 : index
    %c0_121 = arith.constant 0 : index
    %c0_122 = arith.constant 0 : index
    %170 = vector.load %arg9[%c16, %c0_121, %c0_122] : memref<27x8x8xf32, #tpu.memory_space<vmem>>, vector<1x8x8xf32>
    %171 = vector.shape_cast %170 : vector<1x8x8xf32> to vector<8x8xf32>
    %cst_123 = arith.constant dense<0.000000e+00> : vector<16x16x8xf32>
    %172 = tpu.matmul %169, %171, %cst_123 {dimension_numbers = #tpu.dot_dimension_numbers<[2], [0], [0, 1], [1], [0, 0, 0, 1, 1, 1], [], []>} : vector<16x16x8xf32>, vector<8x8xf32>, vector<16x16x8xf32> -> vector<16x16x8xf32>
    %173 = arith.addf %168, %172 : vector<16x16x8xf32>
    %174 = vector.extract_strided_slice %132 {offsets = [2, 9, 0], sizes = [16, 16, 8], strides = [1, 1, 1]} : vector<18x32x8xf32> to vector<16x16x8xf32>
    %c17 = arith.constant 17 : index
    %c0_124 = arith.constant 0 : index
    %c0_125 = arith.constant 0 : index
    %175 = vector.load %arg9[%c17, %c0_124, %c0_125] : memref<27x8x8xf32, #tpu.memory_space<vmem>>, vector<1x8x8xf32>
    %176 = vector.shape_cast %175 : vector<1x8x8xf32> to vector<8x8xf32>
    %cst_126 = arith.constant dense<0.000000e+00> : vector<16x16x8xf32>
    %177 = tpu.matmul %174, %176, %cst_126 {dimension_numbers = #tpu.dot_dimension_numbers<[2], [0], [0, 1], [1], [0, 0, 0, 1, 1, 1], [], []>} : vector<16x16x8xf32>, vector<8x8xf32>, vector<16x16x8xf32> -> vector<16x16x8xf32>
    %178 = arith.addf %173, %177 : vector<16x16x8xf32>
    %c1_127 = arith.constant 1 : index
    %c0_128 = arith.constant 0 : index
    %179 = vector.load %arg10[%c1_127, %c0_128] : memref<3x8xf32, #tpu.memory_space<vmem>>, vector<1x8xf32>
    %180 = vector.shape_cast %179 : vector<1x8xf32> to vector<8xf32>
    %181 = vector.shape_cast %180 : vector<8xf32> to vector<1x1x8xf32>
    %182 = vector.broadcast %181 : vector<1x1x8xf32> to vector<16x16x8xf32>
    %183 = arith.mulf %178, %182 : vector<16x16x8xf32>
    %c1_129 = arith.constant 1 : index
    %c0_130 = arith.constant 0 : index
    %184 = vector.load %arg11[%c1_129, %c0_130] : memref<3x8xf32, #tpu.memory_space<vmem>>, vector<1x8xf32>
    %185 = vector.shape_cast %184 : vector<1x8xf32> to vector<8xf32>
    %186 = vector.shape_cast %185 : vector<8xf32> to vector<1x1x8xf32>
    %187 = vector.broadcast %186 : vector<1x1x8xf32> to vector<16x16x8xf32>
    %188 = arith.addf %183, %187 : vector<16x16x8xf32>
    %cst_131 = arith.constant 0.000000e+00 : f32
    %189 = vector.broadcast %cst_131 : f32 to vector<18x32x8xf32>
    %c0_132 = arith.constant 0 : index
    %c0_133 = arith.constant 0 : index
    %c0_134 = arith.constant 0 : index
    %190 = vector.load %arg14[%c0_132, %c0_133, %c0_134] : memref<18x32x8xf32, #tpu.memory_space<vmem>>, vector<18x32x8xf32>
    tpu.vector_store %arg14[%c0_132, %c0_133, %c0_134], %189 {strides = array<i32>} : memref<18x32x8xf32, #tpu.memory_space<vmem>>, vector<18x32x8xf32>,
    %c1_135 = arith.constant 1 : index
    %c8_136 = arith.constant 8 : index
    %c0_137 = arith.constant 0 : index
    %191 = vector.load %arg14[%c1_135, %c8_136, %c0_137] : memref<18x32x8xf32, #tpu.memory_space<vmem>>, vector<16x16x8xf32>
    tpu.vector_store %arg14[%c1_135, %c8_136, %c0_137], %126 {strides = array<i32>} : memref<18x32x8xf32, #tpu.memory_space<vmem>>, vector<16x16x8xf32>,
    %c0_138 = arith.constant 0 : index
    %c0_139 = arith.constant 0 : index
    %c0_140 = arith.constant 0 : index
    %192 = vector.load %arg14[%c0_138, %c0_139, %c0_140] : memref<18x32x8xf32, #tpu.memory_space<vmem>>, vector<18x32x8xf32>
    %cst_141 = arith.constant 0.000000e+00 : f32
    %193 = vector.broadcast %cst_141 : f32 to vector<16x16x8xf32>
    %194 = vector.extract_strided_slice %192 {offsets = [0, 7, 0], sizes = [16, 16, 8], strides = [1, 1, 1]} : vector<18x32x8xf32> to vector<16x16x8xf32>
    %195 = arith.addf %193, %194 : vector<16x16x8xf32>
    %196 = vector.extract_strided_slice %192 {offsets = [0, 8, 0], sizes = [16, 16, 8], strides = [1, 1, 1]} : vector<18x32x8xf32> to vector<16x16x8xf32>
    %197 = arith.addf %195, %196 : vector<16x16x8xf32>
    %198 = vector.extract_strided_slice %192 {offsets = [0, 9, 0], sizes = [16, 16, 8], strides = [1, 1, 1]} : vector<18x32x8xf32> to vector<16x16x8xf32>
    %199 = arith.addf %197, %198 : vector<16x16x8xf32>
    %200 = vector.extract_strided_slice %192 {offsets = [1, 7, 0], sizes = [16, 16, 8], strides = [1, 1, 1]} : vector<18x32x8xf32> to vector<16x16x8xf32>
    %201 = arith.addf %199, %200 : vector<16x16x8xf32>
    %202 = vector.extract_strided_slice %192 {offsets = [1, 8, 0], sizes = [16, 16, 8], strides = [1, 1, 1]} : vector<18x32x8xf32> to vector<16x16x8xf32>
    %203 = arith.addf %201, %202 : vector<16x16x8xf32>
    %204 = vector.extract_strided_slice %192 {offsets = [1, 9, 0], sizes = [16, 16, 8], strides = [1, 1, 1]} : vector<18x32x8xf32> to vector<16x16x8xf32>
    %205 = arith.addf %203, %204 : vector<16x16x8xf32>
    %206 = vector.extract_strided_slice %192 {offsets = [2, 7, 0], sizes = [16, 16, 8], strides = [1, 1, 1]} : vector<18x32x8xf32> to vector<16x16x8xf32>
    %207 = arith.addf %205, %206 : vector<16x16x8xf32>
    %208 = vector.extract_strided_slice %192 {offsets = [2, 8, 0], sizes = [16, 16, 8], strides = [1, 1, 1]} : vector<18x32x8xf32> to vector<16x16x8xf32>
    %209 = arith.addf %207, %208 : vector<16x16x8xf32>
    %210 = vector.extract_strided_slice %192 {offsets = [2, 9, 0], sizes = [16, 16, 8], strides = [1, 1, 1]} : vector<18x32x8xf32> to vector<16x16x8xf32>
    %211 = arith.addf %209, %210 : vector<16x16x8xf32>
    %c0_142 = arith.constant 0 : index
    %c0_143 = arith.constant 0 : index
    %c0_144 = arith.constant 0 : index
    %212 = vector.load %arg12[%c0_142, %c0_143, %c0_144] : memref<16x16x8xf32, #tpu.memory_space<vmem>>, vector<16x16x8xf32>
    %213 = arith.mulf %211, %212 : vector<16x16x8xf32>
    %214 = arith.addf %188, %213 : vector<16x16x8xf32>
    %cst_145 = arith.constant 0.000000e+00 : f32
    %215 = vector.broadcast %cst_145 : f32 to vector<16x16x8xf32>
    %216 = arith.maximumf %214, %215 : vector<16x16x8xf32>
    %cst_146 = arith.constant 0.000000e+00 : f32
    %217 = vector.broadcast %cst_146 : f32 to vector<18x32x8xf32>
    %c0_147 = arith.constant 0 : index
    %c0_148 = arith.constant 0 : index
    %c0_149 = arith.constant 0 : index
    %218 = vector.load %arg14[%c0_147, %c0_148, %c0_149] : memref<18x32x8xf32, #tpu.memory_space<vmem>>, vector<18x32x8xf32>
    tpu.vector_store %arg14[%c0_147, %c0_148, %c0_149], %217 {strides = array<i32>} : memref<18x32x8xf32, #tpu.memory_space<vmem>>, vector<18x32x8xf32>,
    %c1_150 = arith.constant 1 : index
    %c8_151 = arith.constant 8 : index
    %c0_152 = arith.constant 0 : index
    %219 = vector.load %arg14[%c1_150, %c8_151, %c0_152] : memref<18x32x8xf32, #tpu.memory_space<vmem>>, vector<16x16x8xf32>
    tpu.vector_store %arg14[%c1_150, %c8_151, %c0_152], %216 {strides = array<i32>} : memref<18x32x8xf32, #tpu.memory_space<vmem>>, vector<16x16x8xf32>,
    %c0_153 = arith.constant 0 : index
    %c0_154 = arith.constant 0 : index
    %c0_155 = arith.constant 0 : index
    %220 = vector.load %arg14[%c0_153, %c0_154, %c0_155] : memref<18x32x8xf32, #tpu.memory_space<vmem>>, vector<18x32x8xf32>
    %cst_156 = arith.constant 0.000000e+00 : f32
    %221 = vector.broadcast %cst_156 : f32 to vector<16x16x8xf32>
    %222 = vector.extract_strided_slice %220 {offsets = [0, 7, 0], sizes = [16, 16, 8], strides = [1, 1, 1]} : vector<18x32x8xf32> to vector<16x16x8xf32>
    %c18 = arith.constant 18 : index
    %c0_157 = arith.constant 0 : index
    %c0_158 = arith.constant 0 : index
    %223 = vector.load %arg9[%c18, %c0_157, %c0_158] : memref<27x8x8xf32, #tpu.memory_space<vmem>>, vector<1x8x8xf32>
    %224 = vector.shape_cast %223 : vector<1x8x8xf32> to vector<8x8xf32>
    %cst_159 = arith.constant dense<0.000000e+00> : vector<16x16x8xf32>
    %225 = tpu.matmul %222, %224, %cst_159 {dimension_numbers = #tpu.dot_dimension_numbers<[2], [0], [0, 1], [1], [0, 0, 0, 1, 1, 1], [], []>} : vector<16x16x8xf32>, vector<8x8xf32>, vector<16x16x8xf32> -> vector<16x16x8xf32>
    %226 = arith.addf %221, %225 : vector<16x16x8xf32>
    %227 = vector.extract_strided_slice %220 {offsets = [0, 8, 0], sizes = [16, 16, 8], strides = [1, 1, 1]} : vector<18x32x8xf32> to vector<16x16x8xf32>
    %c19 = arith.constant 19 : index
    %c0_160 = arith.constant 0 : index
    %c0_161 = arith.constant 0 : index
    %228 = vector.load %arg9[%c19, %c0_160, %c0_161] : memref<27x8x8xf32, #tpu.memory_space<vmem>>, vector<1x8x8xf32>
    %229 = vector.shape_cast %228 : vector<1x8x8xf32> to vector<8x8xf32>
    %cst_162 = arith.constant dense<0.000000e+00> : vector<16x16x8xf32>
    %230 = tpu.matmul %227, %229, %cst_162 {dimension_numbers = #tpu.dot_dimension_numbers<[2], [0], [0, 1], [1], [0, 0, 0, 1, 1, 1], [], []>} : vector<16x16x8xf32>, vector<8x8xf32>, vector<16x16x8xf32> -> vector<16x16x8xf32>
    %231 = arith.addf %226, %230 : vector<16x16x8xf32>
    %232 = vector.extract_strided_slice %220 {offsets = [0, 9, 0], sizes = [16, 16, 8], strides = [1, 1, 1]} : vector<18x32x8xf32> to vector<16x16x8xf32>
    %c20 = arith.constant 20 : index
    %c0_163 = arith.constant 0 : index
    %c0_164 = arith.constant 0 : index
    %233 = vector.load %arg9[%c20, %c0_163, %c0_164] : memref<27x8x8xf32, #tpu.memory_space<vmem>>, vector<1x8x8xf32>
    %234 = vector.shape_cast %233 : vector<1x8x8xf32> to vector<8x8xf32>
    %cst_165 = arith.constant dense<0.000000e+00> : vector<16x16x8xf32>
    %235 = tpu.matmul %232, %234, %cst_165 {dimension_numbers = #tpu.dot_dimension_numbers<[2], [0], [0, 1], [1], [0, 0, 0, 1, 1, 1], [], []>} : vector<16x16x8xf32>, vector<8x8xf32>, vector<16x16x8xf32> -> vector<16x16x8xf32>
    %236 = arith.addf %231, %235 : vector<16x16x8xf32>
    %237 = vector.extract_strided_slice %220 {offsets = [1, 7, 0], sizes = [16, 16, 8], strides = [1, 1, 1]} : vector<18x32x8xf32> to vector<16x16x8xf32>
    %c21 = arith.constant 21 : index
    %c0_166 = arith.constant 0 : index
    %c0_167 = arith.constant 0 : index
    %238 = vector.load %arg9[%c21, %c0_166, %c0_167] : memref<27x8x8xf32, #tpu.memory_space<vmem>>, vector<1x8x8xf32>
    %239 = vector.shape_cast %238 : vector<1x8x8xf32> to vector<8x8xf32>
    %cst_168 = arith.constant dense<0.000000e+00> : vector<16x16x8xf32>
    %240 = tpu.matmul %237, %239, %cst_168 {dimension_numbers = #tpu.dot_dimension_numbers<[2], [0], [0, 1], [1], [0, 0, 0, 1, 1, 1], [], []>} : vector<16x16x8xf32>, vector<8x8xf32>, vector<16x16x8xf32> -> vector<16x16x8xf32>
    %241 = arith.addf %236, %240 : vector<16x16x8xf32>
    %242 = vector.extract_strided_slice %220 {offsets = [1, 8, 0], sizes = [16, 16, 8], strides = [1, 1, 1]} : vector<18x32x8xf32> to vector<16x16x8xf32>
    %c22 = arith.constant 22 : index
    %c0_169 = arith.constant 0 : index
    %c0_170 = arith.constant 0 : index
    %243 = vector.load %arg9[%c22, %c0_169, %c0_170] : memref<27x8x8xf32, #tpu.memory_space<vmem>>, vector<1x8x8xf32>
    %244 = vector.shape_cast %243 : vector<1x8x8xf32> to vector<8x8xf32>
    %cst_171 = arith.constant dense<0.000000e+00> : vector<16x16x8xf32>
    %245 = tpu.matmul %242, %244, %cst_171 {dimension_numbers = #tpu.dot_dimension_numbers<[2], [0], [0, 1], [1], [0, 0, 0, 1, 1, 1], [], []>} : vector<16x16x8xf32>, vector<8x8xf32>, vector<16x16x8xf32> -> vector<16x16x8xf32>
    %246 = arith.addf %241, %245 : vector<16x16x8xf32>
    %247 = vector.extract_strided_slice %220 {offsets = [1, 9, 0], sizes = [16, 16, 8], strides = [1, 1, 1]} : vector<18x32x8xf32> to vector<16x16x8xf32>
    %c23 = arith.constant 23 : index
    %c0_172 = arith.constant 0 : index
    %c0_173 = arith.constant 0 : index
    %248 = vector.load %arg9[%c23, %c0_172, %c0_173] : memref<27x8x8xf32, #tpu.memory_space<vmem>>, vector<1x8x8xf32>
    %249 = vector.shape_cast %248 : vector<1x8x8xf32> to vector<8x8xf32>
    %cst_174 = arith.constant dense<0.000000e+00> : vector<16x16x8xf32>
    %250 = tpu.matmul %247, %249, %cst_174 {dimension_numbers = #tpu.dot_dimension_numbers<[2], [0], [0, 1], [1], [0, 0, 0, 1, 1, 1], [], []>} : vector<16x16x8xf32>, vector<8x8xf32>, vector<16x16x8xf32> -> vector<16x16x8xf32>
    %251 = arith.addf %246, %250 : vector<16x16x8xf32>
    %252 = vector.extract_strided_slice %220 {offsets = [2, 7, 0], sizes = [16, 16, 8], strides = [1, 1, 1]} : vector<18x32x8xf32> to vector<16x16x8xf32>
    %c24 = arith.constant 24 : index
    %c0_175 = arith.constant 0 : index
    %c0_176 = arith.constant 0 : index
    %253 = vector.load %arg9[%c24, %c0_175, %c0_176] : memref<27x8x8xf32, #tpu.memory_space<vmem>>, vector<1x8x8xf32>
    %254 = vector.shape_cast %253 : vector<1x8x8xf32> to vector<8x8xf32>
    %cst_177 = arith.constant dense<0.000000e+00> : vector<16x16x8xf32>
    %255 = tpu.matmul %252, %254, %cst_177 {dimension_numbers = #tpu.dot_dimension_numbers<[2], [0], [0, 1], [1], [0, 0, 0, 1, 1, 1], [], []>} : vector<16x16x8xf32>, vector<8x8xf32>, vector<16x16x8xf32> -> vector<16x16x8xf32>
    %256 = arith.addf %251, %255 : vector<16x16x8xf32>
    %257 = vector.extract_strided_slice %220 {offsets = [2, 8, 0], sizes = [16, 16, 8], strides = [1, 1, 1]} : vector<18x32x8xf32> to vector<16x16x8xf32>
    %c25 = arith.constant 25 : index
    %c0_178 = arith.constant 0 : index
    %c0_179 = arith.constant 0 : index
    %258 = vector.load %arg9[%c25, %c0_178, %c0_179] : memref<27x8x8xf32, #tpu.memory_space<vmem>>, vector<1x8x8xf32>
    %259 = vector.shape_cast %258 : vector<1x8x8xf32> to vector<8x8xf32>
    %cst_180 = arith.constant dense<0.000000e+00> : vector<16x16x8xf32>
    %260 = tpu.matmul %257, %259, %cst_180 {dimension_numbers = #tpu.dot_dimension_numbers<[2], [0], [0, 1], [1], [0, 0, 0, 1, 1, 1], [], []>} : vector<16x16x8xf32>, vector<8x8xf32>, vector<16x16x8xf32> -> vector<16x16x8xf32>
    %261 = arith.addf %256, %260 : vector<16x16x8xf32>
    %262 = vector.extract_strided_slice %220 {offsets = [2, 9, 0], sizes = [16, 16, 8], strides = [1, 1, 1]} : vector<18x32x8xf32> to vector<16x16x8xf32>
    %c26 = arith.constant 26 : index
    %c0_181 = arith.constant 0 : index
    %c0_182 = arith.constant 0 : index
    %263 = vector.load %arg9[%c26, %c0_181, %c0_182] : memref<27x8x8xf32, #tpu.memory_space<vmem>>, vector<1x8x8xf32>
    %264 = vector.shape_cast %263 : vector<1x8x8xf32> to vector<8x8xf32>
    %cst_183 = arith.constant dense<0.000000e+00> : vector<16x16x8xf32>
    %265 = tpu.matmul %262, %264, %cst_183 {dimension_numbers = #tpu.dot_dimension_numbers<[2], [0], [0, 1], [1], [0, 0, 0, 1, 1, 1], [], []>} : vector<16x16x8xf32>, vector<8x8xf32>, vector<16x16x8xf32> -> vector<16x16x8xf32>
    %266 = arith.addf %261, %265 : vector<16x16x8xf32>
    %c2_184 = arith.constant 2 : index
    %c0_185 = arith.constant 0 : index
    %267 = vector.load %arg10[%c2_184, %c0_185] : memref<3x8xf32, #tpu.memory_space<vmem>>, vector<1x8xf32>
    %268 = vector.shape_cast %267 : vector<1x8xf32> to vector<8xf32>
    %269 = vector.shape_cast %268 : vector<8xf32> to vector<1x1x8xf32>
    %270 = vector.broadcast %269 : vector<1x1x8xf32> to vector<16x16x8xf32>
    %271 = arith.mulf %266, %270 : vector<16x16x8xf32>
    %c2_186 = arith.constant 2 : index
    %c0_187 = arith.constant 0 : index
    %272 = vector.load %arg11[%c2_186, %c0_187] : memref<3x8xf32, #tpu.memory_space<vmem>>, vector<1x8xf32>
    %273 = vector.shape_cast %272 : vector<1x8xf32> to vector<8xf32>
    %274 = vector.shape_cast %273 : vector<8xf32> to vector<1x1x8xf32>
    %275 = vector.broadcast %274 : vector<1x1x8xf32> to vector<16x16x8xf32>
    %276 = arith.addf %271, %275 : vector<16x16x8xf32>
    %277 = arith.addf %41, %276 : vector<16x16x8xf32>
    %c0_188 = arith.constant 0 : index
    %c0_189 = arith.constant 0 : index
    %c0_190 = arith.constant 0 : index
    %c0_191 = arith.constant 0 : index
    %278 = vector.load %arg13[%c0_188, %c0_189, %c0_190, %c0_191] : memref<4x16x16x8xf32, #tpu.memory_space<vmem>>, vector<1x16x16x8xf32>
    %279 = vector.shape_cast %278 : vector<1x16x16x8xf32> to vector<16x16x8xf32>
    %280 = vector.shape_cast %104 : vector<16x16x8xf32> to vector<1x16x16x8xf32>
    tpu.vector_store %arg13[%c0_188, %c0_189, %c0_190, %c0_191], %280 {strides = array<i32>} : memref<4x16x16x8xf32, #tpu.memory_space<vmem>>, vector<1x16x16x8xf32>,
    %c1_192 = arith.constant 1 : index
    %c0_193 = arith.constant 0 : index
    %c0_194 = arith.constant 0 : index
    %c0_195 = arith.constant 0 : index
    %281 = vector.load %arg13[%c1_192, %c0_193, %c0_194, %c0_195] : memref<4x16x16x8xf32, #tpu.memory_space<vmem>>, vector<1x16x16x8xf32>
    %282 = vector.shape_cast %281 : vector<1x16x16x8xf32> to vector<16x16x8xf32>
    %283 = vector.shape_cast %126 : vector<16x16x8xf32> to vector<1x16x16x8xf32>
    tpu.vector_store %arg13[%c1_192, %c0_193, %c0_194, %c0_195], %283 {strides = array<i32>} : memref<4x16x16x8xf32, #tpu.memory_space<vmem>>, vector<1x16x16x8xf32>,
    %c2_196 = arith.constant 2 : index
    %c0_197 = arith.constant 0 : index
    %c0_198 = arith.constant 0 : index
    %c0_199 = arith.constant 0 : index
    %284 = vector.load %arg13[%c2_196, %c0_197, %c0_198, %c0_199] : memref<4x16x16x8xf32, #tpu.memory_space<vmem>>, vector<1x16x16x8xf32>
    %285 = vector.shape_cast %284 : vector<1x16x16x8xf32> to vector<16x16x8xf32>
    %286 = vector.shape_cast %214 : vector<16x16x8xf32> to vector<1x16x16x8xf32>
    tpu.vector_store %arg13[%c2_196, %c0_197, %c0_198, %c0_199], %286 {strides = array<i32>} : memref<4x16x16x8xf32, #tpu.memory_space<vmem>>, vector<1x16x16x8xf32>,
    %c3_200 = arith.constant 3 : index
    %c0_201 = arith.constant 0 : index
    %c0_202 = arith.constant 0 : index
    %c0_203 = arith.constant 0 : index
    %287 = vector.load %arg13[%c3_200, %c0_201, %c0_202, %c0_203] : memref<4x16x16x8xf32, #tpu.memory_space<vmem>>, vector<1x16x16x8xf32>
    %288 = vector.shape_cast %287 : vector<1x16x16x8xf32> to vector<16x16x8xf32>
    %289 = vector.shape_cast %277 : vector<16x16x8xf32> to vector<1x16x16x8xf32>
    tpu.vector_store %arg13[%c3_200, %c0_201, %c0_202, %c0_203], %289 {strides = array<i32>} : memref<4x16x16x8xf32, #tpu.memory_space<vmem>>, vector<1x16x16x8xf32>,
    return
  }
  func.func @transform_0(%arg0: i32) -> (i32, i32, i32, i32) {
    %c0_i32 = arith.constant 0 : i32
    %c0_i32_0 = arith.constant 0 : i32
    %c0_i32_1 = arith.constant 0 : i32
    %c0_i32_2 = arith.constant 0 : i32
    return %arg0, %c0_i32, %c0_i32_0, %c0_i32_1 : i32, i32, i32, i32
  }
  func.func @transform_1(%arg0: i32) -> (i32, i32, i32, i32) {
    %c0_i32 = arith.constant 0 : i32
    %c0_i32_0 = arith.constant 0 : i32
    %c0_i32_1 = arith.constant 0 : i32
    %c0_i32_2 = arith.constant 0 : i32
    return %arg0, %c0_i32, %c0_i32_0, %c0_i32_1 : i32, i32, i32, i32
  }
  func.func @transform_2(%arg0: i32) -> (i32, i32, i32, i32) {
    %c0_i32 = arith.constant 0 : i32
    %c0_i32_0 = arith.constant 0 : i32
    %c0_i32_1 = arith.constant 0 : i32
    %c0_i32_2 = arith.constant 0 : i32
    return %arg0, %c0_i32, %c0_i32_0, %c0_i32_1 : i32, i32, i32, i32
  }
  func.func @transform_3(%arg0: i32) -> (i32, i32) {
    %c0_i32 = arith.constant 0 : i32
    %c0_i32_0 = arith.constant 0 : i32
    %c0_i32_1 = arith.constant 0 : i32
    return %c0_i32, %c0_i32_0 : i32, i32
  }
  func.func @transform_4(%arg0: i32) -> (i32, i32) {
    %c0_i32 = arith.constant 0 : i32
    %c0_i32_0 = arith.constant 0 : i32
    %c0_i32_1 = arith.constant 0 : i32
    return %c0_i32, %c0_i32_0 : i32, i32
  }
  func.func @transform_5(%arg0: i32) -> (i32, i32) {
    %c0_i32 = arith.constant 0 : i32
    %c0_i32_0 = arith.constant 0 : i32
    %c0_i32_1 = arith.constant 0 : i32
    return %c0_i32, %c0_i32_0 : i32, i32
  }
  func.func @transform_6(%arg0: i32) -> (i32, i32) {
    %c0_i32 = arith.constant 0 : i32
    %c0_i32_0 = arith.constant 0 : i32
    %c0_i32_1 = arith.constant 0 : i32
    return %c0_i32, %c0_i32_0 : i32, i32
  }
  func.func @transform_7(%arg0: i32) -> (i32, i32) {
    %c0_i32 = arith.constant 0 : i32
    %c0_i32_0 = arith.constant 0 : i32
    %c0_i32_1 = arith.constant 0 : i32
    return %c0_i32, %c0_i32_0 : i32, i32
  }
  func.func @transform_8(%arg0: i32) -> (i32, i32, i32) {
    %c0_i32 = arith.constant 0 : i32
    %c0_i32_0 = arith.constant 0 : i32
    %c0_i32_1 = arith.constant 0 : i32
    %c0_i32_2 = arith.constant 0 : i32
    return %c0_i32, %c0_i32_0, %c0_i32_1 : i32, i32, i32
  }
  func.func @transform_9(%arg0: i32) -> (i32, i32) {
    %c0_i32 = arith.constant 0 : i32
    %c0_i32_0 = arith.constant 0 : i32
    %c0_i32_1 = arith.constant 0 : i32
    return %c0_i32, %c0_i32_0 : i32, i32
  }
  func.func @transform_10(%arg0: i32) -> (i32, i32) {
    %c0_i32 = arith.constant 0 : i32
    %c0_i32_0 = arith.constant 0 : i32
    %c0_i32_1 = arith.constant 0 : i32
    return %c0_i32, %c0_i32_0 : i32, i32
  }
  func.func @transform_11(%arg0: i32) -> (i32, i32, i32) {
    %c0_i32 = arith.constant 0 : i32
    %c0_i32_0 = arith.constant 0 : i32
    %c0_i32_1 = arith.constant 0 : i32
    %c0_i32_2 = arith.constant 0 : i32
    return %c0_i32, %c0_i32_0, %c0_i32_1 : i32, i32, i32
  }
  func.func @transform_12(%arg0: i32) -> (i32, i32, i32, i32) {
    %c0_i32 = arith.constant 0 : i32
    %c0_i32_0 = arith.constant 0 : i32
    %c0_i32_1 = arith.constant 0 : i32
    %c0_i32_2 = arith.constant 0 : i32
    return %arg0, %c0_i32, %c0_i32_0, %c0_i32_1 : i32, i32, i32, i32
  }
}

</mosaic_0001>

<bundles_post_ra>
// kernel: tpu_custom_call.1
= control target key start
LH: loop header
LB: loop body
LE: loop exit
PB: predicated region body
PF: predicated region fallthrough
CT: control target
= control target key end

     0   :  { %s17747_s21 = smov 0   ;;  %s25387_s0 = inlined_call_operand.vmem [shape: f32[2,16,16,4], index: 0, kind: input, shape index: {}]   ;;  %s25388_s1 = inlined_call_operand.vmem [shape: f32[2,16,16,6], index: 1, kind: input, shape index: {}]   ;;  %s25389_s2 = inlined_call_operand.vmem [shape: f32[2,16,16,8], index: 2, kind: input, shape index: {}]   ;;  %s25390_s3 = inlined_call_operand.vmem [shape: f32[4,8], index: 3, kind: input, shape index: {}]   ;;  %s25391_s4 = inlined_call_operand.vmem [shape: f32[6,8], index: 4, kind: input, shape index: {}]   ;;  %s25392_s5 = inlined_call_operand.vmem [shape: f32[8,8], index: 5, kind: input, shape index: {}]   ;;  %s25393_s6 = inlined_call_operand.vmem [shape: f32[1,8], index: 6, kind: input, shape index: {}]   ;;  %s25394_s7 = inlined_call_operand.vmem [shape: f32[1,8], index: 7, kind: input, shape index: {}]   ;;  %s25395_s8 = inlined_call_operand.vmem [shape: f32[27,8,8], index: 8, kind: input, shape index: {}]   ;;  %s25396_s9 = inlined_call_operand.vmem [shape: f32[3,8], index: 9, kind: input, shape index: {}]   ;;  %s25397_s10 = inlined_call_operand.vmem [shape: f32[3,8], index: 10, kind: input, shape index: {}]   ;;  %s25398_s11 = inlined_call_operand.vmem [shape: f32[16,16,8], index: 11, kind: input, shape index: {}]   ;;  %s25399_s12 = inlined_call_operand.vmem [shape: f32[8,16,16,8], index: 12, kind: output, shape index: {}]  }
   0x1 LB: > { %s17753_s22 = sadd.s32 4294967295, %s17678_s21   ;;  %p13268_p0 = scmp.ge.s32.totalorder %s17678_s21, 1  ;;  %s17678_s21 = sphi %s17747_s21, %s22_s21  }
   0x2   : > { %p382_p1 = scmp.lt.s32.totalorder %s17678_s21, 3 }
   0x4   : > { %p383_p2 = pnand %p13268_p0, %p382_p1 }
   0x6   : > { %386 = sbr.rel (%p383_p2) target bundleno = 2122 (0x84a), region = 68 }
   0xd   : > { %v489_v0 = vld [vmem:[%s25390_s3] sm:$0xf]  ;;  %vm619_vm0 = vcmask 1043456   ;;  %p435_p3 = scmp.lt.s32.totalorder %s17753_s22, 1  ;;  %vm1088_vm1 = vcmask 1045504   ;;  %vm522_vm2 = vcmask 31744  }
   0xe   : > { %15366 = vmatprep.subr.msk.mxu0 %vm619_vm0, %v489_v0  ;;  %v958_v1 = vld [vmem:[%s25391_s4] sm:$0x3f]  ;;  %vm991_vm3 = vcmask 48128   ;;  %vm1446_vm4 = vcmask 64512   ;;  %vm2381_vm5 = vcmask 1040384   ;;  %vm2769_vm6 = vcmask 1046528  }
   0xf   : > { %15367 = vmatpush3.msk.msra.mxu0 %vm619_vm0, %v489_v0  ;;  %s436_s27 = scalar_select %p435_p3, %s17753_s22, 1  ;;  %v17803_v29 = vld [vmem:[%s25392_s5] sm:$0xff] }
  0x10   : > { %15416 = vmatprep.subr.msk.mxu0 %vm1088_vm1, %v958_v1  ;;  %s13275_s24 = sshll.u32 %s17753_s22, 2 }
  0x11   : > { %s17766_s28 = sshll.u32 %s436_s27, 8  ;;  %p22147_p4 = scmp.lt.s32.totalorder %s13275_s24, 7 }
  0x12   : > { %s17772_s13 = scalar_lea.vmem %s25387_s0, %s17766_s28  ;;  %s17843_s18 = scalar_lea.vmem %s25388_s1, %s17766_s28 }
  0x13   : > { %v457_v2 = vld [vmem:[%s17772_s13] sm:$0xff]  ;;  %v458_v3 = vld [vmem:[%s17772_s13 + $0x8] sm:$0xff]  ;;  %v459_v4 = vld [vmem:[%s17772_s13 + $0x10] sm:$0xff]  ;;  %s17917_s25 = scalar_lea.vmem %s25389_s2, %s17766_s28  ;;  %s27199_s24 = smov (!%p22147_p4, %s13275_s24), 7 }
  0x14   : > { %v490_v5 = vmax.f32 %v457_v2, 0.0  ;;  %v491_v6 = vmax.f32 %v458_v3, 0.0  ;;  %v492_v7 = vmax.f32 %v459_v4, 0.0  ;;  %v460_v8 = vld [vmem:[%s17772_s13 + $0x18] sm:$0xff]  ;;  %v461_v9 = vld [vmem:[%s17772_s13 + $0x20] sm:$0xff]  ;;  %v462_v12 = vld [vmem:[%s17772_s13 + $0x28] sm:$0xff] }
  0x15   : > { %v493_v10 = vmax.f32 %v460_v8, 0.0  ;;  %v494_v11 = vmax.f32 %v461_v9, 0.0  ;;  %v463_v13 = vld [vmem:[%s17772_s13 + $0x30] sm:$0xff]  ;;  %v495_v14 = vmax.f32 %v462_v12, 0.0  ;;  %v464_v16 = vld [vmem:[%s17772_s13 + $0x38] sm:$0xff]  ;;  %v465_v17 = vld [vmem:[%s17772_s13 + $0x40] sm:$0xff] }
  0x16   : > { %15368 = vmatprep.mubr.msk.f32.mxu0 %vm522_vm2, %v490_v5  ;;  %v496_v15 = vmax.f32 %v463_v13, 0.0  ;;  %v497_v18 = vmax.f32 %v464_v16, 0.0  ;;  %v498_v19 = vmax.f32 %v465_v17, 0.0  ;;  %v466_v20 = vld [vmem:[%s17772_s13 + $0x48] sm:$0xff]  ;;  %v467_v21 = vld [vmem:[%s17772_s13 + $0x50] sm:$0xff]  ;;  %v468_v24 = vld [vmem:[%s17772_s13 + $0x58] sm:$0xff] }
  0x17   : > { %15369 = vmatmul.mubr.msk.f32.vlgmr.msra.gmra.mrb[0].mxu0 %vm522_vm2, %v491_v6  ;;  %v499_v22 = vmax.f32 %v466_v20, 0.0  ;;  %v500_v23 = vmax.f32 %v467_v21, 0.0  ;;  %v469_v25 = vld [vmem:[%s17772_s13 + $0x60] sm:$0xff]  ;;  %v501_v26 = vmax.f32 %v468_v24, 0.0  ;;  %v470_v28 = vld [vmem:[%s17772_s13 + $0x68] sm:$0xff]  ;;  %v471_v30 = vld [vmem:[%s17772_s13 + $0x70] sm:$0xff] }
  0x18   : > { %15417 = vmatpush3.msk.msra.mxu0 %vm1088_vm1, %v958_v1  ;;  %15371 = vmatprep.mubr.msk.f32.mxu0 %vm522_vm2, %v492_v7  ;;  %v502_v27 = vmax.f32 %v469_v25, 0.0  ;;  %v503_v31 = vmax.f32 %v470_v28, 0.0  ;;  %v504_v32 = vmax.f32 %v471_v30, 0.0  ;;  %v472_v33 = vld [vmem:[%s17772_s13 + $0x78] sm:$0xff]  ;;  %v473_v34 = vld [vmem:[%s17772_s13 + $0x80] sm:$0xff]  ;;  %v474_v37 = vld [vmem:[%s17772_s13 + $0x88] sm:$0xff] }
  0x19   : > { %15466 = vmatprep.subr.mxu0 %v17803_v29  ;;  %v505_v35 = vmax.f32 %v472_v33, 0.0  ;;  %v506_v36 = vmax.f32 %v473_v34, 0.0  ;;  %v475_v38 = vld [vmem:[%s17772_s13 + $0x90] sm:$0xff]  ;;  %v507_v39 = vmax.f32 %v474_v37, 0.0  ;;  %v476_v41 = vld [vmem:[%s17772_s13 + $0x98] sm:$0xff]  ;;  %v477_v42 = vld [vmem:[%s17772_s13 + $0xa0] sm:$0xff] }
  0x1a   : > { %v508_v40 = vmax.f32 %v475_v38, 0.0  ;;  %v509_v43 = vmax.f32 %v476_v41, 0.0  ;;  %v510_v44 = vmax.f32 %v477_v42, 0.0  ;;  %v478_v45 = vld [vmem:[%s17772_s13 + $0xa8] sm:$0xff]  ;;  %v479_v46 = vld [vmem:[%s17772_s13 + $0xb0] sm:$0xff]  ;;  %v480_v49 = vld [vmem:[%s17772_s13 + $0xb8] sm:$0xff] }
  0x1b   : > { %15372 = vmatmul.mubr.msk.f32.gmra.mrb[2].mxu0 %vm522_vm2, %v493_v10  ;;  %v511_v47 = vmax.f32 %v478_v45, 0.0  ;;  %v512_v48 = vmax.f32 %v479_v46, 0.0  ;;  %v481_v50 = vld [vmem:[%s17772_s13 + $0xc0] sm:$0xff]  ;;  %v513_v51 = vmax.f32 %v480_v49, 0.0  ;;  %v482_v53 = vld [vmem:[%s17772_s13 + $0xc8] sm:$0xff]  ;;  %v483_v54 = vld [vmem:[%s17772_s13 + $0xd0] sm:$0xff] }
  0x1c   : > { %15374 = vmatprep.mubr.msk.f32.mxu0 %vm522_vm2, %v494_v11  ;;  %v514_v52 = vmax.f32 %v481_v50, 0.0  ;;  %v515_v55 = vmax.f32 %v482_v53, 0.0  ;;  %v516_v56 = vmax.f32 %v483_v54, 0.0  ;;  %v484_v57 = vld [vmem:[%s17772_s13 + $0xd8] sm:$0xff]  ;;  %v485_v58 = vld [vmem:[%s17772_s13 + $0xe0] sm:$0xff]  ;;  %v486_v61 = vld [vmem:[%s17772_s13 + $0xe8] sm:$0xff] }
  0x1d   : > { %v517_v59 = vmax.f32 %v484_v57, 0.0  ;;  %v518_v60 = vmax.f32 %v485_v58, 0.0  ;;  %v487_v62 = vld [vmem:[%s17772_s13 + $0xf0] sm:$0xff]  ;;  %v519_v63 = vmax.f32 %v486_v61, 0.0  ;;  %v488_v1 = vld [vmem:[%s17772_s13 + $0xf8] sm:$0xff]  ;;  %v926_v2 = vld [vmem:[%s17843_s18] sm:$0xff] }
  0x1e   : > { %v520_v0 = vmax.f32 %v487_v62, 0.0  ;;  %v521_v3 = vmax.f32 %v488_v1, 0.0  ;;  %v959_v4 = vmax.f32 %v926_v2, 0.0  ;;  %v927_v5 = vld [vmem:[%s17843_s18 + $0x8] sm:$0xff]  ;;  %v928_v6 = vld [vmem:[%s17843_s18 + $0x10] sm:$0xff]  ;;  %v929_v9 = vld [vmem:[%s17843_s18 + $0x18] sm:$0xff] }
  0x1f   : > { %15375 = vmatmul.mubr.msk.f32.gmra.mrb[4].mxu0 %vm522_vm2, %v495_v14  ;;  %v960_v7 = vmax.f32 %v927_v5, 0.0  ;;  %v961_v8 = vmax.f32 %v928_v6, 0.0  ;;  %v930_v10 = vld [vmem:[%s17843_s18 + $0x20] sm:$0xff]  ;;  %v962_v11 = vmax.f32 %v929_v9, 0.0  ;;  %v931_v13 = vld [vmem:[%s17843_s18 + $0x28] sm:$0xff]  ;;  %v932_v14 = vld [vmem:[%s17843_s18 + $0x30] sm:$0xff] }
  0x20   : > { %15377 = vmatprep.mubr.msk.f32.mxu0 %vm522_vm2, %v496_v15  ;;  %v963_v12 = vmax.f32 %v930_v10, 0.0  ;;  %v964_v15 = vmax.f32 %v931_v13, 0.0  ;;  %v965_v16 = vmax.f32 %v932_v14, 0.0  ;;  %v933_v17 = vld [vmem:[%s17843_s18 + $0x38] sm:$0xff]  ;;  %v935_v21 = vld [vmem:[%s17843_s18 + $0x48] sm:$0xff]  ;;  %v940_v30 = vld [vmem:[%s17843_s18 + $0x70] sm:$0xff] }
  0x21   : > { %v937_v25 = vld [vmem:[%s17843_s18 + $0x58] sm:$0xff]  ;;  %v942_v34 = vld [vmem:[%s17843_s18 + $0x80] sm:$0xff]  ;;  %v943_v37 = vld [vmem:[%s17843_s18 + $0x88] sm:$0xff]  ;;  %s14375_s19 = sshll.u32 %s27199_s24, 8 }
  0x22   : > { %v941_v33 = vld [vmem:[%s17843_s18 + $0x78] sm:$0xff]  ;;  %v944_v38 = vld [vmem:[%s17843_s18 + $0x90] sm:$0xff]  ;;  %v946_v42 = vld [vmem:[%s17843_s18 + $0xa0] sm:$0xff]  ;;  %s22275_s24 = scalar_lea.vmem %s25399_s12, %s14375_s19 }
  0x23   : > { %15378 = vmatmul.mubr.msk.f32.gmra.mrb[6].mxu0 %vm522_vm2, %v497_v18  ;;  %v934_v18 = vld [vmem:[%s17843_s18 + $0x40] sm:$0xff]  ;;  %v945_v41 = vld [vmem:[%s17843_s18 + $0x98] sm:$0xff]  ;;  %v947_v45 = vld [vmem:[%s17843_s18 + $0xa8] sm:$0xff] }
  0x24   : > { %15380 = vmatprep.mubr.msk.f32.mxu0 %vm522_vm2, %v498_v19  ;;  %v966_v19 = vmax.f32 %v933_v17, 0.0  ;;  %v967_v20 = vmax.f32 %v934_v18, 0.0  ;;  %v948_v46 = vld [vmem:[%s17843_s18 + $0xb0] sm:$0xff]  ;;  %v949_v50 = vld [vmem:[%s17843_s18 + $0xb8] sm:$0xff]  ;;  %v951_v54 = vld [vmem:[%s17843_s18 + $0xc8] sm:$0xff] }
  0x25   : > { %v981_v49 = vmax.f32 %v948_v46, 0.0  ;;  %v953_v58 = vld [vmem:[%s17843_s18 + $0xd8] sm:$0xff]  ;;  %v955_v62 = vld [vmem:[%s17843_s18 + $0xe8] sm:$0xff] }
  0x26   : > { %v957_v2 = vld [vmem:[%s17843_s18 + $0xf8] sm:$0xff]  ;;  %v1382_v6 = vld [vmem:[%s17917_s25 + $0x8] sm:$0xff] }
  0x27   : > { %15381 = vmatmul.mubr.msk.f32.gmra.mrb[8].mxu0 %vm522_vm2, %v499_v22  ;;  %v936_v22 = vld [vmem:[%s17843_s18 + $0x50] sm:$0xff]  ;;  %v1384_v10 = vld [vmem:[%s17917_s25 + $0x18] sm:$0xff]  ;;  %v1386_v14 = vld [vmem:[%s17917_s25 + $0x28] sm:$0xff] }
  0x28   : > { %15383 = vmatprep.mubr.msk.f32.mxu0 %vm522_vm2, %v500_v23  ;;  %v968_v23 = vmax.f32 %v935_v21, 0.0  ;;  %v969_v24 = vmax.f32 %v936_v22, 0.0  ;;  %v1388_v18 = vld [vmem:[%s17917_s25 + $0x38] sm:$0xff]  ;;  %v1390_v22 = vld [vmem:[%s17917_s25 + $0x48] sm:$0xff] }
  0x2b   : > { %15384 = vmatmul.mubr.msk.f32.gmra.mrb[10].mxu0 %vm522_vm2, %v501_v26  ;;  %v938_v26 = vld [vmem:[%s17843_s18 + $0x60] sm:$0xff] }
  0x2c   : > { %15386 = vmatprep.mubr.msk.f32.mxu0 %vm522_vm2, %v502_v27  ;;  %v970_v27 = vmax.f32 %v937_v25, 0.0  ;;  %v971_v28 = vmax.f32 %v938_v26, 0.0  ;;  %v1392_v26 = vld [vmem:[%s17917_s25 + $0x58] sm:$0xff] }
  0x2f   : > { %15387 = vmatmul.mubr.msk.f32.gmra.mrb[12].mxu0 %vm522_vm2, %v503_v31 }
  0x30   : > { %15389 = vmatprep.mubr.msk.f32.mxu0 %vm522_vm2, %v504_v32  ;;  %v973_v32 = vmax.f32 %v940_v30, 0.0  ;;  %v17950_v30 = vld [vmem:[%s17917_s25 + $0x68] sm:$0xff] }
  0x33   : > { %15390 = vmatmul.mubr.msk.f32.gmra.mrb[14].mxu0 %vm522_vm2, %v505_v35  ;;  %v974_v35 = vmax.f32 %v941_v33, 0.0 }
  0x34   : > { %15392 = vmatprep.mubr.msk.f32.mxu0 %vm522_vm2, %v506_v36  ;;  %v975_v36 = vmax.f32 %v942_v34, 0.0  ;;  %v17960_v34 = vld [vmem:[%s17917_s25 + $0x78] sm:$0xff] }
  0x37   : > { %15393 = vmatmul.mubr.msk.f32.gmra.mrb[16].mxu0 %vm522_vm2, %v507_v39  ;;  %v976_v39 = vmax.f32 %v943_v37, 0.0  ;;  %v1429_v37 = vmax.f32 %v17960_v34, 0.0 }
  0x38   : > { %15395 = vmatprep.mubr.msk.f32.mxu0 %vm522_vm2, %v508_v40  ;;  %v977_v40 = vmax.f32 %v944_v38, 0.0 }
  0x3b   : > { %15396 = vmatmul.mubr.msk.f32.gmra.mrb[18].mxu0 %vm522_vm2, %v509_v43  ;;  %v978_v43 = vmax.f32 %v945_v41, 0.0 }
  0x3c   : > { %15398 = vmatprep.mubr.msk.f32.mxu0 %vm522_vm2, %v510_v44  ;;  %v979_v44 = vmax.f32 %v946_v42, 0.0 }
  0x3f   : > { %15399 = vmatmul.mubr.msk.f32.gmra.mrb[20].mxu0 %vm522_vm2, %v511_v47  ;;  %v980_v47 = vmax.f32 %v947_v45, 0.0 }
  0x40   : > { %15401 = vmatprep.mubr.msk.f32.mxu0 %vm522_vm2, %v512_v48  ;;  %v13378_v48 = vld [vmem:[%s25395_s8 + $0x8] sm:$0xff] }
  0x43   : > { %15402 = vmatmul.mubr.msk.f32.gmra.mrb[22].mxu0 %vm522_vm2, %v513_v51  ;;  %v950_v51 = vld [vmem:[%s17843_s18 + $0xc0] sm:$0xff] }
  0x44   : > { %15404 = vmatprep.mubr.msk.f32.mxu0 %vm522_vm2, %v514_v52  ;;  %v982_v52 = vmax.f32 %v949_v50, 0.0  ;;  %v983_v53 = vmax.f32 %v950_v51, 0.0  ;;  %v1405_v51 = vld [vmem:[%s17917_s25 + $0xc0] sm:$0xff] }
  0x47   : > { %15405 = vmatmul.mubr.msk.f32.gmra.mrb[24].mxu0 %vm522_vm2, %v515_v55  ;;  %v952_v55 = vld [vmem:[%s17843_s18 + $0xd0] sm:$0xff] }
  0x48   : > { %15407 = vmatprep.mubr.msk.f32.mxu0 %vm522_vm2, %v516_v56  ;;  %v984_v56 = vmax.f32 %v951_v54, 0.0  ;;  %v985_v57 = vmax.f32 %v952_v55, 0.0 }
  0x4b   : > { %15408 = vmatmul.mubr.msk.f32.gmra.mrb[26].mxu0 %vm522_vm2, %v517_v59  ;;  %v954_v59 = vld [vmem:[%s17843_s18 + $0xe0] sm:$0xff] }
  0x4c   : > { %15410 = vmatprep.mubr.msk.f32.mxu0 %vm522_vm2, %v518_v60  ;;  %v986_v60 = vmax.f32 %v953_v58, 0.0  ;;  %v987_v61 = vmax.f32 %v954_v59, 0.0  ;;  %v18145_v58 = vld [vmem:[%s25395_s8] sm:$0xff] }
  0x4f   : > { %15411 = vmatmul.mubr.msk.f32.gmra.mrb[28].mxu0 %vm522_vm2, %v519_v63  ;;  %v956_v63 = vld [vmem:[%s17843_s18 + $0xf0] sm:$0xff] }
  0x50   : > { %15413 = vmatprep.mubr.msk.f32.mxu0 %vm522_vm2, %v520_v0  ;;  %v988_v0 = vmax.f32 %v955_v62, 0.0  ;;  %v989_v1 = vmax.f32 %v956_v63, 0.0  ;;  %v1438_v63 = vmax.f32 %v1405_v51, 0.0 }
  0x53   : > { %15414 = vmatmul.mubr.msk.f32.gmra.mrb[30].mxu0 %vm522_vm2, %v521_v3  ;;  %v1381_v3 = vld [vmem:[%s17917_s25] sm:$0xff] }
  0x54   : > { %15418 = vmatprep.mubr.msk.f32.mxu0 %vm991_vm3, %v959_v4  ;;  %v990_v4 = vmax.f32 %v957_v2, 0.0  ;;  %v1414_v5 = vmax.f32 %v1381_v3, 0.0 }
  0x57   : > { %15419 = vmatmul.mubr.msk.f32.vlgmr.msra.gmra.mrb[32].mxu0 %vm991_vm3, %v960_v7  ;;  %v1383_v7 = vld [vmem:[%s17917_s25 + $0x10] sm:$0xff] }
  0x58   : > { %15421 = vmatprep.mubr.msk.f32.mxu0 %vm991_vm3, %v961_v8  ;;  %15467 = vmatpush3.msra.mxu0 %v17803_v29  ;;  %v939_v29 = vld [vmem:[%s17843_s18 + $0x68] sm:$0xff]  ;;  %v1415_v8 = vmax.f32 %v1382_v6, 0.0  ;;  %v1416_v9 = vmax.f32 %v1383_v7, 0.0  ;;  %v1408_v6 = vld [vmem:[%s17917_s25 + $0xd8] sm:$0xff]  ;;  %v1409_v7 = vld [vmem:[%s17917_s25 + $0xe0] sm:$0xff] }
  0x59   : > { %v972_v31 = vmax.f32 %v939_v29, 0.0  ;;  %15516 = vmatprep.subr.mxu0 %v13378_v48 }
  0x5b   : > { %15422 = vmatmul.mubr.msk.f32.gmra.mrb[34].mxu0 %vm991_vm3, %v962_v11  ;;  %v1385_v11 = vld [vmem:[%s17917_s25 + $0x20] sm:$0xff] }
  0x5c   : > { %15424 = vmatprep.mubr.msk.f32.mxu0 %vm991_vm3, %v963_v12  ;;  %v1417_v12 = vmax.f32 %v1384_v10, 0.0  ;;  %v1418_v13 = vmax.f32 %v1385_v11, 0.0  ;;  %v1441_v11 = vmax.f32 %v1408_v6, 0.0 }
  0x5f   : > { %15425 = vmatmul.mubr.msk.f32.gmra.mrb[36].mxu0 %vm991_vm3, %v964_v15  ;;  %v1387_v15 = vld [vmem:[%s17917_s25 + $0x30] sm:$0xff] }
  0x60   : > { %15427 = vmatprep.mubr.msk.f32.mxu0 %vm991_vm3, %v965_v16  ;;  %v1419_v16 = vmax.f32 %v1386_v14, 0.0  ;;  %v1420_v17 = vmax.f32 %v1387_v15, 0.0  ;;  %v1411_v14 = vld [vmem:[%s17917_s25 + $0xf0] sm:$0xff] }
  0x63   : > { %15428 = vmatmul.mubr.msk.f32.gmra.mrb[38].mxu0 %vm991_vm3, %v966_v19  ;;  %v1389_v19 = vld [vmem:[%s17917_s25 + $0x40] sm:$0xff] }
  0x64   : > { %15430 = vmatprep.mubr.msk.f32.mxu0 %vm991_vm3, %v967_v20  ;;  %v1421_v20 = vmax.f32 %v1388_v18, 0.0  ;;  %v1422_v21 = vmax.f32 %v1389_v19, 0.0  ;;  %v1444_v18 = vmax.f32 %v1411_v14, 0.0  ;;  %v1412_v19 = vld [vmem:[%s17917_s25 + $0xf8] sm:$0xff] }
  0x67   : > { %15431 = vmatmul.mubr.msk.f32.gmra.mrb[40].mxu0 %vm991_vm3, %v968_v23  ;;  %v1391_v23 = vld [vmem:[%s17917_s25 + $0x50] sm:$0xff] }
  0x68   : > { %15433 = vmatprep.mubr.msk.f32.mxu0 %vm991_vm3, %v969_v24  ;;  %v1423_v24 = vmax.f32 %v1390_v22, 0.0  ;;  %v1424_v25 = vmax.f32 %v1391_v23, 0.0  ;;  %v1445_v22 = vmax.f32 %v1412_v19, 0.0  ;;  %v13443_v19 = vld [vmem:[%s25395_s8 + $0x10] sm:$0xff] }
  0x6b   : > { %15434 = vmatmul.mubr.msk.f32.gmra.mrb[42].mxu0 %vm991_vm3, %v970_v27  ;;  %v1393_v27 = vld [vmem:[%s17917_s25 + $0x60] sm:$0xff] }
  0x6c   : > { %15436 = vmatprep.mubr.msk.f32.mxu0 %vm991_vm3, %v971_v28  ;;  %v1425_v28 = vmax.f32 %v1392_v26, 0.0  ;;  %v1426_v29 = vmax.f32 %v1393_v27, 0.0 }
  0x6f   : > { %15437 = vmatmul.mubr.msk.f32.gmra.mrb[44].mxu0 %vm991_vm3, %v972_v31  ;;  %v17953_v31 = vld [vmem:[%s17917_s25 + $0x70] sm:$0xff] }
  0x70   : > { %15439 = vmatprep.mubr.msk.f32.mxu0 %vm991_vm3, %v973_v32  ;;  %v1427_v32 = vmax.f32 %v17950_v30, 0.0  ;;  %v1428_v33 = vmax.f32 %v17953_v31, 0.0 }
  0x73   : > { %15440 = vmatmul.mubr.msk.f32.gmra.mrb[46].mxu0 %vm991_vm3, %v974_v35  ;;  %v17963_v35 = vld [vmem:[%s17917_s25 + $0x80] sm:$0xff] }
  0x74   : > { %15442 = vmatprep.mubr.msk.f32.mxu0 %vm991_vm3, %v975_v36  ;;  %v25409_v36 = vmov 0.0   ;;  %v1430_v38 = vmax.f32 %v17963_v35, 0.0 }
  0x75   : > { %1870 = vst.msk [vmem:[#allocation2 + $0x30] sm:$0xff] %vm1446_vm4, %v25409_v36  ;;  %1864 = vst.msk [vmem:[#allocation2] sm:$0xff] %vm1446_vm4, %v25409_v36 }
  0x76   : > { %1865 = vst.msk [vmem:[#allocation2 + $0x8] sm:$0xff] %vm1446_vm4, %v25409_v36  ;;  %1866 = vst.msk [vmem:[#allocation2 + $0x10] sm:$0xff] %vm1446_vm4, %v25409_v36 }
  0x77   : > { %15443 = vmatmul.mubr.msk.f32.gmra.mrb[48].mxu0 %vm991_vm3, %v976_v39  ;;  %1867 = vst.msk [vmem:[#allocation2 + $0x18] sm:$0xff] %vm1446_vm4, %v25409_v36  ;;  %1868 = vst.msk [vmem:[#allocation2 + $0x20] sm:$0xff] %vm1446_vm4, %v25409_v36  ;;  %v1398_v39 = vld [vmem:[%s17917_s25 + $0x88] sm:$0xff] }
  0x78   : > { %15445 = vmatprep.mubr.msk.f32.mxu0 %vm991_vm3, %v977_v40  ;;  %1869 = vst.msk [vmem:[#allocation2 + $0x28] sm:$0xff] %vm1446_vm4, %v25409_v36  ;;  %1871 = vst.msk [vmem:[#allocation2 + $0x38] sm:$0xff] %vm1446_vm4, %v25409_v36  ;;  %v1399_v40 = vld [vmem:[%s17917_s25 + $0x90] sm:$0xff]  ;;  %v1431_v41 = vmax.f32 %v1398_v39, 0.0 }
  0x79   : > { %1872 = vst.msk [vmem:[#allocation2 + $0x40] sm:$0xff] %vm1446_vm4, %v25409_v36  ;;  %1873 = vst.msk [vmem:[#allocation2 + $0x48] sm:$0xff] %vm1446_vm4, %v25409_v36  ;;  %v1432_v42 = vmax.f32 %v1399_v40, 0.0 }
  0x7a   : > { %1874 = vst.msk [vmem:[#allocation2 + $0x50] sm:$0xff] %vm1446_vm4, %v25409_v36  ;;  %1875 = vst.msk [vmem:[#allocation2 + $0x58] sm:$0xff] %vm1446_vm4, %v25409_v36 }
  0x7b   : > { %15446 = vmatmul.mubr.msk.f32.gmra.mrb[50].mxu0 %vm991_vm3, %v978_v43  ;;  %1876 = vst.msk [vmem:[#allocation2 + $0x60] sm:$0xff] %vm1446_vm4, %v25409_v36  ;;  %1877 = vst.msk [vmem:[#allocation2 + $0x68] sm:$0xff] %vm1446_vm4, %v25409_v36  ;;  %v1400_v43 = vld [vmem:[%s17917_s25 + $0x98] sm:$0xff] }
  0x7c   : > { %15448 = vmatprep.mubr.msk.f32.mxu0 %vm991_vm3, %v979_v44  ;;  %1878 = vst.msk [vmem:[#allocation2 + $0x70] sm:$0xff] %vm1446_vm4, %v25409_v36  ;;  %1879 = vst.msk [vmem:[#allocation2 + $0x78] sm:$0xff] %vm1446_vm4, %v25409_v36  ;;  %v1401_v44 = vld [vmem:[%s17917_s25 + $0xa0] sm:$0xff]  ;;  %v1433_v45 = vmax.f32 %v1400_v43, 0.0 }
  0x7d   : > { %1880 = vst.msk [vmem:[#allocation2 + $0x80] sm:$0xff] %vm1446_vm4, %v25409_v36  ;;  %1881 = vst.msk [vmem:[#allocation2 + $0x88] sm:$0xff] %vm1446_vm4, %v25409_v36  ;;  %v1434_v46 = vmax.f32 %v1401_v44, 0.0  ;;  %v18136_v55 = vld [vmem:[#allocation2 + $0x10] sm:$0xff] }
  0x7e   : > { %1882 = vst.msk [vmem:[#allocation2 + $0x90] sm:$0xff] %vm1446_vm4, %v25409_v36  ;;  %1883 = vst.msk [vmem:[#allocation2 + $0x98] sm:$0xff] %vm1446_vm4, %v25409_v36 }
  0x7f   : > { %15449 = vmatmul.mubr.msk.f32.gmra.mrb[52].mxu0 %vm991_vm3, %v980_v47  ;;  %1884 = vst.msk [vmem:[#allocation2 + $0xa0] sm:$0xff] %vm1446_vm4, %v25409_v36  ;;  %1885 = vst.msk [vmem:[#allocation2 + $0xa8] sm:$0xff] %vm1446_vm4, %v25409_v36  ;;  %v1402_v47 = vld [vmem:[%s17917_s25 + $0xa8] sm:$0xff] }
  0x80   : > { %15451 = vmatprep.mubr.msk.f32.mxu0 %vm991_vm3, %v981_v49  ;;  %1886 = vst.msk [vmem:[#allocation2 + $0xb0] sm:$0xff] %vm1446_vm4, %v25409_v36  ;;  %1887 = vst.msk [vmem:[#allocation2 + $0xb8] sm:$0xff] %vm1446_vm4, %v25409_v36  ;;  %v1404_v49 = vld [vmem:[%s17917_s25 + $0xb8] sm:$0xff]  ;;  %v1435_v50 = vmax.f32 %v1402_v47, 0.0  ;;  %v18147_v59 = vld [vmem:[#allocation2 + $0x40] sm:$0xff] }
  0x81   : > { %1888 = vst.msk [vmem:[#allocation2 + $0xc0] sm:$0xff] %vm1446_vm4, %v25409_v36  ;;  %1889 = vst.msk [vmem:[#allocation2 + $0xc8] sm:$0xff] %vm1446_vm4, %v25409_v36  ;;  %v1437_v62 = vmax.f32 %v1404_v49, 0.0 }
  0x82   : > { %1890 = vst.msk [vmem:[#allocation2 + $0xd0] sm:$0xff] %vm1446_vm4, %v25409_v36  ;;  %1891 = vst.msk [vmem:[#allocation2 + $0xd8] sm:$0xff] %vm1446_vm4, %v25409_v36  ;;  %v18168_v2 = vld [vmem:[#allocation2 + $0x60] sm:$0xff] }
  0x83   : > { %15452 = vmatmul.mubr.msk.f32.gmra.mrb[54].mxu0 %vm991_vm3, %v982_v52  ;;  %1892 = vst.msk [vmem:[#allocation2 + $0xe0] sm:$0xff] %vm1446_vm4, %v25409_v36  ;;  %1893 = vst.msk [vmem:[#allocation2 + $0xe8] sm:$0xff] %vm1446_vm4, %v25409_v36  ;;  %v18130_v52 = vld [vmem:[#allocation2 + $0x8] sm:$0xff]  ;;  %v18170_v3 = vld [vmem:[#allocation2 + $0x78] sm:$0xff] }
  0x84   : > { %15454 = vmatprep.mubr.msk.f32.mxu0 %vm991_vm3, %v983_v53  ;;  %1894 = vst.msk [vmem:[#allocation2 + $0xf0] sm:$0xff] %vm1446_vm4, %v25409_v36  ;;  %1895 = vst.msk [vmem:[#allocation2 + $0xf8] sm:$0xff] %vm1446_vm4, %v25409_v36  ;;  %v13476_v53 = vld [vmem:[%s25395_s8 + $0x18] sm:$0xff]  ;;  %v25400_v44 = vrot.slane %v18130_v52, 7 }
  0x85   : > { %1896 = vst.msk [vmem:[#allocation2 + $0x100] sm:$0xff] %vm1446_vm4, %v25409_v36  ;;  %1897 = vst.msk [vmem:[#allocation2 + $0x108] sm:$0xff] %vm1446_vm4, %v25409_v36  ;;  %15666 = vmatprep.subr.mxu1 %v13476_v53  ;;  %v18184_v10 = vld [vmem:[#allocation2 + $0x98] sm:$0xff] }
  0x86   : > { %1898 = vst.msk [vmem:[#allocation2 + $0x110] sm:$0xff] %vm1446_vm4, %v25409_v36  ;;  %1899 = vst.msk [vmem:[#allocation2 + $0x118] sm:$0xff] %vm1446_vm4, %v25409_v36  ;;  %15667 = vmatpush3.msra.mxu1 %v13476_v53  ;;  %v18196_v15 = vld [vmem:[#allocation2 + $0xa0] sm:$0xff] }
  0x87   : > { %15455 = vmatmul.mubr.msk.f32.gmra.mrb[56].mxu0 %vm991_vm3, %v984_v56  ;;  %1900 = vst.msk [vmem:[#allocation2 + $0x120] sm:$0xff] %vm1446_vm4, %v25409_v36  ;;  %1901 = vst.msk [vmem:[#allocation2 + $0x128] sm:$0xff] %vm1446_vm4, %v25409_v36  ;;  %v18138_v56 = vld [vmem:[#allocation2 + $0x20] sm:$0xff] }
  0x88   : > { %15457 = vmatprep.mubr.msk.f32.mxu0 %vm991_vm3, %v985_v57  ;;  %1902 = vst.msk [vmem:[#allocation2 + $0x130] sm:$0xff] %vm1446_vm4, %v25409_v36  ;;  %1903 = vst.msk [vmem:[#allocation2 + $0x138] sm:$0xff] %vm1446_vm4, %v25409_v36  ;;  %v18140_v57 = vld [vmem:[#allocation2 + $0x38] sm:$0xff] }
  0x89   : > { %1904 = vst.msk [vmem:[#allocation2 + $0x140] sm:$0xff] %vm1446_vm4, %v25409_v36  ;;  %1905 = vst.msk [vmem:[#allocation2 + $0x148] sm:$0xff] %vm1446_vm4, %v25409_v36 }
  0x8a   : > { %1906 = vst.msk [vmem:[#allocation2 + $0x150] sm:$0xff] %vm1446_vm4, %v25409_v36  ;;  %1907 = vst.msk [vmem:[#allocation2 + $0x158] sm:$0xff] %vm1446_vm4, %v25409_v36  ;;  %v18217_v23 = vld [vmem:[#allocation2 + $0xe0] sm:$0xff] }
  0x8b   : > { %15458 = vmatmul.mubr.msk.f32.gmra.mrb[58].mxu0 %vm991_vm3, %v986_v60  ;;  %1908 = vst.msk [vmem:[#allocation2 + $0x160] sm:$0xff] %vm1446_vm4, %v25409_v36  ;;  %1909 = vst.msk [vmem:[#allocation2 + $0x168] sm:$0xff] %vm1446_vm4, %v25409_v36  ;;  %v18149_v60 = vld [vmem:[#allocation2 + $0x58] sm:$0xff] }
  0x8c   : > { %15460 = vmatprep.mubr.msk.f32.mxu0 %vm991_vm3, %v987_v61  ;;  %1910 = vst.msk [vmem:[#allocation2 + $0x170] sm:$0xff] %vm1446_vm4, %v25409_v36  ;;  %1911 = vst.msk [vmem:[#allocation2 + $0x178] sm:$0xff] %vm1446_vm4, %v25409_v36  ;;  %v25401_v61 = vmov -inf  }
  0x8d   : > { %1912 = vst.msk [vmem:[#allocation2 + $0x180] sm:$0xff] %vm1446_vm4, %v25409_v36  ;;  %1913 = vst.msk [vmem:[#allocation2 + $0x188] sm:$0xff] %vm1446_vm4, %v25409_v36  ;;  %v18230_v26 = vld [vmem:[#allocation2 + $0x118] sm:$0xff] }
  0x8e   : > { %1914 = vst.msk [vmem:[#allocation2 + $0x190] sm:$0xff] %vm1446_vm4, %v25409_v36  ;;  %1915 = vst.msk [vmem:[#allocation2 + $0x198] sm:$0xff] %vm1446_vm4, %v25409_v36  ;;  %v18239_v27 = vld [vmem:[#allocation2 + $0x120] sm:$0xff] }
  0x8f   : > { %15461 = vmatmul.mubr.msk.f32.gmra.mrb[60].mxu0 %vm991_vm3, %v988_v0  ;;  %1916 = vst.msk [vmem:[#allocation2 + $0x1a0] sm:$0xff] %vm1446_vm4, %v25409_v36  ;;  %1917 = vst.msk [vmem:[#allocation2 + $0x1a8] sm:$0xff] %vm1446_vm4, %v25409_v36  ;;  %v1406_v0 = vld [vmem:[%s17917_s25 + $0xc8] sm:$0xff] }
  0x90   : > { %15463 = vmatprep.mubr.msk.f32.mxu0 %vm991_vm3, %v989_v1  ;;  %1918 = vst.msk [vmem:[#allocation2 + $0x1b0] sm:$0xff] %vm1446_vm4, %v25409_v36  ;;  %1919 = vst.msk [vmem:[#allocation2 + $0x1b8] sm:$0xff] %vm1446_vm4, %v25409_v36  ;;  %v1407_v1 = vld [vmem:[%s17917_s25 + $0xd0] sm:$0xff] }
  0x91   : > { %1920 = vst.msk [vmem:[#allocation2 + $0x1c0] sm:$0xff] %vm1446_vm4, %v25409_v36  ;;  %1921 = vst.msk [vmem:[#allocation2 + $0x1c8] sm:$0xff] %vm1446_vm4, %v25409_v36  ;;  %v18249_v30 = vld [vmem:[#allocation2 + $0x158] sm:$0xff] }
  0x92   : > { %1922 = vst.msk [vmem:[#allocation2 + $0x1d0] sm:$0xff] %vm1446_vm4, %v25409_v36  ;;  %1923 = vst.msk [vmem:[#allocation2 + $0x1d8] sm:$0xff] %vm1446_vm4, %v25409_v36  ;;  %v18255_v31 = vld [vmem:[#allocation2 + $0x160] sm:$0xff] }
  0x93   : > { %15464 = vmatmul.mubr.msk.f32.gmra.mrb[62].mxu0 %vm991_vm3, %v990_v4  ;;  %1924 = vst.msk [vmem:[#allocation2 + $0x1e0] sm:$0xff] %vm1446_vm4, %v25409_v36  ;;  %1925 = vst.msk [vmem:[#allocation2 + $0x1e8] sm:$0xff] %vm1446_vm4, %v25409_v36  ;;  %v1439_v4 = vmax.f32 %v1406_v0, 0.0 }
  0x94   : > { %15468 = vmatprep.mubr.msk.f32.mxu0 %vm1446_vm4, %v1414_v5  ;;  %1926 = vst.msk [vmem:[#allocation2 + $0x1f0] sm:$0xff] %vm1446_vm4, %v25409_v36  ;;  %1927 = vst.msk [vmem:[#allocation2 + $0x1f8] sm:$0xff] %vm1446_vm4, %v25409_v36  ;;  %v1440_v5 = vmax.f32 %v1407_v1, 0.0  ;;  %v18334_v1 = vld [vmem:[%s25395_s8 + $0x20] sm:$0xff] }
  0x95   : > { %1928 = vst.msk [vmem:[#allocation2 + $0x200] sm:$0xff] %vm1446_vm4, %v25409_v36  ;;  %1929 = vst.msk [vmem:[#allocation2 + $0x208] sm:$0xff] %vm1446_vm4, %v25409_v36  ;;  %v18265_v34 = vld [vmem:[#allocation2 + $0x198] sm:$0xff]  ;;  %15716 = vmatprep.subr.mxu1 %v18334_v1 }
  0x96   : > { %1930 = vst.msk [vmem:[#allocation2 + $0x210] sm:$0xff] %vm1446_vm4, %v25409_v36  ;;  %1931 = vst.msk [vmem:[#allocation2 + $0x218] sm:$0xff] %vm1446_vm4, %v25409_v36  ;;  %v18271_v35 = vld [vmem:[#allocation2 + $0x1a0] sm:$0xff] }
  0x97   : > { %15469 = vmatmul.mubr.msk.f32.vlgmr.msra.gmra.mrb[64].mxu0 %vm1446_vm4, %v1415_v8  ;;  %1932 = vst.msk [vmem:[#allocation2 + $0x220] sm:$0xff] %vm1446_vm4, %v25409_v36  ;;  %1933 = vst.msk [vmem:[#allocation2 + $0x228] sm:$0xff] %vm1446_vm4, %v25409_v36 }
  0x98   : > { %15471 = vmatprep.mubr.msk.f32.mxu0 %vm1446_vm4, %v1416_v9  ;;  %15517 = vmatpush3.msra.mxu0 %v13378_v48  ;;  %1934 = vst.msk [vmem:[#allocation2 + $0x230] sm:$0xff] %vm1446_vm4, %v25409_v36  ;;  %1935 = vst.msk [vmem:[#allocation2 + $0x238] sm:$0xff] %vm1446_vm4, %v25409_v36  ;;  %v1403_v48 = vld [vmem:[%s17917_s25 + $0xb0] sm:$0xff]  ;;  %v18182_v9 = vld [vmem:[#allocation2 + $0x80] sm:$0xff] }
  0x99   : > { %v1436_v54 = vmax.f32 %v1403_v48, 0.0  ;;  %25921 = vst [vmem:[#allocation3_spill] sm:$0xff] %v18140_v57  ;;  %25922 = vst [vmem:[#allocation4_spill] sm:$0xff] %v18149_v60  ;;  %15566 = vmatprep.subr.mxu0 %v18145_v58  ;;  %v18283_v40 = vld [vmem:[#allocation2 + $0x1c0] sm:$0xff]  ;;  %v26002_v57 = vmov -inf  }
  0x9a   : > { %4884 = vst.msk [vmem:[#allocation2 + $0x8] sm:$0xff] %vm1446_vm4, %v25401_v61  ;;  %4885 = vst.msk [vmem:[#allocation2 + $0x10] sm:$0xff] %vm1446_vm4, %v25401_v61  ;;  %v1969_v48 = vld [vmem:[#allocation2] sm:$0xff] }
  0x9b   : > { %15472 = vmatmul.mubr.msk.f32.gmra.mrb[66].mxu0 %vm1446_vm4, %v1417_v12  ;;  %4887 = vst.msk [vmem:[#allocation2 + $0x20] sm:$0xff] %vm1446_vm4, %v25401_v61  ;;  %4891 = vst.msk [vmem:[#allocation2 + $0x40] sm:$0xff] %vm1446_vm4, %v25401_v61  ;;  %v1442_v12 = vmax.f32 %v1409_v7, 0.0 }
  0x9c   : > { %15474 = vmatprep.mubr.msk.f32.mxu0 %vm1446_vm4, %v1418_v13  ;;  %4890 = vst.msk [vmem:[#allocation2 + $0x38] sm:$0xff] %vm1446_vm4, %v25401_v61  ;;  %4894 = vst.msk [vmem:[#allocation2 + $0x58] sm:$0xff] %vm1446_vm4, %v25401_v61  ;;  %v1410_v13 = vld [vmem:[%s17917_s25 + $0xe8] sm:$0xff]  ;;  %v18315_v53 = vld [vmem:[#allocation2 + $0x200] sm:$0xff] }
  0x9d   : > { %25923 = vst [vmem:[#allocation5_spill] sm:$0xff] %v18170_v3  ;;  %4895 = vst.msk [vmem:[#allocation2 + $0x60] sm:$0xff] %vm1446_vm4, %v25401_v61 }
  0x9e   : > { %4898 = vst.msk [vmem:[#allocation2 + $0x78] sm:$0xff] %vm1446_vm4, %v25401_v61  ;;  %25924 = vst [vmem:[#allocation6_spill] sm:$0xff] %v18184_v10 }
  0x9f   : > { %15475 = vmatmul.mubr.msk.f32.gmra.mrb[68].mxu0 %vm1446_vm4, %v1419_v16  ;;  %4899 = vst.msk [vmem:[#allocation2 + $0x80] sm:$0xff] %vm1446_vm4, %v25401_v61  ;;  %4902 = vst.msk [vmem:[#allocation2 + $0x98] sm:$0xff] %vm1446_vm4, %v25401_v61  ;;  %v18198_v16 = vld [vmem:[#allocation2 + $0xb8] sm:$0xff] }
  0xa0   : > { %15477 = vmatprep.mubr.msk.f32.mxu0 %vm1446_vm4, %v1420_v17  ;;  %25925 = vst [vmem:[#allocation7_spill] sm:$0xff] %v18198_v16  ;;  %4903 = vst.msk [vmem:[#allocation2 + $0xa0] sm:$0xff] %vm1446_vm4, %v25401_v61  ;;  %v1443_v17 = vmax.f32 %v1410_v13, 0.0 }
  0xa1   : > { %4906 = vst.msk [vmem:[#allocation2 + $0xb8] sm:$0xff] %vm1446_vm4, %v25401_v61  ;;  %4911 = vst.msk [vmem:[#allocation2 + $0xe0] sm:$0xff] %vm1446_vm4, %v25401_v61 }
  0xa2   : > { %v18180_v8 = vld [vmem:[#allocation2 + $0x20] sm:$0xff]  ;;  %25928 = vst [vmem:[#allocation10_spill] sm:$0xff] %v18230_v26  ;;  %4918 = vst.msk [vmem:[#allocation2 + $0x118] sm:$0xff] %vm1446_vm4, %v25401_v61 }
  0xa3   : > { %15478 = vmatmul.mubr.msk.f32.gmra.mrb[70].mxu0 %vm1446_vm4, %v1421_v20  ;;  %5707 = vst.msk [vmem:[#allocation2 + $0x20] sm:$0xff] %vm1446_vm4, %v25409_v36  ;;  %v18207_v20 = vld [vmem:[#allocation2 + $0xc0] sm:$0xff]  ;;  %4919 = vst.msk [vmem:[#allocation2 + $0x120] sm:$0xff] %vm1446_vm4, %v25401_v61 }
  0xa4   : > { %15480 = vmatprep.mubr.msk.f32.mxu0 %vm1446_vm4, %v1422_v21  ;;  %v18209_v21 = vld [vmem:[#allocation2 + $0xd8] sm:$0xff]  ;;  %4907 = vst.msk [vmem:[#allocation2 + $0xc0] sm:$0xff] %vm1446_vm4, %v25401_v61  ;;  %25930 = vst [vmem:[#allocation12_spill] sm:$0xff] %v18249_v30  ;;  %v18353_v13 = vld [vmem:[#allocation2 + $0x60] sm:$0xff] }
  0xa5   : > { %25926 = vst [vmem:[#allocation8_spill] sm:$0xff] %v18209_v21  ;;  %4910 = vst.msk [vmem:[#allocation2 + $0xd8] sm:$0xff] %vm1446_vm4, %v25401_v61  ;;  %v18357_v14 = vld [vmem:[#allocation2 + $0x78] sm:$0xff] }
  0xa6   : > { %4926 = vst.msk [vmem:[#allocation2 + $0x158] sm:$0xff] %vm1446_vm4, %v25401_v61  ;;  %4927 = vst.msk [vmem:[#allocation2 + $0x160] sm:$0xff] %vm1446_vm4, %v25401_v61 }
  0xa7   : > { %15481 = vmatmul.mubr.msk.f32.gmra.mrb[72].mxu0 %vm1446_vm4, %v1423_v24  ;;  %v18219_v24 = vld [vmem:[#allocation2 + $0xf8] sm:$0xff]  ;;  %25932 = vst [vmem:[#allocation14_spill] sm:$0xff] %v18265_v34  ;;  %4934 = vst.msk [vmem:[#allocation2 + $0x198] sm:$0xff] %vm1446_vm4, %v25401_v61 }
  0xa8   : > { %15483 = vmatprep.mubr.msk.f32.mxu0 %vm1446_vm4, %v1424_v25  ;;  %25927 = vst [vmem:[#allocation9_spill] sm:$0xff] %v18219_v24  ;;  %4914 = vst.msk [vmem:[#allocation2 + $0xf8] sm:$0xff] %vm1446_vm4, %v25401_v61  ;;  %v18228_v25 = vld [vmem:[#allocation2 + $0x100] sm:$0xff] }
  0xa9   : > { %4915 = vst.msk [vmem:[#allocation2 + $0x100] sm:$0xff] %vm1446_vm4, %v25401_v61  ;;  %4935 = vst.msk [vmem:[#allocation2 + $0x1a0] sm:$0xff] %vm1446_vm4, %v25401_v61 }
  0xaa   : > { %4939 = vst.msk [vmem:[#allocation2 + $0x1c0] sm:$0xff] %vm1446_vm4, %v25401_v61  ;;  %4883 = vst.msk [vmem:[#allocation2] sm:$0xff] %vm1446_vm4, %v25401_v61 }
  0xab   : > { %15484 = vmatmul.mubr.msk.f32.gmra.mrb[74].mxu0 %vm1446_vm4, %v1425_v28  ;;  %v18241_v28 = vld [vmem:[#allocation2 + $0x138] sm:$0xff]  ;;  %4947 = vst.msk [vmem:[#allocation2 + $0x200] sm:$0xff] %vm1446_vm4, %v25401_v61  ;;  %25939 = vst [vmem:[#allocation21_spill] sm:$0xff] %v18353_v13  ;;  %v18561_v13 = vld [vmem:[%s25393_s6] ss:$0 sm:$0xff] }
  0xac   : > { %15486 = vmatprep.mubr.msk.f32.mxu0 %vm1446_vm4, %v1426_v29  ;;  %25929 = vst [vmem:[#allocation11_spill] sm:$0xff] %v18241_v28  ;;  %4922 = vst.msk [vmem:[#allocation2 + $0x138] sm:$0xff] %vm1446_vm4, %v25401_v61  ;;  %v18247_v29 = vld [vmem:[#allocation2 + $0x140] sm:$0xff] }
  0xad   : > { %4923 = vst.msk [vmem:[#allocation2 + $0x140] sm:$0xff] %vm1446_vm4, %v25401_v61  ;;  %25940 = vst [vmem:[#allocation22_spill] sm:$0xff] %v18357_v14  ;;  %v18434_v28 = vld [vmem:[#allocation2 + $0xe0] sm:$0xff] }
  0xae   : > { %5715 = vst.msk [vmem:[#allocation2 + $0x60] sm:$0xff] %vm1446_vm4, %v25409_v36  ;;  %5718 = vst.msk [vmem:[#allocation2 + $0x78] sm:$0xff] %vm1446_vm4, %v25409_v36 }
  0xaf   : > { %15487 = vmatmul.mubr.msk.f32.gmra.mrb[76].mxu0 %vm1446_vm4, %v1427_v32  ;;  %v18257_v32 = vld [vmem:[#allocation2 + $0x178] sm:$0xff]  ;;  %25962 = vst [vmem:[#allocation44_spill] sm:$0xff] %v18434_v28  ;;  %5731 = vst.msk [vmem:[#allocation2 + $0xe0] sm:$0xff] %vm1446_vm4, %v25409_v36 }
  0xb0   : > { %15489 = vmatprep.mubr.msk.f32.mxu0 %vm1446_vm4, %v1428_v33  ;;  %25931 = vst [vmem:[#allocation13_spill] sm:$0xff] %v18257_v32  ;;  %4930 = vst.msk [vmem:[#allocation2 + $0x178] sm:$0xff] %vm1446_vm4, %v25401_v61  ;;  %v18263_v33 = vld [vmem:[#allocation2 + $0x180] sm:$0xff]  ;;  %v18436_v26 = vld [vmem:[#allocation2 + $0xf8] sm:$0xff] }
  0xb1   : > { %4931 = vst.msk [vmem:[#allocation2 + $0x180] sm:$0xff] %vm1446_vm4, %v25401_v61  ;;  %25963 = vst [vmem:[#allocation45_spill] sm:$0xff] %v18436_v26  ;;  %v18454_v26 = vld [vmem:[#allocation2 + $0x100] sm:$0xff] }
  0xb2   : > { %5734 = vst.msk [vmem:[#allocation2 + $0xf8] sm:$0xff] %vm1446_vm4, %v25409_v36  ;;  %25968 = vst [vmem:[#allocation50_spill] sm:$0xff] %v18454_v26 }
  0xb3   : > { %15490 = vmatmul.mubr.msk.f32.gmra.mrb[78].mxu0 %vm1446_vm4, %v1429_v37  ;;  %v18273_v37 = vld [vmem:[#allocation2 + $0x1b8] sm:$0xff]  ;;  %5735 = vst.msk [vmem:[#allocation2 + $0x100] sm:$0xff] %vm1446_vm4, %v25409_v36 }
  0xb4   : > { %15492 = vmatprep.mubr.msk.f32.mxu0 %vm1446_vm4, %v1430_v38  ;;  %25933 = vst [vmem:[#allocation15_spill] sm:$0xff] %v18273_v37  ;;  %4938 = vst.msk [vmem:[#allocation2 + $0x1b8] sm:$0xff] %vm1446_vm4, %v25401_v61  ;;  %v18416_v37 = vld [vmem:[#allocation2 + $0xd8] sm:$0xff] }
  0xb5   : > { %25957 = vst [vmem:[#allocation39_spill] sm:$0xff] %v18416_v37  ;;  %5730 = vst.msk [vmem:[#allocation2 + $0xd8] sm:$0xff] %vm1446_vm4, %v25409_v36 }
  0xb6   : > { %v18472_v26 = vld [vmem:[#allocation2 + $0xe0] sm:$0xff] }
  0xb7   : > { %15493 = vmatmul.mubr.msk.f32.gmra.mrb[80].mxu0 %vm1446_vm4, %v1431_v41  ;;  %v18285_v41 = vld [vmem:[#allocation2 + $0x1d8] sm:$0xff]  ;;  %25973 = vst [vmem:[#allocation55_spill] sm:$0xff] %v18472_v26  ;;  %8716 = vst.msk [vmem:[#allocation2 + $0xe0] sm:$0xff] %vm1446_vm4, %v25409_v36 }
  0xb8   : > { %15495 = vmatprep.mubr.msk.f32.mxu0 %vm1446_vm4, %v1432_v42  ;;  %25934 = vst [vmem:[#allocation16_spill] sm:$0xff] %v18285_v41  ;;  %4942 = vst.msk [vmem:[#allocation2 + $0x1d8] sm:$0xff] %vm1446_vm4, %v25401_v61  ;;  %v18496_v26 = vld [vmem:[#allocation2 + $0x158] sm:$0xff] }
  0xb9   : > { %25981 = vst [vmem:[#allocation63_spill] sm:$0xff] %v18496_v26  ;;  %5746 = vst.msk [vmem:[#allocation2 + $0x158] sm:$0xff] %vm1446_vm4, %v25409_v36  ;;  %v18514_v26 = vld [vmem:[#allocation2 + $0x160] sm:$0xff] }
  0xba   : > { %25986 = vst [vmem:[#allocation68_spill] sm:$0xff] %v18514_v26  ;;  %5747 = vst.msk [vmem:[#allocation2 + $0x160] sm:$0xff] %vm1446_vm4, %v25409_v36 }
  0xbb   : > { %15496 = vmatmul.mubr.msk.f32.gmra.mrb[82].mxu0 %vm1446_vm4, %v1433_v45  ;;  %v18296_v45 = vld [vmem:[#allocation2 + $0x1e0] sm:$0xff] }
  0xbc   : > { %15498 = vmatprep.mubr.msk.f32.mxu0 %vm1446_vm4, %v1434_v46  ;;  %v18298_v46 = vld [vmem:[#allocation2 + $0x1f8] sm:$0xff]  ;;  %4943 = vst.msk [vmem:[#allocation2 + $0x1e0] sm:$0xff] %vm1446_vm4, %v25401_v61 }
  0xbd   : > { %25935 = vst [vmem:[#allocation17_spill] sm:$0xff] %v18298_v46  ;;  %4946 = vst.msk [vmem:[#allocation2 + $0x1f8] sm:$0xff] %vm1446_vm4, %v25401_v61  ;;  %v18386_v61 = vld [vmem:[#allocation2 + $0x98] sm:$0xff] }
  0xbe   : > { %25947 = vst [vmem:[#allocation29_spill] sm:$0xff] %v18386_v61  ;;  %5722 = vst.msk [vmem:[#allocation2 + $0x98] sm:$0xff] %vm1446_vm4, %v25409_v36  ;;  %v18406_v46 = vld [vmem:[#allocation2 + $0xb8] sm:$0xff] }
  0xbf   : > { %15499 = vmatmul.mubr.msk.f32.gmra.mrb[84].mxu0 %vm1446_vm4, %v1435_v50  ;;  %v2382_v50 = vrot.slane %v1969_v48, 7  ;;  %v18374_v48 = vld [vmem:[#allocation2 + $0x80] sm:$0xff]  ;;  %25953 = vst [vmem:[#allocation35_spill] sm:$0xff] %v18406_v46  ;;  %5726 = vst.msk [vmem:[#allocation2 + $0xb8] sm:$0xff] %vm1446_vm4, %v25409_v36 }
  0xc0   : > { %15501 = vmatprep.mubr.msk.f32.mxu0 %vm1446_vm4, %v1436_v54  ;;  %25944 = vst [vmem:[#allocation26_spill] sm:$0xff] %v18374_v48  ;;  %5719 = vst.msk [vmem:[#allocation2 + $0x80] sm:$0xff] %vm1446_vm4, %v25409_v36 }
  0xc1   : > { %v18313_v51 = vsel %vm2381_vm5, %v2382_v50, %v25400_v44 }
  0xc3   : > { %15502 = vmatmul.mubr.msk.f32.gmra.mrb[86].mxu0 %vm1446_vm4, %v1437_v62  ;;  %v18323_v62 = vld [vmem:[#allocation2 + $0x38] sm:$0xff] }
  0xc4   : > { %15504 = vmatprep.mubr.msk.f32.mxu0 %vm1446_vm4, %v1438_v63  ;;  %5710 = vst.msk [vmem:[#allocation2 + $0x38] sm:$0xff] %vm1446_vm4, %v25409_v36 }
  0xc5   : > { %v18424_v32 = vld [vmem:[#allocation2 + $0x98] sm:$0xff] }
  0xc6   : > { %25959 = vst [vmem:[#allocation41_spill] sm:$0xff] %v18424_v32  ;;  %8707 = vst.msk [vmem:[#allocation2 + $0x98] sm:$0xff] %vm1446_vm4, %v25409_v36  ;;  %v18444_v32 = vld [vmem:[#allocation2 + $0xb8] sm:$0xff] }
  0xc7   : > { %15505 = vmatmul.mubr.msk.f32.gmra.mrb[88].mxu0 %vm1446_vm4, %v1439_v4  ;;  %v18337_v4 = vld [vmem:[#allocation2 + $0x40] sm:$0xff]  ;;  %25965 = vst [vmem:[#allocation47_spill] sm:$0xff] %v18444_v32  ;;  %8711 = vst.msk [vmem:[#allocation2 + $0xb8] sm:$0xff] %vm1446_vm4, %v25409_v36  ;;  %v18466_v32 = vld [vmem:[#allocation2 + $0x118] sm:$0xff] }
  0xc8   : > { %15507 = vmatprep.mubr.msk.f32.mxu0 %vm1446_vm4, %v1440_v5  ;;  %25936 = vst [vmem:[#allocation18_spill] sm:$0xff] %v18337_v4  ;;  %v18339_v5 = vld [vmem:[#allocation2 + $0x58] sm:$0xff]  ;;  %5711 = vst.msk [vmem:[#allocation2 + $0x40] sm:$0xff] %vm1446_vm4, %v25409_v36 }
  0xc9   : > { %5714 = vst.msk [vmem:[#allocation2 + $0x58] sm:$0xff] %vm1446_vm4, %v25409_v36  ;;  %25971 = vst [vmem:[#allocation53_spill] sm:$0xff] %v18466_v32  ;;  %v18486_v32 = vld [vmem:[#allocation2 + $0x138] sm:$0xff] }
  0xca   : > { %5738 = vst.msk [vmem:[#allocation2 + $0x118] sm:$0xff] %vm1446_vm4, %v25409_v36  ;;  %25977 = vst [vmem:[#allocation59_spill] sm:$0xff] %v18486_v32 }
  0xcb   : > { %15508 = vmatmul.mubr.msk.f32.gmra.mrb[90].mxu0 %vm1446_vm4, %v1441_v11  ;;  %v18349_v11 = vld [vmem:[#allocation2 + $0x38] sm:$0xff]  ;;  %5742 = vst.msk [vmem:[#allocation2 + $0x138] sm:$0xff] %vm1446_vm4, %v25409_v36 }
  0xcc   : > { %15510 = vmatprep.mubr.msk.f32.mxu0 %vm1446_vm4, %v1442_v12  ;;  %25937 = vst [vmem:[#allocation19_spill] sm:$0xff] %v18349_v11  ;;  %v18351_v12 = vld [vmem:[#allocation2 + $0x20] sm:$0xff]  ;;  %8695 = vst.msk [vmem:[#allocation2 + $0x38] sm:$0xff] %vm1446_vm4, %v25409_v36 }
  0xcd   : > { %25938 = vst [vmem:[#allocation20_spill] sm:$0xff] %v18351_v12  ;;  %8692 = vst.msk [vmem:[#allocation2 + $0x20] sm:$0xff] %vm1446_vm4, %v25409_v36  ;;  %v18392_v11 = vld [vmem:[#allocation2 + $0x60] sm:$0xff] }
  0xce   : > { %25949 = vst [vmem:[#allocation31_spill] sm:$0xff] %v18392_v11  ;;  %8700 = vst.msk [vmem:[#allocation2 + $0x60] sm:$0xff] %vm1446_vm4, %v25409_v36  ;;  %v18412_v11 = vld [vmem:[#allocation2 + $0x80] sm:$0xff] }
  0xcf   : > { %15511 = vmatmul.mubr.msk.f32.gmra.mrb[92].mxu0 %vm1446_vm4, %v1443_v17  ;;  %25955 = vst [vmem:[#allocation37_spill] sm:$0xff] %v18412_v11  ;;  %8704 = vst.msk [vmem:[#allocation2 + $0x80] sm:$0xff] %vm1446_vm4, %v25409_v36 }
  0xd0   : > { %15513 = vmatprep.mubr.msk.f32.mxu0 %vm1446_vm4, %v1444_v18  ;;  %v18376_v50 = vld [vmem:[#allocation2 + $0x58] sm:$0xff] }
  0xd1   : > { %25945 = vst [vmem:[#allocation27_spill] sm:$0xff] %v18376_v50  ;;  %8699 = vst.msk [vmem:[#allocation2 + $0x58] sm:$0xff] %vm1446_vm4, %v25409_v36  ;;  %v18394_v50 = vld [vmem:[#allocation2 + $0xa0] sm:$0xff]  ;;  %v18504_v32 = vld [vmem:[#allocation2 + $0x118] sm:$0xff] }
  0xd2   : > { %25950 = vst [vmem:[#allocation32_spill] sm:$0xff] %v18394_v50  ;;  %5723 = vst.msk [vmem:[#allocation2 + $0xa0] sm:$0xff] %vm1446_vm4, %v25409_v36 }
  0xd3   : > { %15514 = vmatmul.mubr.msk.f32.gmra.mrb[94].mxu0 %vm1446_vm4, %v1445_v22  ;;  %v18372_v22 = vld [vmem:[#allocation2 + $0x40] sm:$0xff]  ;;  %25983 = vst [vmem:[#allocation65_spill] sm:$0xff] %v18504_v32  ;;  %8723 = vst.msk [vmem:[#allocation2 + $0x118] sm:$0xff] %vm1446_vm4, %v25409_v36  ;;  %v18524_v32 = vld [vmem:[#allocation2 + $0x138] sm:$0xff] }
  0xd4   : > { %15518 = vmatprep.mubr.msk.f32.mxu0 %vm1446_vm4, %v18130_v52  ;;  %25943 = vst [vmem:[#allocation25_spill] sm:$0xff] %v18372_v22  ;;  %8696 = vst.msk [vmem:[#allocation2 + $0x40] sm:$0xff] %vm1446_vm4, %v25409_v36  ;;  %v18396_v22 = vld [vmem:[#allocation2 + $0x78] sm:$0xff] }
  0xd5   : > { %25951 = vst [vmem:[#allocation33_spill] sm:$0xff] %v18396_v22  ;;  %8703 = vst.msk [vmem:[#allocation2 + $0x78] sm:$0xff] %vm1446_vm4, %v25409_v36  ;;  %v18414_v22 = vld [vmem:[#allocation2 + $0xc0] sm:$0xff] }
  0xd6   : > { %25956 = vst [vmem:[#allocation38_spill] sm:$0xff] %v18414_v22  ;;  %5727 = vst.msk [vmem:[#allocation2 + $0xc0] sm:$0xff] %vm1446_vm4, %v25409_v36 }
  0xd7   : > { %15519 = vmatmul.mubr.msk.f32.vlgmr.msra.gmra.mrb[96].mxu0 %vm1446_vm4, %v18136_v55  ;;  %25989 = vst [vmem:[#allocation71_spill] sm:$0xff] %v18524_v32  ;;  %8727 = vst.msk [vmem:[#allocation2 + $0x138] sm:$0xff] %vm1446_vm4, %v25409_v36  ;;  %v18546_v32 = vld [vmem:[#allocation2 + $0x198] sm:$0xff] }
  0xd8   : > { %15567 = vmatpush3.msra.mxu0 %v18145_v58  ;;  %25995 = vst [vmem:[#allocation77_spill] sm:$0xff] %v18546_v32  ;;  %5754 = vst.msk [vmem:[#allocation2 + $0x198] sm:$0xff] %vm1446_vm4, %v25409_v36  ;;  %v18569_v32 = vld [vmem:[#allocation2 + $0x1b8] sm:$0xff] }
  0xd9   : > { %15616 = vmatprep.subr.mxu0 %v13443_v19  ;;  %v18432_v11 = vld [vmem:[#allocation2 + $0xa0] sm:$0xff]  ;;  %26000 = vst [vmem:[#allocation82_spill] sm:$0xff] %v18569_v32  ;;  %5758 = vst.msk [vmem:[#allocation2 + $0x1b8] sm:$0xff] %vm1446_vm4, %v25409_v36 }
  0xda   : > { %25961 = vst [vmem:[#allocation43_spill] sm:$0xff] %v18432_v11  ;;  %8708 = vst.msk [vmem:[#allocation2 + $0xa0] sm:$0xff] %vm1446_vm4, %v25409_v36  ;;  %v18456_v11 = vld [vmem:[#allocation2 + $0xd8] sm:$0xff] }
  0xdb   : > { %25969 = vst [vmem:[#allocation51_spill] sm:$0xff] %v18456_v11  ;;  %8715 = vst.msk [vmem:[#allocation2 + $0xd8] sm:$0xff] %vm1446_vm4, %v25409_v36  ;;  %v18474_v11 = vld [vmem:[#allocation2 + $0x120] sm:$0xff] }
  0xdc   : > { %25974 = vst [vmem:[#allocation56_spill] sm:$0xff] %v18474_v11  ;;  %5739 = vst.msk [vmem:[#allocation2 + $0x120] sm:$0xff] %vm1446_vm4, %v25409_v36  ;;  %v18492_v11 = vld [vmem:[#allocation2 + $0x100] sm:$0xff] }
  0xdd   : > { %v18452_v28 = vld [vmem:[#allocation2 + $0xc0] sm:$0xff]  ;;  %25979 = vst [vmem:[#allocation61_spill] sm:$0xff] %v18492_v11  ;;  %8720 = vst.msk [vmem:[#allocation2 + $0x100] sm:$0xff] %vm1446_vm4, %v25409_v36  ;;  %v18516_v11 = vld [vmem:[#allocation2 + $0x178] sm:$0xff] }
  0xde   : > { %25967 = vst [vmem:[#allocation49_spill] sm:$0xff] %v18452_v28  ;;  %8712 = vst.msk [vmem:[#allocation2 + $0xc0] sm:$0xff] %vm1446_vm4, %v25409_v36  ;;  %v18476_v28 = vld [vmem:[#allocation2 + $0xf8] sm:$0xff] }
  0xdf   : > { %25975 = vst [vmem:[#allocation57_spill] sm:$0xff] %v18476_v28  ;;  %8719 = vst.msk [vmem:[#allocation2 + $0xf8] sm:$0xff] %vm1446_vm4, %v25409_v36  ;;  %v18494_v28 = vld [vmem:[#allocation2 + $0x140] sm:$0xff] }
  0xe0   : > { %25980 = vst [vmem:[#allocation62_spill] sm:$0xff] %v18494_v28  ;;  %5743 = vst.msk [vmem:[#allocation2 + $0x140] sm:$0xff] %vm1446_vm4, %v25409_v36 }
  0xe1   : > { %25987 = vst [vmem:[#allocation69_spill] sm:$0xff] %v18516_v11  ;;  %5750 = vst.msk [vmem:[#allocation2 + $0x178] sm:$0xff] %vm1446_vm4, %v25409_v36  ;;  %v18534_v11 = vld [vmem:[#allocation2 + $0x180] sm:$0xff] }
  0xe2   : > { %25992 = vst [vmem:[#allocation74_spill] sm:$0xff] %v18534_v11  ;;  %5751 = vst.msk [vmem:[#allocation2 + $0x180] sm:$0xff] %vm1446_vm4, %v25409_v36  ;;  %v18552_v11 = vld [vmem:[#allocation2 + $0x160] sm:$0xff] }
  0xe3   : > { %v18512_v28 = vld [vmem:[#allocation2 + $0x120] sm:$0xff]  ;;  %25997 = vst [vmem:[#allocation79_spill] sm:$0xff] %v18552_v11  ;;  %8732 = vst.msk [vmem:[#allocation2 + $0x160] sm:$0xff] %vm1446_vm4, %v25409_v36 }
  0xe4   : > { %25985 = vst [vmem:[#allocation67_spill] sm:$0xff] %v18512_v28  ;;  %8724 = vst.msk [vmem:[#allocation2 + $0x120] sm:$0xff] %vm1446_vm4, %v25409_v36  ;;  %v18536_v28 = vld [vmem:[#allocation2 + $0x158] sm:$0xff]  ;;  %v18577_v11 = vld [vmem:[%s25394_s7] ss:$0 sm:$0xff] }
  0xe5   : > { %25993 = vst [vmem:[#allocation75_spill] sm:$0xff] %v18536_v28  ;;  %8731 = vst.msk [vmem:[#allocation2 + $0x158] sm:$0xff] %vm1446_vm4, %v25409_v36  ;;  %v18554_v28 = vld [vmem:[#allocation2 + $0x1a0] sm:$0xff] }
  0xe6   : > { %25998 = vst [vmem:[#allocation80_spill] sm:$0xff] %v18554_v28  ;;  %5755 = vst.msk [vmem:[#allocation2 + $0x1a0] sm:$0xff] %vm1446_vm4, %v25409_v36 }
  0xe7   : > { %v18532_v26 = vld [vmem:[#allocation2 + $0x140] sm:$0xff] }
  0xe8   : > { %25991 = vst [vmem:[#allocation73_spill] sm:$0xff] %v18532_v26  ;;  %8728 = vst.msk [vmem:[#allocation2 + $0x140] sm:$0xff] %vm1446_vm4, %v25409_v36  ;;  %v18556_v26 = vld [vmem:[#allocation2 + $0x178] sm:$0xff] }
  0xe9   : > { %25999 = vst [vmem:[#allocation81_spill] sm:$0xff] %v18556_v26  ;;  %8735 = vst.msk [vmem:[#allocation2 + $0x178] sm:$0xff] %vm1446_vm4, %v25409_v36  ;;  %v18585_v32 = vld [vmem:[#allocation2 + $0x180] sm:$0xff] }
  0xea   : > { %v18275_v38 = vpop.f32.mrb[0].mxu0  ;;  %26003 = vst [vmem:[#allocation84_spill] sm:$0xff] %v18585_v32 }
  0xeb   : > { %v18281_v39 = vpop.f32.mrb[1].mxu0 }
  0xee   : > { %v18287_v42 = vpop.f32.mrb[2].mxu0 }
  0xef   : > { %v18293_v43 = vpop.f32.mrb[3].mxu0 }
  0xf2   : > { %v18300_v47 = vpop.f32.mrb[4].mxu0 }
  0xf3   : > { %v18306_v49 = vpop.f32.mrb[5].mxu0 }
  0xf6   : > { %v18317_v54 = vpop.f32.mrb[6].mxu0 }
  0xf7   : > { %v18321_v58 = vpop.f32.mrb[7].mxu0 }
  0xfa   : > { %v18327_v63 = vpop.f32.mrb[8].mxu0 }
  0xfb   : > { %v18329_v0 = vpop.f32.mrb[9].mxu0 }
  0xfe   : > { %v18341_v6 = vpop.f32.mrb[10].mxu0 }
  0xff   : > { %v18347_v7 = vpop.f32.mrb[11].mxu0 }
 0x102   : > { %v18359_v17 = vpop.f32.mrb[12].mxu0 }
 0x103   : > { %25941 = vst [vmem:[#allocation23_spill] sm:$0xff] %v18359_v17  ;;  %v18367_v18 = vpop.f32.mrb[13].mxu0 }
 0x104   : > { %25942 = vst [vmem:[#allocation24_spill] sm:$0xff] %v18367_v18 }
 0x106   : > { %v18378_v44 = vpop.f32.mrb[14].mxu0 }
 0x107   : > { %25946 = vst [vmem:[#allocation28_spill] sm:$0xff] %v18378_v44  ;;  %v18388_v19 = vpop.f32.mrb[15].mxu0 }
 0x108   : > { %25948 = vst [vmem:[#allocation30_spill] sm:$0xff] %v18388_v19 }
 0x10a   : > { %v18398_v12 = vpop.f32.mrb[16].mxu0 }
 0x10b   : > { %25952 = vst [vmem:[#allocation34_spill] sm:$0xff] %v18398_v12  ;;  %v18408_v41 = vpop.f32.mrb[17].mxu0 }
 0x10c   : > { %25954 = vst [vmem:[#allocation36_spill] sm:$0xff] %v18408_v41 }
 0x10e   : > { %v18418_v34 = vpop.f32.mrb[18].mxu0 }
 0x10f   : > { %25958 = vst [vmem:[#allocation40_spill] sm:$0xff] %v18418_v34  ;;  %v18428_v30 = vpop.f32.mrb[19].mxu0 }
 0x110   : > { %25960 = vst [vmem:[#allocation42_spill] sm:$0xff] %v18428_v30 }
 0x112   : > { %v18438_v24 = vpop.f32.mrb[20].mxu0 }
 0x113   : > { %25964 = vst [vmem:[#allocation46_spill] sm:$0xff] %v18438_v24  ;;  %v18448_v22 = vpop.f32.mrb[21].mxu0 }
 0x114   : > { %25966 = vst [vmem:[#allocation48_spill] sm:$0xff] %v18448_v22 }
 0x116   : > { %v18458_v37 = vpop.f32.mrb[22].mxu0 }
 0x117   : > { %25970 = vst [vmem:[#allocation52_spill] sm:$0xff] %v18458_v37  ;;  %v18468_v50 = vpop.f32.mrb[23].mxu0 }
 0x118   : > { %25972 = vst [vmem:[#allocation54_spill] sm:$0xff] %v18468_v50 }
 0x11a   : > { %v18478_v46 = vpop.f32.mrb[24].mxu0 }
 0x11b   : > { %25976 = vst [vmem:[#allocation58_spill] sm:$0xff] %v18478_v46  ;;  %v18488_v48 = vpop.f32.mrb[25].mxu0  ;;  %v18610_v46 = vld [vmem:[#allocation2 + $0x1f8] sm:$0xff] }
 0x11c   : > { %25978 = vst [vmem:[#allocation60_spill] sm:$0xff] %v18488_v48  ;;  %v18606_v48 = vld [vmem:[#allocation2 + $0x1a0] sm:$0xff]  ;;  %26010 = vst [vmem:[#allocation90_spill] sm:$0xff] %v18610_v46  ;;  %v18623_v46 = vld [vmem:[#allocation2 + $0x18] sm:$0xff] }
 0x11d   : > { %26008 = vst [vmem:[#allocation88_spill] sm:$0xff] %v18606_v48  ;;  %26012 = vst [vmem:[#allocation92_spill] sm:$0xff] %v18623_v46 }
 0x11e   : > { %v18498_v21 = vpop.f32.mrb[26].mxu0  ;;  %4886 = vst.msk [vmem:[#allocation2 + $0x18] sm:$0xff] %vm1446_vm4, %v26002_v57 }
 0x11f   : > { %25982 = vst [vmem:[#allocation64_spill] sm:$0xff] %v18498_v21  ;;  %v18508_v61 = vpop.f32.mrb[27].mxu0  ;;  %v26006_v21 = vmov 0.0  }
 0x120   : > { %25984 = vst [vmem:[#allocation66_spill] sm:$0xff] %v18508_v61  ;;  %8736 = vst.msk [vmem:[#allocation2 + $0x180] sm:$0xff] %vm1446_vm4, %v26006_v21 }
 0x121   : > { %8740 = vst.msk [vmem:[#allocation2 + $0x1a0] sm:$0xff] %vm1446_vm4, %v26006_v21  ;;  %5766 = vst.msk [vmem:[#allocation2 + $0x1f8] sm:$0xff] %vm1446_vm4, %v26006_v21 }
 0x122   : > { %v18518_v16 = vpop.f32.mrb[28].mxu0 }
 0x123   : > { %25988 = vst [vmem:[#allocation70_spill] sm:$0xff] %v18518_v16  ;;  %v18528_v10 = vpop.f32.mrb[29].mxu0  ;;  %v18589_v16 = vld [vmem:[#allocation2 + $0x1d8] sm:$0xff] }
 0x124   : > { %25990 = vst [vmem:[#allocation72_spill] sm:$0xff] %v18528_v10  ;;  %v18580_v10 = vld [vmem:[#allocation2 + $0x218] sm:$0xff]  ;;  %26005 = vst [vmem:[#allocation86_spill] sm:$0xff] %v18589_v16 }
 0x125   : > { %26001 = vst [vmem:[#allocation83_spill] sm:$0xff] %v18580_v10  ;;  %4950 = vst.msk [vmem:[#allocation2 + $0x218] sm:$0xff] %vm1446_vm4, %v26002_v57 }
 0x126   : > { %v18538_v3 = vpop.f32.mrb[30].mxu0  ;;  %5762 = vst.msk [vmem:[#allocation2 + $0x1d8] sm:$0xff] %vm1446_vm4, %v26006_v21 }
 0x127   : > { %25994 = vst [vmem:[#allocation76_spill] sm:$0xff] %v18538_v3  ;;  %v18548_v60 = vpop.f32.mrb[31].mxu0 }
 0x128   : > { %25996 = vst [vmem:[#allocation78_spill] sm:$0xff] %v18548_v60 }
 0x12a   : > { %v15420_v3 = vpop.f32.mrb[32].mxu0 }
 0x12b   : > { %v1318_v28 = vmul.f32 %v15420_v3, %v18561_v13  ;;  %v1158_v26 = vpop.f32.mrb[33].mxu0  ;;  %v18587_v3 = vld [vmem:[#allocation2 + $0x1c0] sm:$0xff] }
 0x12c   : > { %v1317_v60 = vmul.f32 %v18561_v13, %v1158_v26  ;;  %26004 = vst [vmem:[#allocation85_spill] sm:$0xff] %v18587_v3  ;;  %5759 = vst.msk [vmem:[#allocation2 + $0x1c0] sm:$0xff] %vm1446_vm4, %v26006_v21  ;;  %v18596_v26 = vld [vmem:[#allocation2 + $0x198] sm:$0xff] }
 0x12d   : > { %v1350_v14 = vadd.f32 %v18577_v11, %v1318_v28  ;;  %26007 = vst [vmem:[#allocation87_spill] sm:$0xff] %v18596_v26  ;;  %8739 = vst.msk [vmem:[#allocation2 + $0x198] sm:$0xff] %vm1446_vm4, %v26006_v21  ;;  %v18608_v26 = vld [vmem:[#allocation2 + $0x1e0] sm:$0xff] }
 0x12e   : > { %v1349_v36 = vadd.f32 %v18577_v11, %v1317_v60  ;;  %v15423_v61 = vpop.f32.mrb[34].mxu0  ;;  %26009 = vst [vmem:[#allocation89_spill] sm:$0xff] %v18608_v26  ;;  %5763 = vst.msk [vmem:[#allocation2 + $0x1e0] sm:$0xff] %vm1446_vm4, %v26006_v21 }
 0x12f   : > { %v1833_v28 = vmax.f32 %v1350_v14, 0.0  ;;  %v1320_v32 = vmul.f32 %v15423_v61, %v18561_v13  ;;  %v1168_v3 = vpop.f32.mrb[35].mxu0 }
 0x130   : > { %v1832_v60 = vmax.f32 %v1349_v36, 0.0  ;;  %v1319_v16 = vmul.f32 %v18561_v13, %v1168_v3  ;;  %v18618_v36 = vld [vmem:[#allocation2 + $0x1b8] sm:$0xff] }
 0x131   : > { %1938 = vst.msk [vmem:[#allocation2 + $0x30] sm:$0xff] %vm1446_vm4, %v1833_v28  ;;  %v1352_v10 = vadd.f32 %v18577_v11, %v1320_v32  ;;  %26011 = vst [vmem:[#allocation91_spill] sm:$0xff] %v18618_v36 }
 0x132   : > { %1937 = vst.msk [vmem:[#allocation2 + $0x28] sm:$0xff] %vm1446_vm4, %v1832_v60  ;;  %v1351_v61 = vadd.f32 %v18577_v11, %v1319_v16  ;;  %v15426_v14 = vpop.f32.mrb[36].mxu0  ;;  %8743 = vst.msk [vmem:[#allocation2 + $0x1b8] sm:$0xff] %vm1446_vm4, %v26006_v21 }
 0x133   : > { %v1835_v32 = vmax.f32 %v1352_v10, 0.0  ;;  %v1322_v3 = vmul.f32 %v15426_v14, %v18561_v13  ;;  %v1178_v28 = vpop.f32.mrb[37].mxu0  ;;  %v18632_v36 = vld [vmem:[#allocation2 + $0x1c0] sm:$0xff]  ;;  %v18634_v10 = vld [vmem:[#allocation2 + $0x1d8] sm:$0xff] }
 0x134   : > { %v1834_v16 = vmax.f32 %v1351_v61, 0.0  ;;  %v1321_v60 = vmul.f32 %v18561_v13, %v1178_v28  ;;  %26013 = vst [vmem:[#allocation93_spill] sm:$0xff] %v18632_v36  ;;  %26014 = vst [vmem:[#allocation94_spill] sm:$0xff] %v18634_v10  ;;  %v18642_v61 = vld [vmem:[#allocation2 + $0x200] sm:$0xff]  ;;  %v2387_v36 = vrot.slane %v18138_v56, 7 }
 0x135   : > { %1940 = vst.msk [vmem:[#allocation2 + $0x50] sm:$0xff] %vm1446_vm4, %v1835_v32  ;;  %v1354_v26 = vadd.f32 %v18577_v11, %v1322_v3  ;;  %8744 = vst.msk [vmem:[#allocation2 + $0x1c0] sm:$0xff] %vm1446_vm4, %v26006_v21 }
 0x136   : > { %1939 = vst.msk [vmem:[#allocation2 + $0x48] sm:$0xff] %vm1446_vm4, %v1834_v16  ;;  %v1353_v14 = vadd.f32 %v18577_v11, %v1321_v60  ;;  %v15429_v48 = vpop.f32.mrb[38].mxu0  ;;  %8747 = vst.msk [vmem:[#allocation2 + $0x1d8] sm:$0xff] %vm1446_vm4, %v26006_v21 }
 0x137   : > { %26015 = vst [vmem:[#allocation95_spill] sm:$0xff] %v18642_v61  ;;  %v1837_v32 = vmax.f32 %v1354_v26, 0.0  ;;  %v1324_v3 = vmul.f32 %v15429_v48, %v18561_v13  ;;  %v1188_v28 = vpop.f32.mrb[39].mxu0  ;;  %5767 = vst.msk [vmem:[#allocation2 + $0x200] sm:$0xff] %vm1446_vm4, %v26006_v21  ;;  %v18658_v26 = vld [vmem:[#allocation2 + $0x1e0] sm:$0xff] }
 0x138   : > { %v1836_v10 = vmax.f32 %v1353_v14, 0.0  ;;  %v1323_v16 = vmul.f32 %v18561_v13, %v1188_v28  ;;  %v18648_v60 = vld [vmem:[#allocation2 + $0x30] sm:$0xff]  ;;  %26016 = vst [vmem:[#allocation96_spill] sm:$0xff] %v18658_v26  ;;  %v18660_v14 = vld [vmem:[#allocation2 + $0x1f8] sm:$0xff]  ;;  %8748 = vst.msk [vmem:[#allocation2 + $0x1e0] sm:$0xff] %vm1446_vm4, %v26006_v21 }
 0x139   : > { %1942 = vst.msk [vmem:[#allocation2 + $0x70] sm:$0xff] %vm1446_vm4, %v1837_v32  ;;  %v1356_v46 = vadd.f32 %v18577_v11, %v1324_v3  ;;  %v18653_v50 = vld [vmem:[#allocation2 + $0x28] sm:$0xff]  ;;  %4889 = vst.msk [vmem:[#allocation2 + $0x30] sm:$0xff] %vm1446_vm4, %v26002_v57  ;;  %v2390_v48 = vrot.slane %v18648_v60, 7 }
 0x13a   : > { %26017 = vst [vmem:[#allocation97_spill] sm:$0xff] %v18660_v14  ;;  %1941 = vst.msk [vmem:[#allocation2 + $0x68] sm:$0xff] %vm1446_vm4, %v1836_v10  ;;  %v1355_v28 = vadd.f32 %v18577_v11, %v1323_v16  ;;  %v15432_v56 = vpop.f32.mrb[40].mxu0  ;;  %15521 = vmatprep.mubr.msk.f32.mxu0 %vm1446_vm4, %v18653_v50  ;;  %v2388_v32 = vrot.slane %v18653_v50, 7  ;;  %v2392_v16 = vrot.slane %v18147_v59, 7 }
 0x13b   : > { %4888 = vst.msk [vmem:[#allocation2 + $0x28] sm:$0xff] %vm1446_vm4, %v26002_v57  ;;  %8751 = vst.msk [vmem:[#allocation2 + $0x1f8] sm:$0xff] %vm1446_vm4, %v26006_v21  ;;  %v1839_v3 = vmax.f32 %v1356_v46, 0.0  ;;  %v1326_v10 = vmul.f32 %v15432_v56, %v18561_v13  ;;  %v1198_v61 = vpop.f32.mrb[41].mxu0  ;;  %15522 = vmatmul.mubr.msk.f32.gmra.mrb[98].mxu0 %vm1446_vm4, %v18648_v60 }
 0x13c   : > { %v1838_v14 = vmax.f32 %v1355_v28, 0.0  ;;  %v1325_v26 = vmul.f32 %v18561_v13, %v1198_v61  ;;  %v18679_v37 = vsel %vm2381_vm5, %v2387_v36, %v2388_v32  ;;  %v18682_v22 = vsel %vm2381_vm5, %v2388_v32, %v2390_v48  ;;  %v18684_v24 = vld [vmem:[#allocation2 + $0x50] sm:$0xff]  ;;  %v18698_v36 = vld [vmem:[%s25395_s8 + $0x28] sm:$0xff] }
 0x13d   : > { %26018 = vst [vmem:[#allocation98_spill] sm:$0xff] %v18684_v24  ;;  %1944 = vst.msk [vmem:[#allocation2 + $0x90] sm:$0xff] %vm1446_vm4, %v1839_v3  ;;  %v1358_v46 = vadd.f32 %v18577_v11, %v1326_v10  ;;  %15668 = vmatprep.mubr.msk.f32.mxu1 %vm1446_vm4, %v18679_v37  ;;  %v18690_v56 = vld [vmem:[#allocation2 + $0x48] sm:$0xff]  ;;  %v2395_v59 = vrot.slane %v18684_v24, 7 }
 0x13e   : > { %26019 = vst [vmem:[#allocation99_spill] sm:$0xff] %v18690_v56  ;;  %4893 = vst.msk [vmem:[#allocation2 + $0x50] sm:$0xff] %vm1446_vm4, %v26002_v57  ;;  %v1357_v61 = vadd.f32 %v18577_v11, %v1325_v26  ;;  %v15435_v48 = vpop.f32.mrb[42].mxu0  ;;  %15524 = vmatprep.mubr.msk.f32.mxu0 %vm1446_vm4, %v18690_v56  ;;  %15669 = vmatmul.mubr.msk.f32.vlgmr.msra.gmra.mrb[0].mxu1 %vm1446_vm4, %v18682_v22  ;;  %v2393_v28 = vrot.slane %v18690_v56, 7  ;;  %v18709_v32 = vld [vmem:[#allocation2 + $0x200] sm:$0xff]  ;;  %v2397_v26 = vrot.slane %v18168_v2, 7 }
 0x13f   : > { %1943 = vst.msk [vmem:[#allocation2 + $0x88] sm:$0xff] %vm1446_vm4, %v1838_v14  ;;  %4892 = vst.msk [vmem:[#allocation2 + $0x48] sm:$0xff] %vm1446_vm4, %v26002_v57  ;;  %v1841_v3 = vmax.f32 %v1358_v46, 0.0  ;;  %v1328_v10 = vmul.f32 %v15435_v48, %v18561_v13  ;;  %v1208_v14 = vpop.f32.mrb[43].mxu0  ;;  %15525 = vmatmul.mubr.msk.f32.gmra.mrb[100].mxu0 %vm1446_vm4, %v18684_v24  ;;  %15717 = vmatpush3.msra.mxu1 %v18334_v1 }
 0x140   : > { %26020 = vst [vmem:[#allocation100_spill] sm:$0xff] %v18709_v32  ;;  %8752 = vst.msk [vmem:[#allocation2 + $0x200] sm:$0xff] %vm1446_vm4, %v26006_v21  ;;  %v1840_v30 = vmax.f32 %v1357_v61, 0.0  ;;  %v1327_v34 = vmul.f32 %v18561_v13, %v1208_v14  ;;  %v18720_v41 = vsel %vm2381_vm5, %v2392_v16, %v2393_v28  ;;  %v18723_v46 = vsel %vm2381_vm5, %v2393_v28, %v2395_v59  ;;  %v18725_v48 = vld [vmem:[#allocation2 + $0x70] sm:$0xff] }
 0x141   : > { %26021 = vst [vmem:[#allocation101_spill] sm:$0xff] %v18720_v41  ;;  %26022 = vst [vmem:[#allocation102_spill] sm:$0xff] %v18723_v46  ;;  %15766 = vmatprep.subr.mxu1 %v18698_v36  ;;  %v1360_v2 = vadd.f32 %v18577_v11, %v1328_v10  ;;  %15671 = vmatprep.mubr.msk.f32.mxu1 %vm1446_vm4, %v18720_v41  ;;  %v18732_v1 = vld [vmem:[#allocation2 + $0x68] sm:$0xff]  ;;  %v2400_v16 = vrot.slane %v18725_v48, 7 }
 0x142   : > { %26023 = vst [vmem:[#allocation103_spill] sm:$0xff] %v18725_v48  ;;  %1946 = vst.msk [vmem:[#allocation2 + $0xb0] sm:$0xff] %vm1446_vm4, %v1841_v3  ;;  %v1359_v59 = vadd.f32 %v18577_v11, %v1327_v34  ;;  %v15438_v61 = vpop.f32.mrb[44].mxu0  ;;  %15527 = vmatprep.mubr.msk.f32.mxu0 %vm1446_vm4, %v18732_v1  ;;  %15672 = vmatmul.mubr.msk.f32.gmra.mrb[2].mxu1 %vm1446_vm4, %v18723_v46  ;;  %v2398_v28 = vrot.slane %v18732_v1, 7 }
 0x143   : > { %26024 = vst [vmem:[#allocation104_spill] sm:$0xff] %v18732_v1  ;;  %4897 = vst.msk [vmem:[#allocation2 + $0x70] sm:$0xff] %vm1446_vm4, %v26002_v57  ;;  %v1843_v3 = vmax.f32 %v1360_v2, 0.0  ;;  %v1330_v10 = vmul.f32 %v15438_v61, %v18561_v13  ;;  %v1218_v14 = vpop.f32.mrb[45].mxu0  ;;  %15528 = vmatmul.mubr.msk.f32.gmra.mrb[102].mxu0 %vm1446_vm4, %v18725_v48 }
 0x144   : > { %1945 = vst.msk [vmem:[#allocation2 + $0xa8] sm:$0xff] %vm1446_vm4, %v1840_v30  ;;  %4896 = vst.msk [vmem:[#allocation2 + $0x68] sm:$0xff] %vm1446_vm4, %v26002_v57  ;;  %v2402_v30 = vrot.slane %v18182_v9, 7  ;;  %v1842_v34 = vmax.f32 %v1359_v59, 0.0  ;;  %v1329_v32 = vmul.f32 %v18561_v13, %v1218_v14  ;;  %v18752_v12 = vsel %vm2381_vm5, %v2397_v26, %v2398_v28  ;;  %v18757_v19 = vld [vmem:[#allocation2 + $0x90] sm:$0xff] }
 0x145   : > { %26025 = vst [vmem:[#allocation105_spill] sm:$0xff] %v18752_v12  ;;  %v18755_v4 = vsel %vm2381_vm5, %v2398_v28, %v2400_v16  ;;  %26027 = vst [vmem:[#allocation107_spill] sm:$0xff] %v18757_v19  ;;  %v1362_v2 = vadd.f32 %v18577_v11, %v1330_v10  ;;  %15674 = vmatprep.mubr.msk.f32.mxu1 %vm1446_vm4, %v18752_v12  ;;  %v2405_v9 = vrot.slane %v18757_v19, 7 }
 0x146   : > { %26026 = vst [vmem:[#allocation106_spill] sm:$0xff] %v18755_v4  ;;  %1948 = vst.msk [vmem:[#allocation2 + $0xd0] sm:$0xff] %vm1446_vm4, %v1843_v3  ;;  %v18763_v61 = vld [vmem:[#allocation2 + $0x88] sm:$0xff]  ;;  %v1361_v26 = vadd.f32 %v18577_v11, %v1329_v32  ;;  %v15441_v16 = vpop.f32.mrb[46].mxu0  ;;  %15675 = vmatmul.mubr.msk.f32.gmra.mrb[4].mxu1 %vm1446_vm4, %v18755_v4  ;;  %v2407_v32 = vrot.slane %v18196_v15, 7 }
 0x147   : > { %26028 = vst [vmem:[#allocation108_spill] sm:$0xff] %v18763_v61  ;;  %4901 = vst.msk [vmem:[#allocation2 + $0x90] sm:$0xff] %vm1446_vm4, %v26002_v57  ;;  %15530 = vmatprep.mubr.msk.f32.mxu0 %vm1446_vm4, %v18763_v61  ;;  %v2403_v59 = vrot.slane %v18763_v61, 7  ;;  %v1845_v28 = vmax.f32 %v1362_v2, 0.0  ;;  %v1332_v3 = vmul.f32 %v15441_v16, %v18561_v13  ;;  %v1228_v10 = vpop.f32.mrb[47].mxu0 }
 0x148   : > { %1947 = vst.msk [vmem:[#allocation2 + $0xc8] sm:$0xff] %vm1446_vm4, %v1842_v34  ;;  %4900 = vst.msk [vmem:[#allocation2 + $0x88] sm:$0xff] %vm1446_vm4, %v26002_v57  ;;  %15531 = vmatmul.mubr.msk.f32.gmra.mrb[104].mxu0 %vm1446_vm4, %v18757_v19  ;;  %v1844_v14 = vmax.f32 %v1361_v26, 0.0  ;;  %v1331_v34 = vmul.f32 %v18561_v13, %v1228_v10  ;;  %v2412_v10 = vrot.slane %v18207_v20, 7 }
 0x149   : > { %v18783_v44 = vsel %vm2381_vm5, %v2402_v30, %v2403_v59  ;;  %v18786_v18 = vsel %vm2381_vm5, %v2403_v59, %v2405_v9  ;;  %v18788_v48 = vld [vmem:[#allocation2 + $0xb0] sm:$0xff]  ;;  %1950 = vst.msk [vmem:[#allocation2 + $0xf0] sm:$0xff] %vm1446_vm4, %v1845_v28  ;;  %v1364_v2 = vadd.f32 %v18577_v11, %v1332_v3 }
 0x14a   : > { %26029 = vst [vmem:[#allocation109_spill] sm:$0xff] %v18783_v44  ;;  %26030 = vst [vmem:[#allocation110_spill] sm:$0xff] %v18786_v18  ;;  %15677 = vmatprep.mubr.msk.f32.mxu1 %vm1446_vm4, %v18783_v44  ;;  %v2410_v15 = vrot.slane %v18788_v48, 7  ;;  %v1363_v30 = vadd.f32 %v18577_v11, %v1331_v34  ;;  %v15444_v9 = vpop.f32.mrb[48].mxu0 }
 0x14b   : > { %26031 = vst [vmem:[#allocation111_spill] sm:$0xff] %v18788_v48  ;;  %v18794_v16 = vld [vmem:[#allocation2 + $0xa8] sm:$0xff]  ;;  %4905 = vst.msk [vmem:[#allocation2 + $0xb0] sm:$0xff] %vm1446_vm4, %v26002_v57  ;;  %15678 = vmatmul.mubr.msk.f32.gmra.mrb[6].mxu1 %vm1446_vm4, %v18786_v18  ;;  %v1847_v59 = vmax.f32 %v1364_v2, 0.0  ;;  %v1334_v28 = vmul.f32 %v15444_v9, %v18561_v13  ;;  %v1238_v3 = vpop.f32.mrb[49].mxu0  ;;  %v4987_v2 = vld [vmem:[#allocation2] sm:$0xff] }
 0x14c   : > { %26032 = vst [vmem:[#allocation112_spill] sm:$0xff] %v18794_v16  ;;  %1949 = vst.msk [vmem:[#allocation2 + $0xe8] sm:$0xff] %vm1446_vm4, %v1844_v14  ;;  %15533 = vmatprep.mubr.msk.f32.mxu0 %vm1446_vm4, %v18794_v16  ;;  %v2408_v26 = vrot.slane %v18794_v16, 7  ;;  %v1846_v14 = vmax.f32 %v1363_v30, 0.0  ;;  %v1333_v34 = vmul.f32 %v18561_v13, %v1238_v3  ;;  %v18821_v16 = vld [vmem:[#allocation2 + $0x8] sm:$0xff] }
 0x14d   : > { %4904 = vst.msk [vmem:[#allocation2 + $0xa8] sm:$0xff] %vm1446_vm4, %v26002_v57  ;;  %15534 = vmatmul.mubr.msk.f32.gmra.mrb[106].mxu0 %vm1446_vm4, %v18788_v48  ;;  %v18819_v18 = vld [vmem:[#allocation2 + $0xd0] sm:$0xff]  ;;  %1952 = vst.msk [vmem:[#allocation2 + $0x110] sm:$0xff] %vm1446_vm4, %v1847_v59  ;;  %v1366_v9 = vadd.f32 %v18577_v11, %v1334_v28  ;;  %v5107_v28 = vrot.slane %v4987_v2, 7  ;;  %v2417_v48 = vrot.slane %v18217_v23, 7 }
 0x14e   : > { %v18814_v19 = vsel %vm2381_vm5, %v2407_v32, %v2408_v26  ;;  %v18817_v61 = vsel %vm2381_vm5, %v2408_v26, %v2410_v15  ;;  %26035 = vst [vmem:[#allocation115_spill] sm:$0xff] %v18819_v18  ;;  %4909 = vst.msk [vmem:[#allocation2 + $0xd0] sm:$0xff] %vm1446_vm4, %v26002_v57  ;;  %v2415_v32 = vrot.slane %v18819_v18, 7  ;;  %v18836_v15 = vld [vmem:[#allocation2 + $0x10] sm:$0xff]  ;;  %v1365_v30 = vadd.f32 %v18577_v11, %v1333_v34  ;;  %v15447_v26 = vpop.f32.mrb[50].mxu0 }
 0x14f   : > { %26033 = vst [vmem:[#allocation113_spill] sm:$0xff] %v18814_v19  ;;  %26034 = vst [vmem:[#allocation114_spill] sm:$0xff] %v18817_v61  ;;  %15680 = vmatprep.mubr.msk.f32.mxu1 %vm1446_vm4, %v18814_v19  ;;  %v18827_v20 = vld [vmem:[#allocation2 + $0xc8] sm:$0xff]  ;;  %v1849_v3 = vmax.f32 %v1366_v9, 0.0  ;;  %v1248_v34 = vpop.f32.mrb[51].mxu0  ;;  %v25439_v19 = vrot.slane %v18821_v16, 7 }
 0x150   : > { %26036 = vst [vmem:[#allocation116_spill] sm:$0xff] %v18827_v20  ;;  %5704 = vst.msk [vmem:[#allocation2 + $0x8] sm:$0xff] %vm1446_vm4, %v26006_v21  ;;  %15536 = vmatprep.mubr.msk.f32.mxu0 %vm1446_vm4, %v18827_v20  ;;  %15681 = vmatmul.mubr.msk.f32.gmra.mrb[8].mxu1 %vm1446_vm4, %v18817_v61  ;;  %v2413_v59 = vrot.slane %v18827_v20, 7  ;;  %v1848_v17 = vmax.f32 %v1365_v30, 0.0  ;;  %v1335_v61 = vmul.f32 %v18561_v13, %v1248_v34  ;;  %v18861_v9 = vld [vmem:[#allocation2 + $0xf0] sm:$0xff]  ;;  %v2422_v34 = vrot.slane %v18228_v25, 7 }
 0x151   : > { %5703 = vst.msk [vmem:[#allocation2] sm:$0xff] %vm1446_vm4, %v26006_v21  ;;  %1951 = vst.msk [vmem:[#allocation2 + $0x108] sm:$0xff] %vm1446_vm4, %v1846_v14  ;;  %v1336_v14 = vmul.f32 %v15447_v26, %v18561_v13  ;;  %15537 = vmatmul.mubr.msk.f32.gmra.mrb[108].mxu0 %vm1446_vm4, %v18819_v18  ;;  %v18863_v26 = vld [vmem:[#allocation2 + $0x18] sm:$0xff] }
 0x152   : > { %4908 = vst.msk [vmem:[#allocation2 + $0xc8] sm:$0xff] %vm1446_vm4, %v26002_v57  ;;  %5705 = vst.msk [vmem:[#allocation2 + $0x10] sm:$0xff] %vm1446_vm4, %v26006_v21  ;;  %v18856_v20 = vsel %vm2381_vm5, %v2412_v10, %v2413_v59  ;;  %v18859_v2 = vsel %vm2381_vm5, %v2413_v59, %v2415_v32  ;;  %v2420_v10 = vrot.slane %v18861_v9, 7  ;;  %v1367_v32 = vadd.f32 %v18577_v11, %v1335_v61  ;;  %v15450_v30 = vpop.f32.mrb[52].mxu0 }
 0x153   : > { %26037 = vst [vmem:[#allocation117_spill] sm:$0xff] %v18856_v20  ;;  %26038 = vst [vmem:[#allocation118_spill] sm:$0xff] %v18859_v2  ;;  %v1368_v18 = vadd.f32 %v18577_v11, %v1336_v14  ;;  %15683 = vmatprep.mubr.msk.f32.mxu1 %vm1446_vm4, %v18856_v20  ;;  %v18869_v23 = vld [vmem:[#allocation2 + $0xe8] sm:$0xff]  ;;  %v1338_v61 = vmul.f32 %v15450_v30, %v18561_v13  ;;  %v1258_v14 = vpop.f32.mrb[53].mxu0 }
 0x154   : > { %26039 = vst [vmem:[#allocation119_spill] sm:$0xff] %v18861_v9  ;;  %1954 = vst.msk [vmem:[#allocation2 + $0x130] sm:$0xff] %vm1446_vm4, %v1849_v3  ;;  %15539 = vmatprep.mubr.msk.f32.mxu0 %vm1446_vm4, %v18869_v23  ;;  %15684 = vmatmul.mubr.msk.f32.gmra.mrb[10].mxu1 %vm1446_vm4, %v18859_v2  ;;  %v2418_v59 = vrot.slane %v18869_v23, 7  ;;  %v18888_v3 = vsel %vm2381_vm5, %v5107_v28, %v25439_v19  ;;  %v1850_v20 = vmax.f32 %v1367_v32, 0.0  ;;  %v18901_v28 = vld [vmem:[#allocation2 + $0x110] sm:$0xff] }
 0x155   : > { %26040 = vst [vmem:[#allocation120_spill] sm:$0xff] %v18869_v23  ;;  %4913 = vst.msk [vmem:[#allocation2 + $0xf0] sm:$0xff] %vm1446_vm4, %v26002_v57  ;;  %15540 = vmatmul.mubr.msk.f32.gmra.mrb[110].mxu0 %vm1446_vm4, %v18861_v9  ;;  %v1337_v44 = vmul.f32 %v18561_v13, %v1258_v14  ;;  %v2425_v25 = vrot.slane %v18901_v28, 7  ;;  %v5110_v14 = vrot.slane %v18836_v15, 7 }
 0x156   : > { %5706 = vst.msk [vmem:[#allocation2 + $0x18] sm:$0xff] %vm1446_vm4, %v26006_v21  ;;  %1953 = vst.msk [vmem:[#allocation2 + $0x128] sm:$0xff] %vm1446_vm4, %v1848_v17  ;;  %v1851_v17 = vmax.f32 %v1368_v18, 0.0  ;;  %v18896_v2 = vsel %vm2381_vm5, %v2417_v48, %v2418_v59  ;;  %v18899_v23 = vsel %vm2381_vm5, %v2418_v59, %v2420_v10  ;;  %v1370_v18 = vadd.f32 %v18577_v11, %v1338_v61  ;;  %v18912_v48 = vld [vmem:[#allocation2 + $0x218] sm:$0xff]  ;;  %v15453_v32 = vpop.f32.mrb[54].mxu0 }
 0x157   : > { %4912 = vst.msk [vmem:[#allocation2 + $0xe8] sm:$0xff] %vm1446_vm4, %v26002_v57  ;;  %26041 = vst [vmem:[#allocation121_spill] sm:$0xff] %v18896_v2  ;;  %15686 = vmatprep.mubr.msk.f32.mxu1 %vm1446_vm4, %v18896_v2  ;;  %v1369_v10 = vadd.f32 %v18577_v11, %v1337_v44  ;;  %v1268_v61 = vpop.f32.mrb[55].mxu0  ;;  %v2427_v44 = vrot.slane %v18239_v27, 7 }
 0x158   : > { %26042 = vst [vmem:[#allocation122_spill] sm:$0xff] %v18899_v23  ;;  %26043 = vst [vmem:[#allocation123_spill] sm:$0xff] %v18901_v28  ;;  %v18907_v30 = vld [vmem:[#allocation2 + $0x108] sm:$0xff]  ;;  %15687 = vmatmul.mubr.msk.f32.gmra.mrb[12].mxu1 %vm1446_vm4, %v18899_v23 }
 0x159   : > { %1956 = vst.msk [vmem:[#allocation2 + $0x150] sm:$0xff] %vm1446_vm4, %v1851_v17  ;;  %26044 = vst [vmem:[#allocation124_spill] sm:$0xff] %v18907_v30  ;;  %15542 = vmatprep.mubr.msk.f32.mxu0 %vm1446_vm4, %v18907_v30  ;;  %v2423_v59 = vrot.slane %v18907_v30, 7  ;;  %v1853_v17 = vmax.f32 %v1370_v18, 0.0  ;;  %v1852_v19 = vmax.f32 %v1369_v10, 0.0 }
 0x15a   : > { %4917 = vst.msk [vmem:[#allocation2 + $0x110] sm:$0xff] %vm1446_vm4, %v26002_v57  ;;  %26045 = vst [vmem:[#allocation125_spill] sm:$0xff] %v18912_v48  ;;  %15543 = vmatmul.mubr.msk.f32.gmra.mrb[112].mxu0 %vm1446_vm4, %v18901_v28  ;;  %v1339_v48 = vmul.f32 %v18561_v13, %v1268_v61  ;;  %v15456_v10 = vpop.f32.mrb[56].mxu0 }
 0x15b   : > { %1955 = vst.msk [vmem:[#allocation2 + $0x148] sm:$0xff] %vm1446_vm4, %v1850_v20  ;;  %4916 = vst.msk [vmem:[#allocation2 + $0x108] sm:$0xff] %vm1446_vm4, %v26002_v57  ;;  %v1340_v20 = vmul.f32 %v15453_v32, %v18561_v13  ;;  %v18932_v9 = vsel %vm2381_vm5, %v2422_v34, %v2423_v59  ;;  %v18935_v30 = vsel %vm2381_vm5, %v2423_v59, %v2425_v25  ;;  %v18937_v18 = vld [vmem:[#allocation2 + $0x130] sm:$0xff]  ;;  %v1278_v61 = vpop.f32.mrb[57].mxu0 }
 0x15c   : > { %5770 = vst.msk [vmem:[#allocation2 + $0x218] sm:$0xff] %vm1446_vm4, %v26006_v21  ;;  %26046 = vst [vmem:[#allocation126_spill] sm:$0xff] %v18932_v9  ;;  %15689 = vmatprep.mubr.msk.f32.mxu1 %vm1446_vm4, %v18932_v9  ;;  %v2430_v34 = vrot.slane %v18937_v18, 7  ;;  %v1371_v25 = vadd.f32 %v18577_v11, %v1339_v48  ;;  %v26050_v48 = vrot.slane %v18821_v16, 7  ;;  %v1341_v23 = vmul.f32 %v18561_v13, %v1278_v61 }
 0x15d   : > { %26047 = vst [vmem:[#allocation127_spill] sm:$0xff] %v18935_v30  ;;  %26048 = vst [vmem:[#allocation128_spill] sm:$0xff] %v18937_v18  ;;  %v1372_v32 = vadd.f32 %v18577_v11, %v1340_v20  ;;  %v18943_v27 = vld [vmem:[#allocation2 + $0x128] sm:$0xff]  ;;  %15690 = vmatmul.mubr.msk.f32.gmra.mrb[14].mxu1 %vm1446_vm4, %v18935_v30  ;;  %v1342_v20 = vmul.f32 %v15456_v10, %v18561_v13  ;;  %v5302_v61 = vrot.slane %v18863_v26, 1 }
 0x15e   : > { %1958 = vst.msk [vmem:[#allocation2 + $0x170] sm:$0xff] %vm1446_vm4, %v1853_v17  ;;  %26049 = vst [vmem:[#allocation129_spill] sm:$0xff] %v18943_v27  ;;  %15545 = vmatprep.mubr.msk.f32.mxu0 %vm1446_vm4, %v18943_v27  ;;  %v2428_v59 = vrot.slane %v18943_v27, 7  ;;  %v18964_v28 = vsel %vm2381_vm5, %v26050_v48, %v5110_v14  ;;  %v1854_v9 = vmax.f32 %v1371_v25, 0.0 }
 0x15f   : > { %4921 = vst.msk [vmem:[#allocation2 + $0x130] sm:$0xff] %vm1446_vm4, %v26002_v57  ;;  %1957 = vst.msk [vmem:[#allocation2 + $0x168] sm:$0xff] %vm1446_vm4, %v1852_v19  ;;  %v1855_v17 = vmax.f32 %v1372_v32, 0.0  ;;  %15546 = vmatmul.mubr.msk.f32.gmra.mrb[114].mxu0 %vm1446_vm4, %v18937_v18  ;;  %v2432_v19 = vrot.slane %v18247_v29, 7  ;;  %v1374_v29 = vadd.f32 %v18577_v11, %v1342_v20  ;;  %v5300_v20 = vrot.slane %v18836_v15, 1 }
 0x160   : > { %4920 = vst.msk [vmem:[#allocation2 + $0x128] sm:$0xff] %vm1446_vm4, %v26002_v57  ;;  %v18968_v30 = vsel %vm2381_vm5, %v2427_v44, %v2428_v59  ;;  %v18971_v32 = vsel %vm2381_vm5, %v2428_v59, %v2430_v34  ;;  %v18973_v10 = vld [vmem:[#allocation2 + $0x150] sm:$0xff]  ;;  %1959 = vst.msk [vmem:[#allocation2 + $0x188] sm:$0xff] %vm1446_vm4, %v1854_v9  ;;  %v1373_v34 = vadd.f32 %v18577_v11, %v1341_v23  ;;  %v15459_v59 = vpop.f32.mrb[58].mxu0 }
 0x161   : > { %26051 = vst [vmem:[#allocation130_spill] sm:$0xff] %v18968_v30  ;;  %26052 = vst [vmem:[#allocation131_spill] sm:$0xff] %v18971_v32  ;;  %15692 = vmatprep.mubr.msk.f32.mxu1 %vm1446_vm4, %v18968_v30  ;;  %v2435_v44 = vrot.slane %v18973_v10, 7  ;;  %v1857_v9 = vmax.f32 %v1374_v29, 0.0  ;;  %v1344_v23 = vmul.f32 %v15459_v59, %v18561_v13  ;;  %v1288_v48 = vpop.f32.mrb[59].mxu0 }
 0x162   : > { %26053 = vst [vmem:[#allocation132_spill] sm:$0xff] %v18973_v10  ;;  %1960 = vst.msk [vmem:[#allocation2 + $0x190] sm:$0xff] %vm1446_vm4, %v1855_v17  ;;  %v18979_v14 = vld [vmem:[#allocation2 + $0x148] sm:$0xff]  ;;  %15693 = vmatmul.mubr.msk.f32.gmra.mrb[16].mxu1 %vm1446_vm4, %v18971_v32  ;;  %v1856_v18 = vmax.f32 %v1373_v34, 0.0  ;;  %v1343_v27 = vmul.f32 %v18561_v13, %v1288_v48  ;;  %v5299_v48 = vrot.slane %v18821_v16, 1 }
 0x163   : > { %26054 = vst [vmem:[#allocation133_spill] sm:$0xff] %v18979_v14  ;;  %4925 = vst.msk [vmem:[#allocation2 + $0x150] sm:$0xff] %vm1446_vm4, %v26002_v57  ;;  %v18984_v25 = vld [vmem:[#allocation2 + $0x218] sm:$0xff]  ;;  %15548 = vmatprep.mubr.msk.f32.mxu0 %vm1446_vm4, %v18979_v14  ;;  %v2433_v17 = vrot.slane %v18979_v14, 7  ;;  %v1376_v29 = vadd.f32 %v18577_v11, %v1344_v23 }
 0x164   : > { %26055 = vst [vmem:[#allocation134_spill] sm:$0xff] %v18984_v25  ;;  %4924 = vst.msk [vmem:[#allocation2 + $0x148] sm:$0xff] %vm1446_vm4, %v26002_v57  ;;  %15549 = vmatmul.mubr.msk.f32.gmra.mrb[116].mxu0 %vm1446_vm4, %v18973_v10  ;;  %v2437_v25 = vrot.slane %v18255_v31, 7 }
 0x165   : > { %8755 = vst.msk [vmem:[#allocation2 + $0x218] sm:$0xff] %vm1446_vm4, %v26006_v21  ;;  %v19005_v14 = vsel %vm2381_vm5, %v2432_v19, %v2433_v17  ;;  %v19008_v26 = vsel %vm2381_vm5, %v2433_v17, %v2435_v44  ;;  %v19010_v32 = vld [vmem:[#allocation2 + $0x170] sm:$0xff]  ;;  %1962 = vst.msk [vmem:[#allocation2 + $0x1b0] sm:$0xff] %vm1446_vm4, %v1857_v9  ;;  %v1375_v19 = vadd.f32 %v18577_v11, %v1343_v27  ;;  %v15462_v44 = vpop.f32.mrb[60].mxu0  ;;  %v1859_v9 = vmax.f32 %v1376_v29, 0.0 }
 0x166   : > { %26056 = vst [vmem:[#allocation135_spill] sm:$0xff] %v19005_v14  ;;  %26057 = vst [vmem:[#allocation136_spill] sm:$0xff] %v19008_v26  ;;  %15695 = vmatprep.mubr.msk.f32.mxu1 %vm1446_vm4, %v19005_v14  ;;  %v19016_v59 = vld [vmem:[#allocation2 + $0x168] sm:$0xff]  ;;  %v2440_v31 = vrot.slane %v19010_v32, 7  ;;  %v19031_v17 = vsel %vm2769_vm6, %v5300_v20, %v5302_v61  ;;  %v1298_v23 = vpop.f32.mrb[61].mxu0  ;;  %v2442_v27 = vrot.slane %v18263_v33, 7 }
 0x167   : > { %26058 = vst [vmem:[#allocation137_spill] sm:$0xff] %v19010_v32  ;;  %26059 = vst [vmem:[#allocation138_spill] sm:$0xff] %v19016_v59  ;;  %15551 = vmatprep.mubr.msk.f32.mxu0 %vm1446_vm4, %v19016_v59  ;;  %15696 = vmatmul.mubr.msk.f32.gmra.mrb[18].mxu1 %vm1446_vm4, %v19008_v26  ;;  %v2438_v34 = vrot.slane %v19016_v59, 7  ;;  %v1858_v10 = vmax.f32 %v1375_v19, 0.0  ;;  %v1345_v14 = vmul.f32 %v18561_v13, %v1298_v23  ;;  %v19051_v33 = vld [vmem:[#allocation2 + $0x188] sm:$0xff]  ;;  %v15465_v19 = vpop.f32.mrb[62].mxu0 }
 0x168   : > { %4929 = vst.msk [vmem:[#allocation2 + $0x170] sm:$0xff] %vm1446_vm4, %v26002_v57  ;;  %1961 = vst.msk [vmem:[#allocation2 + $0x1a8] sm:$0xff] %vm1446_vm4, %v1856_v18  ;;  %v1346_v18 = vmul.f32 %v15462_v44, %v18561_v13  ;;  %15552 = vmatmul.mubr.msk.f32.gmra.mrb[118].mxu0 %vm1446_vm4, %v19010_v32  ;;  %v1308_v23 = vpop.f32.mrb[63].mxu0  ;;  %v19072_v32 = vsel %vm2769_vm6, %v5299_v48, %v5300_v20  ;;  %v858_v48 = vmul.f32 %v18287_v42, %v18561_v13 }
 0x169   : > { %4928 = vst.msk [vmem:[#allocation2 + $0x168] sm:$0xff] %vm1446_vm4, %v26002_v57  ;;  %v19040_v26 = vsel %vm2381_vm5, %v2437_v25, %v2438_v34  ;;  %v19043_v61 = vsel %vm2381_vm5, %v2438_v34, %v2440_v31  ;;  %v19045_v29 = vld [vmem:[#allocation2 + $0x190] sm:$0xff]  ;;  %1964 = vst.msk [vmem:[#allocation2 + $0x1d0] sm:$0xff] %vm1446_vm4, %v1859_v9  ;;  %v1377_v31 = vadd.f32 %v18577_v11, %v1345_v14  ;;  %15554 = vmatprep.mubr.msk.f32.mxu0 %vm1446_vm4, %v19051_v33 }
 0x16a   : > { %26060 = vst [vmem:[#allocation139_spill] sm:$0xff] %v19040_v26  ;;  %26061 = vst [vmem:[#allocation140_spill] sm:$0xff] %v19043_v61  ;;  %v1378_v44 = vadd.f32 %v18577_v11, %v1346_v18  ;;  %15698 = vmatprep.mubr.msk.f32.mxu1 %vm1446_vm4, %v19040_v26  ;;  %v2445_v25 = vrot.slane %v19045_v29, 7  ;;  %v2443_v34 = vrot.slane %v19051_v33, 7  ;;  %v2447_v9 = vrot.slane %v18271_v35, 7 }
 0x16b   : > { %26062 = vst [vmem:[#allocation141_spill] sm:$0xff] %v19045_v29  ;;  %26063 = vst [vmem:[#allocation142_spill] sm:$0xff] %v19051_v33  ;;  %15699 = vmatmul.mubr.msk.f32.gmra.mrb[20].mxu1 %vm1446_vm4, %v19043_v61  ;;  %v856_v18 = vmul.f32 %v18275_v38, %v18561_v13  ;;  %v1348_v14 = vmul.f32 %v15465_v19, %v18561_v13  ;;  %v1860_v59 = vmax.f32 %v1377_v31, 0.0 }
 0x16c   : > { %4933 = vst.msk [vmem:[#allocation2 + $0x190] sm:$0xff] %vm1446_vm4, %v26002_v57  ;;  %1963 = vst.msk [vmem:[#allocation2 + $0x1c8] sm:$0xff] %vm1446_vm4, %v1858_v10  ;;  %v1861_v10 = vmax.f32 %v1378_v44, 0.0  ;;  %15555 = vmatmul.mubr.msk.f32.gmra.mrb[120].mxu0 %vm1446_vm4, %v19045_v29  ;;  %v1347_v61 = vmul.f32 %v18561_v13, %v1308_v23  ;;  %v19076_v33 = vsel %vm2381_vm5, %v2442_v27, %v2443_v34  ;;  %v19081_v38 = vld [vmem:[#allocation2 + $0x1b0] sm:$0xff] }
 0x16d   : > { %4932 = vst.msk [vmem:[#allocation2 + $0x188] sm:$0xff] %vm1446_vm4, %v26002_v57  ;;  %26064 = vst [vmem:[#allocation143_spill] sm:$0xff] %v19076_v33  ;;  %v19079_v35 = vsel %vm2381_vm5, %v2443_v34, %v2445_v25  ;;  %v855_v44 = vmul.f32 %v18561_v13, %v18281_v39  ;;  %v1380_v19 = vadd.f32 %v18577_v11, %v1348_v14  ;;  %15701 = vmatprep.mubr.msk.f32.mxu1 %vm1446_vm4, %v19076_v33  ;;  %v15470_v25 = vpop.f32.mrb[64].mxu0 }
 0x16e   : > { %26065 = vst [vmem:[#allocation144_spill] sm:$0xff] %v19079_v35  ;;  %26066 = vst [vmem:[#allocation145_spill] sm:$0xff] %v19081_v38  ;;  %v2450_v27 = vrot.slane %v19081_v38, 7  ;;  %v1379_v39 = vadd.f32 %v18577_v11, %v1347_v61  ;;  %v19106_v34 = vadd.f32 %v18577_v11, %v856_v18  ;;  %v2452_v61 = vrot.slane %v18283_v40, 7 }
 0x16f   : > { %1966 = vst.msk [vmem:[#allocation2 + $0x1f0] sm:$0xff] %vm1446_vm4, %v1861_v10  ;;  %v19089_v20 = vld [vmem:[#allocation2 + $0x1a8] sm:$0xff]  ;;  %4937 = vst.msk [vmem:[#allocation2 + $0x1b0] sm:$0xff] %vm1446_vm4, %v26002_v57  ;;  %15702 = vmatmul.mubr.msk.f32.gmra.mrb[22].mxu1 %vm1446_vm4, %v19079_v35  ;;  %v1863_v42 = vmax.f32 %v1380_v19, 0.0  ;;  %v1609_v10 = vpop.f32.mrb[65].mxu0  ;;  %v19122_v19 = vadd.f32 %v18577_v11, %v855_v44  ;;  %v19137_v44 = vadd.f32 %v18577_v11, %v858_v48 }
 0x170   : > { %26067 = vst [vmem:[#allocation146_spill] sm:$0xff] %v19089_v20  ;;  %1965 = vst.msk [vmem:[#allocation2 + $0x1e8] sm:$0xff] %vm1446_vm4, %v1860_v59  ;;  %15557 = vmatprep.mubr.msk.f32.mxu0 %vm1446_vm4, %v19089_v20  ;;  %v2448_v31 = vrot.slane %v19089_v20, 7  ;;  %v1769_v59 = vmul.f32 %v15470_v25, %v18561_v13  ;;  %v1862_v14 = vmax.f32 %v1379_v39, 0.0  ;;  %v1768_v23 = vmul.f32 %v18561_v13, %v1609_v10  ;;  %v19119_v18 = vld [vmem:[#allocation2 + $0x1d0] sm:$0xff] }
 0x171   : > { %4936 = vst.msk [vmem:[#allocation2 + $0x1a8] sm:$0xff] %vm1446_vm4, %v26002_v57  ;;  %26068 = vst [vmem:[#allocation147_spill] sm:$0xff] %v19106_v34  ;;  %15558 = vmatmul.mubr.msk.f32.gmra.mrb[122].mxu0 %vm1446_vm4, %v19081_v38  ;;  %v2385_v25 = vrot.slane %v18136_v55, 7  ;;  %v857_v39 = vmul.f32 %v18561_v13, %v18293_v43  ;;  %v860_v43 = vmul.f32 %v18300_v47, %v18561_v13 }
 0x172   : > { %v19114_v29 = vsel %vm2381_vm5, %v2447_v9, %v2448_v31  ;;  %v19117_v20 = vsel %vm2381_vm5, %v2448_v31, %v2450_v27  ;;  %26071 = vst [vmem:[#allocation150_spill] sm:$0xff] %v19119_v18  ;;  %26072 = vst [vmem:[#allocation151_spill] sm:$0xff] %v19122_v19  ;;  %v19127_v40 = vadd.f32 %v18577_v11, %v1769_v59  ;;  %v2455_v27 = vrot.slane %v19119_v18, 7 }
 0x173   : > { %26069 = vst [vmem:[#allocation148_spill] sm:$0xff] %v19114_v29  ;;  %26070 = vst [vmem:[#allocation149_spill] sm:$0xff] %v19117_v20  ;;  %15704 = vmatprep.mubr.msk.f32.mxu1 %vm1446_vm4, %v19114_v29  ;;  %v19131_v9 = vld [vmem:[#allocation2 + $0x1c8] sm:$0xff]  ;;  %v19143_v31 = vadd.f32 %v18577_v11, %v1768_v23 }
 0x174   : > { %1968 = vst.msk [vmem:[#allocation2 + $0x210] sm:$0xff] %vm1446_vm4, %v1863_v42  ;;  %26073 = vst [vmem:[#allocation152_spill] sm:$0xff] %v19127_v40  ;;  %v15473_v42 = vpop.f32.mrb[66].mxu0  ;;  %15560 = vmatprep.mubr.msk.f32.mxu0 %vm1446_vm4, %v19131_v9  ;;  %15705 = vmatmul.mubr.msk.f32.gmra.mrb[24].mxu1 %vm1446_vm4, %v19117_v20  ;;  %v2453_v48 = vrot.slane %v19131_v9, 7 }
 0x175   : > { %26074 = vst [vmem:[#allocation153_spill] sm:$0xff] %v19131_v9  ;;  %4941 = vst.msk [vmem:[#allocation2 + $0x1d0] sm:$0xff] %vm1446_vm4, %v26002_v57  ;;  %v1619_v23 = vpop.f32.mrb[67].mxu0  ;;  %15561 = vmatmul.mubr.msk.f32.gmra.mrb[124].mxu0 %vm1446_vm4, %v19119_v18  ;;  %v859_v18 = vmul.f32 %v18561_v13, %v18306_v49 }
 0x176   : > { %26075 = vst [vmem:[#allocation154_spill] sm:$0xff] %v19137_v44  ;;  %1967 = vst.msk [vmem:[#allocation2 + $0x208] sm:$0xff] %vm1446_vm4, %v1862_v14  ;;  %v1771_v14 = vmul.f32 %v15473_v42, %v18561_v13  ;;  %v1770_v9 = vmul.f32 %v18561_v13, %v1619_v23  ;;  %v19165_v59 = vsel %vm2381_vm5, %v2452_v61, %v2453_v48  ;;  %v19170_v10 = vld [vmem:[#allocation2 + $0x1f0] sm:$0xff] }
 0x177   : > { %26076 = vst [vmem:[#allocation155_spill] sm:$0xff] %v19143_v31  ;;  %4940 = vst.msk [vmem:[#allocation2 + $0x1c8] sm:$0xff] %vm1446_vm4, %v26002_v57  ;;  %v19168_v47 = vsel %vm2381_vm5, %v2453_v48, %v2455_v27  ;;  %15707 = vmatprep.mubr.msk.f32.mxu1 %vm1446_vm4, %v19165_v59  ;;  %v19181_v61 = vld [vmem:[#allocation2 + $0x1e8] sm:$0xff]  ;;  %v2460_v27 = vrot.slane %v19170_v10, 7  ;;  %v19188_v48 = vadd.f32 %v18577_v11, %v857_v39 }
 0x178   : > { %4956 = vst.msk [vmem:[#allocation2 + $0x30] sm:$0xff] %vm1446_vm4, %v19127_v40  ;;  %4955 = vst.msk [vmem:[#allocation2 + $0x28] sm:$0xff] %vm1446_vm4, %v19143_v31  ;;  %v2457_v40 = vrot.slane %v18296_v45, 7  ;;  %v19177_v38 = vadd.f32 %v18577_v11, %v1771_v14  ;;  %v19191_v49 = vadd.f32 %v18577_v11, %v1770_v9  ;;  %v15476_v14 = vpop.f32.mrb[68].mxu0  ;;  %15563 = vmatprep.mubr.msk.f32.mxu0 %vm1446_vm4, %v19181_v61  ;;  %15708 = vmatmul.mubr.msk.f32.gmra.mrb[26].mxu1 %vm1446_vm4, %v19168_v47 }
 0x179   : > { %26077 = vst [vmem:[#allocation156_spill] sm:$0xff] %v19165_v59  ;;  %26078 = vst [vmem:[#allocation157_spill] sm:$0xff] %v19168_v47  ;;  %v2458_v23 = vrot.slane %v19181_v61, 7  ;;  %v19201_v45 = vadd.f32 %v18577_v11, %v860_v43  ;;  %v862_v39 = vmul.f32 %v18317_v54, %v18561_v13  ;;  %v1773_v9 = vmul.f32 %v15476_v14, %v18561_v13  ;;  %v1629_v42 = vpop.f32.mrb[69].mxu0 }
 0x17a   : > { %26079 = vst [vmem:[#allocation158_spill] sm:$0xff] %v19170_v10  ;;  %26080 = vst [vmem:[#allocation159_spill] sm:$0xff] %v19177_v38  ;;  %15564 = vmatmul.mubr.msk.f32.gmra.mrb[126].mxu0 %vm1446_vm4, %v19170_v10  ;;  %v26085_v31 = vrot.slane %v18130_v52, 7  ;;  %v1772_v43 = vmul.f32 %v18561_v13, %v1629_v42 }
 0x17b   : > { %26081 = vst [vmem:[#allocation160_spill] sm:$0xff] %v19181_v61  ;;  %4945 = vst.msk [vmem:[#allocation2 + $0x1f0] sm:$0xff] %vm1446_vm4, %v26002_v57  ;;  %v19217_v54 = vsel %vm2381_vm5, %v2457_v40, %v2458_v23  ;;  %15568 = vmatprep.mubr.msk.f32.mxu0 %vm1446_vm4, %v18313_v51  ;;  %v19222_v14 = vsel %vm2381_vm5, %v2458_v23, %v2460_v27  ;;  %v19225_v10 = vld [vmem:[#allocation2 + $0x210] sm:$0xff]  ;;  %v19233_v42 = vadd.f32 %v18577_v11, %v1773_v9 }
 0x17c   : > { %26082 = vst [vmem:[#allocation161_spill] sm:$0xff] %v19188_v48  ;;  %26083 = vst [vmem:[#allocation162_spill] sm:$0xff] %v19191_v49  ;;  %v2386_v47 = vsel %vm2381_vm5, %v26085_v31, %v2385_v25  ;;  %v19228_v25 = vadd.f32 %v18577_v11, %v859_v18  ;;  %v861_v31 = vmul.f32 %v18561_v13, %v18321_v58  ;;  %15710 = vmatprep.mubr.msk.f32.mxu1 %vm1446_vm4, %v19217_v54  ;;  %v15479_v58 = vpop.f32.mrb[70].mxu0  ;;  %v13677_v9 = vld [vmem:[%s25395_s8 + $0x50] sm:$0xff] }
 0x17d   : > { %4944 = vst.msk [vmem:[#allocation2 + $0x1e8] sm:$0xff] %vm1446_vm4, %v26002_v57  ;;  %26084 = vst [vmem:[#allocation163_spill] sm:$0xff] %v19201_v45  ;;  %v19237_v51 = vld [vmem:[#allocation2 + $0x208] sm:$0xff]  ;;  %v3179_v40 = vrot.slane %v19225_v10, 7  ;;  %v19246_v27 = vadd.f32 %v18577_v11, %v1772_v43  ;;  %15711 = vmatmul.mubr.msk.f32.gmra.mrb[28].mxu1 %vm1446_vm4, %v19222_v14  ;;  %v19260_v43 = vadd.f32 %v18577_v11, %v862_v39  ;;  %v19273_v39 = vld [vmem:[#allocation2 + $0x10] sm:$0xff] }
 0x17e   : > { %4958 = vst.msk [vmem:[#allocation2 + $0x50] sm:$0xff] %vm1446_vm4, %v19177_v38  ;;  %4957 = vst.msk [vmem:[#allocation2 + $0x48] sm:$0xff] %vm1446_vm4, %v19191_v49  ;;  %v3176_v38 = vrot.slane %v18315_v53, 7  ;;  %v3177_v23 = vrot.slane %v19237_v51, 7  ;;  %v19256_v49 = vld [vmem:[#allocation2 + $0x8] sm:$0xff]  ;;  %v1775_v61 = vmul.f32 %v15479_v58, %v18561_v13  ;;  %15569 = vmatmul.mubr.msk.f32.vlgmr.msra.gmra.mrb[96].mxu0 %vm1446_vm4, %v2386_v47  ;;  %v26096_v53 = vmax.f32 %v19106_v34, 0.0 }
 0x17f   : > { %26086 = vst [vmem:[#allocation164_spill] sm:$0xff] %v19217_v54  ;;  %26087 = vst [vmem:[#allocation165_spill] sm:$0xff] %v19222_v14  ;;  %v19243_v18 = vld [vmem:[#allocation2 + $0x30] sm:$0xff]  ;;  %v1639_v14 = vpop.f32.mrb[71].mxu0  ;;  %15571 = vmatprep.mubr.msk.f32.mxu0 %vm1446_vm4, %v18679_v37  ;;  %v26100_v34 = vmax.f32 %v19122_v19, 0.0 }
 0x180   : > { %26088 = vst [vmem:[#allocation166_spill] sm:$0xff] %v19225_v10  ;;  %26089 = vst [vmem:[#allocation167_spill] sm:$0xff] %v19228_v25  ;;  %v5115_v10 = vrot.slane %v19243_v18, 7  ;;  %v1774_v58 = vmul.f32 %v18561_v13, %v1639_v14  ;;  %v17644_v47 = vld [vmem:[%s25395_s8 + $0x10] sm:$0xff]  ;;  %v19299_v14 = vadd.f32 %v18577_v11, %v861_v31  ;;  %v19305_v37 = vadd.f32 %v18577_v11, %v1775_v61 }
 0x181   : > { %26090 = vst [vmem:[#allocation168_spill] sm:$0xff] %v19233_v42  ;;  %26091 = vst [vmem:[#allocation169_spill] sm:$0xff] %v19237_v51  ;;  %v19265_v51 = vld [vmem:[#allocation2 + $0x28] sm:$0xff]  ;;  %15617 = vmatpush3.msra.mxu0 %v17644_v47 }
 0x182   : > { %4949 = vst.msk [vmem:[#allocation2 + $0x210] sm:$0xff] %vm1446_vm4, %v26002_v57  ;;  %26092 = vst [vmem:[#allocation170_spill] sm:$0xff] %v19246_v27  ;;  %15966 = vmatprep.subr.mxu0 %v13677_v9  ;;  %v5220_v9 = vmax.f32 %v19243_v18, %v18964_v28  ;;  %15572 = vmatmul.mubr.msk.f32.gmra.mrb[98].mxu0 %vm1446_vm4, %v18682_v22 }
 0x183   : > { %4948 = vst.msk [vmem:[#allocation2 + $0x208] sm:$0xff] %vm1446_vm4, %v26002_v57  ;;  %26093 = vst [vmem:[#allocation171_spill] sm:$0xff] %v19256_v49  ;;  %v5113_v49 = vrot.slane %v19265_v51, 7  ;;  %15574 = vmatprep.mubr.msk.f32.mxu0 %vm1446_vm4, %v18720_v41 }
 0x184   : > { %26094 = vst [vmem:[#allocation172_spill] sm:$0xff] %v19260_v43  ;;  %5709 = vst.msk [vmem:[#allocation2 + $0x30] sm:$0xff] %vm1446_vm4, %v26006_v21 }
 0x185   : > { %4960 = vst.msk [vmem:[#allocation2 + $0x70] sm:$0xff] %vm1446_vm4, %v19233_v42  ;;  %8689 = vst.msk [vmem:[#allocation2 + $0x8] sm:$0xff] %vm1446_vm4, %v26006_v21  ;;  %v19293_v42 = vsel %vm2381_vm5, %v3177_v23, %v3179_v40  ;;  %v19313_v40 = vmul.f32 %v18327_v63, %v18561_v13  ;;  %v19315_v31 = vld [vmem:[#allocation2 + $0x50] sm:$0xff]  ;;  %v19323_v61 = vsel %vm2381_vm5, %v5113_v49, %v5115_v10  ;;  %v19329_v63 = vld [vmem:[#allocation2 + $0x48] sm:$0xff] }
 0x186   : > { %26095 = vst [vmem:[#allocation173_spill] sm:$0xff] %v19273_v39  ;;  %5776 = vst.msk [vmem:[#allocation2 + $0x30] sm:$0xff] %vm1446_vm4, %v26096_v53  ;;  %v19290_v53 = vsel %vm2381_vm5, %v3176_v38, %v3177_v23  ;;  %v5219_v38 = vmax.f32 %v19265_v51, %v18888_v3  ;;  %v19318_v23 = vadd.f32 %v18577_v11, %v1774_v58  ;;  %v19336_v11 = vld [vmem:[%s25393_s6] ss:$0 sm:$0xff]  ;;  %v5120_v10 = vrot.slane %v19315_v31, 7 }
 0x187   : > { %5708 = vst.msk [vmem:[#allocation2 + $0x28] sm:$0xff] %vm1446_vm4, %v26006_v21  ;;  %4959 = vst.msk [vmem:[#allocation2 + $0x68] sm:$0xff] %vm1446_vm4, %v19246_v27  ;;  %15713 = vmatprep.mubr.msk.f32.mxu1 %vm1446_vm4, %v19290_v53  ;;  %v5222_v58 = vmax.f32 %v19315_v31, %v19323_v61  ;;  %v863_v47 = vmul.f32 %v19336_v11, %v18329_v0  ;;  %v26104_v0 = vmax.f32 %v19188_v48, 0.0  ;;  %15575 = vmatmul.mubr.msk.f32.gmra.mrb[100].mxu0 %vm1446_vm4, %v18723_v46  ;;  %v26145_v46 = vld [vmem:[#allocation114_spill] sm:$0xff] }
 0x188   : > { %26097 = vst [vmem:[#allocation174_spill] sm:$0xff] %v19290_v53  ;;  %26098 = vst [vmem:[#allocation175_spill] sm:$0xff] %v19293_v42  ;;  %15714 = vmatmul.mubr.msk.f32.gmra.mrb[30].mxu1 %vm1446_vm4, %v19293_v42  ;;  %v19344_v28 = vmax.f32 %v5219_v38, %v18821_v16  ;;  %v19363_v38 = vmax.f32 %v5220_v9, %v18836_v15  ;;  %v5307_v16 = vrot.slane %v18323_v62, 1  ;;  %v26106_v15 = vrot.slane %v18180_v8, 7  ;;  %v13575_v62 = vld [vmem:[%s25395_s8 + $0x30] sm:$0xff]  ;;  %v26128_v53 = vld [vmem:[#allocation103_spill] sm:$0xff] }
 0x189   : > { %8690 = vst.msk [vmem:[#allocation2 + $0x10] sm:$0xff] %vm1446_vm4, %v26006_v21  ;;  %26099 = vst [vmem:[#allocation176_spill] sm:$0xff] %v19299_v14  ;;  %15718 = vmatprep.mubr.msk.f32.mxu1 %vm1446_vm4, %v18653_v50  ;;  %v26109_v8 = vrot.slane %v19329_v63, 7  ;;  %15577 = vmatprep.mubr.msk.f32.mxu0 %vm1446_vm4, %v18752_v12 }
 0x18a   : > { %5775 = vst.msk [vmem:[#allocation2 + $0x28] sm:$0xff] %vm1446_vm4, %v26100_v34  ;;  %26101 = vst [vmem:[#allocation177_spill] sm:$0xff] %v19305_v37  ;;  %v15482_v34 = vpop.f32.mrb[72].mxu0  ;;  %v19383_v9 = vsel %vm2381_vm5, %v26106_v15, %v5113_v49 }
 0x18b   : > { %26102 = vst [vmem:[#allocation178_spill] sm:$0xff] %v19318_v23  ;;  %5713 = vst.msk [vmem:[#allocation2 + $0x50] sm:$0xff] %vm1446_vm4, %v26006_v21  ;;  %v1777_v13 = vmul.f32 %v19336_v11, %v15482_v34  ;;  %v1649_v3 = vpop.f32.mrb[73].mxu0  ;;  %v26103_v34 = vmax.f32 %v19137_v44, 0.0  ;;  %v19400_v49 = vsel %vm2381_vm5, %v26109_v8, %v5120_v10  ;;  %15578 = vmatmul.mubr.msk.f32.gmra.mrb[102].mxu0 %vm1446_vm4, %v18755_v4  ;;  %v26131_v4 = vld [vmem:[#allocation24_spill] sm:$0xff] }
 0x18c   : > { %4962 = vst.msk [vmem:[#allocation2 + $0x90] sm:$0xff] %vm1446_vm4, %v19305_v37  ;;  %5712 = vst.msk [vmem:[#allocation2 + $0x48] sm:$0xff] %vm1446_vm4, %v26006_v21  ;;  %v1776_v22 = vmul.f32 %v19336_v11, %v1649_v3  ;;  %v19377_v3 = vmax.f32 %v5222_v58, %v19243_v18  ;;  %v15485_v37 = vpop.f32.mrb[74].mxu0  ;;  %15719 = vmatmul.mubr.msk.f32.vlgmr.msra.gmra.mrb[0].mxu1 %vm1446_vm4, %v18648_v60  ;;  %v5312_v58 = vrot.slane %v18339_v5, 1 }
 0x18d   : > { %5778 = vst.msk [vmem:[#allocation2 + $0x50] sm:$0xff] %vm1446_vm4, %v26103_v34  ;;  %4961 = vst.msk [vmem:[#allocation2 + $0x88] sm:$0xff] %vm1446_vm4, %v19318_v23  ;;  %v19371_v34 = vld [vmem:[%s25394_s7] ss:$0 sm:$0xff]  ;;  %v19385_v23 = vld [vmem:[#allocation2 + $0x70] sm:$0xff]  ;;  %v1779_v48 = vmul.f32 %v19336_v11, %v15485_v37  ;;  %v1659_v44 = vpop.f32.mrb[75].mxu0  ;;  %15721 = vmatprep.mubr.msk.f32.mxu1 %vm1446_vm4, %v18690_v56  ;;  %15767 = vmatpush3.msra.mxu1 %v18698_v36 }
 0x18e   : > { %5777 = vst.msk [vmem:[#allocation2 + $0x48] sm:$0xff] %vm1446_vm4, %v26104_v0  ;;  %v19374_v27 = vadd.f32 %v19371_v34, %v1777_v13  ;;  %v19388_v0 = vadd.f32 %v19371_v34, %v1776_v22  ;;  %v19392_v13 = vld [vmem:[#allocation2 + $0x8] sm:$0xff]  ;;  %5717 = vst.msk [vmem:[#allocation2 + $0x70] sm:$0xff] %vm1446_vm4, %v26006_v21  ;;  %v19420_v10 = vld [vmem:[#allocation2 + $0x30] sm:$0xff]  ;;  %v5224_v8 = vmax.f32 %v19385_v23, %v19400_v49  ;;  %15816 = vmatprep.subr.mxu1 %v13575_v62 }
 0x18f   : > { %26108 = vst [vmem:[#allocation181_spill] sm:$0xff] %v19392_v13  ;;  %v19407_v15 = vld [vmem:[#allocation2 + $0x68] sm:$0xff]  ;;  %10035 = vst.msk [vmem:[#allocation2 + $0x8] sm:$0xff] %vm1446_vm4, %v26006_v21  ;;  %v1778_v19 = vmul.f32 %v19336_v11, %v1659_v44  ;;  %v19446_v22 = vadd.f32 %v19371_v34, %v19313_v40  ;;  %v866_v44 = vmul.f32 %v19336_v11, %v18341_v6  ;;  %v26121_v13 = vrot.slane %v19315_v31, 1 }
 0x190   : > { %26105 = vst [vmem:[#allocation179_spill] sm:$0xff] %v19374_v27  ;;  %26107 = vst [vmem:[#allocation180_spill] sm:$0xff] %v19388_v0  ;;  %v19418_v5 = vld [vmem:[#allocation2 + $0x10] sm:$0xff]  ;;  %v19454_v36 = vadd.f32 %v19371_v34, %v1779_v48  ;;  %v865_v40 = vmul.f32 %v19336_v11, %v18347_v7  ;;  %15722 = vmatmul.mubr.msk.f32.gmra.mrb[2].mxu1 %vm1446_vm4, %v18684_v24  ;;  %v19471_v48 = vmax.f32 %v5224_v8, %v19315_v31 }
 0x191   : > { %4964 = vst.msk [vmem:[#allocation2 + $0xb0] sm:$0xff] %vm1446_vm4, %v19374_v27  ;;  %26110 = vst [vmem:[#allocation182_spill] sm:$0xff] %v19418_v5  ;;  %v26112_v27 = vmax.f32 %v19201_v45, 0.0  ;;  %v19439_v37 = vld [vmem:[#allocation2 + $0x28] sm:$0xff]  ;;  %v19466_v6 = vadd.f32 %v19371_v34, %v1778_v19  ;;  %15724 = vmatprep.mubr.msk.f32.mxu1 %vm1446_vm4, %v18732_v1  ;;  %v26120_v8 = vrot.slane %v19243_v18, 1  ;;  %v26122_v5 = vld [vmem:[#allocation109_spill] sm:$0xff] }
 0x192   : > { %26111 = vst [vmem:[#allocation183_spill] sm:$0xff] %v19420_v10  ;;  %5716 = vst.msk [vmem:[#allocation2 + $0x68] sm:$0xff] %vm1446_vm4, %v26006_v21  ;;  %15580 = vmatprep.mubr.msk.f32.mxu0 %vm1446_vm4, %v26122_v5 }
 0x193   : > { %5780 = vst.msk [vmem:[#allocation2 + $0x70] sm:$0xff] %vm1446_vm4, %v26112_v27  ;;  %4963 = vst.msk [vmem:[#allocation2 + $0xa8] sm:$0xff] %vm1446_vm4, %v19388_v0  ;;  %v5678_v27 = vmax.f32 %v19260_v43, 0.0  ;;  %v26115_v0 = vmax.f32 %v19228_v25, 0.0  ;;  %v19459_v43 = vadd.f32 %v19371_v34, %v863_v47  ;;  %v19463_v45 = vld [vmem:[#allocation2 + $0x90] sm:$0xff]  ;;  %v15488_v25 = vpop.f32.mrb[76].mxu0 }
 0x194   : > { %10036 = vst.msk [vmem:[#allocation2 + $0x10] sm:$0xff] %vm1446_vm4, %v26006_v21  ;;  %26113 = vst [vmem:[#allocation184_spill] sm:$0xff] %v19439_v37  ;;  %v19476_v47 = vld [vmem:[#allocation2 + $0x88] sm:$0xff]  ;;  %v1781_v7 = vmul.f32 %v19336_v11, %v15488_v25  ;;  %v1669_v19 = vpop.f32.mrb[77].mxu0  ;;  %v19485_v62 = vld [vmem:[#allocation2 + $0x50] sm:$0xff]  ;;  %15725 = vmatmul.mubr.msk.f32.gmra.mrb[4].mxu1 %vm1446_vm4, %v26128_v53 }
 0x195   : > { %8694 = vst.msk [vmem:[#allocation2 + $0x30] sm:$0xff] %vm1446_vm4, %v26006_v21  ;;  %26114 = vst [vmem:[#allocation185_spill] sm:$0xff] %v19446_v22  ;;  %v1780_v25 = vmul.f32 %v19336_v11, %v1669_v19  ;;  %v5679_v5 = vmax.f32 %v19459_v43, 0.0  ;;  %v26164_v37 = vld [vmem:[#allocation116_spill] sm:$0xff] }
 0x196   : > { %5779 = vst.msk [vmem:[#allocation2 + $0x68] sm:$0xff] %vm1446_vm4, %v26115_v0  ;;  %26116 = vst [vmem:[#allocation186_spill] sm:$0xff] %v19454_v36  ;;  %v5677_v0 = vmax.f32 %v19299_v14, 0.0  ;;  %v19490_v14 = vsel %vm2769_vm6, %v26120_v8, %v5307_v16  ;;  %v19505_v16 = vld [vmem:[#allocation2 + $0x48] sm:$0xff]  ;;  %v19517_v19 = vadd.f32 %v19371_v34, %v1781_v7  ;;  %v26129_v7 = vmax.f32 %v19363_v38, %v19031_v17  ;;  %v26132_v38 = vld [vmem:[#allocation110_spill] sm:$0xff] }
 0x197   : > { %8693 = vst.msk [vmem:[#allocation2 + $0x28] sm:$0xff] %vm1446_vm4, %v26006_v21  ;;  %26117 = vst [vmem:[#allocation187_spill] sm:$0xff] %v19459_v43  ;;  %v19524_v42 = vadd.f32 %v19371_v34, %v1780_v25  ;;  %v19540_v25 = vadd.f32 %v19371_v34, %v865_v40  ;;  %15581 = vmatmul.mubr.msk.f32.gmra.mrb[104].mxu0 %vm1446_vm4, %v26132_v38 }
 0x198   : > { %26118 = vst [vmem:[#allocation188_spill] sm:$0xff] %v19466_v6  ;;  %5721 = vst.msk [vmem:[#allocation2 + $0x90] sm:$0xff] %vm1446_vm4, %v26006_v21 }
 0x199   : > { %4966 = vst.msk [vmem:[#allocation2 + $0xd0] sm:$0xff] %vm1446_vm4, %v19454_v36  ;;  %26119 = vst [vmem:[#allocation189_spill] sm:$0xff] %v19485_v62  ;;  %v19495_v36 = vsel %vm2769_vm6, %v26121_v13, %v5312_v58  ;;  %v5680_v13 = vmax.f32 %v19446_v22, 0.0  ;;  %v19511_v58 = vadd.f32 %v19371_v34, %v866_v44  ;;  %v15491_v22 = vpop.f32.mrb[78].mxu0  ;;  %v5414_v44 = vmax.f32 %v19377_v3, %v19490_v14 }
 0x19a   : > { %5782 = vst.msk [vmem:[#allocation2 + $0x90] sm:$0xff] %vm1446_vm4, %v5678_v27  ;;  %5720 = vst.msk [vmem:[#allocation2 + $0x88] sm:$0xff] %vm1446_vm4, %v26006_v21  ;;  %v26125_v27 = vld [vmem:[#allocation23_spill] sm:$0xff]  ;;  %v867_v62 = vmul.f32 %v19336_v11, %v26131_v4  ;;  %v19546_v3 = vld [vmem:[#allocation2 + $0xa8] sm:$0xff]  ;;  %v1783_v17 = vmul.f32 %v19336_v11, %v15491_v22 }
 0x19b   : > { %4965 = vst.msk [vmem:[#allocation2 + $0xc8] sm:$0xff] %vm1446_vm4, %v19466_v6  ;;  %26123 = vst [vmem:[#allocation190_spill] sm:$0xff] %v19505_v16  ;;  %v868_v8 = vmul.f32 %v19336_v11, %v26125_v27  ;;  %v19521_v6 = vld [vmem:[#allocation2 + $0xb0] sm:$0xff]  ;;  %v19536_v27 = vmax.f32 %v26129_v7, %v19323_v61  ;;  %v1679_v61 = vpop.f32.mrb[79].mxu0  ;;  %v26133_v7 = vld [vmem:[#allocation108_spill] sm:$0xff] }
 0x19c   : > { %8698 = vst.msk [vmem:[#allocation2 + $0x50] sm:$0xff] %vm1446_vm4, %v26006_v21  ;;  %26124 = vst [vmem:[#allocation191_spill] sm:$0xff] %v19511_v58  ;;  %15727 = vmatprep.mubr.msk.f32.mxu1 %vm1446_vm4, %v26133_v7  ;;  %v19555_v40 = vld [vmem:[#allocation2 + $0x70] sm:$0xff]  ;;  %v26135_v4 = vld [vmem:[#allocation28_spill] sm:$0xff]  ;;  %v1782_v22 = vmul.f32 %v19336_v11, %v1679_v61  ;;  %v5682_v61 = vmax.f32 %v19511_v58, 0.0  ;;  %v19597_v12 = vadd.f32 %v19371_v34, %v867_v62 }
 0x19d   : > { %5781 = vst.msk [vmem:[#allocation2 + $0x88] sm:$0xff] %vm1446_vm4, %v5677_v0  ;;  %26126 = vst [vmem:[#allocation23_spill] sm:$0xff] %v19517_v19  ;;  %v870_v0 = vmul.f32 %v19336_v11, %v26135_v4  ;;  %v19567_v43 = vld [vmem:[#allocation2 + $0x68] sm:$0xff]  ;;  %v19572_v4 = vadd.f32 %v19371_v34, %v868_v8  ;;  %v15494_v8 = vpop.f32.mrb[80].mxu0  ;;  %v26148_v62 = vld [vmem:[#allocation18_spill] sm:$0xff] }
 0x19e   : > { %8697 = vst.msk [vmem:[#allocation2 + $0x48] sm:$0xff] %vm1446_vm4, %v26006_v21  ;;  %26127 = vst [vmem:[#allocation192_spill] sm:$0xff] %v19524_v42  ;;  %v1785_v58 = vmul.f32 %v19336_v11, %v15494_v8 }
 0x19f   : > { %26130 = vst [vmem:[#allocation193_spill] sm:$0xff] %v19540_v25  ;;  %5725 = vst.msk [vmem:[#allocation2 + $0xb0] sm:$0xff] %vm1446_vm4, %v26006_v21  ;;  %v19614_v16 = vadd.f32 %v19371_v34, %v870_v0  ;;  %v19628_v0 = vld [vmem:[#allocation2 + $0x220] sm:$0xff] }
 0x1a0   : > { %4968 = vst.msk [vmem:[#allocation2 + $0xf0] sm:$0xff] %vm1446_vm4, %v19517_v19  ;;  %26134 = vst [vmem:[#allocation24_spill] sm:$0xff] %v19555_v40  ;;  %v26136_v19 = vld [vmem:[#allocation113_spill] sm:$0xff]  ;;  %v19586_v40 = vadd.f32 %v19371_v34, %v1782_v22 }
 0x1a1   : > { %5784 = vst.msk [vmem:[#allocation2 + $0xb0] sm:$0xff] %vm1446_vm4, %v5680_v13  ;;  %5724 = vst.msk [vmem:[#allocation2 + $0xa8] sm:$0xff] %vm1446_vm4, %v26006_v21  ;;  %15583 = vmatprep.mubr.msk.f32.mxu0 %vm1446_vm4, %v26136_v19  ;;  %v26139_v13 = vld [vmem:[#allocation30_spill] sm:$0xff]  ;;  %v19583_v19 = vld [vmem:[#allocation2 + $0xd0] sm:$0xff] }
 0x1a2   : > { %4967 = vst.msk [vmem:[#allocation2 + $0xe8] sm:$0xff] %vm1446_vm4, %v19524_v42  ;;  %26137 = vst [vmem:[#allocation28_spill] sm:$0xff] %v19567_v43  ;;  %v869_v38 = vmul.f32 %v19336_v11, %v26139_v13  ;;  %v19578_v42 = vadd.f32 %v19371_v34, %v1783_v17  ;;  %v26143_v43 = vld [vmem:[#allocation107_spill] sm:$0xff]  ;;  %v19591_v13 = vmax.f32 %v5414_v44, %v19400_v49  ;;  %v5681_v17 = vmax.f32 %v19540_v25, 0.0  ;;  %v19601_v22 = vld [vmem:[#allocation2 + $0xc8] sm:$0xff]  ;;  %v1689_v44 = vpop.f32.mrb[81].mxu0 }
 0x1a3   : > { %8702 = vst.msk [vmem:[#allocation2 + $0x70] sm:$0xff] %vm1446_vm4, %v26006_v21  ;;  %26138 = vst [vmem:[#allocation194_spill] sm:$0xff] %v19572_v4  ;;  %15728 = vmatmul.mubr.msk.f32.gmra.mrb[6].mxu1 %vm1446_vm4, %v26143_v43  ;;  %15584 = vmatmul.mubr.msk.f32.gmra.mrb[106].mxu0 %vm1446_vm4, %v26145_v46  ;;  %v5117_v25 = vrot.slane %v26148_v62, 7  ;;  %v1784_v8 = vmul.f32 %v19336_v11, %v1689_v44  ;;  %v19630_v62 = vld [vmem:[#allocation2 + $0x228] sm:$0xff] }
 0x1a4   : > { %5783 = vst.msk [vmem:[#allocation2 + $0xa8] sm:$0xff] %vm1446_vm4, %v5679_v5  ;;  %26140 = vst [vmem:[#allocation30_spill] sm:$0xff] %v19578_v42  ;;  %v5494_v5 = vmax.f32 %v19536_v27, %v19490_v14  ;;  %v26146_v14 = vld [vmem:[#allocation112_spill] sm:$0xff]  ;;  %v19610_v27 = vld [vmem:[#allocation2 + $0x90] sm:$0xff] }
 0x1a5   : > { %8701 = vst.msk [vmem:[#allocation2 + $0x68] sm:$0xff] %vm1446_vm4, %v26006_v21  ;;  %26141 = vst [vmem:[#allocation195_spill] sm:$0xff] %v19583_v19  ;;  %15730 = vmatprep.mubr.msk.f32.mxu1 %vm1446_vm4, %v26146_v14  ;;  %v19624_v46 = vld [vmem:[#allocation2 + $0x88] sm:$0xff] }
 0x1a6   : > { %26142 = vst [vmem:[#allocation196_spill] sm:$0xff] %v19586_v40  ;;  %26144 = vst [vmem:[#allocation197_spill] sm:$0xff] %v19597_v12 }
 0x1a7   : > { %5729 = vst.msk [vmem:[#allocation2 + $0xd0] sm:$0xff] %vm1446_vm4, %v26006_v21  ;;  %4970 = vst.msk [vmem:[#allocation2 + $0x110] sm:$0xff] %vm1446_vm4, %v19578_v42  ;;  %v26150_v42 = vld [vmem:[#allocation117_spill] sm:$0xff] }
 0x1a8   : > { %26147 = vst [vmem:[#allocation198_spill] sm:$0xff] %v19610_v27  ;;  %26149 = vst [vmem:[#allocation18_spill] sm:$0xff] %v19614_v16  ;;  %15586 = vmatprep.mubr.msk.f32.mxu0 %vm1446_vm4, %v26150_v42  ;;  %v19634_v27 = vadd.f32 %v19371_v34, %v869_v38  ;;  %v19640_v42 = vadd.f32 %v19371_v34, %v1785_v58  ;;  %v19650_v38 = vld [vmem:[#allocation2 + $0xf0] sm:$0xff] }
 0x1a9   : > { %5786 = vst.msk [vmem:[#allocation2 + $0xd0] sm:$0xff] %vm1446_vm4, %v5682_v61  ;;  %5728 = vst.msk [vmem:[#allocation2 + $0xc8] sm:$0xff] %vm1446_vm4, %v26006_v21  ;;  %v5684_v61 = vmax.f32 %v19572_v4, 0.0  ;;  %v19648_v4 = vld [vmem:[#allocation2 + $0x230] sm:$0xff]  ;;  %v19671_v41 = vld [vmem:[#allocation2 + $0xe8] sm:$0xff] }
 0x1aa   : > { %4969 = vst.msk [vmem:[#allocation2 + $0x108] sm:$0xff] %vm1446_vm4, %v19586_v40  ;;  %26151 = vst [vmem:[#allocation199_spill] sm:$0xff] %v19624_v46  ;;  %v26155_v40 = vld [vmem:[#allocation34_spill] sm:$0xff]  ;;  %v5683_v46 = vmax.f32 %v19597_v12, 0.0  ;;  %v19680_v12 = vld [vmem:[#allocation2 + $0xb0] sm:$0xff] }
 0x1ab   : > { %8706 = vst.msk [vmem:[#allocation2 + $0x90] sm:$0xff] %vm1446_vm4, %v26006_v21  ;;  %26152 = vst [vmem:[#allocation200_spill] sm:$0xff] %v19628_v0  ;;  %v872_v44 = vmul.f32 %v19336_v11, %v26155_v40  ;;  %v19653_v40 = vadd.f32 %v19371_v34, %v1784_v8  ;;  %v19662_v0 = vmax.f32 %v5494_v5, %v19400_v49  ;;  %v26161_v8 = vld [vmem:[#allocation36_spill] sm:$0xff]  ;;  %v26163_v5 = vld [vmem:[#allocation118_spill] sm:$0xff] }
 0x1ac   : > { %26153 = vst [vmem:[#allocation201_spill] sm:$0xff] %v19630_v62  ;;  %26154 = vst [vmem:[#allocation202_spill] sm:$0xff] %v19634_v27  ;;  %v26160_v62 = vld [vmem:[#allocation111_spill] sm:$0xff]  ;;  %v871_v10 = vmul.f32 %v19336_v11, %v26161_v8  ;;  %15587 = vmatmul.mubr.msk.f32.gmra.mrb[108].mxu0 %vm1446_vm4, %v26163_v5  ;;  %v26166_v8 = vrot.slane %v19329_v63, 7 }
 0x1ad   : > { %5785 = vst.msk [vmem:[#allocation2 + $0xc8] sm:$0xff] %vm1446_vm4, %v5681_v17  ;;  %26156 = vst [vmem:[#allocation34_spill] sm:$0xff] %v19640_v42  ;;  %v15497_v17 = vpop.f32.mrb[82].mxu0  ;;  %15731 = vmatmul.mubr.msk.f32.gmra.mrb[8].mxu1 %vm1446_vm4, %v26160_v62  ;;  %15589 = vmatprep.mubr.msk.f32.mxu0 %vm1446_vm4, %v18896_v2 }
 0x1ae   : > { %8705 = vst.msk [vmem:[#allocation2 + $0x88] sm:$0xff] %vm1446_vm4, %v26006_v21  ;;  %4951 = vst.msk [vmem:[#allocation2 + $0x220] sm:$0xff] %vm1446_vm4, %v26002_v57  ;;  %v1787_v58 = vmul.f32 %v19336_v11, %v15497_v17  ;;  %v1699_v49 = vpop.f32.mrb[83].mxu0  ;;  %15733 = vmatprep.mubr.msk.f32.mxu1 %vm1446_vm4, %v26164_v37  ;;  %v19685_v39 = vsel %vm2381_vm5, %v5117_v25, %v26166_v8  ;;  %v19701_v25 = vadd.f32 %v19371_v34, %v872_v44  ;;  %v19714_v2 = vld [vmem:[#allocation2 + $0x110] sm:$0xff] }
 0x1af   : > { %4952 = vst.msk [vmem:[#allocation2 + $0x228] sm:$0xff] %vm1446_vm4, %v26002_v57  ;;  %26157 = vst [vmem:[#allocation203_spill] sm:$0xff] %v19648_v4  ;;  %v5221_v4 = vmax.f32 %v19329_v63, %v19383_v9  ;;  %v1786_v17 = vmul.f32 %v19336_v11, %v1699_v49  ;;  %v19711_v49 = vld [vmem:[#allocation2 + $0x238] sm:$0xff]  ;;  %v15500_v5 = vpop.f32.mrb[84].mxu0 }
 0x1b0   : > { %26158 = vst [vmem:[#allocation204_spill] sm:$0xff] %v19650_v38  ;;  %26159 = vst [vmem:[#allocation205_spill] sm:$0xff] %v19653_v40 }
 0x1b1   : > { %4953 = vst.msk [vmem:[#allocation2 + $0x230] sm:$0xff] %vm1446_vm4, %v26002_v57  ;;  %5733 = vst.msk [vmem:[#allocation2 + $0xf0] sm:$0xff] %vm1446_vm4, %v26006_v21  ;;  %v19717_v44 = vadd.f32 %v19371_v34, %v1786_v17  ;;  %v19732_v17 = vadd.f32 %v19371_v34, %v871_v10  ;;  %v19747_v10 = vld [vmem:[#allocation2 + $0xd0] sm:$0xff] }
 0x1b2   : > { %26162 = vst [vmem:[#allocation36_spill] sm:$0xff] %v19671_v41  ;;  %4972 = vst.msk [vmem:[#allocation2 + $0x130] sm:$0xff] %vm1446_vm4, %v19640_v42  ;;  %v5686_v41 = vmax.f32 %v19614_v16, 0.0  ;;  %v19696_v42 = vld [vmem:[#allocation2 + $0xa8] sm:$0xff]  ;;  %v5304_v16 = vrot.slane %v19265_v51, 1 }
 0x1b3   : > { %26165 = vst [vmem:[#allocation206_spill] sm:$0xff] %v19680_v12  ;;  %5788 = vst.msk [vmem:[#allocation2 + $0xf0] sm:$0xff] %vm1446_vm4, %v5684_v61  ;;  %v26169_v61 = vld [vmem:[#allocation40_spill] sm:$0xff]  ;;  %v26174_v12 = vld [vmem:[#allocation115_spill] sm:$0xff] }
 0x1b4   : > { %5732 = vst.msk [vmem:[#allocation2 + $0xe8] sm:$0xff] %vm1446_vm4, %v26006_v21  ;;  %4971 = vst.msk [vmem:[#allocation2 + $0x128] sm:$0xff] %vm1446_vm4, %v19653_v40  ;;  %v874_v8 = vmul.f32 %v19336_v11, %v26169_v61  ;;  %v19707_v40 = vadd.f32 %v19371_v34, %v1787_v58  ;;  %15734 = vmatmul.mubr.msk.f32.gmra.mrb[10].mxu1 %vm1446_vm4, %v26174_v12  ;;  %v5223_v58 = vmax.f32 %v19407_v15, %v19685_v39 }
 0x1b5   : > { %26167 = vst [vmem:[#allocation207_spill] sm:$0xff] %v19696_v42  ;;  %8710 = vst.msk [vmem:[#allocation2 + $0xb0] sm:$0xff] %vm1446_vm4, %v26006_v21  ;;  %v19728_v61 = vmax.f32 %v5221_v4, %v19265_v51  ;;  %v1709_v51 = vpop.f32.mrb[85].mxu0  ;;  %v26178_v4 = vld [vmem:[#allocation122_spill] sm:$0xff] }
 0x1b6   : > { %26168 = vst [vmem:[#allocation208_spill] sm:$0xff] %v19701_v25  ;;  %5787 = vst.msk [vmem:[#allocation2 + $0xe8] sm:$0xff] %vm1446_vm4, %v5683_v46  ;;  %v5568_v46 = vmax.f32 %v19662_v0, %v19315_v31  ;;  %v1789_v0 = vmul.f32 %v19336_v11, %v15500_v5  ;;  %15590 = vmatmul.mubr.msk.f32.gmra.mrb[110].mxu0 %vm1446_vm4, %v26178_v4  ;;  %v1788_v5 = vmul.f32 %v19336_v11, %v1709_v51 }
 0x1b7   : > { %26170 = vst [vmem:[#allocation40_spill] sm:$0xff] %v19707_v40  ;;  %8709 = vst.msk [vmem:[#allocation2 + $0xa8] sm:$0xff] %vm1446_vm4, %v26006_v21  ;;  %v5309_v51 = vrot.slane %v19329_v63, 1 }
 0x1b8   : > { %26171 = vst [vmem:[#allocation209_spill] sm:$0xff] %v19711_v49  ;;  %26172 = vst [vmem:[#allocation210_spill] sm:$0xff] %v19714_v2  ;;  %v5685_v2 = vmax.f32 %v19634_v27, 0.0  ;;  %v26176_v49 = vld [vmem:[#allocation42_spill] sm:$0xff]  ;;  %v26179_v27 = vld [vmem:[#allocation120_spill] sm:$0xff]  ;;  %v19769_v4 = vadd.f32 %v19371_v34, %v1789_v0  ;;  %v26190_v0 = vrot.slane %v19243_v18, 1 }
 0x1b9   : > { %26173 = vst [vmem:[#allocation211_spill] sm:$0xff] %v19717_v44  ;;  %4954 = vst.msk [vmem:[#allocation2 + $0x238] sm:$0xff] %vm1446_vm4, %v26002_v57  ;;  %v873_v42 = vmul.f32 %v19336_v11, %v26176_v49  ;;  %v19738_v57 = vld [vmem:[#allocation2 + $0x108] sm:$0xff]  ;;  %15736 = vmatprep.mubr.msk.f32.mxu1 %vm1446_vm4, %v26179_v27  ;;  %v26181_v49 = vld [vmem:[#allocation46_spill] sm:$0xff] }
 0x1ba   : > { %26175 = vst [vmem:[#allocation115_spill] sm:$0xff] %v19732_v17  ;;  %5737 = vst.msk [vmem:[#allocation2 + $0x110] sm:$0xff] %vm1446_vm4, %v26006_v21  ;;  %v876_v38 = vmul.f32 %v19336_v11, %v26181_v49  ;;  %v5688_v49 = vmax.f32 %v19701_v25, 0.0  ;;  %v26188_v25 = vld [vmem:[#allocation119_spill] sm:$0xff]  ;;  %v26192_v27 = vld [vmem:[#allocation48_spill] sm:$0xff] }
 0x1bb   : > { %26177 = vst [vmem:[#allocation42_spill] sm:$0xff] %v19738_v57  ;;  %4974 = vst.msk [vmem:[#allocation2 + $0x150] sm:$0xff] %vm1446_vm4, %v19707_v40  ;;  %v26182_v40 = vld [vmem:[#allocation126_spill] sm:$0xff]  ;;  %v19759_v57 = vld [vmem:[#allocation2 + $0xc8] sm:$0xff]  ;;  %15737 = vmatmul.mubr.msk.f32.gmra.mrb[12].mxu1 %vm1446_vm4, %v26188_v25  ;;  %v875_v19 = vmul.f32 %v19336_v11, %v26192_v27 }
 0x1bc   : > { %26180 = vst [vmem:[#allocation212_spill] sm:$0xff] %v19747_v10  ;;  %5790 = vst.msk [vmem:[#allocation2 + $0x110] sm:$0xff] %vm1446_vm4, %v5686_v41  ;;  %15592 = vmatprep.mubr.msk.f32.mxu0 %vm1446_vm4, %v26182_v40  ;;  %v19765_v41 = vadd.f32 %v19371_v34, %v874_v8  ;;  %v19777_v40 = vadd.f32 %v19371_v34, %v1788_v5  ;;  %v15503_v10 = vpop.f32.mrb[86].mxu0  ;;  %v19782_v8 = vmax.f32 %v5568_v46, %v19495_v36  ;;  %v19800_v46 = vld [vmem:[#allocation2 + $0x128] sm:$0xff] }
 0x1bd   : > { %5736 = vst.msk [vmem:[#allocation2 + $0x108] sm:$0xff] %vm1446_vm4, %v26006_v21  ;;  %4973 = vst.msk [vmem:[#allocation2 + $0x148] sm:$0xff] %vm1446_vm4, %v19717_v44  ;;  %v19774_v44 = vld [vmem:[#allocation2 + $0x130] sm:$0xff]  ;;  %v19794_v5 = vadd.f32 %v19371_v34, %v873_v42  ;;  %v1791_v18 = vmul.f32 %v19336_v11, %v15503_v10  ;;  %v19812_v27 = vadd.f32 %v19371_v34, %v876_v38 }
 0x1be   : > { %26183 = vst [vmem:[#allocation46_spill] sm:$0xff] %v19759_v57  ;;  %8714 = vst.msk [vmem:[#allocation2 + $0xd0] sm:$0xff] %vm1446_vm4, %v26006_v21  ;;  %v19790_v57 = vsel %vm2769_vm6, %v5304_v16, %v26190_v0  ;;  %v1719_v16 = vpop.f32.mrb[87].mxu0  ;;  %v26195_v0 = vld [vmem:[#allocation124_spill] sm:$0xff]  ;;  %v19809_v42 = vld [vmem:[#allocation2 + $0xf0] sm:$0xff]  ;;  %v5690_v38 = vmax.f32 %v19765_v41, 0.0 }
 0x1bf   : > { %26184 = vst [vmem:[#allocation213_spill] sm:$0xff] %v19765_v41  ;;  %5789 = vst.msk [vmem:[#allocation2 + $0x108] sm:$0xff] %vm1446_vm4, %v5685_v2  ;;  %v19785_v2 = vmax.f32 %v5223_v58, %v19329_v63  ;;  %v26194_v58 = vld [vmem:[#allocation127_spill] sm:$0xff]  ;;  %15739 = vmatprep.mubr.msk.f32.mxu1 %vm1446_vm4, %v26195_v0  ;;  %v1790_v10 = vmul.f32 %v19336_v11, %v1719_v16 }
 0x1c0   : > { %26185 = vst [vmem:[#allocation214_spill] sm:$0xff] %v19769_v4  ;;  %8713 = vst.msk [vmem:[#allocation2 + $0xc8] sm:$0xff] %vm1446_vm4, %v26006_v21  ;;  %15593 = vmatmul.mubr.msk.f32.gmra.mrb[112].mxu0 %vm1446_vm4, %v26194_v58  ;;  %v26206_v58 = vld [vmem:[#allocation54_spill] sm:$0xff] }
 0x1c1   : > { %26186 = vst [vmem:[#allocation215_spill] sm:$0xff] %v19774_v44  ;;  %26187 = vst [vmem:[#allocation216_spill] sm:$0xff] %v19777_v40  ;;  %v5687_v44 = vmax.f32 %v19732_v17, 0.0  ;;  %v26198_v17 = vld [vmem:[#allocation52_spill] sm:$0xff]  ;;  %15595 = vmatprep.mubr.msk.f32.mxu0 %vm1446_vm4, %v18968_v30  ;;  %v19838_v16 = vadd.f32 %v19371_v34, %v1790_v10  ;;  %v26204_v30 = vrot.slane %v19315_v31, 1  ;;  %v19853_v10 = vadd.f32 %v19371_v34, %v875_v19 }
 0x1c2   : > { %26189 = vst [vmem:[#allocation119_spill] sm:$0xff] %v19782_v8  ;;  %26191 = vst [vmem:[#allocation217_spill] sm:$0xff] %v19794_v5  ;;  %v878_v8 = vmul.f32 %v19336_v11, %v26198_v17  ;;  %v19831_v17 = vadd.f32 %v19371_v34, %v1791_v18  ;;  %v5413_v18 = vmax.f32 %v19728_v61, %v19790_v57  ;;  %v26209_v61 = vld [vmem:[#allocation129_spill] sm:$0xff] }
 0x1c3   : > { %5741 = vst.msk [vmem:[#allocation2 + $0x130] sm:$0xff] %vm1446_vm4, %v26006_v21  ;;  %26193 = vst [vmem:[#allocation48_spill] sm:$0xff] %v19800_v46  ;;  %v26203_v46 = vld [vmem:[#allocation123_spill] sm:$0xff]  ;;  %v19845_v41 = vsel %vm2769_vm6, %v5309_v51, %v26204_v30  ;;  %v19868_v19 = vld [vmem:[#allocation2 + $0x110] sm:$0xff]  ;;  %v5692_v51 = vmax.f32 %v19812_v27, 0.0 }
 0x1c4   : > { %4976 = vst.msk [vmem:[#allocation2 + $0x170] sm:$0xff] %vm1446_vm4, %v19769_v4  ;;  %26196 = vst [vmem:[#allocation124_spill] sm:$0xff] %v19809_v42  ;;  %v19824_v4 = vld [vmem:[#allocation2 + $0xe8] sm:$0xff]  ;;  %15740 = vmatmul.mubr.msk.f32.gmra.mrb[14].mxu1 %vm1446_vm4, %v26203_v46  ;;  %v877_v42 = vmul.f32 %v19336_v11, %v26206_v58  ;;  %v19872_v58 = vadd.f32 %v19371_v34, %v878_v8 }
 0x1c5   : > { %26197 = vst [vmem:[#allocation218_spill] sm:$0xff] %v19812_v27  ;;  %5792 = vst.msk [vmem:[#allocation2 + $0x130] sm:$0xff] %vm1446_vm4, %v5688_v49  ;;  %v19835_v49 = vld [vmem:[#allocation2 + $0x150] sm:$0xff]  ;;  %v19859_v31 = vld [vmem:[#allocation2 + $0x148] sm:$0xff]  ;;  %15742 = vmatprep.mubr.msk.f32.mxu1 %vm1446_vm4, %v26209_v61 }
 0x1c6   : > { %5740 = vst.msk [vmem:[#allocation2 + $0x128] sm:$0xff] %vm1446_vm4, %v26006_v21  ;;  %4975 = vst.msk [vmem:[#allocation2 + $0x168] sm:$0xff] %vm1446_vm4, %v19777_v40  ;;  %v15506_v40 = vpop.f32.mrb[88].mxu0  ;;  %v19884_v27 = vld [vmem:[#allocation2 + $0x108] sm:$0xff] }
 0x1c7   : > { %26199 = vst [vmem:[#allocation52_spill] sm:$0xff] %v19824_v4  ;;  %8718 = vst.msk [vmem:[#allocation2 + $0xf0] sm:$0xff] %vm1446_vm4, %v26006_v21  ;;  %v1793_v30 = vmul.f32 %v19336_v11, %v15506_v40  ;;  %v26215_v8 = vld [vmem:[#allocation60_spill] sm:$0xff] }
 0x1c8   : > { %5791 = vst.msk [vmem:[#allocation2 + $0x128] sm:$0xff] %vm1446_vm4, %v5687_v44  ;;  %26200 = vst [vmem:[#allocation219_spill] sm:$0xff] %v19831_v17  ;;  %v5411_v44 = vmax.f32 %v19344_v28, %v19072_v32  ;;  %v1729_v32 = vpop.f32.mrb[89].mxu0  ;;  %v26208_v28 = vld [vmem:[#allocation131_spill] sm:$0xff] }
 0x1c9   : > { %8717 = vst.msk [vmem:[#allocation2 + $0xe8] sm:$0xff] %vm1446_vm4, %v26006_v21  ;;  %26201 = vst [vmem:[#allocation220_spill] sm:$0xff] %v19835_v49  ;;  %v5689_v49 = vmax.f32 %v19794_v5, 0.0  ;;  %15596 = vmatmul.mubr.msk.f32.gmra.mrb[114].mxu0 %vm1446_vm4, %v26208_v28  ;;  %v26212_v5 = vld [vmem:[#allocation58_spill] sm:$0xff]  ;;  %v1792_v40 = vmul.f32 %v19336_v11, %v1729_v32  ;;  %v5691_v32 = vmax.f32 %v19853_v10, 0.0 }
 0x1ca   : > { %26202 = vst [vmem:[#allocation221_spill] sm:$0xff] %v19838_v16  ;;  %26205 = vst [vmem:[#allocation123_spill] sm:$0xff] %v19853_v10 }
 0x1cb   : > { %5745 = vst.msk [vmem:[#allocation2 + $0x150] sm:$0xff] %vm1446_vm4, %v26006_v21  ;;  %26207 = vst [vmem:[#allocation54_spill] sm:$0xff] %v19859_v31  ;;  %v880_v31 = vmul.f32 %v19336_v11, %v26212_v5  ;;  %v879_v5 = vmul.f32 %v19336_v11, %v26215_v8  ;;  %v19901_v28 = vadd.f32 %v19371_v34, %v1792_v40  ;;  %v26221_v40 = vld [vmem:[#allocation64_spill] sm:$0xff] }
 0x1cc   : > { %4978 = vst.msk [vmem:[#allocation2 + $0x190] sm:$0xff] %vm1446_vm4, %v19831_v17  ;;  %26210 = vst [vmem:[#allocation129_spill] sm:$0xff] %v19868_v19  ;;  %v26213_v17 = vld [vmem:[#allocation135_spill] sm:$0xff]  ;;  %v15509_v19 = vpop.f32.mrb[90].mxu0  ;;  %v19911_v8 = vmax.f32 %v5413_v18, %v19685_v39  ;;  %v882_v4 = vmul.f32 %v19336_v11, %v26221_v40  ;;  %v26223_v18 = vld [vmem:[#allocation136_spill] sm:$0xff] }
 0x1cd   : > { %26211 = vst [vmem:[#allocation222_spill] sm:$0xff] %v19872_v58  ;;  %5794 = vst.msk [vmem:[#allocation2 + $0x150] sm:$0xff] %vm1446_vm4, %v5690_v38  ;;  %15598 = vmatprep.mubr.msk.f32.mxu0 %vm1446_vm4, %v26213_v17  ;;  %v19892_v38 = vadd.f32 %v19371_v34, %v1793_v30  ;;  %v19898_v17 = vld [vmem:[#allocation2 + $0x170] sm:$0xff]  ;;  %v19908_v30 = vmax.f32 %v5411_v44, %v19383_v9  ;;  %v1795_v9 = vmul.f32 %v19336_v11, %v15509_v19  ;;  %v1739_v44 = vpop.f32.mrb[91].mxu0 }
 0x1ce   : > { %5744 = vst.msk [vmem:[#allocation2 + $0x148] sm:$0xff] %vm1446_vm4, %v26006_v21  ;;  %4977 = vst.msk [vmem:[#allocation2 + $0x188] sm:$0xff] %vm1446_vm4, %v19838_v16  ;;  %v5125_v16 = vrot.slane %v19385_v23, 7  ;;  %15599 = vmatmul.mubr.msk.f32.gmra.mrb[116].mxu0 %vm1446_vm4, %v26223_v18  ;;  %v1794_v40 = vmul.f32 %v19336_v11, %v1739_v44  ;;  %v19949_v10 = vadd.f32 %v19371_v34, %v879_v5  ;;  %v26235_v18 = vld [vmem:[#allocation66_spill] sm:$0xff] }
 0x1cf   : > { %26214 = vst [vmem:[#allocation58_spill] sm:$0xff] %v19884_v27  ;;  %8722 = vst.msk [vmem:[#allocation2 + $0x110] sm:$0xff] %vm1446_vm4, %v26006_v21  ;;  %v26219_v27 = vld [vmem:[#allocation128_spill] sm:$0xff]  ;;  %15601 = vmatprep.mubr.msk.f32.mxu0 %vm1446_vm4, %v19040_v26  ;;  %v19953_v44 = vadd.f32 %v19371_v34, %v1795_v9  ;;  %v26238_v5 = vld [vmem:[#allocation138_spill] sm:$0xff] }
 0x1d0   : > { %5793 = vst.msk [vmem:[#allocation2 + $0x148] sm:$0xff] %vm1446_vm4, %v5689_v49  ;;  %26216 = vst [vmem:[#allocation60_spill] sm:$0xff] %v19892_v38  ;;  %15743 = vmatmul.mubr.msk.f32.gmra.mrb[16].mxu1 %vm1446_vm4, %v26219_v27  ;;  %v19921_v27 = vld [vmem:[#allocation2 + $0x168] sm:$0xff]  ;;  %v26224_v49 = vld [vmem:[#allocation133_spill] sm:$0xff] }
 0x1d1   : > { %8721 = vst.msk [vmem:[#allocation2 + $0x108] sm:$0xff] %vm1446_vm4, %v26006_v21  ;;  %26217 = vst [vmem:[#allocation223_spill] sm:$0xff] %v19898_v17  ;;  %v19915_v17 = vadd.f32 %v19371_v34, %v877_v42  ;;  %15745 = vmatprep.mubr.msk.f32.mxu1 %vm1446_vm4, %v26224_v49  ;;  %v19930_v42 = vld [vmem:[#allocation2 + $0x130] sm:$0xff]  ;;  %v19940_v19 = vld [vmem:[#allocation2 + $0x128] sm:$0xff] }
 0x1d2   : > { %26218 = vst [vmem:[#allocation224_spill] sm:$0xff] %v19901_v28  ;;  %5749 = vst.msk [vmem:[#allocation2 + $0x170] sm:$0xff] %vm1446_vm4, %v26006_v21  ;;  %v26232_v26 = vld [vmem:[#allocation132_spill] sm:$0xff] }
 0x1d3   : > { %26220 = vst [vmem:[#allocation225_spill] sm:$0xff] %v19915_v17  ;;  %26222 = vst [vmem:[#allocation64_spill] sm:$0xff] %v19921_v27  ;;  %v19960_v27 = vadd.f32 %v19371_v34, %v1794_v40  ;;  %v19975_v40 = vadd.f32 %v19371_v34, %v882_v4 }
 0x1d4   : > { %4980 = vst.msk [vmem:[#allocation2 + $0x1b0] sm:$0xff] %vm1446_vm4, %v19892_v38  ;;  %26225 = vst [vmem:[#allocation133_spill] sm:$0xff] %v19930_v42  ;;  %v5694_v38 = vmax.f32 %v19872_v58, 0.0  ;;  %v15512_v58 = vpop.f32.mrb[92].mxu0  ;;  %15746 = vmatmul.mubr.msk.f32.gmra.mrb[18].mxu1 %vm1446_vm4, %v26232_v26  ;;  %v881_v42 = vmul.f32 %v19336_v11, %v26235_v18  ;;  %v19990_v4 = vld [vmem:[#allocation2 + $0x150] sm:$0xff]  ;;  %v26240_v18 = vld [vmem:[#allocation70_spill] sm:$0xff] }
 0x1d5   : > { %5796 = vst.msk [vmem:[#allocation2 + $0x170] sm:$0xff] %vm1446_vm4, %v5692_v51  ;;  %5748 = vst.msk [vmem:[#allocation2 + $0x168] sm:$0xff] %vm1446_vm4, %v26006_v21  ;;  %v19946_v51 = vadd.f32 %v19371_v34, %v880_v31  ;;  %v5493_v31 = vmax.f32 %v19908_v30, %v19790_v57  ;;  %v19981_v57 = vld [vmem:[#allocation2 + $0x188] sm:$0xff]  ;;  %v1797_v30 = vmul.f32 %v19336_v11, %v15512_v58  ;;  %15748 = vmatprep.mubr.msk.f32.mxu1 %vm1446_vm4, %v26238_v5  ;;  %v26255_v5 = vld [vmem:[#allocation78_spill] sm:$0xff] }
 0x1d6   : > { %4979 = vst.msk [vmem:[#allocation2 + $0x1a8] sm:$0xff] %vm1446_vm4, %v19901_v28  ;;  %26226 = vst [vmem:[#allocation226_spill] sm:$0xff] %v19940_v19  ;;  %v19957_v28 = vld [vmem:[#allocation2 + $0x190] sm:$0xff]  ;;  %v26244_v19 = vld [vmem:[#allocation22_spill] sm:$0xff] }
 0x1d7   : > { %8726 = vst.msk [vmem:[#allocation2 + $0x130] sm:$0xff] %vm1446_vm4, %v26006_v21  ;;  %26227 = vst [vmem:[#allocation227_spill] sm:$0xff] %v19946_v51 }
 0x1d8   : > { %26228 = vst [vmem:[#allocation228_spill] sm:$0xff] %v19949_v10  ;;  %5795 = vst.msk [vmem:[#allocation2 + $0x168] sm:$0xff] %vm1446_vm4, %v5691_v32  ;;  %v26233_v32 = vrot.slane %v19407_v15, 7 }
 0x1d9   : > { %26229 = vst [vmem:[#allocation229_spill] sm:$0xff] %v19953_v44  ;;  %8725 = vst.msk [vmem:[#allocation2 + $0x128] sm:$0xff] %vm1446_vm4, %v26006_v21 }
 0x1da   : > { %26230 = vst [vmem:[#allocation230_spill] sm:$0xff] %v19957_v28  ;;  %26231 = vst [vmem:[#allocation231_spill] sm:$0xff] %v19960_v27  ;;  %v19971_v9 = vsel %vm2381_vm5, %v26233_v32, %v5125_v16  ;;  %v5693_v28 = vmax.f32 %v19915_v17, 0.0  ;;  %v1749_v16 = vpop.f32.mrb[93].mxu0  ;;  %v26237_v32 = vld [vmem:[#allocation140_spill] sm:$0xff]  ;;  %v884_v17 = vmul.f32 %v19336_v11, %v26240_v18  ;;  %v20011_v18 = vadd.f32 %v19371_v34, %v1797_v30 }
 0x1db   : > { %26234 = vst [vmem:[#allocation132_spill] sm:$0xff] %v19975_v40  ;;  %5753 = vst.msk [vmem:[#allocation2 + $0x190] sm:$0xff] %vm1446_vm4, %v26006_v21  ;;  %15602 = vmatmul.mubr.msk.f32.gmra.mrb[118].mxu0 %vm1446_vm4, %v26237_v32  ;;  %v1796_v58 = vmul.f32 %v19336_v11, %v1749_v16  ;;  %v20004_v32 = vld [vmem:[#allocation2 + $0x148] sm:$0xff]  ;;  %v5226_v30 = vmax.f32 %v19463_v45, %v19971_v9  ;;  %v5698_v16 = vmax.f32 %v19975_v40, 0.0  ;;  %v26251_v40 = vld [vmem:[#allocation142_spill] sm:$0xff] }
 0x1dc   : > { %26236 = vst [vmem:[#allocation66_spill] sm:$0xff] %v19981_v57  ;;  %4982 = vst.msk [vmem:[#allocation2 + $0x1d0] sm:$0xff] %vm1446_vm4, %v19953_v44  ;;  %15604 = vmatprep.mubr.msk.f32.mxu0 %vm1446_vm4, %v19076_v33  ;;  %v26241_v44 = vld [vmem:[#allocation3_spill] sm:$0xff]  ;;  %v5695_v57 = vmax.f32 %v19949_v10, 0.0  ;;  %v20018_v33 = vld [vmem:[#allocation2 + $0x1b0] sm:$0xff] }
 0x1dd   : > { %26239 = vst [vmem:[#allocation232_spill] sm:$0xff] %v19990_v4  ;;  %5798 = vst.msk [vmem:[#allocation2 + $0x190] sm:$0xff] %vm1446_vm4, %v5694_v38  ;;  %v5696_v38 = vmax.f32 %v19946_v51, 0.0  ;;  %v20021_v4 = vadd.f32 %v19371_v34, %v1796_v58  ;;  %v15515_v51 = vpop.f32.mrb[94].mxu0  ;;  %v26249_v10 = vld [vmem:[#allocation72_spill] sm:$0xff] }
 0x1de   : > { %5752 = vst.msk [vmem:[#allocation2 + $0x188] sm:$0xff] %vm1446_vm4, %v26006_v21  ;;  %4981 = vst.msk [vmem:[#allocation2 + $0x1c8] sm:$0xff] %vm1446_vm4, %v19960_v27  ;;  %v5317_v27 = vrot.slane %v26244_v19, 1  ;;  %v20030_v19 = vadd.f32 %v19371_v34, %v881_v42  ;;  %v20036_v58 = vld [vmem:[#allocation2 + $0x1a8] sm:$0xff]  ;;  %v20045_v42 = vld [vmem:[#allocation2 + $0x170] sm:$0xff] }
 0x1df   : > { %26242 = vst [vmem:[#allocation70_spill] sm:$0xff] %v20004_v32  ;;  %8730 = vst.msk [vmem:[#allocation2 + $0x150] sm:$0xff] %vm1446_vm4, %v26006_v21  ;;  %v26247_v32 = vld [vmem:[#allocation137_spill] sm:$0xff]  ;;  %15605 = vmatmul.mubr.msk.f32.gmra.mrb[120].mxu0 %vm1446_vm4, %v19079_v35 }
 0x1e0   : > { %5797 = vst.msk [vmem:[#allocation2 + $0x188] sm:$0xff] %vm1446_vm4, %v5693_v28  ;;  %26243 = vst [vmem:[#allocation3_spill] sm:$0xff] %v20011_v18  ;;  %15749 = vmatmul.mubr.msk.f32.gmra.mrb[20].mxu1 %vm1446_vm4, %v26247_v32  ;;  %v5535_v28 = vmax.f32 %v5493_v31, %v19685_v39  ;;  %v1799_v39 = vmul.f32 %v19336_v11, %v15515_v51  ;;  %v1759_v31 = vpop.f32.mrb[95].mxu0  ;;  %v26254_v32 = vld [vmem:[#allocation76_spill] sm:$0xff]  ;;  %15607 = vmatprep.mubr.msk.f32.mxu0 %vm1446_vm4, %v19114_v29 }
 0x1e1   : > { %8729 = vst.msk [vmem:[#allocation2 + $0x148] sm:$0xff] %vm1446_vm4, %v26006_v21  ;;  %26245 = vst [vmem:[#allocation22_spill] sm:$0xff] %v20018_v33  ;;  %v883_v33 = vmul.f32 %v19336_v11, %v26249_v10  ;;  %15751 = vmatprep.mubr.msk.f32.mxu1 %vm1446_vm4, %v26251_v40  ;;  %v20048_v10 = vadd.f32 %v19371_v34, %v884_v17  ;;  %v1798_v51 = vmul.f32 %v19336_v11, %v1759_v31  ;;  %v20062_v17 = vld [vmem:[#allocation2 + $0x168] sm:$0xff] }
 0x1e2   : > { %26246 = vst [vmem:[#allocation233_spill] sm:$0xff] %v20021_v4  ;;  %26248 = vst [vmem:[#allocation234_spill] sm:$0xff] %v20030_v19 }
 0x1e3   : > { %5757 = vst.msk [vmem:[#allocation2 + $0x1b0] sm:$0xff] %vm1446_vm4, %v26006_v21  ;;  %26250 = vst [vmem:[#allocation72_spill] sm:$0xff] %v20036_v58  ;;  %v886_v58 = vmul.f32 %v19336_v11, %v26254_v32  ;;  %v26258_v32 = vrot.slane %v19385_v23, 1  ;;  %v20079_v29 = vld [vmem:[#allocation2 + $0x1d0] sm:$0xff]  ;;  %v20082_v35 = vadd.f32 %v19371_v34, %v1798_v51  ;;  %15608 = vmatmul.mubr.msk.f32.gmra.mrb[122].mxu0 %vm1446_vm4, %v19117_v20 }
 0x1e4   : > { %4984 = vst.msk [vmem:[#allocation2 + $0x1f0] sm:$0xff] %vm1446_vm4, %v20011_v18  ;;  %26252 = vst [vmem:[#allocation142_spill] sm:$0xff] %v20045_v42  ;;  %v885_v18 = vmul.f32 %v19336_v11, %v26255_v5  ;;  %v20068_v5 = vadd.f32 %v19371_v34, %v1799_v39  ;;  %v5567_v39 = vmax.f32 %v5535_v28, %v19329_v63  ;;  %v26266_v63 = vld [vmem:[#allocation146_spill] sm:$0xff]  ;;  %15610 = vmatprep.mubr.msk.f32.mxu0 %vm1446_vm4, %v19165_v59 }
 0x1e5   : > { %26253 = vst [vmem:[#allocation235_spill] sm:$0xff] %v20048_v10  ;;  %5800 = vst.msk [vmem:[#allocation2 + $0x1b0] sm:$0xff] %vm1446_vm4, %v5696_v38  ;;  %v20075_v11 = vsel %vm2769_vm6, %v26258_v32, %v5317_v27  ;;  %v26259_v38 = vld [vmem:[#allocation21_spill] sm:$0xff]  ;;  %v20088_v42 = vmax.f32 %v5226_v30, %v19385_v23  ;;  %v26263_v27 = vmax.f32 %v19471_v48, %v19495_v36  ;;  %v20102_v51 = vld [vmem:[#allocation2 + $0x1c8] sm:$0xff]  ;;  %v5130_v28 = vrot.slane %v19463_v45, 7 }
 0x1e6   : > { %5756 = vst.msk [vmem:[#allocation2 + $0x1a8] sm:$0xff] %vm1446_vm4, %v26006_v21  ;;  %4983 = vst.msk [vmem:[#allocation2 + $0x1e8] sm:$0xff] %vm1446_vm4, %v20021_v4  ;;  %v5122_v31 = vrot.slane %v26259_v38, 7  ;;  %v5314_v4 = vrot.slane %v19407_v15, 1  ;;  %v5697_v38 = vmax.f32 %v20030_v19, 0.0  ;;  %v26267_v48 = vld [vmem:[#allocation4_spill] sm:$0xff] }
 0x1e7   : > { %26256 = vst [vmem:[#allocation76_spill] sm:$0xff] %v20062_v17  ;;  %8734 = vst.msk [vmem:[#allocation2 + $0x170] sm:$0xff] %vm1446_vm4, %v26006_v21  ;;  %v20094_v32 = vmax.f32 %v26263_v27, %v19971_v9  ;;  %v26268_v30 = vld [vmem:[#allocation5_spill] sm:$0xff]  ;;  %v5700_v19 = vmax.f32 %v20048_v10, 0.0  ;;  %v20116_v17 = vadd.f32 %v19371_v34, %v886_v58  ;;  %v20128_v27 = vld [vmem:[#allocation2 + $0x188] sm:$0xff]  ;;  %v20133_v58 = vmax.f32 %v5567_v39, %v19845_v41 }
 0x1e8   : > { %5799 = vst.msk [vmem:[#allocation2 + $0x1a8] sm:$0xff] %vm1446_vm4, %v5695_v57  ;;  %26257 = vst [vmem:[#allocation78_spill] sm:$0xff] %v20068_v5  ;;  %v26262_v57 = vld [vmem:[#allocation141_spill] sm:$0xff] }
 0x1e9   : > { %8733 = vst.msk [vmem:[#allocation2 + $0x168] sm:$0xff] %vm1446_vm4, %v26006_v21  ;;  %26260 = vst [vmem:[#allocation21_spill] sm:$0xff] %v20079_v29  ;;  %15752 = vmatmul.mubr.msk.f32.gmra.mrb[22].mxu1 %vm1446_vm4, %v26262_v57  ;;  %v20098_v29 = vadd.f32 %v19371_v34, %v883_v33  ;;  %v20112_v33 = vld [vmem:[#allocation2 + $0x190] sm:$0xff] }
 0x1ea   : > { %26261 = vst [vmem:[#allocation236_spill] sm:$0xff] %v20082_v35  ;;  %5761 = vst.msk [vmem:[#allocation2 + $0x1d0] sm:$0xff] %vm1446_vm4, %v26006_v21  ;;  %15754 = vmatprep.mubr.msk.f32.mxu1 %vm1446_vm4, %v26266_v63 }
 0x1eb   : > { %26264 = vst [vmem:[#allocation141_spill] sm:$0xff] %v20098_v29  ;;  %26265 = vst [vmem:[#allocation237_spill] sm:$0xff] %v20102_v51  ;;  %v20119_v51 = vadd.f32 %v19371_v34, %v885_v18  ;;  %v2771_v34 = vrot.slane %v18136_v55, 1  ;;  %v26276_v55 = vmax.f32 %v19591_v13, %v19495_v36  ;;  %v26278_v18 = vrot.slane %v19385_v23, 1  ;;  %v26280_v36 = vld [vmem:[#allocation157_spill] sm:$0xff] }
 0x1ec   : > { %4986 = vst.msk [vmem:[#allocation2 + $0x210] sm:$0xff] %vm1446_vm4, %v20068_v5  ;;  %26269 = vst [vmem:[#allocation146_spill] sm:$0xff] %v20112_v33  ;;  %v26275_v5 = vld [vmem:[#allocation145_spill] sm:$0xff]  ;;  %15611 = vmatmul.mubr.msk.f32.gmra.mrb[124].mxu0 %vm1446_vm4, %v26280_v36  ;;  %v26288_v36 = vmax.f32 %v19785_v2, %v19845_v41  ;;  %v26293_v2 = vrot.slane %v19476_v47, 7 }
 0x1ed   : > { %26270 = vst [vmem:[#allocation4_spill] sm:$0xff] %v20116_v17  ;;  %26271 = vst [vmem:[#allocation5_spill] sm:$0xff] %v20119_v51  ;;  %15755 = vmatmul.mubr.msk.f32.gmra.mrb[24].mxu1 %vm1446_vm4, %v26275_v5  ;;  %v5538_v39 = vmax.f32 %v26276_v55, %v19971_v9  ;;  %v26281_v13 = vld [vmem:[#allocation153_spill] sm:$0xff]  ;;  %v26282_v9 = vld [vmem:[#allocation92_spill] sm:$0xff]  ;;  %15613 = vmatprep.mubr.msk.f32.mxu0 %vm1446_vm4, %v19217_v54 }
 0x1ee   : > { %5802 = vst.msk [vmem:[#allocation2 + $0x1d0] sm:$0xff] %vm1446_vm4, %v5698_v16  ;;  %5760 = vst.msk [vmem:[#allocation2 + $0x1c8] sm:$0xff] %vm1446_vm4, %v26006_v21  ;;  %v20158_v16 = vsel %vm2769_vm6, %v5314_v4, %v26278_v18  ;;  %15757 = vmatprep.mubr.msk.f32.mxu1 %vm1446_vm4, %v26281_v13  ;;  %v2775_v4 = vrot.slane %v18653_v50, 1  ;;  %v2776_v18 = vrot.slane %v18648_v60, 1  ;;  %v20173_v55 = vld [vmem:[#allocation2 + $0x1b0] sm:$0xff] }
 0x1ef   : > { %4985 = vst.msk [vmem:[#allocation2 + $0x208] sm:$0xff] %vm1446_vm4, %v20082_v35  ;;  %26272 = vst [vmem:[#allocation238_spill] sm:$0xff] %v20128_v27  ;;  %v20144_v35 = vld [vmem:[#allocation2 + $0x1f0] sm:$0xff]  ;;  %v20182_v59 = vld [vmem:[#allocation2 + $0x1a8] sm:$0xff]  ;;  %v5570_v50 = vmax.f32 %v5538_v39, %v19385_v23  ;;  %v26289_v23 = vmax.f32 %v19911_v8, %v19845_v41 }
 0x1f0   : > { %8738 = vst.msk [vmem:[#allocation2 + $0x190] sm:$0xff] %vm1446_vm4, %v26006_v21  ;;  %26273 = vst [vmem:[#allocation239_spill] sm:$0xff] %v20133_v58  ;;  %v5699_v58 = vmax.f32 %v20098_v29, 0.0  ;;  %v26295_v8 = vld [vmem:[#allocation165_spill] sm:$0xff] }
 0x1f1   : > { %5801 = vst.msk [vmem:[#allocation2 + $0x1c8] sm:$0xff] %vm1446_vm4, %v5697_v38  ;;  %8737 = vst.msk [vmem:[#allocation2 + $0x188] sm:$0xff] %vm1446_vm4, %v26006_v21  ;;  %v26277_v38 = vrot.slane %v19407_v15, 7  ;;  %15614 = vmatmul.mubr.msk.f32.gmra.mrb[126].mxu0 %vm1446_vm4, %v26295_v8 }
 0x1f2   : > { %26274 = vst [vmem:[#allocation240_spill] sm:$0xff] %v20144_v35  ;;  %5765 = vst.msk [vmem:[#allocation2 + $0x1f0] sm:$0xff] %vm1446_vm4, %v26006_v21  ;;  %v20164_v35 = vld [vmem:[#allocation2 + $0x1e8] sm:$0xff] }
 0x1f3   : > { %v5124_v10 = vsel %vm2381_vm5, %v5122_v31, %v26277_v38  ;;  %26279 = vst [vmem:[#allocation145_spill] sm:$0xff] %v20164_v35  ;;  %v2773_v31 = vrot.slane %v26282_v9, 1  ;;  %26283 = vst [vmem:[#allocation153_spill] sm:$0xff] %v20173_v55  ;;  %v26284_v38 = vld [vmem:[#allocation6_spill] sm:$0xff]  ;;  %v26285_v35 = vld [vmem:[#allocation7_spill] sm:$0xff]  ;;  %v26287_v9 = vrot.slane %v18130_v52, 1  ;;  %v20209_v52 = vmax.f32 %v5570_v50, %v20075_v11 }
 0x1f4   : > { %5804 = vst.msk [vmem:[#allocation2 + $0x1f0] sm:$0xff] %vm1446_vm4, %v5700_v19  ;;  %5764 = vst.msk [vmem:[#allocation2 + $0x1e8] sm:$0xff] %vm1446_vm4, %v26006_v21  ;;  %v5225_v60 = vmax.f32 %v19476_v47, %v5124_v10  ;;  %v5702_v19 = vmax.f32 %v20116_v17, 0.0  ;;  %v20198_v29 = vmax.f32 %v26288_v36, %v5124_v10  ;;  %v5537_v39 = vmax.f32 %v26289_v23, %v5124_v10  ;;  %v20204_v55 = vld [vmem:[#allocation2 + $0x210] sm:$0xff]  ;;  %v26296_v10 = vld [vmem:[#allocation160_spill] sm:$0xff] }
 0x1f5   : > { %26286 = vst [vmem:[#allocation92_spill] sm:$0xff] %v20182_v59  ;;  %8742 = vst.msk [vmem:[#allocation2 + $0x1b0] sm:$0xff] %vm1446_vm4, %v26006_v21  ;;  %v2772_v54 = vsel %vm2769_vm6, %v26287_v9, %v2771_v34  ;;  %v5701_v17 = vmax.f32 %v20119_v51, 0.0  ;;  %v20217_v36 = vsel %vm2381_vm5, %v26293_v2, %v5130_v28  ;;  %v2774_v50 = vsel %vm2769_vm6, %v2771_v34, %v2773_v31  ;;  %v20235_v51 = vld [vmem:[#allocation2 + $0x1d0] sm:$0xff] }
 0x1f6   : > { %5803 = vst.msk [vmem:[#allocation2 + $0x1e8] sm:$0xff] %vm1446_vm4, %v5699_v58  ;;  %8741 = vst.msk [vmem:[#allocation2 + $0x1a8] sm:$0xff] %vm1446_vm4, %v26006_v21  ;;  %v26291_v58 = vld [vmem:[#allocation150_spill] sm:$0xff]  ;;  %v20212_v9 = vmax.f32 %v5225_v60, %v19407_v15  ;;  %v20221_v41 = vld [vmem:[#allocation2 + $0x208] sm:$0xff]  ;;  %v2777_v60 = vsel %vm2769_vm6, %v2775_v4, %v2776_v18  ;;  %v26297_v23 = vrot.slane %v26241_v44, 1  ;;  %v2781_v2 = vrot.slane %v18684_v24, 1  ;;  %15618 = vmatprep.mubr.msk.f32.mxu0 %vm1446_vm4, %v2772_v54 }
 0x1f7   : > { %26290 = vst [vmem:[#allocation6_spill] sm:$0xff] %v20204_v55  ;;  %15758 = vmatmul.mubr.msk.f32.gmra.mrb[26].mxu1 %vm1446_vm4, %v26291_v58  ;;  %26292 = vst [vmem:[#allocation7_spill] sm:$0xff] %v20209_v52  ;;  %v20237_v52 = vld [vmem:[#allocation2] sm:$0xff]  ;;  %v2780_v34 = vrot.slane %v18690_v56, 1  ;;  %v2785_v44 = vrot.slane %v18732_v1, 1  ;;  %v2786_v31 = vrot.slane %v26128_v53, 1  ;;  %15619 = vmatmul.mubr.msk.f32.vlgmr.msra.gmra.mrb[96].mxu0 %vm1446_vm4, %v2774_v50 }
 0x1f8   : > { %5769 = vst.msk [vmem:[#allocation2 + $0x210] sm:$0xff] %vm1446_vm4, %v26006_v21  ;;  %26294 = vst [vmem:[#allocation241_spill] sm:$0xff] %v20221_v41  ;;  %15760 = vmatprep.mubr.msk.f32.mxu1 %vm1446_vm4, %v26296_v10  ;;  %v20232_v28 = vsel %vm2769_vm6, %v2776_v18, %v26297_v23  ;;  %v20246_v4 = vld [vmem:[#allocation2 + $0x1c8] sm:$0xff]  ;;  %v2790_v54 = vrot.slane %v26133_v7, 1  ;;  %v5569_v41 = vmax.f32 %v5537_v39, %v19407_v15  ;;  %v26301_v55 = vld [vmem:[#allocation158_spill] sm:$0xff]  ;;  %v2796_v53 = vrot.slane %v26160_v62, 1 }
 0x1f9   : > { %26298 = vst [vmem:[#allocation242_spill] sm:$0xff] %v20235_v51  ;;  %26299 = vst [vmem:[#allocation243_spill] sm:$0xff] %v20237_v52  ;;  %v5228_v18 = vmax.f32 %v19521_v6, %v20217_v36  ;;  %v26302_v7 = vld [vmem:[#allocation29_spill] sm:$0xff]  ;;  %v26304_v39 = vrot.slane %v26267_v48, 1  ;;  %v2795_v62 = vrot.slane %v26146_v14, 1  ;;  %v2800_v24 = vrot.slane %v26164_v37, 1  ;;  %15621 = vmatprep.mubr.msk.f32.mxu0 %vm1446_vm4, %v2777_v60 }
 0x1fa   : > { %5806 = vst.msk [vmem:[#allocation2 + $0x210] sm:$0xff] %vm1446_vm4, %v5702_v19  ;;  %5768 = vst.msk [vmem:[#allocation2 + $0x208] sm:$0xff] %vm1446_vm4, %v26006_v21  ;;  %v2791_v19 = vrot.slane %v26143_v43, 1  ;;  %v5320_v43 = vrot.slane %v19463_v45, 1  ;;  %v5322_v1 = vrot.slane %v26302_v7, 1  ;;  %v26303_v15 = vld [vmem:[#allocation169_spill] sm:$0xff]  ;;  %v20292_v48 = vsel %vm2769_vm6, %v2780_v34, %v2781_v2 }
 0x1fb   : > { %26300 = vst [vmem:[#allocation244_spill] sm:$0xff] %v20246_v4  ;;  %8746 = vst.msk [vmem:[#allocation2 + $0x1d0] sm:$0xff] %vm1446_vm4, %v26006_v21  ;;  %15761 = vmatmul.mubr.msk.f32.gmra.mrb[28].mxu1 %vm1446_vm4, %v26301_v55  ;;  %v20280_v23 = vsel %vm2769_vm6, %v2781_v2, %v26304_v39  ;;  %v20285_v8 = vld [vmem:[#allocation2 + $0x1f0] sm:$0xff]  ;;  %v20295_v50 = vsel %vm2769_vm6, %v2785_v44, %v2786_v31  ;;  %v26309_v39 = vrot.slane %v26268_v30, 1  ;;  %v26311_v56 = vld [vmem:[#allocation8_spill] sm:$0xff]  ;;  %v26314_v2 = vrot.slane %v26284_v38, 1 }
 0x1fc   : > { %8688 = vst.msk [vmem:[#allocation2] sm:$0xff] %vm1446_vm4, %v26006_v21  ;;  %5805 = vst.msk [vmem:[#allocation2 + $0x208] sm:$0xff] %vm1446_vm4, %v5701_v17  ;;  %v20268_v17 = vld [vmem:[%s25395_s8 + $0x48] sm:$0xff]  ;;  %15763 = vmatprep.mubr.msk.f32.mxu1 %vm1446_vm4, %v26303_v15  ;;  %v17647_v7 = vld [vmem:[%s25395_s8 + $0x50] sm:$0xff]  ;;  %v20320_v30 = vmax.f32 %v5569_v41, %v20158_v16  ;;  %v20327_v38 = vsel %vm2769_vm6, %v2790_v54, %v2791_v19  ;;  %v20338_v41 = vsel %vm2769_vm6, %v5320_v43, %v5322_v1 }
 0x1fd   : > { %8745 = vst.msk [vmem:[#allocation2 + $0x1c8] sm:$0xff] %vm1446_vm4, %v26006_v21  ;;  %26305 = vst [vmem:[#allocation29_spill] sm:$0xff] %v20280_v23  ;;  %15967 = vmatpush3.msra.mxu0 %v17647_v7  ;;  %v20300_v37 = vsel %vm2769_vm6, %v2786_v31, %v26309_v39  ;;  %v20307_v7 = vld [vmem:[#allocation2 + $0x20] sm:$0xff]  ;;  %v20312_v34 = vsel %vm2769_vm6, %v2791_v19, %v26314_v2  ;;  %v26317_v44 = vld [vmem:[#allocation26_spill] sm:$0xff]  ;;  %v5319_v39 = vrot.slane %v19476_v47, 1  ;;  %v26320_v2 = vrot.slane %v26285_v35, 1 }
 0x1fe   : > { %26306 = vst [vmem:[#allocation245_spill] sm:$0xff] %v20285_v8  ;;  %26307 = vst [vmem:[#allocation246_spill] sm:$0xff] %v20292_v48  ;;  %v20303_v8 = vld [vmem:[#allocation2 + $0x1e8] sm:$0xff]  ;;  %16016 = vmatprep.subr.mxu0 %v20268_v17  ;;  %v5127_v31 = vrot.slane %v26317_v44, 7  ;;  %v26318_v14 = vld [vmem:[#allocation166_spill] sm:$0xff]  ;;  %15622 = vmatmul.mubr.msk.f32.gmra.mrb[98].mxu0 %vm1446_vm4, %v20232_v28  ;;  %v20350_v35 = vsel %vm2769_vm6, %v2795_v62, %v2796_v53 }
 0x1ff   : > { %26308 = vst [vmem:[#allocation247_spill] sm:$0xff] %v20295_v50  ;;  %26310 = vst [vmem:[#allocation248_spill] sm:$0xff] %v20300_v37  ;;  %15764 = vmatmul.mubr.msk.f32.gmra.mrb[30].mxu1 %vm1446_vm4, %v26318_v14  ;;  %v20340_v44 = vld [vmem:[#allocation2 + $0x228] sm:$0xff]  ;;  %v20344_v51 = vld [vmem:[#allocation2 + $0x220] sm:$0xff]  ;;  %15624 = vmatprep.mubr.msk.f32.mxu0 %vm1446_vm4, %v20292_v48 }
 0x200   : > { %26312 = vst [vmem:[#allocation8_spill] sm:$0xff] %v20303_v8  ;;  %8750 = vst.msk [vmem:[#allocation2 + $0x1f0] sm:$0xff] %vm1446_vm4, %v26006_v21  ;;  %v20335_v8 = vmax.f32 %v5228_v18, %v19463_v45  ;;  %15768 = vmatprep.mubr.msk.f32.mxu1 %vm1446_vm4, %v2777_v60  ;;  %v26326_v18 = vrot.slane %v26174_v12, 1 }
 0x201   : > { %26313 = vst [vmem:[#allocation249_spill] sm:$0xff] %v20307_v7  ;;  %26315 = vst [vmem:[#allocation250_spill] sm:$0xff] %v20312_v34  ;;  %v20332_v7 = vsel %vm2769_vm6, %v2796_v53, %v26320_v2  ;;  %v20359_v19 = vld [vmem:[#allocation2 + $0x210] sm:$0xff]  ;;  %v26330_v2 = vld [vmem:[#allocation35_spill] sm:$0xff] }
 0x202   : > { %8749 = vst.msk [vmem:[#allocation2 + $0x1e8] sm:$0xff] %vm1446_vm4, %v26006_v21  ;;  %10038 = vst.msk [vmem:[#allocation2 + $0x20] sm:$0xff] %vm1446_vm4, %v26006_v21  ;;  %v20355_v54 = vsel %vm2769_vm6, %v2800_v24, %v26326_v18  ;;  %v20373_v24 = vld [vmem:[#allocation2 + $0x40] sm:$0xff]  ;;  %v5420_v62 = vmax.f32 %v20335_v8, %v20338_v41  ;;  %v5133_v18 = vrot.slane %v19546_v3, 7  ;;  %15625 = vmatmul.mubr.msk.f32.gmra.mrb[100].mxu0 %vm1446_vm4, %v20280_v23 }
 0x203   : > { %26316 = vst [vmem:[#allocation251_spill] sm:$0xff] %v20320_v30  ;;  %26319 = vst [vmem:[#allocation26_spill] sm:$0xff] %v20327_v38  ;;  %v20342_v30 = vld [vmem:[#allocation2 + $0x230] sm:$0xff]  ;;  %v20357_v1 = vld [vmem:[#allocation2] sm:$0xff]  ;;  %15769 = vmatmul.mubr.msk.f32.vlgmr.msra.gmra.mrb[0].mxu1 %vm1446_vm4, %v20232_v28  ;;  %15627 = vmatprep.mubr.msk.f32.mxu0 %vm1446_vm4, %v20295_v50 }
 0x204   : > { %26321 = vst [vmem:[#allocation252_spill] sm:$0xff] %v20332_v7  ;;  %26322 = vst [vmem:[#allocation253_spill] sm:$0xff] %v20340_v44  ;;  %v20375_v53 = vld [vmem:[#allocation2 + $0x208] sm:$0xff]  ;;  %15771 = vmatprep.mubr.msk.f32.mxu1 %vm1446_vm4, %v20292_v48 }
 0x205   : > { %26323 = vst [vmem:[#allocation254_spill] sm:$0xff] %v20342_v30  ;;  %26324 = vst [vmem:[#allocation255_spill] sm:$0xff] %v20344_v51  ;;  %v5327_v30 = vrot.slane %v26330_v2, 1  ;;  %v26331_v51 = vld [vmem:[#allocation32_spill] sm:$0xff]  ;;  %v5135_v2 = vrot.slane %v19521_v6, 7 }
 0x206   : > { %26325 = vst [vmem:[#allocation256_spill] sm:$0xff] %v20350_v35  ;;  %26327 = vst [vmem:[#allocation257_spill] sm:$0xff] %v20355_v54  ;;  %v5132_v44 = vrot.slane %v26331_v51, 7  ;;  %v26334_v51 = vmax.f32 %v20088_v42, %v20075_v11  ;;  %15628 = vmatmul.mubr.msk.f32.gmra.mrb[102].mxu0 %vm1446_vm4, %v20300_v37 }
 0x207   : > { %26328 = vst [vmem:[#allocation258_spill] sm:$0xff] %v20357_v1  ;;  %26329 = vst [vmem:[#allocation259_spill] sm:$0xff] %v20359_v19  ;;  %v26336_v1 = vrot.slane %v19476_v47, 7  ;;  %v5325_v19 = vrot.slane %v19521_v6, 1  ;;  %15772 = vmatmul.mubr.msk.f32.gmra.mrb[2].mxu1 %vm1446_vm4, %v20280_v23  ;;  %15630 = vmatprep.mubr.msk.f32.mxu0 %vm1446_vm4, %v20327_v38  ;;  %v26479_v23 = vld [vmem:[#allocation200_spill] sm:$0xff] }
 0x208   : > { %5772 = vst.msk [vmem:[#allocation2 + $0x228] sm:$0xff] %vm1446_vm4, %v26006_v21  ;;  %5773 = vst.msk [vmem:[#allocation2 + $0x230] sm:$0xff] %vm1446_vm4, %v26006_v21  ;;  %v5460_v60 = vmax.f32 %v26334_v51, %v20217_v36  ;;  %v5321_v51 = vsel %vm2769_vm6, %v5319_v39, %v5320_v43  ;;  %v20413_v39 = vld [vmem:[#allocation2 + $0x238] sm:$0xff]  ;;  %15774 = vmatprep.mubr.msk.f32.mxu1 %vm1446_vm4, %v20295_v50  ;;  %v26478_v50 = vld [vmem:[#allocation8_spill] sm:$0xff] }
 0x209   : > { %5771 = vst.msk [vmem:[#allocation2 + $0x220] sm:$0xff] %vm1446_vm4, %v26006_v21  ;;  %10034 = vst.msk [vmem:[#allocation2] sm:$0xff] %vm1446_vm4, %v26006_v21  ;;  %v5129_v42 = vsel %vm2381_vm5, %v5127_v31, %v26336_v1  ;;  %v26338_v31 = vld [vmem:[#allocation39_spill] sm:$0xff]  ;;  %v5324_v1 = vrot.slane %v19546_v3, 1 }
 0x20a   : > { %26332 = vst [vmem:[#allocation35_spill] sm:$0xff] %v20373_v24  ;;  %26333 = vst [vmem:[#allocation32_spill] sm:$0xff] %v20375_v53  ;;  %v26335_v24 = vmax.f32 %v20094_v32, %v20075_v11  ;;  %v20405_v53 = vld [vmem:[%s25395_s8 + $0x38] sm:$0xff]  ;;  %v5500_v52 = vmax.f32 %v5460_v60, %v20338_v41  ;;  %v5227_v11 = vmax.f32 %v19546_v3, %v5129_v42  ;;  %v5332_v43 = vrot.slane %v26338_v31, 1 }
 0x20b   : > { %8754 = vst.msk [vmem:[#allocation2 + $0x210] sm:$0xff] %vm1446_vm4, %v26006_v21  ;;  %10042 = vst.msk [vmem:[#allocation2 + $0x40] sm:$0xff] %vm1446_vm4, %v26006_v21  ;;  %v26337_v32 = vmax.f32 %v20212_v9, %v20158_v16  ;;  %v26340_v60 = vld [vmem:[#allocation38_spill] sm:$0xff]  ;;  %v17648_v9 = vld [vmem:[%s25395_s8 + $0x30] sm:$0xff]  ;;  %v26342_v31 = vmax.f32 %v20198_v29, %v20158_v16  ;;  %15775 = vmatmul.mubr.msk.f32.gmra.mrb[4].mxu1 %vm1446_vm4, %v20300_v37  ;;  %15631 = vmatmul.mubr.msk.f32.gmra.mrb[104].mxu0 %vm1446_vm4, %v20312_v34 }
 0x20c   : > { %8753 = vst.msk [vmem:[#allocation2 + $0x208] sm:$0xff] %vm1446_vm4, %v26006_v21  ;;  %v5540_v8 = vmax.f32 %v26335_v24, %v20217_v36  ;;  %26339 = vst [vmem:[#allocation39_spill] sm:$0xff] %v20413_v39  ;;  %v5138_v24 = vrot.slane %v19601_v22, 7  ;;  %v5137_v4 = vrot.slane %v26340_v60, 7  ;;  %15817 = vmatpush3.msra.mxu1 %v17648_v9  ;;  %v26343_v39 = vld [vmem:[#allocation195_spill] sm:$0xff]  ;;  %v5136_v9 = vsel %vm2381_vm5, %v5133_v18, %v5135_v2 }
 0x20d   : > { %v5459_v36 = vmax.f32 %v26337_v32, %v5129_v42  ;;  %5774 = vst.msk [vmem:[#allocation2 + $0x238] sm:$0xff] %vm1446_vm4, %v26006_v21  ;;  %v20430_v32 = vld [vmem:[#allocation2 + $0x60] sm:$0xff]  ;;  %v5539_v60 = vmax.f32 %v26342_v31, %v5129_v42  ;;  %v5140_v48 = vrot.slane %v26343_v39, 7  ;;  %15866 = vmatprep.subr.mxu1 %v20405_v53  ;;  %v5230_v42 = vmax.f32 %v26343_v39, %v5136_v9 }
 0x20e   : > { %v5572_v28 = vmax.f32 %v5540_v8, %v19463_v45  ;;  %26341 = vst [vmem:[#allocation38_spill] sm:$0xff] %v20430_v32  ;;  %v5259_v45 = vmax.f32 %v5227_v11, %v19476_v47  ;;  %10046 = vst.msk [vmem:[#allocation2 + $0x60] sm:$0xff] %vm1446_vm4, %v26006_v21  ;;  %v5328_v32 = vsel %vm2769_vm6, %v5325_v19, %v5327_v30  ;;  %15777 = vmatprep.mubr.msk.f32.mxu1 %vm1446_vm4, %v20327_v38  ;;  %v26474_v38 = vld [vmem:[#allocation157_spill] sm:$0xff] }
 0x20f   : > { %v5499_v8 = vmax.f32 %v5459_v36, %v5321_v51  ;;  %v5134_v11 = vsel %vm2381_vm5, %v5132_v44, %v5133_v18  ;;  %v5571_v16 = vmax.f32 %v5539_v60, %v19476_v47  ;;  %v5462_v36 = vmax.f32 %v5420_v62, %v5136_v9  ;;  %v20459_v47 = vld [vmem:[#allocation2 + $0x80] sm:$0xff]  ;;  %15633 = vmatprep.mubr.msk.f32.mxu0 %vm1446_vm4, %v20350_v35 }
 0x210   : > { %v20441_v20 = vmax.f32 %v5572_v28, %v20338_v41  ;;  %v5419_v29 = vmax.f32 %v5259_v45, %v5321_v51  ;;  %v5542_v41 = vmax.f32 %v5500_v52, %v5136_v9  ;;  %v5229_v30 = vmax.f32 %v19601_v22, %v5134_v11  ;;  %26345 = vst [vmem:[#allocation260_spill] sm:$0xff] %v20459_v47  ;;  %v26347_v9 = vld [vmem:[#allocation204_spill] sm:$0xff]  ;;  %v26381_v47 = vld [vmem:[#allocation137_spill] sm:$0xff] }
 0x211   : > { %v5326_v44 = vsel %vm2769_vm6, %v5324_v1, %v5325_v19  ;;  %v5330_v18 = vrot.slane %v26343_v39, 1  ;;  %v20461_v2 = vmax.f32 %v5571_v16, %v5321_v51  ;;  %v5262_v62 = vmax.f32 %v5230_v42, %v19521_v6  ;;  %10050 = vst.msk [vmem:[#allocation2 + $0x80] sm:$0xff] %vm1446_vm4, %v26006_v21  ;;  %15778 = vmatmul.mubr.msk.f32.gmra.mrb[6].mxu1 %vm1446_vm4, %v20312_v34 }
 0x212   : > { %26344 = vst [vmem:[#allocation195_spill] sm:$0xff] %v20441_v20  ;;  %v5502_v28 = vmax.f32 %v5462_v36, %v5328_v32  ;;  %v5461_v45 = vmax.f32 %v5419_v29, %v5134_v11  ;;  %v5574_v52 = vmax.f32 %v5542_v41, %v19521_v6  ;;  %v5261_v19 = vmax.f32 %v5229_v30, %v19546_v3  ;;  %v20485_v29 = vld [vmem:[#allocation2 + $0xa0] sm:$0xff] }
 0x213   : > { %26346 = vst [vmem:[#allocation261_spill] sm:$0xff] %v20461_v2  ;;  %v5541_v1 = vmax.f32 %v5499_v8, %v5134_v11  ;;  %v5141_v31 = vsel %vm2381_vm5, %v5138_v24, %v5140_v48  ;;  %v5422_v60 = vmax.f32 %v5262_v62, %v5328_v32  ;;  %v20473_v42 = vsel %vm2769_vm6, %v5330_v18, %v5332_v43 }
 0x214   : > { %v5501_v51 = vmax.f32 %v5461_v45, %v5326_v44  ;;  %v5232_v16 = vmax.f32 %v26347_v9, %v5141_v31  ;;  %26348 = vst [vmem:[#allocation262_spill] sm:$0xff] %v20473_v42  ;;  %v20479_v6 = vmax.f32 %v5574_v52, %v5328_v32  ;;  %v5421_v8 = vmax.f32 %v5261_v19, %v5326_v44  ;;  %v26408_v9 = vld [vmem:[#allocation173_spill] sm:$0xff] }
 0x215   : > { %v5573_v48 = vmax.f32 %v5541_v1, %v19546_v3  ;;  %v5329_v11 = vrot.slane %v19601_v22, 1  ;;  %26350 = vst [vmem:[#allocation264_spill] sm:$0xff] %v20485_v29  ;;  %v20490_v36 = vmax.f32 %v5422_v60, %v5141_v31  ;;  %v5544_v41 = vmax.f32 %v5502_v28, %v5141_v31  ;;  %10054 = vst.msk [vmem:[#allocation2 + $0xa0] sm:$0xff] %vm1446_vm4, %v26006_v21  ;;  %v26354_v3 = vld [vmem:[#allocation36_spill] sm:$0xff] }
 0x216   : > { %26349 = vst [vmem:[#allocation263_spill] sm:$0xff] %v20479_v6  ;;  %v20488_v43 = vmax.f32 %v5232_v16, %v26343_v39  ;;  %v5139_v30 = vsel %vm2381_vm5, %v5137_v4, %v5138_v24  ;;  %15634 = vmatmul.mubr.msk.f32.gmra.mrb[106].mxu0 %vm1446_vm4, %v20332_v7  ;;  %15780 = vmatprep.mubr.msk.f32.mxu1 %vm1446_vm4, %v20350_v35  ;;  %v2806_v1 = vrot.slane %v26188_v25, 1  ;;  %v2815_v60 = vrot.slane %v26209_v61, 1  ;;  %v26371_v4 = vld [vmem:[#allocation128_spill] sm:$0xff]  ;;  %v26473_v35 = vld [vmem:[#allocation243_spill] sm:$0xff] }
 0x217   : > { %26352 = vst [vmem:[#allocation266_spill] sm:$0xff] %v20490_v36  ;;  %v20495_v32 = vmax.f32 %v5573_v48, %v5326_v44  ;;  %v5231_v62 = vmax.f32 %v26354_v3, %v5139_v30  ;;  %v20499_v45 = vsel %vm2769_vm6, %v5329_v11, %v5330_v18  ;;  %v20501_v52 = vmax.f32 %v5421_v8, %v5139_v30  ;;  %v26357_v18 = vld [vmem:[#allocation120_spill] sm:$0xff] }
 0x218   : > { %26351 = vst [vmem:[#allocation265_spill] sm:$0xff] %v20488_v43  ;;  %26355 = vst [vmem:[#allocation268_spill] sm:$0xff] %v20499_v45  ;;  %v5576_v24 = vmax.f32 %v5544_v41, %v26343_v39  ;;  %v5543_v44 = vmax.f32 %v5501_v51, %v5139_v30  ;;  %v2805_v19 = vrot.slane %v26357_v18, 1  ;;  %15636 = vmatprep.mubr.msk.f32.mxu0 %vm1446_vm4, %v20355_v54  ;;  %v20523_v39 = vld [vmem:[#allocation2 + $0xc0] sm:$0xff]  ;;  %15781 = vmatmul.mubr.msk.f32.gmra.mrb[8].mxu1 %vm1446_vm4, %v20332_v7  ;;  %v26364_v30 = vld [vmem:[#allocation9_spill] sm:$0xff] }
 0x219   : > { %26353 = vst [vmem:[#allocation267_spill] sm:$0xff] %v20495_v32  ;;  %26356 = vst [vmem:[#allocation269_spill] sm:$0xff] %v20501_v52  ;;  %v20517_v31 = vmax.f32 %v5231_v62, %v19601_v22  ;;  %v26361_v48 = vrot.slane %v26311_v56, 1  ;;  %v26362_v11 = vrot.slane %v26174_v12, 1  ;;  %v2808_v62 = vrot.slane %v26364_v30, 1  ;;  %15783 = vmatprep.mubr.msk.f32.mxu1 %vm1446_vm4, %v20355_v54  ;;  %v26466_v54 = vld [vmem:[#allocation148_spill] sm:$0xff] }
 0x21a   : > { %26359 = vst [vmem:[#allocation270_spill] sm:$0xff] %v20523_v39  ;;  %v20526_v51 = vmax.f32 %v5576_v24, %v20473_v42  ;;  %v5575_v16 = vmax.f32 %v5543_v44, %v19601_v22  ;;  %10058 = vst.msk [vmem:[#allocation2 + $0xc0] sm:$0xff] %vm1446_vm4, %v26006_v21  ;;  %v20551_v24 = vsel %vm2769_vm6, %v2805_v19, %v2806_v1  ;;  %v2810_v56 = vrot.slane %v26195_v0, 1  ;;  %v26369_v19 = vld [vmem:[#allocation10_spill] sm:$0xff]  ;;  %v26406_v42 = vld [vmem:[#allocation83_spill] sm:$0xff] }
 0x21b   : > { %26358 = vst [vmem:[#allocation120_spill] sm:$0xff] %v20517_v31  ;;  %v20540_v41 = vsel %vm2769_vm6, %v26362_v11, %v26361_v48  ;;  %26366 = vst [vmem:[#allocation273_spill] sm:$0xff] %v20551_v24  ;;  %v2811_v44 = vrot.slane %v26203_v46, 1  ;;  %v20557_v48 = vld [vmem:[#allocation2 + $0xe0] sm:$0xff]  ;;  %v2813_v11 = vrot.slane %v26369_v19, 1  ;;  %v2816_v8 = vrot.slane %v26371_v4, 1 }
 0x21c   : > { %26360 = vst [vmem:[#allocation271_spill] sm:$0xff] %v20526_v51  ;;  %26363 = vst [vmem:[#allocation272_spill] sm:$0xff] %v20540_v41  ;;  %v20544_v22 = vmax.f32 %v5575_v16, %v20499_v45  ;;  %15637 = vmatmul.mubr.msk.f32.gmra.mrb[108].mxu0 %vm1446_vm4, %v20540_v41  ;;  %15784 = vmatmul.mubr.msk.f32.gmra.mrb[10].mxu1 %vm1446_vm4, %v20540_v41  ;;  %v20564_v16 = vsel %vm2769_vm6, %v2806_v1, %v2808_v62  ;;  %v20578_v1 = vld [vmem:[#allocation2 + $0x100] sm:$0xff]  ;;  %v2831_v32 = vrot.slane %v26262_v57, 1  ;;  %v26472_v7 = vld [vmem:[#allocation244_spill] sm:$0xff] }
 0x21d   : > { %15639 = vmatprep.mubr.msk.f32.mxu0 %vm1446_vm4, %v20551_v24  ;;  %26367 = vst [vmem:[#allocation274_spill] sm:$0xff] %v20557_v48  ;;  %10062 = vst.msk [vmem:[#allocation2 + $0xe0] sm:$0xff] %vm1446_vm4, %v26006_v21  ;;  %15786 = vmatprep.mubr.msk.f32.mxu1 %vm1446_vm4, %v20551_v24  ;;  %v20572_v30 = vsel %vm2769_vm6, %v2810_v56, %v2811_v44  ;;  %v20585_v62 = vsel %vm2769_vm6, %v2811_v44, %v2813_v11  ;;  %v26374_v56 = vld [vmem:[#allocation11_spill] sm:$0xff]  ;;  %v2821_v48 = vrot.slane %v26232_v26, 1  ;;  %v26460_v24 = vld [vmem:[#allocation76_spill] sm:$0xff] }
 0x21e   : > { %26365 = vst [vmem:[#allocation9_spill] sm:$0xff] %v20544_v22  ;;  %26368 = vst [vmem:[#allocation275_spill] sm:$0xff] %v20564_v16  ;;  %v2818_v19 = vrot.slane %v26374_v56, 1  ;;  %v20593_v28 = vsel %vm2769_vm6, %v2815_v60, %v2816_v8  ;;  %v20599_v44 = vld [vmem:[#allocation2 + $0x120] sm:$0xff]  ;;  %v26378_v60 = vld [vmem:[#allocation12_spill] sm:$0xff]  ;;  %v2826_v22 = vrot.slane %v26381_v47, 1 }
 0x21f   : > { %26370 = vst [vmem:[#allocation10_spill] sm:$0xff] %v20572_v30  ;;  %26372 = vst [vmem:[#allocation128_spill] sm:$0xff] %v20578_v1  ;;  %v2820_v1 = vrot.slane %v26224_v49, 1  ;;  %v2823_v56 = vrot.slane %v26378_v60, 1  ;;  %v2836_v2 = vrot.slane %v26275_v5, 1  ;;  %v2841_v52 = vrot.slane %v26291_v58, 1 }
 0x220   : > { %15640 = vmatmul.mubr.msk.f32.gmra.mrb[110].mxu0 %vm1446_vm4, %v20564_v16  ;;  %10066 = vst.msk [vmem:[#allocation2 + $0x100] sm:$0xff] %vm1446_vm4, %v26006_v21  ;;  %15787 = vmatmul.mubr.msk.f32.gmra.mrb[12].mxu1 %vm1446_vm4, %v20564_v16  ;;  %26373 = vst [vmem:[#allocation276_spill] sm:$0xff] %v20585_v62  ;;  %v20606_v11 = vsel %vm2769_vm6, %v2816_v8, %v2818_v19  ;;  %v20620_v8 = vld [vmem:[#allocation2 + $0x140] sm:$0xff]  ;;  %v2846_v45 = vrot.slane %v26301_v55, 1  ;;  %v3711_v43 = vrot.slane %v26406_v42, 1  ;;  %v26409_v42 = vld [vmem:[#allocation184_spill] sm:$0xff] }
 0x221   : > { %15642 = vmatprep.mubr.msk.f32.mxu0 %vm1446_vm4, %v20572_v30  ;;  %15789 = vmatprep.mubr.msk.f32.mxu1 %vm1446_vm4, %v20572_v30  ;;  %26375 = vst [vmem:[#allocation11_spill] sm:$0xff] %v20593_v28  ;;  %26376 = vst [vmem:[#allocation277_spill] sm:$0xff] %v20599_v44  ;;  %v20614_v39 = vsel %vm2769_vm6, %v2820_v1, %v2821_v48  ;;  %v26380_v44 = vld [vmem:[#allocation138_spill] sm:$0xff]  ;;  %v20627_v19 = vsel %vm2769_vm6, %v2821_v48, %v2823_v56  ;;  %v26384_v1 = vld [vmem:[#allocation13_spill] sm:$0xff]  ;;  %v6220_v34 = vrot.slane %v26473_v35, 7 }
 0x222   : > { %10070 = vst.msk [vmem:[#allocation2 + $0x120] sm:$0xff] %vm1446_vm4, %v26006_v21  ;;  %26377 = vst [vmem:[#allocation278_spill] sm:$0xff] %v20606_v11  ;;  %v2825_v29 = vrot.slane %v26380_v44, 1  ;;  %v2828_v60 = vrot.slane %v26384_v1, 1  ;;  %v20641_v48 = vld [vmem:[#allocation2 + $0x160] sm:$0xff]  ;;  %v26455_v30 = vld [vmem:[#allocation70_spill] sm:$0xff] }
 0x223   : > { %26379 = vst [vmem:[#allocation12_spill] sm:$0xff] %v20614_v39  ;;  %26382 = vst [vmem:[#allocation138_spill] sm:$0xff] %v20620_v8  ;;  %v2830_v8 = vrot.slane %v26251_v40, 1  ;;  %v26457_v16 = vld [vmem:[#allocation139_spill] sm:$0xff]  ;;  %v6223_v37 = vrot.slane %v26408_v9, 7  ;;  %v26482_v55 = vld [vmem:[#allocation174_spill] sm:$0xff] }
 0x224   : > { %15643 = vmatmul.mubr.msk.f32.gmra.mrb[112].mxu0 %vm1446_vm4, %v20585_v62  ;;  %15790 = vmatmul.mubr.msk.f32.gmra.mrb[14].mxu1 %vm1446_vm4, %v20585_v62  ;;  %10074 = vst.msk [vmem:[#allocation2 + $0x140] sm:$0xff] %vm1446_vm4, %v26006_v21  ;;  %26383 = vst [vmem:[#allocation137_spill] sm:$0xff] %v20627_v19  ;;  %v20635_v51 = vsel %vm2769_vm6, %v2825_v29, %v2826_v22  ;;  %v20648_v56 = vsel %vm2769_vm6, %v2826_v22, %v2828_v60  ;;  %v26388_v29 = vld [vmem:[#allocation14_spill] sm:$0xff]  ;;  %v20662_v22 = vld [vmem:[#allocation2 + $0x180] sm:$0xff] }
 0x225   : > { %15645 = vmatprep.mubr.msk.f32.mxu0 %vm1446_vm4, %v20593_v28  ;;  %15792 = vmatprep.mubr.msk.f32.mxu1 %vm1446_vm4, %v20593_v28  ;;  %26385 = vst [vmem:[#allocation13_spill] sm:$0xff] %v20635_v51  ;;  %26386 = vst [vmem:[#allocation279_spill] sm:$0xff] %v20641_v48  ;;  %v2833_v1 = vrot.slane %v26388_v29, 1  ;;  %v20656_v6 = vsel %vm2769_vm6, %v2830_v8, %v2831_v32  ;;  %v2835_v48 = vrot.slane %v26266_v63, 1  ;;  %v26392_v8 = vld [vmem:[#allocation15_spill] sm:$0xff]  ;;  %v26450_v28 = vld [vmem:[#allocation226_spill] sm:$0xff] }
 0x226   : > { %10078 = vst.msk [vmem:[#allocation2 + $0x160] sm:$0xff] %vm1446_vm4, %v26006_v21  ;;  %26387 = vst [vmem:[#allocation280_spill] sm:$0xff] %v20648_v56  ;;  %v2838_v29 = vrot.slane %v26392_v8, 1  ;;  %v26452_v62 = vld [vmem:[#allocation135_spill] sm:$0xff] }
 0x227   : > { %26389 = vst [vmem:[#allocation14_spill] sm:$0xff] %v20656_v6  ;;  %26390 = vst [vmem:[#allocation281_spill] sm:$0xff] %v20662_v22  ;;  %v20669_v60 = vsel %vm2769_vm6, %v2831_v32, %v2833_v1  ;;  %v20677_v20 = vsel %vm2769_vm6, %v2835_v48, %v2836_v2  ;;  %v2840_v22 = vrot.slane %v26281_v13, 1  ;;  %v20683_v32 = vld [vmem:[#allocation2 + $0x1a0] sm:$0xff]  ;;  %v26396_v48 = vld [vmem:[#allocation16_spill] sm:$0xff] }
 0x228   : > { %15646 = vmatmul.mubr.msk.f32.gmra.mrb[114].mxu0 %vm1446_vm4, %v20606_v11  ;;  %15793 = vmatmul.mubr.msk.f32.gmra.mrb[16].mxu1 %vm1446_vm4, %v20606_v11  ;;  %10082 = vst.msk [vmem:[#allocation2 + $0x180] sm:$0xff] %vm1446_vm4, %v26006_v21  ;;  %26391 = vst [vmem:[#allocation282_spill] sm:$0xff] %v20669_v60  ;;  %v20690_v1 = vsel %vm2769_vm6, %v2836_v2, %v2838_v29  ;;  %v2843_v8 = vrot.slane %v26396_v48, 1  ;;  %v20704_v2 = vld [vmem:[#allocation2 + $0x1c0] sm:$0xff]  ;;  %v26447_v11 = vld [vmem:[#allocation130_spill] sm:$0xff] }
 0x229   : > { %15648 = vmatprep.mubr.msk.f32.mxu0 %vm1446_vm4, %v20614_v39  ;;  %15795 = vmatprep.mubr.msk.f32.mxu1 %vm1446_vm4, %v20614_v39  ;;  %26393 = vst [vmem:[#allocation15_spill] sm:$0xff] %v20677_v20  ;;  %26394 = vst [vmem:[#allocation283_spill] sm:$0xff] %v20683_v32  ;;  %v20698_v36 = vsel %vm2769_vm6, %v2840_v22, %v2841_v52  ;;  %v2845_v32 = vrot.slane %v26296_v10, 1  ;;  %v26400_v22 = vld [vmem:[#allocation17_spill] sm:$0xff]  ;;  %v26445_v39 = vld [vmem:[#allocation58_spill] sm:$0xff] }
 0x22a   : > { %10086 = vst.msk [vmem:[#allocation2 + $0x1a0] sm:$0xff] %vm1446_vm4, %v26006_v21  ;;  %26395 = vst [vmem:[#allocation284_spill] sm:$0xff] %v20690_v1  ;;  %v20711_v29 = vsel %vm2769_vm6, %v2841_v52, %v2843_v8  ;;  %v2848_v48 = vrot.slane %v26400_v22, 1  ;;  %v3708_v8 = vrot.slane %v26303_v15, 1  ;;  %v3709_v22 = vrot.slane %v26318_v14, 1  ;;  %v26462_v41 = vld [vmem:[#allocation143_spill] sm:$0xff] }
 0x22b   : > { %26397 = vst [vmem:[#allocation16_spill] sm:$0xff] %v20698_v36  ;;  %26398 = vst [vmem:[#allocation285_spill] sm:$0xff] %v20704_v2  ;;  %v20719_v31 = vsel %vm2769_vm6, %v2845_v32, %v2846_v45  ;;  %v20723_v2 = vld [vmem:[#allocation2 + $0x1e0] sm:$0xff]  ;;  %v3979_v14 = vrot.slane %v26479_v23, 7  ;;  %v26480_v15 = vld [vmem:[#allocation201_spill] sm:$0xff]  ;;  %v6226_v23 = vrot.slane %v26409_v42, 7 }
 0x22c   : > { %15649 = vmatmul.mubr.msk.f32.gmra.mrb[116].mxu0 %vm1446_vm4, %v20627_v19  ;;  %15796 = vmatmul.mubr.msk.f32.gmra.mrb[18].mxu1 %vm1446_vm4, %v20627_v19  ;;  %10090 = vst.msk [vmem:[#allocation2 + $0x1c0] sm:$0xff] %vm1446_vm4, %v26006_v21  ;;  %26399 = vst [vmem:[#allocation286_spill] sm:$0xff] %v20711_v29  ;;  %v20730_v52 = vsel %vm2769_vm6, %v2846_v45, %v2848_v48  ;;  %v26404_v32 = vld [vmem:[#allocation171_spill] sm:$0xff]  ;;  %v20748_v45 = vsel %vm2769_vm6, %v3708_v8, %v3709_v22  ;;  %v20753_v48 = vld [vmem:[%s25395_s8 + $0x58] sm:$0xff]  ;;  %v3980_v35 = vrot.slane %v26480_v15, 7 }
 0x22d   : > { %15651 = vmatprep.mubr.msk.f32.mxu0 %vm1446_vm4, %v20635_v51  ;;  %15798 = vmatprep.mubr.msk.f32.mxu1 %vm1446_vm4, %v20635_v51  ;;  %26401 = vst [vmem:[#allocation17_spill] sm:$0xff] %v20719_v31  ;;  %26402 = vst [vmem:[#allocation287_spill] sm:$0xff] %v20723_v2  ;;  %v20740_v2 = vld [vmem:[#allocation2 + $0x18] sm:$0xff]  ;;  %v20763_v3 = vsel %vm2769_vm6, %v3709_v22, %v3711_v43  ;;  %v26411_v8 = vld [vmem:[#allocation101_spill] sm:$0xff] }
 0x22e   : > { %10094 = vst.msk [vmem:[#allocation2 + $0x1e0] sm:$0xff] %vm1446_vm4, %v26006_v21  ;;  %26403 = vst [vmem:[#allocation288_spill] sm:$0xff] %v20730_v52  ;;  %v26416_v43 = vld [vmem:[#allocation102_spill] sm:$0xff]  ;;  %v20787_v22 = vld [vmem:[%s25395_s8 + $0x40] sm:$0xff] }
 0x22f   : > { %26405 = vst [vmem:[#allocation171_spill] sm:$0xff] %v20740_v2  ;;  %8691 = vst.msk [vmem:[#allocation2 + $0x18] sm:$0xff] %vm1446_vm4, %v26006_v21  ;;  %v26440_v51 = vld [vmem:[#allocation52_spill] sm:$0xff]  ;;  %v26442_v19 = vld [vmem:[#allocation126_spill] sm:$0xff] }
 0x230   : > { %15652 = vmatmul.mubr.msk.f32.gmra.mrb[118].mxu0 %vm1446_vm4, %v20648_v56  ;;  %15799 = vmatmul.mubr.msk.f32.gmra.mrb[20].mxu1 %vm1446_vm4, %v20648_v56  ;;  %26407 = vst [vmem:[#allocation83_spill] sm:$0xff] %v20748_v45  ;;  %26410 = vst [vmem:[#allocation184_spill] sm:$0xff] %v20763_v3  ;;  %v26437_v56 = vld [vmem:[#allocation121_spill] sm:$0xff]  ;;  %v26484_v2 = vld [vmem:[#allocation20_spill] sm:$0xff] }
 0x231   : > { %15654 = vmatprep.mubr.msk.f32.mxu0 %vm1446_vm4, %v20656_v6  ;;  %15801 = vmatprep.mubr.msk.f32.mxu1 %vm1446_vm4, %v20656_v6  ;;  %v26435_v6 = vld [vmem:[#allocation46_spill] sm:$0xff]  ;;  %v6225_v10 = vrot.slane %v26484_v2, 7  ;;  %v26485_v58 = vld [vmem:[#allocation203_spill] sm:$0xff] }
 0x232   : > { %v3982_v15 = vrot.slane %v26485_v58, 7  ;;  %v20973_v58 = vld [vmem:[%s25395_s8 + $0x60] sm:$0xff] }
 0x234   : > { %15655 = vmatmul.mubr.msk.f32.gmra.mrb[120].mxu0 %vm1446_vm4, %v20669_v60  ;;  %15802 = vmatmul.mubr.msk.f32.gmra.mrb[22].mxu1 %vm1446_vm4, %v20669_v60  ;;  %v26432_v60 = vld [vmem:[#allocation117_spill] sm:$0xff] }
 0x235   : > { %15657 = vmatprep.mubr.msk.f32.mxu0 %vm1446_vm4, %v20677_v20  ;;  %15804 = vmatprep.mubr.msk.f32.mxu1 %vm1446_vm4, %v20677_v20  ;;  %v26430_v20 = vld [vmem:[#allocation207_spill] sm:$0xff] }
 0x238   : > { %15658 = vmatmul.mubr.msk.f32.gmra.mrb[122].mxu0 %vm1446_vm4, %v20690_v1  ;;  %15805 = vmatmul.mubr.msk.f32.gmra.mrb[24].mxu1 %vm1446_vm4, %v20690_v1  ;;  %v26427_v1 = vld [vmem:[#allocation113_spill] sm:$0xff] }
 0x239   : > { %15660 = vmatprep.mubr.msk.f32.mxu0 %vm1446_vm4, %v20698_v36  ;;  %15807 = vmatprep.mubr.msk.f32.mxu1 %vm1446_vm4, %v20698_v36  ;;  %v26425_v36 = vld [vmem:[#allocation199_spill] sm:$0xff] }
 0x23c   : > { %15661 = vmatmul.mubr.msk.f32.gmra.mrb[124].mxu0 %vm1446_vm4, %v20711_v29  ;;  %15808 = vmatmul.mubr.msk.f32.gmra.mrb[26].mxu1 %vm1446_vm4, %v20711_v29  ;;  %v26422_v29 = vld [vmem:[#allocation109_spill] sm:$0xff] }
 0x23d   : > { %15663 = vmatprep.mubr.msk.f32.mxu0 %vm1446_vm4, %v20719_v31  ;;  %15810 = vmatprep.mubr.msk.f32.mxu1 %vm1446_vm4, %v20719_v31  ;;  %v20776_v31 = vld [vmem:[#allocation2 + $0x18] sm:$0xff] }
 0x23e   : > { %26415 = vst [vmem:[#allocation289_spill] sm:$0xff] %v20776_v31  ;;  %10037 = vst.msk [vmem:[#allocation2 + $0x18] sm:$0xff] %vm1446_vm4, %v26006_v21  ;;  %v20793_v31 = vld [vmem:[#allocation2 + $0x58] sm:$0xff] }
 0x23f   : > { %26419 = vst [vmem:[#allocation102_spill] sm:$0xff] %v20793_v31  ;;  %10045 = vst.msk [vmem:[#allocation2 + $0x58] sm:$0xff] %vm1446_vm4, %v26006_v21  ;;  %v20807_v31 = vld [vmem:[#allocation2 + $0x78] sm:$0xff] }
 0x240   : > { %15664 = vmatmul.mubr.msk.f32.gmra.mrb[126].mxu0 %vm1446_vm4, %v20730_v52  ;;  %15811 = vmatmul.mubr.msk.f32.gmra.mrb[28].mxu1 %vm1446_vm4, %v20730_v52  ;;  %v20772_v52 = vld [vmem:[#allocation2 + $0x38] sm:$0xff]  ;;  %10049 = vst.msk [vmem:[#allocation2 + $0x78] sm:$0xff] %vm1446_vm4, %v26006_v21 }
 0x241   : > { %15968 = vmatprep.mubr.msk.f32.mxu0 %vm1446_vm4, %v26404_v32  ;;  %15813 = vmatprep.mubr.msk.f32.mxu1 %vm1446_vm4, %v20748_v45  ;;  %v26412_v45 = vld [vmem:[#allocation183_spill] sm:$0xff]  ;;  %26413 = vst [vmem:[#allocation101_spill] sm:$0xff] %v20772_v52  ;;  %10041 = vst.msk [vmem:[#allocation2 + $0x38] sm:$0xff] %vm1446_vm4, %v26006_v21  ;;  %v26418_v52 = vld [vmem:[#allocation189_spill] sm:$0xff] }
 0x242   : > { %v6228_v2 = vrot.slane %v26412_v45, 7 }
 0x244   : > { %15969 = vmatmul.mubr.msk.f32.vlgmr.msra.gmra.mrb[128].mxu0 %vm1446_vm4, %v26408_v9  ;;  %15814 = vmatmul.mubr.msk.f32.gmra.mrb[30].mxu1 %vm1446_vm4, %v20763_v3  ;;  %v26420_v3 = vld [vmem:[#allocation28_spill] sm:$0xff]  ;;  %v20960_v9 = vld [vmem:[#allocation2 + $0x1f8] sm:$0xff] }
 0x245   : > { %16017 = vmatpush3.msra.mxu0 %v20268_v17  ;;  %15971 = vmatprep.mubr.msk.f32.mxu0 %vm1446_vm4, %v26409_v42  ;;  %v26414_v17 = vld [vmem:[#allocation190_spill] sm:$0xff]  ;;  %26486 = vst [vmem:[#allocation130_spill] sm:$0xff] %v20960_v9  ;;  %10097 = vst.msk [vmem:[#allocation2 + $0x1f8] sm:$0xff] %vm1446_vm4, %v26006_v21 }
 0x246   : > { %16066 = vmatprep.subr.mxu0 %v20753_v48  ;;  %15818 = vmatprep.mubr.msk.f32.mxu1 %vm1446_vm4, %v26411_v8  ;;  %v26417_v8 = vld [vmem:[#allocation105_spill] sm:$0xff] }
 0x247   : > { %26424 = vst [vmem:[#allocation105_spill] sm:$0xff] %v20807_v31  ;;  %v26431_v31 = vld [vmem:[#allocation114_spill] sm:$0xff] }
 0x248   : > { %15972 = vmatmul.mubr.msk.f32.gmra.mrb[130].mxu0 %vm1446_vm4, %v26412_v45  ;;  %15819 = vmatmul.mubr.msk.f32.vlgmr.msra.gmra.mrb[0].mxu1 %vm1446_vm4, %v26416_v43  ;;  %v26421_v43 = vld [vmem:[#allocation106_spill] sm:$0xff] }
 0x249   : > { %15974 = vmatprep.mubr.msk.f32.mxu0 %vm1446_vm4, %v26414_v17  ;;  %15821 = vmatprep.mubr.msk.f32.mxu1 %vm1446_vm4, %v26417_v8  ;;  %v26423_v8 = vld [vmem:[#allocation24_spill] sm:$0xff] }
 0x24a   : > { %15867 = vmatpush3.msra.mxu1 %v20405_v53  ;;  %v26426_v53 = vld [vmem:[#allocation110_spill] sm:$0xff] }
 0x24b   : > { %15916 = vmatprep.subr.mxu1 %v20787_v22 }
 0x24c   : > { %15975 = vmatmul.mubr.msk.f32.gmra.mrb[132].mxu0 %vm1446_vm4, %v26418_v52  ;;  %15822 = vmatmul.mubr.msk.f32.gmra.mrb[2].mxu1 %vm1446_vm4, %v26421_v43  ;;  %v26428_v43 = vld [vmem:[#allocation198_spill] sm:$0xff] }
 0x24d   : > { %15977 = vmatprep.mubr.msk.f32.mxu0 %vm1446_vm4, %v26420_v3  ;;  %15824 = vmatprep.mubr.msk.f32.mxu1 %vm1446_vm4, %v26422_v29  ;;  %v20819_v29 = vld [vmem:[#allocation2 + $0x98] sm:$0xff] }
 0x24e   : > { %26429 = vst [vmem:[#allocation106_spill] sm:$0xff] %v20819_v29  ;;  %10053 = vst.msk [vmem:[#allocation2 + $0x98] sm:$0xff] %vm1446_vm4, %v26006_v21  ;;  %v26436_v29 = vld [vmem:[#allocation118_spill] sm:$0xff] }
 0x250   : > { %15978 = vmatmul.mubr.msk.f32.gmra.mrb[134].mxu0 %vm1446_vm4, %v26423_v8  ;;  %15825 = vmatmul.mubr.msk.f32.gmra.mrb[4].mxu1 %vm1446_vm4, %v26426_v53  ;;  %v26433_v53 = vld [vmem:[#allocation206_spill] sm:$0xff] }
 0x251   : > { %15980 = vmatprep.mubr.msk.f32.mxu0 %vm1446_vm4, %v26425_v36  ;;  %15827 = vmatprep.mubr.msk.f32.mxu1 %vm1446_vm4, %v26427_v1  ;;  %v20831_v1 = vld [vmem:[#allocation2 + $0xb8] sm:$0xff] }
 0x252   : > { %26434 = vst [vmem:[#allocation109_spill] sm:$0xff] %v20831_v1  ;;  %10057 = vst.msk [vmem:[#allocation2 + $0xb8] sm:$0xff] %vm1446_vm4, %v26006_v21  ;;  %v26441_v1 = vld [vmem:[#allocation122_spill] sm:$0xff] }
 0x254   : > { %15981 = vmatmul.mubr.msk.f32.gmra.mrb[136].mxu0 %vm1446_vm4, %v26428_v43  ;;  %15828 = vmatmul.mubr.msk.f32.gmra.mrb[6].mxu1 %vm1446_vm4, %v26431_v31  ;;  %v26438_v31 = vld [vmem:[#allocation212_spill] sm:$0xff] }
 0x255   : > { %15983 = vmatprep.mubr.msk.f32.mxu0 %vm1446_vm4, %v26430_v20  ;;  %15830 = vmatprep.mubr.msk.f32.mxu1 %vm1446_vm4, %v26432_v60  ;;  %v20843_v60 = vld [vmem:[#allocation2 + $0xd8] sm:$0xff] }
 0x256   : > { %26439 = vst [vmem:[#allocation110_spill] sm:$0xff] %v20843_v60  ;;  %10061 = vst.msk [vmem:[#allocation2 + $0xd8] sm:$0xff] %vm1446_vm4, %v26006_v21  ;;  %v26446_v60 = vld [vmem:[#allocation127_spill] sm:$0xff] }
 0x258   : > { %15984 = vmatmul.mubr.msk.f32.gmra.mrb[138].mxu0 %vm1446_vm4, %v26433_v53  ;;  %15831 = vmatmul.mubr.msk.f32.gmra.mrb[8].mxu1 %vm1446_vm4, %v26436_v29  ;;  %v26443_v29 = vld [vmem:[#allocation124_spill] sm:$0xff] }
 0x259   : > { %15986 = vmatprep.mubr.msk.f32.mxu0 %vm1446_vm4, %v26435_v6  ;;  %15833 = vmatprep.mubr.msk.f32.mxu1 %vm1446_vm4, %v26437_v56  ;;  %v20855_v56 = vld [vmem:[#allocation2 + $0xf8] sm:$0xff] }
 0x25a   : > { %26444 = vst [vmem:[#allocation113_spill] sm:$0xff] %v20855_v56  ;;  %10065 = vst.msk [vmem:[#allocation2 + $0xf8] sm:$0xff] %vm1446_vm4, %v26006_v21  ;;  %v26451_v56 = vld [vmem:[#allocation131_spill] sm:$0xff] }
 0x25c   : > { %15987 = vmatmul.mubr.msk.f32.gmra.mrb[140].mxu0 %vm1446_vm4, %v26438_v31  ;;  %15834 = vmatmul.mubr.msk.f32.gmra.mrb[10].mxu1 %vm1446_vm4, %v26441_v1  ;;  %v26448_v1 = vld [vmem:[#allocation129_spill] sm:$0xff] }
 0x25d   : > { %15989 = vmatprep.mubr.msk.f32.mxu0 %vm1446_vm4, %v26440_v51  ;;  %15836 = vmatprep.mubr.msk.f32.mxu1 %vm1446_vm4, %v26442_v19  ;;  %v20867_v19 = vld [vmem:[#allocation2 + $0x118] sm:$0xff] }
 0x25e   : > { %26449 = vst [vmem:[#allocation114_spill] sm:$0xff] %v20867_v19  ;;  %10069 = vst.msk [vmem:[#allocation2 + $0x118] sm:$0xff] %vm1446_vm4, %v26006_v21  ;;  %v26456_v19 = vld [vmem:[#allocation136_spill] sm:$0xff] }
 0x260   : > { %15990 = vmatmul.mubr.msk.f32.gmra.mrb[142].mxu0 %vm1446_vm4, %v26443_v29  ;;  %15837 = vmatmul.mubr.msk.f32.gmra.mrb[12].mxu1 %vm1446_vm4, %v26446_v60  ;;  %v26453_v60 = vld [vmem:[#allocation133_spill] sm:$0xff] }
 0x261   : > { %15992 = vmatprep.mubr.msk.f32.mxu0 %vm1446_vm4, %v26445_v39  ;;  %15839 = vmatprep.mubr.msk.f32.mxu1 %vm1446_vm4, %v26447_v11  ;;  %v20879_v11 = vld [vmem:[#allocation2 + $0x138] sm:$0xff] }
 0x262   : > { %26454 = vst [vmem:[#allocation117_spill] sm:$0xff] %v20879_v11  ;;  %10073 = vst.msk [vmem:[#allocation2 + $0x138] sm:$0xff] %vm1446_vm4, %v26006_v21  ;;  %v26461_v11 = vld [vmem:[#allocation140_spill] sm:$0xff] }
 0x264   : > { %15993 = vmatmul.mubr.msk.f32.gmra.mrb[144].mxu0 %vm1446_vm4, %v26448_v1  ;;  %15840 = vmatmul.mubr.msk.f32.gmra.mrb[14].mxu1 %vm1446_vm4, %v26451_v56  ;;  %v26458_v56 = vld [vmem:[#allocation232_spill] sm:$0xff] }
 0x265   : > { %15995 = vmatprep.mubr.msk.f32.mxu0 %vm1446_vm4, %v26450_v28  ;;  %15842 = vmatprep.mubr.msk.f32.mxu1 %vm1446_vm4, %v26452_v62  ;;  %v20891_v62 = vld [vmem:[#allocation2 + $0x158] sm:$0xff] }
 0x266   : > { %26459 = vst [vmem:[#allocation118_spill] sm:$0xff] %v20891_v62  ;;  %10077 = vst.msk [vmem:[#allocation2 + $0x158] sm:$0xff] %vm1446_vm4, %v26006_v21  ;;  %v26465_v62 = vld [vmem:[#allocation144_spill] sm:$0xff] }
 0x268   : > { %15996 = vmatmul.mubr.msk.f32.gmra.mrb[146].mxu0 %vm1446_vm4, %v26453_v60  ;;  %15843 = vmatmul.mubr.msk.f32.gmra.mrb[16].mxu1 %vm1446_vm4, %v26456_v19  ;;  %v26463_v19 = vld [vmem:[#allocation142_spill] sm:$0xff] }
 0x269   : > { %15998 = vmatprep.mubr.msk.f32.mxu0 %vm1446_vm4, %v26455_v30  ;;  %15845 = vmatprep.mubr.msk.f32.mxu1 %vm1446_vm4, %v26457_v16  ;;  %v20903_v16 = vld [vmem:[#allocation2 + $0x178] sm:$0xff] }
 0x26a   : > { %26464 = vst [vmem:[#allocation121_spill] sm:$0xff] %v20903_v16  ;;  %10081 = vst.msk [vmem:[#allocation2 + $0x178] sm:$0xff] %vm1446_vm4, %v26006_v21  ;;  %v26469_v16 = vld [vmem:[#allocation156_spill] sm:$0xff] }
 0x26c   : > { %15999 = vmatmul.mubr.msk.f32.gmra.mrb[148].mxu0 %vm1446_vm4, %v26458_v56  ;;  %15846 = vmatmul.mubr.msk.f32.gmra.mrb[18].mxu1 %vm1446_vm4, %v26461_v11  ;;  %v26468_v11 = vld [vmem:[#allocation149_spill] sm:$0xff] }
 0x26d   : > { %16001 = vmatprep.mubr.msk.f32.mxu0 %vm1446_vm4, %v26460_v24  ;;  %15848 = vmatprep.mubr.msk.f32.mxu1 %vm1446_vm4, %v26462_v41  ;;  %v20915_v41 = vld [vmem:[#allocation2 + $0x198] sm:$0xff] }
 0x26e   : > { %26467 = vst [vmem:[#allocation122_spill] sm:$0xff] %v20915_v41  ;;  %10085 = vst.msk [vmem:[#allocation2 + $0x198] sm:$0xff] %vm1446_vm4, %v26006_v21  ;;  %v6221_v41 = vrot.slane %v26404_v32, 7 }
 0x270   : > { %16002 = vmatmul.mubr.msk.f32.gmra.mrb[150].mxu0 %vm1446_vm4, %v26463_v19  ;;  %15849 = vmatmul.mubr.msk.f32.gmra.mrb[20].mxu1 %vm1446_vm4, %v26465_v62  ;;  %v26470_v62 = vld [vmem:[#allocation153_spill] sm:$0xff] }
 0x271   : > { %16004 = vmatprep.mubr.msk.f32.mxu0 %vm1446_vm4, %v20128_v27  ;;  %15851 = vmatprep.mubr.msk.f32.mxu1 %vm1446_vm4, %v26466_v54  ;;  %v20927_v54 = vld [vmem:[#allocation2 + $0x1b8] sm:$0xff] }
 0x272   : > { %26471 = vst [vmem:[#allocation126_spill] sm:$0xff] %v20927_v54  ;;  %10089 = vst.msk [vmem:[#allocation2 + $0x1b8] sm:$0xff] %vm1446_vm4, %v26006_v21  ;;  %v20941_v54 = vld [vmem:[#allocation2 + $0x1d8] sm:$0xff] }
 0x273   : > { %26477 = vst [vmem:[#allocation127_spill] sm:$0xff] %v20941_v54  ;;  %10093 = vst.msk [vmem:[#allocation2 + $0x1d8] sm:$0xff] %vm1446_vm4, %v26006_v21  ;;  %v26483_v54 = vld [vmem:[#allocation245_spill] sm:$0xff] }
 0x274   : > { %16005 = vmatmul.mubr.msk.f32.gmra.mrb[152].mxu0 %vm1446_vm4, %v20112_v33  ;;  %15852 = vmatmul.mubr.msk.f32.gmra.mrb[22].mxu1 %vm1446_vm4, %v26468_v11  ;;  %v26475_v11 = vld [vmem:[#allocation164_spill] sm:$0xff] }
 0x275   : > { %16007 = vmatprep.mubr.msk.f32.mxu0 %vm1446_vm4, %v20182_v59  ;;  %15854 = vmatprep.mubr.msk.f32.mxu1 %vm1446_vm4, %v26469_v16  ;;  %v26476_v16 = vld [vmem:[#allocation242_spill] sm:$0xff] }
 0x278   : > { %16008 = vmatmul.mubr.msk.f32.gmra.mrb[154].mxu0 %vm1446_vm4, %v26470_v62  ;;  %15855 = vmatmul.mubr.msk.f32.gmra.mrb[24].mxu1 %vm1446_vm4, %v26474_v38  ;;  %v6222_v38 = vsel %vm2381_vm5, %v6220_v34, %v6221_v41  ;;  %v6224_v34 = vsel %vm2381_vm5, %v6221_v41, %v6223_v37  ;;  %v3983_v37 = vsel %vm2381_vm5, %v3980_v35, %v3982_v15 }
 0x279   : > { %16010 = vmatprep.mubr.msk.f32.mxu0 %vm1446_vm4, %v26472_v7  ;;  %15857 = vmatprep.mubr.msk.f32.mxu1 %vm1446_vm4, %v26475_v11  ;;  %v26481_v11 = vld [vmem:[#allocation165_spill] sm:$0xff] }
 0x27c   : > { %16011 = vmatmul.mubr.msk.f32.gmra.mrb[156].mxu0 %vm1446_vm4, %v26476_v16  ;;  %15858 = vmatmul.mubr.msk.f32.gmra.mrb[26].mxu1 %vm1446_vm4, %v26481_v11  ;;  %v3981_v11 = vsel %vm2381_vm5, %v3979_v14, %v3980_v35  ;;  %v26488_v14 = vld [vmem:[#allocation25_spill] sm:$0xff] }
 0x27d   : > { %16013 = vmatprep.mubr.msk.f32.mxu0 %vm1446_vm4, %v26478_v50  ;;  %15860 = vmatprep.mubr.msk.f32.mxu1 %vm1446_vm4, %v26482_v55  ;;  %v26487_v55 = vld [vmem:[#allocation175_spill] sm:$0xff]  ;;  %v6230_v41 = vrot.slane %v26488_v14, 7  ;;  %v6236_v14 = vrot.slane %v26420_v3, 7 }
 0x280   : > { %16014 = vmatmul.mubr.msk.f32.gmra.mrb[158].mxu0 %vm1446_vm4, %v26483_v54  ;;  %15861 = vmatmul.mubr.msk.f32.gmra.mrb[28].mxu1 %vm1446_vm4, %v26487_v55  ;;  %v6231_v55 = vrot.slane %v26414_v17, 7 }
 0x281   : > { %16018 = vmatprep.mubr.msk.f32.mxu0 %vm1446_vm4, %v6222_v38  ;;  %v20977_v38 = vsel %vm2381_vm5, %v6225_v10, %v6226_v23  ;;  %15863 = vmatprep.mubr.msk.f32.mxu1 %vm1446_vm4, %v3981_v11  ;;  %v20989_v10 = vsel %vm2381_vm5, %v6226_v23, %v6228_v2  ;;  %v26489_v11 = vld [vmem:[#allocation99_spill] sm:$0xff]  ;;  %v26492_v23 = vld [vmem:[#allocation98_spill] sm:$0xff] }
 0x282   : > { %v20997_v15 = vsel %vm2381_vm5, %v6230_v41, %v6231_v55 }
 0x283   : > { %26490 = vst [vmem:[#allocation131_spill] sm:$0xff] %v20997_v15 }
 0x284   : > { %16019 = vmatmul.mubr.msk.f32.vlgmr.msra.gmra.mrb[128].mxu0 %vm1446_vm4, %v6224_v34  ;;  %15864 = vmatmul.mubr.msk.f32.gmra.mrb[30].mxu1 %vm1446_vm4, %v3983_v37  ;;  %v6233_v34 = vrot.slane %v26418_v52, 7  ;;  %v6238_v37 = vrot.slane %v26423_v8, 7 }
 0x285   : > { %16067 = vmatpush3.msra.mxu0 %v20753_v48  ;;  %16021 = vmatprep.mubr.msk.f32.mxu0 %vm1446_vm4, %v20977_v38  ;;  %v26491_v48 = vld [vmem:[#allocation31_spill] sm:$0xff] }
 0x286   : > { %16116 = vmatprep.subr.mxu0 %v20973_v58  ;;  %15868 = vmatprep.mubr.msk.f32.mxu1 %vm1446_vm4, %v26489_v11  ;;  %v6235_v35 = vrot.slane %v26491_v48, 7  ;;  %v21006_v2 = vsel %vm2381_vm5, %v6231_v55, %v6233_v34  ;;  %v26494_v11 = vld [vmem:[#allocation104_spill] sm:$0xff]  ;;  %v26496_v48 = vld [vmem:[#allocation37_spill] sm:$0xff]  ;;  %v26497_v55 = vld [vmem:[#allocation103_spill] sm:$0xff]  ;;  %v21024_v34 = vsel %vm2381_vm5, %v6236_v14, %v6238_v37 }
 0x287   : > { %26493 = vst [vmem:[#allocation135_spill] sm:$0xff] %v21006_v2  ;;  %v6240_v9 = vrot.slane %v26496_v48, 7  ;;  %26498 = vst [vmem:[#allocation139_spill] sm:$0xff] %v21024_v34  ;;  %v26501_v48 = vld [vmem:[#allocation43_spill] sm:$0xff] }
 0x288   : > { %16022 = vmatmul.mubr.msk.f32.gmra.mrb[130].mxu0 %vm1446_vm4, %v20989_v10  ;;  %15869 = vmatmul.mubr.msk.f32.vlgmr.msra.gmra.mrb[0].mxu1 %vm1446_vm4, %v26492_v23  ;;  %v21014_v41 = vsel %vm2381_vm5, %v6235_v35, %v6236_v14  ;;  %v6243_v23 = vrot.slane %v26428_v43, 7  ;;  %v26502_v14 = vld [vmem:[#allocation107_spill] sm:$0xff] }
 0x289   : > { %16024 = vmatprep.mubr.msk.f32.mxu0 %vm1446_vm4, %v20997_v15  ;;  %15871 = vmatprep.mubr.msk.f32.mxu1 %vm1446_vm4, %v26494_v11  ;;  %26495 = vst [vmem:[#allocation136_spill] sm:$0xff] %v21014_v41  ;;  %v6241_v15 = vrot.slane %v26425_v36, 7  ;;  %v26499_v11 = vld [vmem:[#allocation108_spill] sm:$0xff] }
 0x28a   : > { %15917 = vmatpush3.msra.mxu1 %v20787_v22  ;;  %v6246_v22 = vrot.slane %v26430_v20, 7 }
 0x28b   : > { %v21032_v35 = vsel %vm2381_vm5, %v6240_v9, %v6241_v15  ;;  %v21041_v37 = vsel %vm2381_vm5, %v6241_v15, %v6243_v23  ;;  %v26507_v15 = vld [vmem:[#allocation111_spill] sm:$0xff] }
 0x28c   : > { %16025 = vmatmul.mubr.msk.f32.gmra.mrb[132].mxu0 %vm1446_vm4, %v21006_v2  ;;  %15872 = vmatmul.mubr.msk.f32.gmra.mrb[2].mxu1 %vm1446_vm4, %v26497_v55  ;;  %26500 = vst [vmem:[#allocation140_spill] sm:$0xff] %v21032_v35  ;;  %26503 = vst [vmem:[#allocation143_spill] sm:$0xff] %v21041_v37  ;;  %v6248_v55 = vrot.slane %v26433_v53, 7 }
 0x28d   : > { %16027 = vmatprep.mubr.msk.f32.mxu0 %vm1446_vm4, %v21014_v41  ;;  %15874 = vmatprep.mubr.msk.f32.mxu1 %vm1446_vm4, %v26499_v11  ;;  %v6245_v41 = vrot.slane %v26501_v48, 7  ;;  %v26504_v11 = vld [vmem:[#allocation112_spill] sm:$0xff]  ;;  %v26506_v48 = vld [vmem:[#allocation49_spill] sm:$0xff] }
 0x28e   : > { %v21058_v23 = vsel %vm2381_vm5, %v6246_v22, %v6248_v55  ;;  %v6258_v55 = vrot.slane %v26443_v29, 7 }
 0x28f   : > { %v21049_v9 = vsel %vm2381_vm5, %v6245_v41, %v6246_v22  ;;  %26508 = vst [vmem:[#allocation148_spill] sm:$0xff] %v21058_v23 }
 0x290   : > { %16028 = vmatmul.mubr.msk.f32.gmra.mrb[134].mxu0 %vm1446_vm4, %v21024_v34  ;;  %15875 = vmatmul.mubr.msk.f32.gmra.mrb[4].mxu1 %vm1446_vm4, %v26502_v14  ;;  %26505 = vst [vmem:[#allocation144_spill] sm:$0xff] %v21049_v9  ;;  %v6250_v34 = vrot.slane %v26506_v48, 7  ;;  %v6253_v14 = vrot.slane %v26438_v31, 7  ;;  %v26511_v48 = vld [vmem:[#allocation55_spill] sm:$0xff] }
 0x291   : > { %16030 = vmatprep.mubr.msk.f32.mxu0 %vm1446_vm4, %v21032_v35  ;;  %15877 = vmatprep.mubr.msk.f32.mxu1 %vm1446_vm4, %v26504_v11  ;;  %v6251_v35 = vrot.slane %v26435_v6, 7  ;;  %v26509_v11 = vld [vmem:[#allocation116_spill] sm:$0xff] }
 0x293   : > { %v21066_v41 = vsel %vm2381_vm5, %v6250_v34, %v6251_v35  ;;  %v21075_v22 = vsel %vm2381_vm5, %v6251_v35, %v6253_v14 }
 0x294   : > { %16031 = vmatmul.mubr.msk.f32.gmra.mrb[136].mxu0 %vm1446_vm4, %v21041_v37  ;;  %15878 = vmatmul.mubr.msk.f32.gmra.mrb[6].mxu1 %vm1446_vm4, %v26507_v15  ;;  %26510 = vst [vmem:[#allocation149_spill] sm:$0xff] %v21066_v41  ;;  %v6255_v37 = vrot.slane %v26511_v48, 7  ;;  %26512 = vst [vmem:[#allocation156_spill] sm:$0xff] %v21075_v22  ;;  %v26514_v15 = vld [vmem:[#allocation61_spill] sm:$0xff]  ;;  %v6261_v48 = vrot.slane %v26445_v39, 7 }
 0x295   : > { %16033 = vmatprep.mubr.msk.f32.mxu0 %vm1446_vm4, %v21049_v9  ;;  %15880 = vmatprep.mubr.msk.f32.mxu1 %vm1446_vm4, %v26509_v11  ;;  %v6256_v9 = vrot.slane %v26440_v51, 7  ;;  %v6260_v11 = vrot.slane %v26514_v15, 7  ;;  %v6266_v15 = vrot.slane %v26450_v28, 7 }
 0x297   : > { %v21083_v34 = vsel %vm2381_vm5, %v6255_v37, %v6256_v9  ;;  %v21100_v35 = vsel %vm2381_vm5, %v6260_v11, %v6261_v48  ;;  %v26517_v37 = vld [vmem:[#allocation67_spill] sm:$0xff] }
 0x298   : > { %16034 = vmatmul.mubr.msk.f32.gmra.mrb[138].mxu0 %vm1446_vm4, %v21058_v23  ;;  %15881 = vmatmul.mubr.msk.f32.gmra.mrb[8].mxu1 %vm1446_vm4, %v26174_v12  ;;  %26513 = vst [vmem:[#allocation243_spill] sm:$0xff] %v21083_v34  ;;  %v21092_v12 = vsel %vm2381_vm5, %v6256_v9, %v6258_v55  ;;  %26516 = vst [vmem:[#allocation164_spill] sm:$0xff] %v21100_v35  ;;  %v6265_v14 = vrot.slane %v26517_v37, 7  ;;  %v26520_v55 = vld [vmem:[#allocation73_spill] sm:$0xff]  ;;  %v6271_v37 = vrot.slane %v26455_v30, 7 }
 0x299   : > { %16036 = vmatprep.mubr.msk.f32.mxu0 %vm1446_vm4, %v21066_v41  ;;  %15883 = vmatprep.mubr.msk.f32.mxu1 %vm1446_vm4, %v26357_v18  ;;  %26515 = vst [vmem:[#allocation157_spill] sm:$0xff] %v21092_v12  ;;  %v6263_v18 = vrot.slane %v26448_v1, 7  ;;  %v6270_v11 = vrot.slane %v26520_v55, 7  ;;  %v6276_v55 = vrot.slane %v26460_v24, 7 }
 0x29a   : > { %v21117_v9 = vsel %vm2381_vm5, %v6265_v14, %v6266_v15 }
 0x29b   : > { %26519 = vst [vmem:[#allocation165_spill] sm:$0xff] %v21117_v9 }
 0x29c   : > { %16037 = vmatmul.mubr.msk.f32.gmra.mrb[140].mxu0 %vm1446_vm4, %v21075_v22  ;;  %15884 = vmatmul.mubr.msk.f32.gmra.mrb[10].mxu1 %vm1446_vm4, %v26188_v25  ;;  %v21109_v25 = vsel %vm2381_vm5, %v6261_v48, %v6263_v18  ;;  %v21134_v48 = vsel %vm2381_vm5, %v6270_v11, %v6271_v37  ;;  %v26523_v18 = vld [vmem:[#allocation79_spill] sm:$0xff] }
 0x29d   : > { %16039 = vmatprep.mubr.msk.f32.mxu0 %vm1446_vm4, %v21083_v34  ;;  %15886 = vmatprep.mubr.msk.f32.mxu1 %vm1446_vm4, %v26195_v0  ;;  %26518 = vst [vmem:[#allocation200_spill] sm:$0xff] %v21109_v25  ;;  %v6268_v0 = vrot.slane %v26453_v60, 7  ;;  %26522 = vst [vmem:[#allocation20_spill] sm:$0xff] %v21134_v48  ;;  %v6275_v14 = vrot.slane %v26523_v18, 7  ;;  %v6281_v18 = vrot.slane %v20128_v27, 7 }
 0x2a0   : > { %16040 = vmatmul.mubr.msk.f32.gmra.mrb[142].mxu0 %vm1446_vm4, %v21092_v12  ;;  %15887 = vmatmul.mubr.msk.f32.gmra.mrb[12].mxu1 %vm1446_vm4, %v26203_v46  ;;  %v21126_v46 = vsel %vm2381_vm5, %v6266_v15, %v6268_v0  ;;  %v21151_v15 = vsel %vm2381_vm5, %v6275_v14, %v6276_v55  ;;  %v26526_v0 = vld [vmem:[#allocation84_spill] sm:$0xff] }
 0x2a1   : > { %16042 = vmatprep.mubr.msk.f32.mxu0 %vm1446_vm4, %v21100_v35  ;;  %15889 = vmatprep.mubr.msk.f32.mxu1 %vm1446_vm4, %v26209_v61  ;;  %26521 = vst [vmem:[#allocation174_spill] sm:$0xff] %v21126_v46  ;;  %v6273_v61 = vrot.slane %v26458_v56, 7  ;;  %26525 = vst [vmem:[#allocation25_spill] sm:$0xff] %v21151_v15  ;;  %v6280_v11 = vrot.slane %v26526_v0, 7  ;;  %v6286_v0 = vrot.slane %v20182_v59, 7 }
 0x2a4   : > { %16043 = vmatmul.mubr.msk.f32.gmra.mrb[144].mxu0 %vm1446_vm4, %v21109_v25  ;;  %15890 = vmatmul.mubr.msk.f32.gmra.mrb[14].mxu1 %vm1446_vm4, %v26371_v4  ;;  %v21143_v4 = vsel %vm2381_vm5, %v6271_v37, %v6273_v61  ;;  %v21168_v37 = vsel %vm2381_vm5, %v6280_v11, %v6281_v18  ;;  %v26529_v61 = vld [vmem:[#allocation88_spill] sm:$0xff] }
 0x2a5   : > { %16045 = vmatprep.mubr.msk.f32.mxu0 %vm1446_vm4, %v21117_v9  ;;  %15892 = vmatprep.mubr.msk.f32.mxu1 %vm1446_vm4, %v26224_v49  ;;  %26524 = vst [vmem:[#allocation175_spill] sm:$0xff] %v21143_v4  ;;  %v6278_v49 = vrot.slane %v26463_v19, 7  ;;  %26528 = vst [vmem:[#allocation31_spill] sm:$0xff] %v21168_v37  ;;  %v6285_v14 = vrot.slane %v26529_v61, 7  ;;  %v6291_v61 = vrot.slane %v26472_v7, 7 }
 0x2a8   : > { %16046 = vmatmul.mubr.msk.f32.gmra.mrb[146].mxu0 %vm1446_vm4, %v21126_v46  ;;  %15893 = vmatmul.mubr.msk.f32.gmra.mrb[16].mxu1 %vm1446_vm4, %v26232_v26  ;;  %v21160_v26 = vsel %vm2381_vm5, %v6276_v55, %v6278_v49  ;;  %v21185_v55 = vsel %vm2381_vm5, %v6285_v14, %v6286_v0  ;;  %v26532_v49 = vld [vmem:[#allocation93_spill] sm:$0xff] }
 0x2a9   : > { %16048 = vmatprep.mubr.msk.f32.mxu0 %vm1446_vm4, %v21134_v48  ;;  %15895 = vmatprep.mubr.msk.f32.mxu1 %vm1446_vm4, %v26380_v44  ;;  %26527 = vst [vmem:[#allocation99_spill] sm:$0xff] %v21160_v26  ;;  %v6283_v44 = vrot.slane %v20112_v33, 7  ;;  %26531 = vst [vmem:[#allocation104_spill] sm:$0xff] %v21185_v55  ;;  %v6290_v11 = vrot.slane %v26532_v49, 7  ;;  %v6296_v49 = vrot.slane %v26478_v50, 7 }
 0x2ac   : > { %16049 = vmatmul.mubr.msk.f32.gmra.mrb[148].mxu0 %vm1446_vm4, %v21143_v4  ;;  %15896 = vmatmul.mubr.msk.f32.gmra.mrb[18].mxu1 %vm1446_vm4, %v26381_v47  ;;  %v21177_v47 = vsel %vm2381_vm5, %v6281_v18, %v6283_v44  ;;  %v21202_v18 = vsel %vm2381_vm5, %v6290_v11, %v6291_v61  ;;  %v26535_v44 = vld [vmem:[#allocation96_spill] sm:$0xff]  ;;  %v6298_v11 = vrot.slane %v26483_v54, 7 }
 0x2ad   : > { %16051 = vmatprep.mubr.msk.f32.mxu0 %vm1446_vm4, %v21151_v15  ;;  %15898 = vmatprep.mubr.msk.f32.mxu1 %vm1446_vm4, %v26251_v40  ;;  %26530 = vst [vmem:[#allocation98_spill] sm:$0xff] %v21177_v47  ;;  %v6288_v40 = vrot.slane %v26470_v62, 7  ;;  %26534 = vst [vmem:[#allocation103_spill] sm:$0xff] %v21202_v18  ;;  %v6295_v14 = vrot.slane %v26535_v44, 7 }
 0x2af   : > { %v21221_v44 = vsel %vm2381_vm5, %v6295_v14, %v6296_v49  ;;  %v26545_v14 = vld [vmem:[#allocation169_spill] sm:$0xff] }
 0x2b0   : > { %16052 = vmatmul.mubr.msk.f32.gmra.mrb[150].mxu0 %vm1446_vm4, %v21160_v26  ;;  %15899 = vmatmul.mubr.msk.f32.gmra.mrb[20].mxu1 %vm1446_vm4, %v26262_v57  ;;  %v21194_v57 = vsel %vm2381_vm5, %v6286_v0, %v6288_v40  ;;  %v26536_v0 = vld [vmem:[#allocation173_spill] sm:$0xff]  ;;  %26540 = vst [vmem:[#allocation43_spill] sm:$0xff] %v21221_v44 }
 0x2b1   : > { %16054 = vmatprep.mubr.msk.f32.mxu0 %vm1446_vm4, %v21168_v37  ;;  %15901 = vmatprep.mubr.msk.f32.mxu1 %vm1446_vm4, %v26266_v63  ;;  %26533 = vst [vmem:[#allocation37_spill] sm:$0xff] %v21194_v57  ;;  %v6293_v63 = vrot.slane %v26476_v16, 7  ;;  %v6608_v40 = vrot.slane %v26536_v0, 1 }
 0x2b4   : > { %16055 = vmatmul.mubr.msk.f32.gmra.mrb[152].mxu0 %vm1446_vm4, %v21177_v47  ;;  %15902 = vmatmul.mubr.msk.f32.gmra.mrb[22].mxu1 %vm1446_vm4, %v26275_v5  ;;  %v6607_v5 = vrot.slane %v26404_v32, 1  ;;  %v26541_v32 = vld [vmem:[#allocation171_spill] sm:$0xff] }
 0x2b5   : > { %16057 = vmatprep.mubr.msk.f32.mxu0 %vm1446_vm4, %v21185_v55  ;;  %15904 = vmatprep.mubr.msk.f32.mxu1 %vm1446_vm4, %v26281_v13  ;;  %v26537_v55 = vld [vmem:[#allocation150_spill] sm:$0xff]  ;;  %v21213_v13 = vsel %vm2381_vm5, %v6291_v61, %v6293_v63  ;;  %v6610_v0 = vrot.slane %v26541_v32, 1  ;;  %v6612_v32 = vrot.slane %v26409_v42, 1 }
 0x2b6   : > { %26538 = vst [vmem:[#allocation108_spill] sm:$0xff] %v21213_v13  ;;  %v6609_v61 = vsel %vm2769_vm6, %v6607_v5, %v6608_v40  ;;  %v26543_v63 = vld [vmem:[#allocation158_spill] sm:$0xff] }
 0x2b7   : > { %v6611_v5 = vsel %vm2769_vm6, %v6608_v40, %v6610_v0  ;;  %v6617_v40 = vrot.slane %v26414_v17, 1  ;;  %v6618_v0 = vrot.slane %v26418_v52, 1  ;;  %v6623_v52 = vrot.slane %v26423_v8, 1  ;;  %v26558_v17 = vld [vmem:[#allocation247_spill] sm:$0xff] }
 0x2b8   : > { %16058 = vmatmul.mubr.msk.f32.gmra.mrb[154].mxu0 %vm1446_vm4, %v21194_v57  ;;  %15905 = vmatmul.mubr.msk.f32.gmra.mrb[24].mxu1 %vm1446_vm4, %v26537_v55  ;;  %v26539_v57 = vld [vmem:[#allocation160_spill] sm:$0xff]  ;;  %v21226_v55 = vld [vmem:[#allocation2 + $0x200] sm:$0xff] }
 0x2b9   : > { %16060 = vmatprep.mubr.msk.f32.mxu0 %vm1446_vm4, %v21202_v18  ;;  %15907 = vmatprep.mubr.msk.f32.mxu1 %vm1446_vm4, %v26539_v57  ;;  %26542 = vst [vmem:[#allocation107_spill] sm:$0xff] %v21226_v55  ;;  %10098 = vst.msk [vmem:[#allocation2 + $0x200] sm:$0xff] %vm1446_vm4, %v26006_v21  ;;  %v21234_v57 = vsel %vm2381_vm5, %v6296_v49, %v6298_v11  ;;  %v6613_v55 = vrot.slane %v26412_v45, 1  ;;  %v26546_v21 = vld [vmem:[#allocation166_spill] sm:$0xff]  ;;  %v21250_v11 = vld [vmem:[%s25395_s8 + $0x68] sm:$0xff] }
 0x2ba   : > { %26544 = vst [vmem:[#allocation112_spill] sm:$0xff] %v21234_v57  ;;  %v26549_v45 = vld [vmem:[#allocation201_spill] sm:$0xff] }
 0x2bc   : > { %16061 = vmatmul.mubr.msk.f32.gmra.mrb[156].mxu0 %vm1446_vm4, %v21213_v13  ;;  %15908 = vmatmul.mubr.msk.f32.gmra.mrb[26].mxu1 %vm1446_vm4, %v26543_v63  ;;  %v26547_v63 = vld [vmem:[#allocation19_spill] sm:$0xff] }
 0x2bd   : > { %16063 = vmatprep.mubr.msk.f32.mxu0 %vm1446_vm4, %v21221_v44  ;;  %15910 = vmatprep.mubr.msk.f32.mxu1 %vm1446_vm4, %v26545_v14  ;;  %v6615_v49 = vrot.slane %v26547_v63, 1  ;;  %v21254_v14 = vsel %vm2769_vm6, %v6612_v32, %v6613_v55  ;;  %v26552_v32 = vld [vmem:[#allocation27_spill] sm:$0xff]  ;;  %v26553_v63 = vld [vmem:[#allocation246_spill] sm:$0xff] }
 0x2be   : > { %26548 = vst [vmem:[#allocation49_spill] sm:$0xff] %v21254_v14 }
 0x2c0   : > { %16064 = vmatmul.mubr.msk.f32.gmra.mrb[158].mxu0 %vm1446_vm4, %v21234_v57  ;;  %15911 = vmatmul.mubr.msk.f32.gmra.mrb[28].mxu1 %vm1446_vm4, %v26546_v21  ;;  %v26550_v21 = vld [vmem:[#allocation203_spill] sm:$0xff] }
 0x2c1   : > { %16068 = vmatprep.mubr.msk.f32.mxu0 %vm1446_vm4, %v6609_v61  ;;  %15913 = vmatprep.mubr.msk.f32.mxu1 %vm1446_vm4, %v26549_v45  ;;  %v21267_v61 = vsel %vm2769_vm6, %v6613_v55, %v6615_v49  ;;  %v26555_v55 = vld [vmem:[#allocation29_spill] sm:$0xff] }
 0x2c2   : > { %26551 = vst [vmem:[#allocation111_spill] sm:$0xff] %v21267_v61 }
 0x2c4   : > { %16069 = vmatmul.mubr.msk.f32.vlgmr.msra.gmra.mrb[128].mxu0 %vm1446_vm4, %v6611_v5  ;;  %15914 = vmatmul.mubr.msk.f32.gmra.mrb[30].mxu1 %vm1446_vm4, %v26550_v21  ;;  %v6620_v5 = vrot.slane %v26552_v32, 1  ;;  %v26557_v32 = vld [vmem:[#allocation33_spill] sm:$0xff] }
 0x2c5   : > { %16117 = vmatpush3.msra.mxu0 %v20973_v58  ;;  %16071 = vmatprep.mubr.msk.f32.mxu0 %vm1446_vm4, %v21254_v14  ;;  %v21275_v58 = vsel %vm2769_vm6, %v6617_v40, %v6618_v0  ;;  %v6622_v14 = vrot.slane %v26420_v3, 1 }
 0x2c6   : > { %16166 = vmatprep.subr.mxu0 %v21250_v11  ;;  %15918 = vmatprep.mubr.msk.f32.mxu1 %vm1446_vm4, %v26553_v63  ;;  %26554 = vst [vmem:[#allocation116_spill] sm:$0xff] %v21275_v58  ;;  %v21284_v49 = vsel %vm2769_vm6, %v6618_v0, %v6620_v5  ;;  %v6625_v63 = vrot.slane %v26557_v32, 1  ;;  %v26560_v0 = vld [vmem:[#allocation248_spill] sm:$0xff]  ;;  %v26563_v32 = vld [vmem:[#allocation26_spill] sm:$0xff] }
 0x2c7   : > { %26556 = vst [vmem:[#allocation55_spill] sm:$0xff] %v21284_v49  ;;  %v21292_v40 = vsel %vm2769_vm6, %v6622_v14, %v6623_v52 }
 0x2c8   : > { %16072 = vmatmul.mubr.msk.f32.gmra.mrb[130].mxu0 %vm1446_vm4, %v21267_v61  ;;  %15919 = vmatmul.mubr.msk.f32.vlgmr.msra.gmra.mrb[0].mxu1 %vm1446_vm4, %v26555_v55  ;;  %26559 = vst [vmem:[#allocation61_spill] sm:$0xff] %v21292_v40  ;;  %v6627_v61 = vrot.slane %v26425_v36, 1  ;;  %v21301_v5 = vsel %vm2769_vm6, %v6623_v52, %v6625_v63  ;;  %v26565_v52 = vld [vmem:[#allocation250_spill] sm:$0xff] }
 0x2c9   : > { %16074 = vmatprep.mubr.msk.f32.mxu0 %vm1446_vm4, %v21275_v58  ;;  %15921 = vmatprep.mubr.msk.f32.mxu1 %vm1446_vm4, %v26558_v17  ;;  %v6628_v58 = vrot.slane %v26428_v43, 1  ;;  %26561 = vst [vmem:[#allocation67_spill] sm:$0xff] %v21301_v5  ;;  %v26562_v17 = vld [vmem:[#allocation41_spill] sm:$0xff] }
 0x2ca   : > { %v6630_v55 = vrot.slane %v26562_v17, 1 }
 0x2cb   : > { %v21309_v14 = vsel %vm2769_vm6, %v6627_v61, %v6628_v58 }
 0x2cc   : > { %16075 = vmatmul.mubr.msk.f32.gmra.mrb[132].mxu0 %vm1446_vm4, %v21284_v49  ;;  %15922 = vmatmul.mubr.msk.f32.gmra.mrb[2].mxu1 %vm1446_vm4, %v26560_v0  ;;  %26564 = vst [vmem:[#allocation73_spill] sm:$0xff] %v21309_v14  ;;  %v6632_v49 = vrot.slane %v26430_v20, 1  ;;  %v21318_v63 = vsel %vm2769_vm6, %v6628_v58, %v6630_v55  ;;  %v26567_v0 = vld [vmem:[#allocation47_spill] sm:$0xff]  ;;  %v21332_v58 = vpop.f32.mrb[96].mxu0  ;;  %v26571_v55 = vld [vmem:[#allocation252_spill] sm:$0xff] }
 0x2cd   : > { %16077 = vmatprep.mubr.msk.f32.mxu0 %vm1446_vm4, %v21292_v40  ;;  %15924 = vmatprep.mubr.msk.f32.mxu1 %vm1446_vm4, %v26563_v32  ;;  %v6633_v40 = vrot.slane %v26433_v53, 1  ;;  %26566 = vst [vmem:[#allocation79_spill] sm:$0xff] %v21318_v63  ;;  %v6635_v17 = vrot.slane %v26567_v0, 1  ;;  %v26568_v32 = vld [vmem:[#allocation256_spill] sm:$0xff]  ;;  %26570 = vst [vmem:[#allocation88_spill] sm:$0xff] %v21332_v58  ;;  %v26573_v0 = vld [vmem:[#allocation51_spill] sm:$0xff] }
 0x2ce   : > { %v6642_v58 = vrot.slane %v26440_v51, 1 }
 0x2cf   : > { %v21326_v61 = vsel %vm2769_vm6, %v6632_v49, %v6633_v40  ;;  %v26575_v49 = vld [vmem:[#allocation257_spill] sm:$0xff] }
 0x2d0   : > { %16078 = vmatmul.mubr.msk.f32.gmra.mrb[134].mxu0 %vm1446_vm4, %v21301_v5  ;;  %15925 = vmatmul.mubr.msk.f32.gmra.mrb[4].mxu1 %vm1446_vm4, %v26565_v52  ;;  %26569 = vst [vmem:[#allocation84_spill] sm:$0xff] %v21326_v61  ;;  %v6637_v5 = vrot.slane %v26435_v6, 1  ;;  %v21337_v52 = vsel %vm2769_vm6, %v6633_v40, %v6635_v17  ;;  %v26578_v17 = vld [vmem:[#allocation272_spill] sm:$0xff] }
 0x2d1   : > { %16080 = vmatprep.mubr.msk.f32.mxu0 %vm1446_vm4, %v21309_v14  ;;  %15927 = vmatprep.mubr.msk.f32.mxu1 %vm1446_vm4, %v26568_v32  ;;  %v6638_v14 = vrot.slane %v26438_v31, 1  ;;  %26572 = vst [vmem:[#allocation93_spill] sm:$0xff] %v21337_v52  ;;  %v6640_v32 = vrot.slane %v26573_v0, 1 }
 0x2d3   : > { %v21358_v0 = vsel %vm2769_vm6, %v6638_v14, %v6640_v32  ;;  %v26585_v32 = vld [vmem:[#allocation275_spill] sm:$0xff] }
 0x2d4   : > { %16081 = vmatmul.mubr.msk.f32.gmra.mrb[136].mxu0 %vm1446_vm4, %v21318_v63  ;;  %15928 = vmatmul.mubr.msk.f32.gmra.mrb[6].mxu1 %vm1446_vm4, %v26571_v55  ;;  %v21340_v63 = vpop.f32.mrb[97].mxu0  ;;  %v6643_v55 = vrot.slane %v26443_v29, 1  ;;  %26579 = vst [vmem:[#allocation160_spill] sm:$0xff] %v21358_v0 }
 0x2d5   : > { %16083 = vmatprep.mubr.msk.f32.mxu0 %vm1446_vm4, %v21326_v61  ;;  %26574 = vst [vmem:[#allocation96_spill] sm:$0xff] %v21340_v63  ;;  %15930 = vmatprep.mubr.msk.f32.mxu1 %vm1446_vm4, %v26575_v49  ;;  %v21347_v61 = vsel %vm2769_vm6, %v6637_v5, %v6638_v14  ;;  %v21353_v40 = vpop.f32.mrb[98].mxu0  ;;  %v26580_v49 = vld [vmem:[#allocation57_spill] sm:$0xff] }
 0x2d6   : > { %26576 = vst [vmem:[#allocation173_spill] sm:$0xff] %v21347_v61  ;;  %26577 = vst [vmem:[#allocation150_spill] sm:$0xff] %v21353_v40  ;;  %v6645_v63 = vrot.slane %v26580_v49, 1  ;;  %v26582_v5 = vld [vmem:[#allocation273_spill] sm:$0xff]  ;;  %v6647_v40 = vrot.slane %v26445_v39, 1 }
 0x2d8   : > { %16084 = vmatmul.mubr.msk.f32.gmra.mrb[138].mxu0 %vm1446_vm4, %v21337_v52  ;;  %15931 = vmatmul.mubr.msk.f32.gmra.mrb[8].mxu1 %vm1446_vm4, %v26578_v17  ;;  %v21361_v52 = vpop.f32.mrb[99].mxu0  ;;  %v6648_v17 = vrot.slane %v26448_v1, 1  ;;  %v21379_v49 = vsel %vm2769_vm6, %v6643_v55, %v6645_v63 }
 0x2d9   : > { %16086 = vmatprep.mubr.msk.f32.mxu0 %vm1446_vm4, %v21347_v61  ;;  %26581 = vst [vmem:[#allocation171_spill] sm:$0xff] %v21361_v52  ;;  %15933 = vmatprep.mubr.msk.f32.mxu1 %vm1446_vm4, %v26582_v5  ;;  %v21368_v61 = vsel %vm2769_vm6, %v6642_v58, %v6643_v55  ;;  %v21374_v14 = vpop.f32.mrb[100].mxu0  ;;  %26586 = vst [vmem:[#allocation166_spill] sm:$0xff] %v21379_v49  ;;  %v26587_v5 = vld [vmem:[#allocation65_spill] sm:$0xff]  ;;  %v26589_v58 = vld [vmem:[#allocation10_spill] sm:$0xff] }
 0x2da   : > { %26583 = vst [vmem:[#allocation158_spill] sm:$0xff] %v21368_v61  ;;  %26584 = vst [vmem:[#allocation169_spill] sm:$0xff] %v21374_v14  ;;  %v6650_v52 = vrot.slane %v26587_v5, 1  ;;  %v6652_v14 = vrot.slane %v26450_v28, 1  ;;  %v26592_v55 = vld [vmem:[#allocation276_spill] sm:$0xff] }
 0x2dc   : > { %16087 = vmatmul.mubr.msk.f32.gmra.mrb[140].mxu0 %vm1446_vm4, %v21358_v0  ;;  %15934 = vmatmul.mubr.msk.f32.gmra.mrb[10].mxu1 %vm1446_vm4, %v26585_v32  ;;  %v21382_v0 = vpop.f32.mrb[101].mxu0  ;;  %v6653_v32 = vrot.slane %v26453_v60, 1  ;;  %v21400_v5 = vsel %vm2769_vm6, %v6648_v17, %v6650_v52 }
 0x2dd   : > { %16089 = vmatprep.mubr.msk.f32.mxu0 %vm1446_vm4, %v21368_v61  ;;  %26588 = vst [vmem:[#allocation19_spill] sm:$0xff] %v21382_v0  ;;  %15936 = vmatprep.mubr.msk.f32.mxu1 %vm1446_vm4, %v26589_v58  ;;  %v21389_v61 = vsel %vm2769_vm6, %v6647_v40, %v6648_v17  ;;  %v21395_v63 = vpop.f32.mrb[102].mxu0  ;;  %26593 = vst [vmem:[#allocation27_spill] sm:$0xff] %v21400_v5  ;;  %v26594_v58 = vld [vmem:[#allocation71_spill] sm:$0xff]  ;;  %v26599_v17 = vld [vmem:[#allocation278_spill] sm:$0xff] }
 0x2de   : > { %26590 = vst [vmem:[#allocation201_spill] sm:$0xff] %v21389_v61  ;;  %26591 = vst [vmem:[#allocation203_spill] sm:$0xff] %v21395_v63  ;;  %v6655_v0 = vrot.slane %v26594_v58, 1  ;;  %v26596_v40 = vld [vmem:[#allocation11_spill] sm:$0xff]  ;;  %v6657_v63 = vrot.slane %v26455_v30, 1 }
 0x2e0   : > { %16090 = vmatmul.mubr.msk.f32.gmra.mrb[142].mxu0 %vm1446_vm4, %v21379_v49  ;;  %15937 = vmatmul.mubr.msk.f32.gmra.mrb[12].mxu1 %vm1446_vm4, %v26592_v55  ;;  %v21403_v49 = vpop.f32.mrb[103].mxu0  ;;  %v6658_v55 = vrot.slane %v26458_v56, 1  ;;  %v21421_v58 = vsel %vm2769_vm6, %v6653_v32, %v6655_v0 }
 0x2e1   : > { %16092 = vmatprep.mubr.msk.f32.mxu0 %vm1446_vm4, %v21389_v61  ;;  %26595 = vst [vmem:[#allocation246_spill] sm:$0xff] %v21403_v49  ;;  %15939 = vmatprep.mubr.msk.f32.mxu1 %vm1446_vm4, %v26596_v40  ;;  %v21410_v61 = vsel %vm2769_vm6, %v6652_v14, %v6653_v32  ;;  %v21416_v52 = vpop.f32.mrb[104].mxu0  ;;  %26600 = vst [vmem:[#allocation247_spill] sm:$0xff] %v21421_v58  ;;  %v26601_v40 = vld [vmem:[#allocation75_spill] sm:$0xff]  ;;  %v26603_v14 = vld [vmem:[#allocation12_spill] sm:$0xff] }
 0x2e2   : > { %26597 = vst [vmem:[#allocation29_spill] sm:$0xff] %v21410_v61  ;;  %26598 = vst [vmem:[#allocation33_spill] sm:$0xff] %v21416_v52  ;;  %v6660_v49 = vrot.slane %v26601_v40, 1  ;;  %v6662_v52 = vrot.slane %v26460_v24, 1  ;;  %v26606_v32 = vld [vmem:[#allocation137_spill] sm:$0xff] }
 0x2e4   : > { %16093 = vmatmul.mubr.msk.f32.gmra.mrb[144].mxu0 %vm1446_vm4, %v21400_v5  ;;  %15940 = vmatmul.mubr.msk.f32.gmra.mrb[14].mxu1 %vm1446_vm4, %v26599_v17  ;;  %v21424_v5 = vpop.f32.mrb[105].mxu0  ;;  %v6663_v17 = vrot.slane %v26463_v19, 1  ;;  %v21442_v40 = vsel %vm2769_vm6, %v6658_v55, %v6660_v49 }
 0x2e5   : > { %16095 = vmatprep.mubr.msk.f32.mxu0 %vm1446_vm4, %v21410_v61  ;;  %26602 = vst [vmem:[#allocation248_spill] sm:$0xff] %v21424_v5  ;;  %15942 = vmatprep.mubr.msk.f32.mxu1 %vm1446_vm4, %v26603_v14  ;;  %v21431_v61 = vsel %vm2769_vm6, %v6657_v63, %v6658_v55  ;;  %26607 = vst [vmem:[#allocation250_spill] sm:$0xff] %v21442_v40  ;;  %v26608_v14 = vld [vmem:[#allocation81_spill] sm:$0xff]  ;;  %v26613_v55 = vld [vmem:[#allocation280_spill] sm:$0xff] }
 0x2e6   : > { %26604 = vst [vmem:[#allocation41_spill] sm:$0xff] %v21431_v61  ;;  %v6665_v5 = vrot.slane %v26608_v14, 1  ;;  %v26610_v63 = vld [vmem:[#allocation13_spill] sm:$0xff] }
 0x2e8   : > { %16096 = vmatmul.mubr.msk.f32.gmra.mrb[146].mxu0 %vm1446_vm4, %v21421_v58  ;;  %15943 = vmatmul.mubr.msk.f32.gmra.mrb[16].mxu1 %vm1446_vm4, %v26606_v32  ;;  %v6668_v32 = vrot.slane %v20112_v33, 1  ;;  %v21463_v14 = vsel %vm2769_vm6, %v6663_v17, %v6665_v5 }
 0x2e9   : > { %16098 = vmatprep.mubr.msk.f32.mxu0 %vm1446_vm4, %v21431_v61  ;;  %v21437_v0 = vpop.f32.mrb[106].mxu0  ;;  %15945 = vmatprep.mubr.msk.f32.mxu1 %vm1446_vm4, %v26610_v63  ;;  %v21452_v61 = vsel %vm2769_vm6, %v6662_v52, %v6663_v17  ;;  %26614 = vst [vmem:[#allocation51_spill] sm:$0xff] %v21463_v14  ;;  %v26615_v63 = vld [vmem:[#allocation87_spill] sm:$0xff]  ;;  %v26617_v52 = vld [vmem:[#allocation14_spill] sm:$0xff] }
 0x2ea   : > { %26605 = vst [vmem:[#allocation26_spill] sm:$0xff] %v21437_v0  ;;  %v21445_v58 = vpop.f32.mrb[107].mxu0  ;;  %26611 = vst [vmem:[#allocation256_spill] sm:$0xff] %v21452_v61  ;;  %v6667_v0 = vrot.slane %v20128_v27, 1  ;;  %v26620_v17 = vld [vmem:[#allocation282_spill] sm:$0xff] }
 0x2eb   : > { %26609 = vst [vmem:[#allocation47_spill] sm:$0xff] %v21445_v58  ;;  %v6670_v58 = vrot.slane %v26615_v63, 1 }
 0x2ec   : > { %16099 = vmatmul.mubr.msk.f32.gmra.mrb[148].mxu0 %vm1446_vm4, %v21442_v40  ;;  %15946 = vmatmul.mubr.msk.f32.gmra.mrb[18].mxu1 %vm1446_vm4, %v26613_v55  ;;  %v6673_v55 = vrot.slane %v26470_v62, 1 }
 0x2ed   : > { %16101 = vmatprep.mubr.msk.f32.mxu0 %vm1446_vm4, %v21452_v61  ;;  %15948 = vmatprep.mubr.msk.f32.mxu1 %vm1446_vm4, %v26617_v52  ;;  %v21473_v61 = vsel %vm2769_vm6, %v6667_v0, %v6668_v32  ;;  %v21484_v63 = vsel %vm2769_vm6, %v6668_v32, %v6670_v58  ;;  %v26622_v52 = vld [vmem:[#allocation91_spill] sm:$0xff]  ;;  %v26627_v32 = vld [vmem:[#allocation284_spill] sm:$0xff] }
 0x2ee   : > { %26618 = vst [vmem:[#allocation272_spill] sm:$0xff] %v21473_v61  ;;  %26621 = vst [vmem:[#allocation273_spill] sm:$0xff] %v21484_v63  ;;  %v26624_v0 = vld [vmem:[#allocation15_spill] sm:$0xff] }
 0x2ef   : > { %v21458_v49 = vpop.f32.mrb[108].mxu0 }
 0x2f0   : > { %26612 = vst [vmem:[#allocation252_spill] sm:$0xff] %v21458_v49  ;;  %v21466_v40 = vpop.f32.mrb[109].mxu0  ;;  %16102 = vmatmul.mubr.msk.f32.gmra.mrb[150].mxu0 %vm1446_vm4, %v21463_v14  ;;  %v6672_v49 = vrot.slane %v20182_v59, 1  ;;  %15949 = vmatmul.mubr.msk.f32.gmra.mrb[20].mxu1 %vm1446_vm4, %v26620_v17  ;;  %v6678_v17 = vrot.slane %v26476_v16, 1 }
 0x2f1   : > { %26616 = vst [vmem:[#allocation257_spill] sm:$0xff] %v21466_v40  ;;  %16104 = vmatprep.mubr.msk.f32.mxu0 %vm1446_vm4, %v21473_v61  ;;  %v6675_v40 = vrot.slane %v26622_v52, 1  ;;  %15951 = vmatprep.mubr.msk.f32.mxu1 %vm1446_vm4, %v26624_v0  ;;  %v26629_v0 = vld [vmem:[#allocation94_spill] sm:$0xff] }
 0x2f2   : > { %v21494_v61 = vsel %vm2769_vm6, %v6672_v49, %v6673_v55  ;;  %v26631_v49 = vld [vmem:[#allocation16_spill] sm:$0xff] }
 0x2f3   : > { %v21479_v5 = vpop.f32.mrb[110].mxu0  ;;  %26625 = vst [vmem:[#allocation65_spill] sm:$0xff] %v21494_v61  ;;  %v21505_v52 = vsel %vm2769_vm6, %v6673_v55, %v6675_v40  ;;  %v26634_v55 = vld [vmem:[#allocation286_spill] sm:$0xff] }
 0x2f4   : > { %26619 = vst [vmem:[#allocation57_spill] sm:$0xff] %v21479_v5  ;;  %v21487_v14 = vpop.f32.mrb[111].mxu0  ;;  %16105 = vmatmul.mubr.msk.f32.gmra.mrb[152].mxu0 %vm1446_vm4, %v21484_v63  ;;  %v6677_v5 = vrot.slane %v26472_v7, 1  ;;  %15952 = vmatmul.mubr.msk.f32.gmra.mrb[22].mxu1 %vm1446_vm4, %v26627_v32  ;;  %26628 = vst [vmem:[#allocation276_spill] sm:$0xff] %v21505_v52  ;;  %v6683_v32 = vrot.slane %v26483_v54, 1 }
 0x2f5   : > { %26623 = vst [vmem:[#allocation275_spill] sm:$0xff] %v21487_v14  ;;  %16107 = vmatprep.mubr.msk.f32.mxu0 %vm1446_vm4, %v21494_v61  ;;  %v6680_v14 = vrot.slane %v26629_v0, 1  ;;  %15954 = vmatprep.mubr.msk.f32.mxu1 %vm1446_vm4, %v26631_v49  ;;  %v26636_v49 = vld [vmem:[#allocation97_spill] sm:$0xff] }
 0x2f6   : > { %v21515_v61 = vsel %vm2769_vm6, %v6677_v5, %v6678_v17  ;;  %v26638_v5 = vld [vmem:[#allocation17_spill] sm:$0xff] }
 0x2f7   : > { %v21500_v58 = vpop.f32.mrb[112].mxu0  ;;  %26632 = vst [vmem:[#allocation11_spill] sm:$0xff] %v21515_v61  ;;  %v21526_v0 = vsel %vm2769_vm6, %v6678_v17, %v6680_v14  ;;  %v4512_v14 = vrot.slane %v26550_v21, 1 }
 0x2f8   : > { %26626 = vst [vmem:[#allocation10_spill] sm:$0xff] %v21500_v58  ;;  %v21508_v63 = vpop.f32.mrb[113].mxu0  ;;  %16108 = vmatmul.mubr.msk.f32.gmra.mrb[154].mxu0 %vm1446_vm4, %v21505_v52  ;;  %v6682_v58 = vrot.slane %v26478_v50, 1  ;;  %15955 = vmatmul.mubr.msk.f32.gmra.mrb[24].mxu1 %vm1446_vm4, %v26634_v55  ;;  %26635 = vst [vmem:[#allocation75_spill] sm:$0xff] %v21526_v0  ;;  %v4511_v55 = vrot.slane %v26549_v45, 1 }
 0x2f9   : > { %26630 = vst [vmem:[#allocation71_spill] sm:$0xff] %v21508_v63  ;;  %16110 = vmatprep.mubr.msk.f32.mxu0 %vm1446_vm4, %v21515_v61  ;;  %v6685_v63 = vrot.slane %v26636_v49, 1  ;;  %15957 = vmatprep.mubr.msk.f32.mxu1 %vm1446_vm4, %v26638_v5  ;;  %v26641_v49 = vld [vmem:[#allocation288_spill] sm:$0xff] }
 0x2fa   : > { %v21536_v61 = vsel %vm2769_vm6, %v6682_v58, %v6683_v32  ;;  %v26645_v58 = vld [vmem:[#allocation209_spill] sm:$0xff]  ;;  %v4513_v21 = vsel %vm2769_vm6, %v4511_v55, %v4512_v14 }
 0x2fb   : > { %v21521_v40 = vpop.f32.mrb[114].mxu0  ;;  %26639 = vst [vmem:[#allocation137_spill] sm:$0xff] %v21536_v61  ;;  %v21547_v5 = vsel %vm2769_vm6, %v6683_v32, %v6685_v63  ;;  %v4514_v45 = vrot.slane %v26645_v58, 1  ;;  %v13841_v63 = vld [vmem:[%s25395_s8 + $0x70] sm:$0xff] }
 0x2fc   : > { %26633 = vst [vmem:[#allocation278_spill] sm:$0xff] %v21521_v40  ;;  %v21529_v52 = vpop.f32.mrb[115].mxu0  ;;  %16111 = vmatmul.mubr.msk.f32.gmra.mrb[156].mxu0 %vm1446_vm4, %v21526_v0  ;;  %15958 = vmatmul.mubr.msk.f32.gmra.mrb[26].mxu1 %vm1446_vm4, %v26641_v49  ;;  %26642 = vst [vmem:[#allocation13_spill] sm:$0xff] %v21547_v5  ;;  %v26644_v40 = vld [vmem:[#allocation83_spill] sm:$0xff]  ;;  %v26647_v49 = vld [vmem:[#allocation184_spill] sm:$0xff] }
 0x2fd   : > { %26637 = vst [vmem:[#allocation12_spill] sm:$0xff] %v21529_v52  ;;  %16113 = vmatprep.mubr.msk.f32.mxu0 %vm1446_vm4, %v21536_v61  ;;  %15960 = vmatprep.mubr.msk.f32.mxu1 %vm1446_vm4, %v26644_v40  ;;  %v26649_v40 = vld [vmem:[#allocation131_spill] sm:$0xff] }
 0x2fe   : > { %v26759_v61 = vld [vmem:[#allocation79_spill] sm:$0xff] }
 0x2ff   : > { %v21542_v17 = vpop.f32.mrb[116].mxu0 }
 0x300   : > { %26640 = vst [vmem:[#allocation81_spill] sm:$0xff] %v21542_v17  ;;  %v21549_v52 = vpop.f32.mrb[117].mxu0  ;;  %16114 = vmatmul.mubr.msk.f32.gmra.mrb[158].mxu0 %vm1446_vm4, %v21547_v5  ;;  %15961 = vmatmul.mubr.msk.f32.gmra.mrb[28].mxu1 %vm1446_vm4, %v26647_v49  ;;  %v26752_v5 = vld [vmem:[#allocation61_spill] sm:$0xff] }
 0x301   : > { %26643 = vst [vmem:[#allocation280_spill] sm:$0xff] %v21549_v52  ;;  %16118 = vmatprep.mubr.msk.f32.mxu0 %vm1446_vm4, %v20977_v38  ;;  %15963 = vmatprep.mubr.msk.f32.mxu1 %vm1446_vm4, %v4513_v21  ;;  %v4515_v38 = vsel %vm2769_vm6, %v4512_v14, %v4514_v45  ;;  %v26656_v45 = vld [vmem:[#allocation140_spill] sm:$0xff]  ;;  %v26701_v52 = vld [vmem:[#allocation54_spill] sm:$0xff] }
 0x303   : > { %v21559_v17 = vpop.f32.mrb[118].mxu0 }
 0x304   : > { %26646 = vst [vmem:[#allocation87_spill] sm:$0xff] %v21559_v17  ;;  %v21566_v32 = vpop.f32.mrb[119].mxu0  ;;  %16119 = vmatmul.mubr.msk.f32.vlgmr.msra.gmra.mrb[128].mxu0 %vm1446_vm4, %v20989_v10  ;;  %15964 = vmatmul.mubr.msk.f32.gmra.mrb[30].mxu1 %vm1446_vm4, %v4515_v38  ;;  %v26652_v10 = vld [vmem:[#allocation136_spill] sm:$0xff] }
 0x305   : > { %26648 = vst [vmem:[#allocation14_spill] sm:$0xff] %v21566_v32  ;;  %16167 = vmatpush3.msra.mxu0 %v21250_v11  ;;  %16121 = vmatprep.mubr.msk.f32.mxu0 %vm1446_vm4, %v26649_v40  ;;  %v26655_v11 = vld [vmem:[#allocation139_spill] sm:$0xff]  ;;  %v26695_v17 = vld [vmem:[#allocation268_spill] sm:$0xff] }
 0x306   : > { %16216 = vmatprep.subr.mxu0 %v13841_v63 }
 0x307   : > { %v21575_v55 = vpop.f32.mrb[120].mxu0 }
 0x308   : > { %26650 = vst [vmem:[#allocation282_spill] sm:$0xff] %v21575_v55  ;;  %v21578_v58 = vpop.f32.mrb[121].mxu0  ;;  %16122 = vmatmul.mubr.msk.f32.gmra.mrb[130].mxu0 %vm1446_vm4, %v21006_v2  ;;  %v26660_v55 = vld [vmem:[#allocation144_spill] sm:$0xff] }
 0x309   : > { %26651 = vst [vmem:[#allocation91_spill] sm:$0xff] %v21578_v58  ;;  %16124 = vmatprep.mubr.msk.f32.mxu0 %vm1446_vm4, %v26652_v10  ;;  %v26659_v58 = vld [vmem:[#allocation143_spill] sm:$0xff] }
 0x30b   : > { %v21584_v21 = vpop.f32.mrb[122].mxu0 }
 0x30c   : > { %26653 = vst [vmem:[#allocation15_spill] sm:$0xff] %v21584_v21  ;;  %v21586_v14 = vpop.f32.mrb[123].mxu0  ;;  %16125 = vmatmul.mubr.msk.f32.gmra.mrb[132].mxu0 %vm1446_vm4, %v26655_v11 }
 0x30d   : > { %26654 = vst [vmem:[#allocation284_spill] sm:$0xff] %v21586_v14  ;;  %16127 = vmatprep.mubr.msk.f32.mxu0 %vm1446_vm4, %v26656_v45 }
 0x30f   : > { %v21592_v49 = vpop.f32.mrb[124].mxu0 }
 0x310   : > { %26657 = vst [vmem:[#allocation94_spill] sm:$0xff] %v21592_v49  ;;  %v21594_v38 = vpop.f32.mrb[125].mxu0  ;;  %16128 = vmatmul.mubr.msk.f32.gmra.mrb[134].mxu0 %vm1446_vm4, %v26659_v58  ;;  %v26694_v58 = vld [vmem:[#allocation120_spill] sm:$0xff] }
 0x311   : > { %26658 = vst [vmem:[#allocation16_spill] sm:$0xff] %v21594_v38  ;;  %16130 = vmatprep.mubr.msk.f32.mxu0 %vm1446_vm4, %v26660_v55 }
 0x313   : > { %v21600_v32 = vpop.f32.mrb[126].mxu0 }
 0x314   : > { %26661 = vst [vmem:[#allocation286_spill] sm:$0xff] %v21600_v32  ;;  %v21602_v21 = vpop.f32.mrb[127].mxu0  ;;  %16131 = vmatmul.mubr.msk.f32.gmra.mrb[136].mxu0 %vm1446_vm4, %v21058_v23  ;;  %v26692_v23 = vld [vmem:[#allocation258_spill] sm:$0xff] }
 0x315   : > { %26662 = vst [vmem:[#allocation97_spill] sm:$0xff] %v21602_v21  ;;  %16133 = vmatprep.mubr.msk.f32.mxu0 %vm1446_vm4, %v21066_v41  ;;  %v26682_v21 = vld [vmem:[#allocation42_spill] sm:$0xff] }
 0x318   : > { %16134 = vmatmul.mubr.msk.f32.gmra.mrb[138].mxu0 %vm1446_vm4, %v21075_v22 }
 0x319   : > { %16136 = vmatprep.mubr.msk.f32.mxu0 %vm1446_vm4, %v21083_v34 }
 0x31c   : > { %16137 = vmatmul.mubr.msk.f32.gmra.mrb[140].mxu0 %vm1446_vm4, %v21092_v12 }
 0x31d   : > { %16139 = vmatprep.mubr.msk.f32.mxu0 %vm1446_vm4, %v21100_v35 }
 0x320   : > { %16140 = vmatmul.mubr.msk.f32.gmra.mrb[142].mxu0 %vm1446_vm4, %v21109_v25  ;;  %v26681_v25 = vld [vmem:[#allocation210_spill] sm:$0xff] }
 0x321   : > { %16142 = vmatprep.mubr.msk.f32.mxu0 %vm1446_vm4, %v21117_v9  ;;  %v26663_v9 = vld [vmem:[#allocation104_spill] sm:$0xff]  ;;  %v5150_v32 = vrot.slane %v26681_v25, 7 }
 0x324   : > { %16143 = vmatmul.mubr.msk.f32.gmra.mrb[144].mxu0 %vm1446_vm4, %v21126_v46  ;;  %v26664_v46 = vld [vmem:[#allocation37_spill] sm:$0xff] }
 0x325   : > { %16145 = vmatprep.mubr.msk.f32.mxu0 %vm1446_vm4, %v21134_v48 }
 0x328   : > { %16146 = vmatmul.mubr.msk.f32.gmra.mrb[146].mxu0 %vm1446_vm4, %v21143_v4  ;;  %v26666_v4 = vld [vmem:[#allocation32_spill] sm:$0xff] }
 0x329   : > { %16148 = vmatprep.mubr.msk.f32.mxu0 %vm1446_vm4, %v21151_v15  ;;  %v26665_v15 = vld [vmem:[#allocation100_spill] sm:$0xff]  ;;  %v7014_v48 = vrot.slane %v26666_v4, 7 }
 0x32c   : > { %16149 = vmatmul.mubr.msk.f32.gmra.mrb[148].mxu0 %vm1446_vm4, %v21160_v26  ;;  %v7013_v26 = vrot.slane %v26665_v15, 7  ;;  %v21664_v15 = vld [vmem:[%s25395_s8 + $0x78] sm:$0xff] }
 0x32d   : > { %16151 = vmatprep.mubr.msk.f32.mxu0 %vm1446_vm4, %v21168_v37 }
 0x330   : > { %16152 = vmatmul.mubr.msk.f32.gmra.mrb[150].mxu0 %vm1446_vm4, %v21177_v47  ;;  %v26667_v47 = vld [vmem:[#allocation259_spill] sm:$0xff] }
 0x331   : > { %16154 = vmatprep.mubr.msk.f32.mxu0 %vm1446_vm4, %v26663_v9  ;;  %v7016_v37 = vrot.slane %v26667_v47, 7 }
 0x334   : > { %16155 = vmatmul.mubr.msk.f32.gmra.mrb[152].mxu0 %vm1446_vm4, %v26664_v46  ;;  %v21650_v46 = vsel %vm2381_vm5, %v7013_v26, %v7014_v48  ;;  %v26671_v26 = vld [vmem:[#allocation190_spill] sm:$0xff] }
 0x335   : > { %16157 = vmatprep.mubr.msk.f32.mxu0 %vm1446_vm4, %v21202_v18  ;;  %26668 = vst [vmem:[#allocation17_spill] sm:$0xff] %v21650_v46 }
 0x338   : > { %16158 = vmatmul.mubr.msk.f32.gmra.mrb[154].mxu0 %vm1446_vm4, %v21213_v13  ;;  %v21655_v13 = vsel %vm2381_vm5, %v7014_v48, %v7016_v37  ;;  %v26672_v48 = vld [vmem:[#allocation189_spill] sm:$0xff]  ;;  %v26674_v37 = vmov 0.0  }
 0x339   : > { %16160 = vmatprep.mubr.msk.f32.mxu0 %vm1446_vm4, %v21221_v44  ;;  %26669 = vst [vmem:[#allocation288_spill] sm:$0xff] %v21655_v13 }
 0x33c   : > { %16161 = vmatmul.mubr.msk.f32.gmra.mrb[156].mxu0 %vm1446_vm4, %v21234_v57  ;;  %v26670_v57 = vld [vmem:[#allocation183_spill] sm:$0xff] }
 0x33d   : > { %16163 = vmatprep.mubr.msk.f32.mxu0 %vm1446_vm4, %v21650_v46  ;;  %v26678_v46 = vld [vmem:[#allocation289_spill] sm:$0xff] }
 0x33e   : > { %v9107_v44 = vrot.slane %v26678_v46, 2 }
 0x340   : > { %16164 = vmatmul.mubr.msk.f32.gmra.mrb[158].mxu0 %vm1446_vm4, %v21655_v13  ;;  %v26677_v13 = vld [vmem:[#allocation204_spill] sm:$0xff] }
 0x341   : > { %16168 = vmatprep.mubr.msk.f32.mxu0 %vm1446_vm4, %v26409_v42  ;;  %v21675_v42 = vld [vmem:[#allocation2 + $0x218] sm:$0xff] }
 0x342   : > { %26673 = vst [vmem:[#allocation83_spill] sm:$0xff] %v21675_v42  ;;  %10101 = vst.msk [vmem:[#allocation2 + $0x218] sm:$0xff] %vm1446_vm4, %v26674_v37 }
 0x344   : > { %16169 = vmatmul.mubr.msk.f32.vlgmr.msra.gmra.mrb[128].mxu0 %vm1446_vm4, %v26670_v57  ;;  %v26675_v57 = vld [vmem:[#allocation182_spill] sm:$0xff] }
 0x345   : > { %16217 = vmatpush3.msra.mxu0 %v13841_v63  ;;  %16171 = vmatprep.mubr.msk.f32.mxu0 %vm1446_vm4, %v26671_v26  ;;  %v25800_v63 = vrot.slane %v26675_v57, 1  ;;  %v25805_v42 = vrot.slane %v26675_v57, 2 }
 0x346   : > { %16266 = vmatprep.subr.mxu0 %v21664_v15 }
 0x347   : > { %v9108_v46 = vsel %vm1088_vm1, %v25805_v42, %v9107_v44  ;;  %v26685_v42 = vld [vmem:[#allocation48_spill] sm:$0xff] }
 0x348   : > { %16172 = vmatmul.mubr.msk.f32.gmra.mrb[130].mxu0 %vm1446_vm4, %v26672_v48  ;;  %v26676_v48 = vld [vmem:[#allocation36_spill] sm:$0xff]  ;;  %v5344_v2 = vrot.slane %v26685_v42, 1 }
 0x349   : > { %16174 = vmatprep.mubr.msk.f32.mxu0 %vm1446_vm4, %v26420_v3  ;;  %v5143_v26 = vrot.slane %v26676_v48, 7  ;;  %v5145_v3 = vrot.slane %v26677_v13, 7 }
 0x34c   : > { %16175 = vmatmul.mubr.msk.f32.gmra.mrb[132].mxu0 %vm1446_vm4, %v26423_v8  ;;  %v26679_v8 = vld [vmem:[#allocation44_spill] sm:$0xff] }
 0x34d   : > { %16177 = vmatprep.mubr.msk.f32.mxu0 %vm1446_vm4, %v26425_v36  ;;  %v9042_v36 = vadd.f32 %v25800_v63, %v26675_v57  ;;  %v5142_v18 = vrot.slane %v26679_v8, 7  ;;  %v5148_v8 = vrot.slane %v26682_v21, 7 }
 0x34f   : > { %v21705_v9 = vadd.f32 %v9108_v46, %v9042_v36 }
 0x350   : > { %16178 = vmatmul.mubr.msk.f32.gmra.mrb[134].mxu0 %vm1446_vm4, %v26428_v43  ;;  %v5146_v43 = vsel %vm2381_vm5, %v5143_v26, %v5145_v3  ;;  %v5335_v3 = vrot.slane %v26677_v13, 1 }
 0x351   : > { %16180 = vmatprep.mubr.msk.f32.mxu0 %vm1446_vm4, %v26430_v20  ;;  %v5144_v20 = vsel %vm2381_vm5, %v5142_v18, %v5143_v26  ;;  %26680 = vst [vmem:[#allocation209_spill] sm:$0xff] %v21705_v9  ;;  %v5234_v63 = vmax.f32 %v26681_v25, %v5146_v43  ;;  %v5334_v18 = vrot.slane %v26676_v48, 1  ;;  %v5151_v26 = vsel %vm2381_vm5, %v5148_v8, %v5150_v32 }
 0x352   : > { %v5233_v36 = vmax.f32 %v26682_v21, %v5144_v20 }
 0x353   : > { %v5266_v44 = vmax.f32 %v5234_v63, %v26677_v13  ;;  %v26687_v63 = vld [vmem:[#allocation181_spill] sm:$0xff]  ;;  %v21734_v32 = vsel %vm2769_vm6, %v5334_v18, %v5335_v3  ;;  %v26690_v18 = vld [vmem:[#allocation262_spill] sm:$0xff] }
 0x354   : > { %16181 = vmatmul.mubr.msk.f32.gmra.mrb[136].mxu0 %vm1446_vm4, %v26433_v53  ;;  %v26683_v53 = vld [vmem:[#allocation50_spill] sm:$0xff] }
 0x355   : > { %16183 = vmatprep.mubr.msk.f32.mxu0 %vm1446_vm4, %v26435_v6  ;;  %v5147_v35 = vrot.slane %v26683_v53, 7  ;;  %v26684_v6 = vld [vmem:[#allocation45_spill] sm:$0xff] }
 0x356   : > { %v5337_v12 = vrot.slane %v26684_v6, 1  ;;  %v5265_v6 = vmax.f32 %v5233_v36, %v26676_v48  ;;  %v5339_v36 = vrot.slane %v26682_v21, 1 }
 0x357   : > { %v5149_v53 = vsel %vm2381_vm5, %v5147_v35, %v5148_v8 }
 0x358   : > { %16184 = vmatmul.mubr.msk.f32.gmra.mrb[138].mxu0 %vm1446_vm4, %v26438_v31  ;;  %v21725_v46 = vsel %vm2769_vm6, %v5335_v3, %v5337_v12  ;;  %v26686_v31 = vld [vmem:[#allocation215_spill] sm:$0xff]  ;;  %v5235_v8 = vmax.f32 %v26685_v42, %v5149_v53  ;;  %v26689_v3 = vld [vmem:[#allocation265_spill] sm:$0xff] }
 0x359   : > { %16186 = vmatprep.mubr.msk.f32.mxu0 %vm1446_vm4, %v26440_v51  ;;  %v5153_v51 = vrot.slane %v26685_v42, 7  ;;  %v5155_v38 = vrot.slane %v26686_v31, 7  ;;  %v5236_v35 = vmax.f32 %v26686_v31, %v5151_v26  ;;  %v5426_v12 = vmax.f32 %v5266_v44, %v21725_v46 }
 0x35a   : > { %v26691_v22 = vmax.f32 %v26689_v3, %v26690_v18  ;;  %v5425_v44 = vmax.f32 %v5265_v6, %v21734_v32 }
 0x35b   : > { %v5156_v41 = vsel %vm2381_vm5, %v5153_v51, %v5155_v38  ;;  %v5268_v49 = vmax.f32 %v5236_v35, %v26681_v25  ;;  %v26697_v38 = vld [vmem:[#allocation56_spill] sm:$0xff] }
 0x35c   : > { %16187 = vmatmul.mubr.msk.f32.gmra.mrb[140].mxu0 %vm1446_vm4, %v26443_v29  ;;  %v5340_v29 = vrot.slane %v26681_v25, 1  ;;  %v5466_v14 = vmax.f32 %v26691_v22, %v5146_v43  ;;  %v5468_v22 = vmax.f32 %v5426_v12, %v5151_v26  ;;  %v5152_v3 = vrot.slane %v26697_v38, 7  ;;  %v26702_v38 = vld [vmem:[#allocation59_spill] sm:$0xff] }
 0x35d   : > { %16189 = vmatprep.mubr.msk.f32.mxu0 %vm1446_vm4, %v26445_v39  ;;  %v26688_v39 = vld [vmem:[#allocation53_spill] sm:$0xff]  ;;  %v5467_v12 = vmax.f32 %v5425_v44, %v5149_v53 }
 0x35e   : > { %v5342_v34 = vrot.slane %v26688_v39, 1  ;;  %v26693_v39 = vrot.slane %v26687_v63, 1  ;;  %v21764_v6 = vsel %vm2769_vm6, %v5339_v36, %v5340_v29  ;;  %v5345_v36 = vrot.slane %v26686_v31, 1  ;;  %v26704_v44 = vld [vmem:[#allocation269_spill] sm:$0xff] }
 0x360   : > { %16190 = vmatmul.mubr.msk.f32.gmra.mrb[142].mxu0 %vm1446_vm4, %v26448_v1  ;;  %v9040_v55 = vadd.f32 %v26693_v39, %v26692_v23  ;;  %v26696_v1 = vmax.f32 %v26694_v58, %v26695_v17  ;;  %v21761_v11 = vsel %vm2769_vm6, %v5340_v29, %v5342_v34  ;;  %v26698_v23 = vld [vmem:[#allocation266_spill] sm:$0xff]  ;;  %v26700_v39 = vld [vmem:[#allocation220_spill] sm:$0xff]  ;;  %v5506_v29 = vmax.f32 %v5466_v14, %v21725_v46 }
 0x361   : > { %16192 = vmatprep.mubr.msk.f32.mxu0 %vm1446_vm4, %v26450_v28  ;;  %v5267_v28 = vmax.f32 %v5235_v8, %v26682_v21  ;;  %v26699_v58 = vmax.f32 %v26698_v23, %v26690_v18  ;;  %v5238_v35 = vmax.f32 %v26700_v39, %v5156_v41  ;;  %v5158_v8 = vrot.slane %v26701_v52, 7 }
 0x362   : > { %v5465_v45 = vmax.f32 %v26696_v1, %v5144_v20  ;;  %v5160_v34 = vrot.slane %v26700_v39, 7  ;;  %v5508_v23 = vmax.f32 %v5468_v22, %v21761_v11  ;;  %v5548_v22 = vmax.f32 %v5506_v29, %v5151_v26 }
 0x363   : > { %v5546_v1 = vmax.f32 %v26699_v58, %v5146_v43  ;;  %v5428_v43 = vmax.f32 %v5268_v49, %v21761_v11  ;;  %v5427_v18 = vmax.f32 %v5267_v28, %v21764_v6  ;;  %v5154_v58 = vsel %vm2381_vm5, %v5152_v3, %v5153_v51 }
 0x364   : > { %16193 = vmatmul.mubr.msk.f32.gmra.mrb[144].mxu0 %vm1446_vm4, %v26453_v60  ;;  %v5347_v60 = vrot.slane %v26702_v38, 1  ;;  %v5505_v10 = vmax.f32 %v5465_v45, %v21734_v32  ;;  %v26705_v45 = vmax.f32 %v26704_v44, %v26695_v17  ;;  %v5270_v49 = vmax.f32 %v5238_v35, %v26686_v31  ;;  %v26706_v44 = vld [vmem:[#allocation223_spill] sm:$0xff] }
 0x365   : > { %16195 = vmatprep.mubr.msk.f32.mxu0 %vm1446_vm4, %v26455_v30  ;;  %v26703_v30 = vrot.slane %v26687_v63, 2  ;;  %v5161_v28 = vsel %vm2381_vm5, %v5158_v8, %v5160_v34  ;;  %v5578_v51 = vmax.f32 %v5546_v1, %v26677_v13  ;;  %v5237_v40 = vmax.f32 %v26701_v52, %v5154_v58  ;;  %v26710_v1 = vld [vmem:[#allocation64_spill] sm:$0xff] }
 0x366   : > { %v5545_v38 = vmax.f32 %v26705_v45, %v5144_v20  ;;  %v5547_v3 = vmax.f32 %v5505_v10, %v5149_v53  ;;  %v5469_v17 = vmax.f32 %v5427_v18, %v5154_v58  ;;  %v5550_v20 = vmax.f32 %v5508_v23, %v5156_v41  ;;  %v26707_v45 = vld [vmem:[#allocation62_spill] sm:$0xff]  ;;  %v26708_v10 = vld [vmem:[#allocation63_spill] sm:$0xff] }
 0x367   : > { %v21788_v14 = vadd.f32 %v26703_v30, %v9040_v55  ;;  %v5507_v30 = vmax.f32 %v5467_v12, %v21764_v6  ;;  %v5348_v55 = vsel %vm2769_vm6, %v5345_v36, %v5347_v60  ;;  %v5346_v35 = vsel %vm2769_vm6, %v5344_v2, %v5345_v36 }
 0x368   : > { %16196 = vmatmul.mubr.msk.f32.gmra.mrb[146].mxu0 %vm1446_vm4, %v26458_v56  ;;  %v5470_v56 = vmax.f32 %v5428_v43, %v5156_v41  ;;  %v5240_v34 = vmax.f32 %v26706_v44, %v5161_v28  ;;  %v5157_v9 = vrot.slane %v26707_v45, 7  ;;  %v5577_v13 = vmax.f32 %v5545_v38, %v26676_v48  ;;  %v26715_v45 = vld [vmem:[#allocation230_spill] sm:$0xff] }
 0x369   : > { %16198 = vmatprep.mubr.msk.f32.mxu0 %vm1446_vm4, %v26460_v24  ;;  %v5430_v26 = vmax.f32 %v5270_v49, %v5348_v55  ;;  %v5350_v60 = vrot.slane %v26700_v39, 1  ;;  %v5352_v53 = vrot.slane %v26708_v10, 1  ;;  %v21814_v41 = vmax.f32 %v5578_v51, %v21725_v46 }
 0x36a   : > { %v5549_v2 = vmax.f32 %v5507_v30, %v5154_v58  ;;  %v5163_v29 = vrot.slane %v26710_v1, 7  ;;  %v5165_v12 = vrot.slane %v26706_v44, 7  ;;  %v5580_v36 = vmax.f32 %v5548_v22, %v26681_v25 }
 0x36b   : > { %26709 = vst [vmem:[#allocation184_spill] sm:$0xff] %v21814_v41  ;;  %v5510_v43 = vmax.f32 %v5470_v56, %v5348_v55  ;;  %v5269_v48 = vmax.f32 %v5237_v40, %v26685_v42  ;;  %v5509_v18 = vmax.f32 %v5469_v17, %v5346_v35  ;;  %v5579_v23 = vmax.f32 %v5547_v3, %v26682_v21 }
 0x36c   : > { %16199 = vmatmul.mubr.msk.f32.gmra.mrb[148].mxu0 %vm1446_vm4, %v26463_v19  ;;  %v5582_v38 = vmax.f32 %v5550_v20, %v26686_v31  ;;  %v5272_v49 = vmax.f32 %v5240_v34, %v26700_v39  ;;  %v5159_v46 = vsel %vm2381_vm5, %v5157_v9, %v5158_v8  ;;  %v21827_v58 = vmax.f32 %v5577_v13, %v21734_v32  ;;  %v26740_v19 = vld [vmem:[#allocation82_spill] sm:$0xff] }
 0x36d   : > { %16201 = vmatprep.mubr.msk.f32.mxu0 %vm1446_vm4, %v20128_v27  ;;  %v7545_v25 = vrot.slane %v26666_v4, 1  ;;  %v5353_v56 = vsel %vm2769_vm6, %v5350_v60, %v5352_v53  ;;  %v5472_v40 = vmax.f32 %v5430_v26, %v5161_v28  ;;  %v5581_v31 = vmax.f32 %v5549_v2, %v26685_v42  ;;  %v26716_v26 = vld [vmem:[#allocation69_spill] sm:$0xff]  ;;  %v26719_v53 = vld [vmem:[#allocation134_spill] sm:$0xff] }
 0x36e   : > { %26711 = vst [vmem:[#allocation100_spill] sm:$0xff] %v21827_v58  ;;  %v7546_v21 = vrot.slane %v26667_v47, 1  ;;  %v5349_v9 = vrot.slane %v26701_v52, 1  ;;  %v5166_v8 = vsel %vm2381_vm5, %v5163_v29, %v5165_v12  ;;  %v5429_v51 = vmax.f32 %v5269_v48, %v5346_v35  ;;  %v26739_v27 = vld [vmem:[#allocation49_spill] sm:$0xff]  ;;  %v26755_v58 = vld [vmem:[#allocation67_spill] sm:$0xff] }
 0x36f   : > { %v5552_v22 = vmax.f32 %v5510_v43, %v5161_v28  ;;  %v5239_v32 = vmax.f32 %v26710_v1, %v5159_v46  ;;  %v5551_v30 = vmax.f32 %v5509_v18, %v5159_v46  ;;  %v21839_v3 = vmax.f32 %v5580_v36, %v21761_v11 }
 0x370   : > { %16202 = vmatmul.mubr.msk.f32.gmra.mrb[150].mxu0 %vm1446_vm4, %v20112_v33  ;;  %v21842_v17 = vmax.f32 %v5579_v23, %v21764_v6  ;;  %v21844_v20 = vmax.f32 %v5582_v38, %v5348_v55  ;;  %v5432_v42 = vmax.f32 %v5272_v49, %v5353_v56  ;;  %v5512_v34 = vmax.f32 %v5472_v40, %v5353_v56  ;;  %v26720_v23 = vld [vmem:[#allocation68_spill] sm:$0xff] }
 0x371   : > { %16204 = vmatprep.mubr.msk.f32.mxu0 %vm1446_vm4, %v20182_v59  ;;  %26712 = vst [vmem:[#allocation183_spill] sm:$0xff] %v21839_v3  ;;  %v5242_v13 = vmax.f32 %v26715_v45, %v5166_v8  ;;  %v5355_v28 = vrot.slane %v26706_v44, 1  ;;  %v5357_v10 = vrot.slane %v26716_v26, 1  ;;  %v21853_v11 = vmax.f32 %v5581_v31, %v5346_v35  ;;  %v26721_v35 = vld [vmem:[#allocation66_spill] sm:$0xff]  ;;  %v26738_v59 = vld [vmem:[#allocation89_spill] sm:$0xff] }
 0x372   : > { %26713 = vst [vmem:[#allocation182_spill] sm:$0xff] %v21842_v17  ;;  %26714 = vst [vmem:[#allocation36_spill] sm:$0xff] %v21844_v20  ;;  %v21856_v6 = vsel %vm2769_vm6, %v7545_v25, %v7546_v21  ;;  %v5351_v55 = vsel %vm2769_vm6, %v5349_v9, %v5350_v60  ;;  %v7548_v2 = vrot.slane %v26719_v53, 1  ;;  %v5584_v12 = vmax.f32 %v5552_v22, %v26700_v39  ;;  %v26723_v31 = vld [vmem:[#allocation74_spill] sm:$0xff]  ;;  %v26728_v53 = vld [vmem:[#allocation80_spill] sm:$0xff] }
 0x373   : > { %26717 = vst [vmem:[#allocation204_spill] sm:$0xff] %v21853_v11  ;;  %26718 = vst [vmem:[#allocation289_spill] sm:$0xff] %v21856_v6  ;;  %v5271_v36 = vmax.f32 %v5239_v32, %v26701_v52  ;;  %v5471_v43 = vmax.f32 %v5429_v51, %v5159_v46  ;;  %v5583_v48 = vmax.f32 %v5551_v30, %v26701_v52  ;;  %v5162_v38 = vrot.slane %v26720_v23, 7  ;;  %v26724_v51 = vld [vmem:[#allocation72_spill] sm:$0xff]  ;;  %v26725_v32 = vld [vmem:[#allocation22_spill] sm:$0xff] }
 0x374   : > { %16205 = vmatmul.mubr.msk.f32.gmra.mrb[152].mxu0 %vm1446_vm4, %v26470_v62  ;;  %v21863_v18 = vmax.f32 %v5432_v42, %v5166_v8  ;;  %v5168_v49 = vrot.slane %v26721_v35, 7  ;;  %v5170_v25 = vrot.slane %v26715_v45, 7  ;;  %v21871_v60 = vmax.f32 %v5242_v13, %v26706_v44 }
 0x375   : > { %16207 = vmatprep.mubr.msk.f32.mxu0 %vm1446_vm4, %v26472_v7  ;;  %v21874_v39 = vsel %vm2769_vm6, %v5355_v28, %v5357_v10  ;;  %v21876_v46 = vmax.f32 %v5512_v34, %v5166_v8  ;;  %v5354_v52 = vrot.slane %v26710_v1, 1  ;;  %v21882_v40 = vsel %vm2769_vm6, %v7546_v21, %v7548_v2 }
 0x376   : > { %26722 = vst [vmem:[#allocation44_spill] sm:$0xff] %v21882_v40  ;;  %v5167_v9 = vrot.slane %v26723_v31, 7  ;;  %v5173_v22 = vrot.slane %v26724_v51, 7  ;;  %v5175_v30 = vrot.slane %v26725_v32, 7  ;;  %v21887_v42 = vmax.f32 %v5584_v12, %v5353_v56  ;;  %v26732_v31 = vld [vmem:[#allocation21_spill] sm:$0xff]  ;;  %v26751_v40 = vld [vmem:[#allocation55_spill] sm:$0xff] }
 0x377   : > { %v5431_v13 = vmax.f32 %v5271_v36, %v5351_v55  ;;  %v5511_v26 = vmax.f32 %v5471_v43, %v5351_v55  ;;  %v21889_v8 = vmax.f32 %v5583_v48, %v5351_v55  ;;  %v5164_v10 = vsel %vm2381_vm5, %v5162_v38, %v5163_v29  ;;  %v21908_v29 = vld [vmem:[#allocation2 + $0x220] sm:$0xff]  ;;  %v21910_v43 = vld [vmem:[#allocation2 + $0x228] sm:$0xff]  ;;  %v26731_v38 = vld [vmem:[#allocation237_spill] sm:$0xff] }
 0x378   : > { %16208 = vmatmul.mubr.msk.f32.gmra.mrb[154].mxu0 %vm1446_vm4, %v26476_v16  ;;  %26726 = vst [vmem:[#allocation210_spill] sm:$0xff] %v21887_v42  ;;  %v21895_v21 = vsel %vm2381_vm5, %v5168_v49, %v5170_v25  ;;  %v5172_v2 = vrot.slane %v26728_v53, 7  ;;  %v21905_v12 = vsel %vm2769_vm6, %v5354_v52, %v5355_v28  ;;  %v5360_v36 = vrot.slane %v26715_v45, 1  ;;  %26729 = vst [vmem:[#allocation50_spill] sm:$0xff] %v21908_v29  ;;  %v21926_v52 = vld [vmem:[#allocation2 + $0x230] sm:$0xff]  ;;  %v26737_v16 = vld [vmem:[#allocation240_spill] sm:$0xff] }
 0x379   : > { %16210 = vmatprep.mubr.msk.f32.mxu0 %vm1446_vm4, %v26478_v50  ;;  %26727 = vst [vmem:[#allocation42_spill] sm:$0xff] %v21889_v8  ;;  %26730 = vst [vmem:[#allocation45_spill] sm:$0xff] %v21910_v43  ;;  %v21915_v48 = vsel %vm2381_vm5, %v5167_v9, %v5168_v49  ;;  %v21918_v23 = vsel %vm2381_vm5, %v5173_v22, %v5175_v30  ;;  %v5178_v25 = vrot.slane %v26731_v38, 7  ;;  %v5180_v28 = vrot.slane %v26732_v31, 7  ;;  %v26734_v9 = vld [vmem:[#allocation77_spill] sm:$0xff]  ;;  %v26762_v43 = vld [vmem:[#allocation254_spill] sm:$0xff] }
 0x37a   : > { %8756 = vst.msk [vmem:[#allocation2 + $0x220] sm:$0xff] %vm1446_vm4, %v26674_v37  ;;  %8757 = vst.msk [vmem:[#allocation2 + $0x228] sm:$0xff] %vm1446_vm4, %v26674_v37  ;;  %v5241_v53 = vmax.f32 %v26721_v35, %v5164_v10  ;;  %v5244_v49 = vmax.f32 %v26725_v32, %v21895_v21  ;;  %v5362_v30 = vrot.slane %v26734_v9, 1  ;;  %v26735_v55 = vld [vmem:[#allocation85_spill] sm:$0xff]  ;;  %v5359_v56 = vrot.slane %v26721_v35, 1 }
 0x37b   : > { %26733 = vst [vmem:[#allocation48_spill] sm:$0xff] %v21926_v52  ;;  %v5177_v34 = vrot.slane %v26735_v55, 7  ;;  %8758 = vst.msk [vmem:[#allocation2 + $0x230] sm:$0xff] %vm1446_vm4, %v26674_v37  ;;  %v5185_v7 = vrot.slane %v26737_v16, 7  ;;  %v21943_v62 = vmax.f32 %v5431_v13, %v5164_v10  ;;  %v5243_v55 = vmax.f32 %v26724_v51, %v21915_v48  ;;  %v26761_v52 = vld [vmem:[#allocation253_spill] sm:$0xff] }
 0x37c   : > { %16211 = vmatmul.mubr.msk.f32.gmra.mrb[156].mxu0 %vm1446_vm4, %v26483_v54  ;;  %v26736_v54 = vld [vmem:[#allocation145_spill] sm:$0xff]  ;;  %v5246_v9 = vmax.f32 %v26732_v31, %v21918_v23  ;;  %v5182_v33 = vrot.slane %v26738_v59, 7  ;;  %v5367_v24 = vrot.slane %v26740_v19, 1  ;;  %v21957_v13 = vsel %vm2381_vm5, %v5178_v25, %v5180_v28 }
 0x37d   : > { %16213 = vmatprep.mubr.msk.f32.mxu0 %vm1446_vm4, %v26666_v4  ;;  %v21937_v4 = vsel %vm2381_vm5, %v5172_v2, %v5173_v22  ;;  %v5183_v50 = vrot.slane %v26736_v54, 7  ;;  %v21952_v22 = vmax.f32 %v5511_v26, %v5164_v10  ;;  %v5365_v2 = vrot.slane %v26725_v32, 1  ;;  %v26763_v29 = vld [vmem:[#allocation93_spill] sm:$0xff] }
 0x37e   : > { %v21961_v8 = vsel %vm2769_vm6, %v5360_v36, %v5362_v30  ;;  %v5245_v59 = vmax.f32 %v26731_v38, %v21937_v4  ;;  %v21966_v42 = vsel %vm2381_vm5, %v5177_v34, %v5178_v25  ;;  %v5276_v19 = vmax.f32 %v5244_v49, %v26715_v45 }
 0x37f   : > { %v21975_v26 = vsel %vm2769_vm6, %v5359_v56, %v5360_v36  ;;  %v5364_v10 = vrot.slane %v26724_v51, 1  ;;  %v21979_v28 = vsel %vm2381_vm5, %v5183_v50, %v5185_v7  ;;  %v5275_v34 = vmax.f32 %v5243_v55, %v26721_v35  ;;  %v26745_v7 = vld [vmem:[#allocation116_spill] sm:$0xff] }
 0x380   : > { %16214 = vmatmul.mubr.msk.f32.gmra.mrb[158].mxu0 %vm1446_vm4, %v26667_v47  ;;  %v5273_v47 = vmax.f32 %v5241_v53, %v26710_v1  ;;  %v26742_v53 = vld [vmem:[#allocation111_spill] sm:$0xff]  ;;  %v5278_v25 = vmax.f32 %v5246_v9, %v26725_v32  ;;  %v5248_v30 = vmax.f32 %v26737_v16, %v21957_v13  ;;  %v21988_v49 = vsel %vm2381_vm5, %v5182_v33, %v5183_v50  ;;  %v26746_v9 = vld [vmem:[#allocation86_spill] sm:$0xff] }
 0x381   : > { %16218 = vmatprep.mubr.msk.f32.mxu0 %vm1446_vm4, %v26739_v27  ;;  %v21971_v27 = vld [vmem:[%s25395_s8 + $0x80] sm:$0xff]  ;;  %v21992_v36 = vld [vmem:[#allocation2 + $0x228] sm:$0xff]  ;;  %v5370_v55 = vrot.slane %v26732_v31, 1  ;;  %v5372_v11 = vrot.slane %v26746_v9, 1  ;;  %v5247_v33 = vmax.f32 %v26736_v54, %v21966_v42  ;;  %v5369_v9 = vrot.slane %v26731_v38, 1 }
 0x382   : > { %26741 = vst [vmem:[#allocation215_spill] sm:$0xff] %v21971_v27  ;;  %v21990_v56 = vld [vmem:[#allocation2 + $0x220] sm:$0xff]  ;;  %26744 = vst [vmem:[#allocation53_spill] sm:$0xff] %v21992_v36  ;;  %v22008_v50 = vld [vmem:[#allocation2 + $0x230] sm:$0xff]  ;;  %v5436_v17 = vmax.f32 %v5276_v19, %v21961_v8  ;;  %v5435_v3 = vmax.f32 %v5275_v34, %v21975_v26  ;;  %v5280_v6 = vmax.f32 %v5248_v30, %v26732_v31  ;;  %v5374_v30 = vrot.slane %v26736_v54, 1 }
 0x383   : > { %26743 = vst [vmem:[#allocation181_spill] sm:$0xff] %v21990_v56  ;;  %10102 = vst.msk [vmem:[#allocation2 + $0x220] sm:$0xff] %vm1446_vm4, %v26674_v37  ;;  %v26748_v56 = vld [vmem:[#allocation6_spill] sm:$0xff]  ;;  %v22045_v34 = vsel %vm2769_vm6, %v5369_v9, %v5370_v55 }
 0x384   : > { %16219 = vmatmul.mubr.msk.f32.vlgmr.msra.gmra.mrb[128].mxu0 %vm1446_vm4, %v26742_v53  ;;  %v21998_v53 = vsel %vm2769_vm6, %v5365_v2, %v5367_v24  ;;  %10103 = vst.msk [vmem:[#allocation2 + $0x228] sm:$0xff] %vm1446_vm4, %v26674_v37  ;;  %26747 = vst [vmem:[#allocation265_spill] sm:$0xff] %v22008_v50  ;;  %v5277_v24 = vmax.f32 %v5245_v59, %v26724_v51  ;;  %v5250_v36 = vmax.f32 %v26748_v56, %v21979_v28  ;;  %v26750_v59 = vld [vmem:[#allocation241_spill] sm:$0xff] }
 0x385   : > { %16267 = vmatpush3.msra.mxu0 %v21664_v15  ;;  %16221 = vmatprep.mubr.msk.f32.mxu0 %vm1446_vm4, %v26745_v7  ;;  %v5513_v15 = vmax.f32 %v21943_v62, %v21905_v12  ;;  %10104 = vst.msk [vmem:[#allocation2 + $0x230] sm:$0xff] %vm1446_vm4, %v26674_v37  ;;  %v5433_v7 = vmax.f32 %v5273_v47, %v21905_v12 }
 0x386   : > { %16316 = vmatprep.subr.mxu0 %v21971_v27  ;;  %v26749_v50 = vmax.f32 %v21871_v60, %v21874_v39  ;;  %v22025_v62 = vsel %vm2769_vm6, %v5364_v10, %v5365_v2  ;;  %v5249_v27 = vmax.f32 %v26750_v59, %v21988_v49  ;;  %v5438_v47 = vmax.f32 %v5278_v25, %v21998_v53 }
 0x387   : > { %v22038_v60 = vsel %vm2769_vm6, %v5370_v55, %v5372_v11  ;;  %v5279_v2 = vmax.f32 %v5247_v33, %v26731_v38  ;;  %v5375_v10 = vrot.slane %v26737_v16, 1  ;;  %v5437_v19 = vmax.f32 %v5277_v24, %v22025_v62 }
 0x388   : > { %v5476_v20 = vmax.f32 %v26749_v50, %v21895_v21  ;;  %16222 = vmatmul.mubr.msk.f32.gmra.mrb[130].mxu0 %vm1446_vm4, %v26751_v40  ;;  %v26753_v50 = vld [vmem:[#allocation90_spill] sm:$0xff]  ;;  %v5282_v25 = vmax.f32 %v5250_v36, %v26737_v16  ;;  %v26754_v11 = vmax.f32 %v21863_v18, %v21874_v39  ;;  %v5281_v24 = vmax.f32 %v5249_v27, %v26736_v54 }
 0x389   : > { %16224 = vmatprep.mubr.msk.f32.mxu0 %vm1446_vm4, %v26752_v5  ;;  %v5377_v40 = vrot.slane %v26753_v50, 1  ;;  %v5585_v5 = vmax.f32 %v21952_v22, %v26710_v1  ;;  %v5475_v50 = vmax.f32 %v5433_v7, %v21915_v48  ;;  %v5478_v36 = vmax.f32 %v5436_v17, %v21918_v23  ;;  %v26756_v22 = vld [vmem:[#allocation73_spill] sm:$0xff] }
 0x38a   : > { %v22055_v33 = vmax.f32 %v26754_v11, %v21895_v21  ;;  %v5477_v55 = vmax.f32 %v5435_v3, %v21937_v4  ;;  %v5440_v9 = vmax.f32 %v5280_v6, %v22038_v60  ;;  %v5480_v1 = vmax.f32 %v5438_v47, %v21957_v13  ;;  %v26757_v47 = vld [vmem:[#allocation95_spill] sm:$0xff] }
 0x38b   : > { %v5439_v18 = vmax.f32 %v5279_v2, %v22045_v34  ;;  %v22069_v21 = vsel %vm2769_vm6, %v5375_v10, %v5377_v40  ;;  %v5447_v27 = vrot.slane %v26750_v59, 7  ;;  %v5449_v7 = vrot.slane %v26748_v56, 7 }
 0x38c   : > { %16225 = vmatmul.mubr.msk.f32.gmra.mrb[132].mxu0 %vm1446_vm4, %v26755_v58  ;;  %v5479_v17 = vmax.f32 %v5437_v19, %v21966_v42  ;;  %v5442_v3 = vmax.f32 %v5282_v25, %v22069_v21  ;;  %v22076_v6 = vsel %vm2769_vm6, %v5374_v30, %v5375_v10  ;;  %v5446_v11 = vrot.slane %v26757_v47, 7  ;;  %v26758_v58 = vld [vmem:[#allocation125_spill] sm:$0xff]  ;;  %v26760_v47 = vld [vmem:[#allocation84_spill] sm:$0xff] }
 0x38d   : > { %16227 = vmatprep.mubr.msk.f32.mxu0 %vm1446_vm4, %v26756_v22  ;;  %v5516_v22 = vmax.f32 %v5476_v20, %v21961_v8  ;;  %v5441_v2 = vmax.f32 %v5281_v24, %v22076_v6  ;;  %v5487_v40 = vrot.slane %v26748_v56, 1  ;;  %v5489_v41 = vrot.slane %v26758_v58, 1 }
 0x38e   : > { %v5515_v19 = vmax.f32 %v5475_v50, %v21975_v26  ;;  %v5555_v25 = vmax.f32 %v5513_v15, %v21915_v48  ;;  %v5482_v10 = vmax.f32 %v5440_v9, %v21979_v28  ;;  %v5486_v30 = vrot.slane %v26750_v59, 1 }
 0x38f   : > { %v5518_v20 = vmax.f32 %v5478_v36, %v21998_v53  ;;  %v5517_v24 = vmax.f32 %v5477_v55, %v22025_v62  ;;  %v5481_v58 = vmax.f32 %v5439_v18, %v21988_v49  ;;  %v5450_v0 = vsel %vm2381_vm5, %v5447_v27, %v5449_v7 }
 0x390   : > { %16228 = vmatmul.mubr.msk.f32.gmra.mrb[134].mxu0 %vm1446_vm4, %v26759_v61  ;;  %v5520_v61 = vmax.f32 %v5480_v1, %v22038_v60  ;;  %v5519_v50 = vmax.f32 %v5479_v17, %v22045_v34  ;;  %v5484_v48 = vmax.f32 %v5442_v3, %v5450_v0  ;;  %v5448_v15 = vsel %vm2381_vm5, %v5446_v11, %v5447_v27  ;;  %v26764_v27 = vld [vmem:[#allocation255_spill] sm:$0xff]  ;;  %v26766_v3 = vld [vmem:[#allocation173_spill] sm:$0xff] }
 0x391   : > { %16230 = vmatprep.mubr.msk.f32.mxu0 %vm1446_vm4, %v26760_v47  ;;  %v22099_v9 = vsel %vm2769_vm6, %v5487_v40, %v5489_v41  ;;  %v5483_v47 = vmax.f32 %v5441_v2, %v5448_v15  ;;  %v5529_v36 = vrot.slane %v26761_v52, 7  ;;  %v5531_v55 = vrot.slane %v26762_v43, 7  ;;  %v22111_v41 = vld [vmem:[#allocation2 + $0x238] sm:$0xff] }
 0x392   : > { %v5558_v18 = vmax.f32 %v5516_v22, %v21918_v23  ;;  %v5522_v1 = vmax.f32 %v5482_v10, %v22069_v21  ;;  %v22108_v7 = vsel %vm2769_vm6, %v5486_v30, %v5487_v40  ;;  %v5528_v17 = vrot.slane %v26764_v27, 7  ;;  %26765 = vst [vmem:[#allocation262_spill] sm:$0xff] %v22111_v41  ;;  %8759 = vst.msk [vmem:[#allocation2 + $0x238] sm:$0xff] %vm1446_vm4, %v26674_v37  ;;  %v22199_v27 = vld [vmem:[%s25396_s9] ss:$0 sm:$0xff] }
 0x393   : > { %v5588_v11 = vmax.f32 %v22055_v33, %v26715_v45  ;;  %v5557_v2 = vmax.f32 %v5515_v19, %v21937_v4  ;;  %v5521_v23 = vmax.f32 %v5481_v58, %v22076_v6  ;;  %v5559_v22 = vmax.f32 %v5517_v24, %v21966_v42  ;;  %v26771_v24 = vld [vmem:[#allocation39_spill] sm:$0xff] }
 0x394   : > { %16231 = vmatmul.mubr.msk.f32.gmra.mrb[136].mxu0 %vm1446_vm4, %v26763_v29  ;;  %v5560_v29 = vmax.f32 %v5518_v20, %v21957_v13  ;;  %v5562_v40 = vmax.f32 %v5520_v61, %v21979_v28  ;;  %v5561_v10 = vmax.f32 %v5519_v50, %v21988_v49  ;;  %v5524_v30 = vmax.f32 %v5484_v48, %v22099_v9  ;;  %v26768_v20 = vld [vmem:[#allocation160_spill] sm:$0xff]  ;;  %v26772_v50 = vld [vmem:[#allocation166_spill] sm:$0xff] }
 0x395   : > { %16233 = vmatprep.mubr.msk.f32.mxu0 %vm1446_vm4, %v26766_v3  ;;  %v26767_v4 = vmax.f32 %v21876_v46, %v26706_v44  ;;  %v5587_v13 = vmax.f32 %v5555_v25, %v26721_v35  ;;  %v5523_v33 = vmax.f32 %v5483_v47, %v22108_v7  ;;  %v5532_v19 = vsel %vm2381_vm5, %v5529_v36, %v5531_v55  ;;  %v26769_v44 = vld [vmem:[#allocation158_spill] sm:$0xff]  ;;  %v26777_v55 = vld [vmem:[#allocation201_spill] sm:$0xff] }
 0x396   : > { %v22139_v61 = vmax.f32 %v5585_v5, %v21905_v12  ;;  %v5590_v42 = vmax.f32 %v5558_v18, %v26725_v32  ;;  %v5564_v28 = vmax.f32 %v5522_v1, %v5450_v0  ;;  %v5530_v49 = vsel %vm2381_vm5, %v5528_v17, %v5529_v36 }
 0x397   : > { %v22131_v45 = vmax.f32 %v26767_v4, %v21874_v39  ;;  %v22152_v35 = vmax.f32 %v5588_v11, %v21961_v8  ;;  %v5589_v39 = vmax.f32 %v5557_v2, %v26724_v51  ;;  %v5592_v5 = vmax.f32 %v5560_v29, %v26732_v31  ;;  %v22214_v11 = vld [vmem:[%s25398_s11] sm:$0xff]  ;;  %v22219_v2 = vld [vmem:[%s25398_s11 + $0x8] sm:$0xff] }
 0x398   : > { %16234 = vmatmul.mubr.msk.f32.gmra.mrb[138].mxu0 %vm1446_vm4, %v26768_v20  ;;  %v5563_v46 = vmax.f32 %v5521_v23, %v5448_v15  ;;  %v5591_v0 = vmax.f32 %v5559_v22, %v26731_v38  ;;  %v5594_v32 = vmax.f32 %v5562_v40, %v26737_v16  ;;  %v5593_v12 = vmax.f32 %v5561_v10, %v26736_v54  ;;  %v26776_v15 = vld [vmem:[#allocation101_spill] sm:$0xff]  ;;  %v22233_v10 = vld [vmem:[%s25398_s11 + $0x18] sm:$0xff]  ;;  %v26781_v4 = vld [vmem:[#allocation96_spill] sm:$0xff] }
 0x399   : > { %16236 = vmatprep.mubr.msk.f32.mxu0 %vm1446_vm4, %v26769_v44  ;;  %v5566_v25 = vmax.f32 %v5524_v30, %v5532_v19  ;;  %v22160_v47 = vmax.f32 %v5587_v13, %v21975_v26  ;;  %v5601_v8 = vrot.slane %v26762_v43, 1  ;;  %v5603_v58 = vrot.slane %v26771_v24, 1  ;;  %v22171_v54 = vld [vmem:[#allocation2 + $0x238] sm:$0xff]  ;;  %v22228_v40 = vld [vmem:[%s25398_s11 + $0x10] sm:$0xff]  ;;  %26780 = vst [vmem:[#allocation268_spill] sm:$0xff] %v22233_v10  ;;  %v26843_v44 = vld [vmem:[#allocation267_spill] sm:$0xff] }
 0x39a   : > { %v5565_v51 = vmax.f32 %v5523_v33, %v5530_v49  ;;  %v22167_v29 = vmax.f32 %v5590_v42, %v21998_v53  ;;  %v5596_v38 = vmax.f32 %v5564_v28, %v26748_v56  ;;  %v5600_v16 = vrot.slane %v26761_v52, 1  ;;  %26773 = vst [vmem:[#allocation258_spill] sm:$0xff] %v22171_v54  ;;  %10105 = vst.msk [vmem:[#allocation2 + $0x238] sm:$0xff] %vm1446_vm4, %v26674_v37  ;;  %v22238_v30 = vld [vmem:[%s25397_s10] ss:$0 sm:$0xff]  ;;  %v26786_v24 = vld [vmem:[#allocation150_spill] sm:$0xff] }
 0x39b   : > { %v26774_v31 = vrot.slane %v26675_v57, 1  ;;  %v26775_v26 = vrot.slane %v26687_v63, 1  ;;  %v22188_v56 = vmax.f32 %v5589_v39, %v22025_v62  ;;  %v22191_v53 = vmax.f32 %v5592_v5, %v22038_v60  ;;  %v15920_v1 = vpop.f32.mrb[0].mxu1  ;;  %26779 = vst [vmem:[#allocation120_spill] sm:$0xff] %v22228_v40  ;;  %v26785_v5 = vld [vmem:[#allocation29_spill] sm:$0xff] }
 0x39c   : > { %16237 = vmatmul.mubr.msk.f32.gmra.mrb[140].mxu0 %vm1446_vm4, %v26772_v50  ;;  %v5595_v18 = vmax.f32 %v5563_v46, %v26750_v59  ;;  %v22202_v17 = vmax.f32 %v5591_v0, %v22045_v34  ;;  %v22205_v62 = vmax.f32 %v5594_v32, %v22069_v21  ;;  %v22208_v60 = vmax.f32 %v5593_v12, %v22076_v6  ;;  %v26778_v34 = vld [vmem:[#allocation88_spill] sm:$0xff]  ;;  %v4586_v21 = vpop.f32.mrb[1].mxu1  ;;  %v26837_v50 = vld [vmem:[#allocation273_spill] sm:$0xff] }
 0x39d   : > { %v8946_v48 = vsel %vm2769_vm6, %v26775_v26, %v26774_v31  ;;  %16239 = vmatprep.mubr.msk.f32.mxu0 %vm1446_vm4, %v26777_v55  ;;  %v5598_v59 = vmax.f32 %v5566_v25, %v26762_v43  ;;  %v16866_v23 = vadd.f32 %v15920_v1, %v26778_v34  ;;  %v5604_v22 = vsel %vm2769_vm6, %v5601_v8, %v5603_v58  ;;  %v26788_v31 = vld [vmem:[#allocation171_spill] sm:$0xff]  ;;  %v26806_v1 = vld [vmem:[#allocation250_spill] sm:$0xff] }
 0x39e   : > { %v5597_v6 = vmax.f32 %v5565_v51, %v26761_v52  ;;  %v9041_v43 = vadd.f32 %v8946_v48, %v26687_v63  ;;  %v16867_v13 = vadd.f32 %v4586_v21, %v26781_v4  ;;  %v26782_v52 = vld [vmem:[#allocation27_spill] sm:$0xff]  ;;  %v22244_v33 = vmax.f32 %v5596_v38, %v22099_v9  ;;  %v26795_v4 = vld [vmem:[#allocation105_spill] sm:$0xff] }
 0x39f   : > { %v5602_v19 = vsel %vm2769_vm6, %v5600_v16, %v5601_v8  ;;  %v26783_v42 = vrot.slane %v26675_v57, 2  ;;  %v26784_v28 = vrot.slane %v26687_v63, 2  ;;  %v4783_v39 = vmul.f32 %v16866_v23, %v22199_v27  ;;  %v15923_v57 = vpop.f32.mrb[2].mxu1  ;;  %v26789_v48 = vld [vmem:[#allocation247_spill] sm:$0xff]  ;;  %v22289_v23 = vld [vmem:[%s25398_s11 + $0x28] sm:$0xff] }
 0x3a0   : > { %16240 = vmatmul.mubr.msk.f32.gmra.mrb[142].mxu0 %vm1446_vm4, %v26782_v52  ;;  %v22257_v46 = vmax.f32 %v5595_v18, %v22108_v7  ;;  %v25847_v9 = vrot.slane %v22214_v11, 1  ;;  %v25848_v0 = vrot.slane %v22219_v2, 1  ;;  %v4782_v32 = vmul.f32 %v16867_v13, %v22199_v27  ;;  %v4596_v51 = vpop.f32.mrb[3].mxu1  ;;  %v26790_v18 = vld [vmem:[#allocation102_spill] sm:$0xff]  ;;  %26792 = vst [vmem:[#allocation266_spill] sm:$0xff] %v22289_v23  ;;  %v26793_v21 = vld [vmem:[#allocation147_spill] sm:$0xff] }
 0x3a1   : > { %v9106_v49 = vsel %vm1088_vm1, %v26784_v28, %v26783_v42  ;;  %16242 = vmatprep.mubr.msk.f32.mxu0 %vm1446_vm4, %v26785_v5  ;;  %v22262_v12 = vmax.f32 %v5598_v59, %v5604_v22  ;;  %v25845_v63 = vrot.slane %v22228_v40, 1  ;;  %v25846_v25 = vrot.slane %v22233_v10, 1  ;;  %v26791_v59 = vld [vmem:[#allocation249_spill] sm:$0xff]  ;;  %v26797_v42 = vld [vmem:[#allocation151_spill] sm:$0xff] }
 0x3a2   : > { %v4820_v8 = vadd.f32 %v22238_v30, %v4783_v39  ;;  %v16868_v58 = vadd.f32 %v15923_v57, %v26786_v24  ;;  %v22268_v7 = vmax.f32 %v5597_v6, %v5602_v19  ;;  %v22270_v38 = vadd.f32 %v9106_v49, %v9041_v43  ;;  %v26794_v43 = vld [vmem:[#allocation41_spill] sm:$0xff]  ;;  %v22306_v19 = vld [vmem:[%s25398_s11 + $0x20] sm:$0xff] }
 0x3a3   : > { %v4819_v16 = vadd.f32 %v22238_v30, %v4782_v32  ;;  %v16869_v26 = vadd.f32 %v4596_v51, %v26788_v31  ;;  %v22284_v34 = vadd.f32 %v21788_v14, %v26791_v59  ;;  %v22300_v14 = vsel %vm2769_vm6, %v25847_v9, %v25848_v0  ;;  %26796 = vst [vmem:[#allocation220_spill] sm:$0xff] %v22306_v19  ;;  %v15926_v39 = vpop.f32.mrb[4].mxu1  ;;  %v22321_v24 = vld [vmem:[%s25398_s11 + $0x30] sm:$0xff]  ;;  %v26802_v51 = vld [vmem:[#allocation119_spill] sm:$0xff] }
 0x3a4   : > { %26787 = vst [vmem:[#allocation56_spill] sm:$0xff] %v22268_v7  ;;  %16243 = vmatmul.mubr.msk.f32.gmra.mrb[144].mxu0 %vm1446_vm4, %v26789_v48  ;;  %v4852_v22 = vadd.f32 %v4820_v8, %v26793_v21  ;;  %v4785_v6 = vmul.f32 %v16868_v58, %v22199_v27  ;;  %v22315_v32 = vsel %vm2769_vm6, %v25845_v63, %v25846_v25  ;;  %26800 = vst [vmem:[#allocation59_spill] sm:$0xff] %v22321_v24  ;;  %v22326_v58 = vld [vmem:[%s25398_s11 + $0x38] sm:$0xff]  ;;  %v26804_v8 = vld [vmem:[#allocation239_spill] sm:$0xff] }
 0x3a5   : > { %16245 = vmatprep.mubr.msk.f32.mxu0 %vm1446_vm4, %v26794_v43  ;;  %v4851_v28 = vadd.f32 %v4819_v16, %v26797_v42  ;;  %v4784_v49 = vmul.f32 %v16869_v26, %v22199_v27  ;;  %26798 = vst [vmem:[#allocation54_spill] sm:$0xff] %v22315_v32  ;;  %26801 = vst [vmem:[#allocation269_spill] sm:$0xff] %v22326_v58  ;;  %v26803_v26 = vld [vmem:[#allocation169_spill] sm:$0xff]  ;;  %v4606_v42 = vpop.f32.mrb[5].mxu1  ;;  %v26805_v9 = vld [vmem:[#allocation19_spill] sm:$0xff] }
 0x3a6   : > { %v5640_v16 = vadd.f32 %v26802_v51, %v4852_v22  ;;  %13052 = vst.msk [vmem:[%s22275_s24 + $0x8] sm:$0xff] %vm1446_vm4, %v4852_v22  ;;  %v4822_v31 = vadd.f32 %v22238_v30, %v4785_v6  ;;  %v16870_v21 = vadd.f32 %v15926_v39, %v26803_v26  ;;  %v16871_v0 = vadd.f32 %v4606_v42, %v26805_v9  ;;  %v26807_v6 = vld [vmem:[#allocation154_spill] sm:$0xff]  ;;  %v26808_v51 = vld [vmem:[#allocation256_spill] sm:$0xff]  ;;  %v26812_v22 = vld [vmem:[#allocation7_spill] sm:$0xff] }
 0x3a7   : > { %v5639_v25 = vadd.f32 %v26804_v8, %v4851_v28  ;;  %13051 = vst.msk [vmem:[%s22275_s24] sm:$0xff] %vm1446_vm4, %v4851_v28  ;;  %v4821_v13 = vadd.f32 %v22238_v30, %v4784_v49  ;;  %v26809_v49 = vld [vmem:[#allocation161_spill] sm:$0xff]  ;;  %v15929_v42 = vpop.f32.mrb[6].mxu1  ;;  %v26813_v9 = vld [vmem:[#allocation203_spill] sm:$0xff] }
 0x3a8   : > { %16246 = vmatmul.mubr.msk.f32.gmra.mrb[146].mxu0 %vm1446_vm4, %v26806_v1  ;;  %8761 = vst.msk [vmem:[#allocation2 + $0x30] sm:$0xff] %vm1446_vm4, %v5640_v16  ;;  %14275 = vst.msk [vmem:[%s22275_s24 + $0x108] sm:$0xff] %vm1446_vm4, %v5640_v16  ;;  %v4854_v39 = vadd.f32 %v4822_v31, %v26807_v6  ;;  %v4787_v8 = vmul.f32 %v16870_v21, %v22199_v27  ;;  %v4786_v16 = vmul.f32 %v16871_v0, %v22199_v27  ;;  %v26810_v31 = vld [vmem:[#allocation50_spill] sm:$0xff]  ;;  %v26811_v21 = vld [vmem:[#allocation45_spill] sm:$0xff]  ;;  %v4616_v41 = vpop.f32.mrb[7].mxu1 }
 0x3a9   : > { %16248 = vmatprep.mubr.msk.f32.mxu0 %vm1446_vm4, %v26808_v51  ;;  %8760 = vst.msk [vmem:[#allocation2 + $0x28] sm:$0xff] %vm1446_vm4, %v5639_v25  ;;  %14274 = vst.msk [vmem:[%s22275_s24 + $0x100] sm:$0xff] %vm1446_vm4, %v5639_v25  ;;  %v4853_v26 = vadd.f32 %v4821_v13, %v26809_v49  ;;  %v7816_v6 = vrot.slane %v26810_v31, 7  ;;  %v16872_v54 = vadd.f32 %v15929_v42, %v26813_v9  ;;  %v26815_v13 = vld [vmem:[#allocation251_spill] sm:$0xff]  ;;  %v26816_v31 = vld [vmem:[#allocation246_spill] sm:$0xff] }
 0x3aa   : > { %v5642_v63 = vadd.f32 %v26812_v22, %v4854_v39  ;;  %13054 = vst.msk [vmem:[%s22275_s24 + $0x18] sm:$0xff] %vm1446_vm4, %v4854_v39  ;;  %v4824_v28 = vadd.f32 %v22238_v30, %v4787_v8  ;;  %v4823_v0 = vadd.f32 %v22238_v30, %v4786_v16  ;;  %v16873_v36 = vadd.f32 %v4616_v41, %v26816_v31  ;;  %v26817_v1 = vld [vmem:[#allocation51_spill] sm:$0xff]  ;;  %v22381_v9 = vld [vmem:[%s25398_s11 + $0x48] sm:$0xff]  ;;  %v26851_v51 = vld [vmem:[#allocation9_spill] sm:$0xff] }
 0x3ab   : > { %v5641_v49 = vadd.f32 %v26815_v13, %v4853_v26  ;;  %13053 = vst.msk [vmem:[%s22275_s24 + $0x10] sm:$0xff] %vm1446_vm4, %v4853_v26  ;;  %v26818_v22 = vrot.slane %v22289_v23, 1  ;;  %v26819_v39 = vrot.slane %v22306_v19, 1  ;;  %26821 = vst [vmem:[#allocation62_spill] sm:$0xff] %v22381_v9  ;;  %v26822_v41 = vld [vmem:[#allocation163_spill] sm:$0xff]  ;;  %v4789_v16 = vmul.f32 %v16872_v54, %v22199_v27  ;;  %v26823_v42 = vld [vmem:[#allocation272_spill] sm:$0xff] }
 0x3ac   : > { %16249 = vmatmul.mubr.msk.f32.gmra.mrb[148].mxu0 %vm1446_vm4, %v26817_v1  ;;  %8763 = vst.msk [vmem:[#allocation2 + $0x50] sm:$0xff] %vm1446_vm4, %v5642_v63  ;;  %14277 = vst.msk [vmem:[%s22275_s24 + $0x118] sm:$0xff] %vm1446_vm4, %v5642_v63  ;;  %v4856_v26 = vadd.f32 %v4824_v28, %v26822_v41  ;;  %v26824_v13 = vrot.slane %v22326_v58, 1  ;;  %v26825_v31 = vrot.slane %v22321_v24, 1  ;;  %v22401_v63 = vld [vmem:[%s25398_s11 + $0x40] sm:$0xff]  ;;  %v4788_v41 = vmul.f32 %v16873_v36, %v22199_v27  ;;  %v26852_v58 = vld [vmem:[#allocation257_spill] sm:$0xff] }
 0x3ad   : > { %v22376_v8 = vsel %vm2769_vm6, %v26819_v39, %v26818_v22  ;;  %16251 = vmatprep.mubr.msk.f32.mxu0 %vm1446_vm4, %v26823_v42  ;;  %26828 = vst [vmem:[#allocation64_spill] sm:$0xff] %v22401_v63  ;;  %8762 = vst.msk [vmem:[#allocation2 + $0x48] sm:$0xff] %vm1446_vm4, %v5641_v49  ;;  %v26829_v54 = vld [vmem:[#allocation167_spill] sm:$0xff]  ;;  %v15932_v42 = vpop.f32.mrb[8].mxu1  ;;  %v4826_v5 = vadd.f32 %v22238_v30, %v4789_v16  ;;  %v26838_v16 = vld [vmem:[#allocation172_spill] sm:$0xff] }
 0x3ae   : > { %26820 = vst [vmem:[#allocation223_spill] sm:$0xff] %v22376_v8  ;;  %v22395_v22 = vsel %vm2769_vm6, %v26825_v31, %v26824_v13  ;;  %14276 = vst.msk [vmem:[%s22275_s24 + $0x110] sm:$0xff] %vm1446_vm4, %v5641_v49  ;;  %v4855_v28 = vadd.f32 %v4823_v0, %v26829_v54  ;;  %v26830_v13 = vrot.slane %v26811_v21, 7  ;;  %v26833_v43 = vld [vmem:[#allocation195_spill] sm:$0xff]  ;;  %v26834_v49 = vld [vmem:[#allocation33_spill] sm:$0xff]  ;;  %v4626_v0 = vpop.f32.mrb[9].mxu1 }
 0x3af   : > { %26826 = vst [vmem:[#allocation63_spill] sm:$0xff] %v22395_v22  ;;  %v5644_v48 = vadd.f32 %v26833_v43, %v4856_v26  ;;  %13056 = vst.msk [vmem:[%s22275_s24 + $0x28] sm:$0xff] %vm1446_vm4, %v4856_v26  ;;  %v16874_v52 = vadd.f32 %v15932_v42, %v26834_v49  ;;  %v26835_v54 = vld [vmem:[#allocation261_spill] sm:$0xff]  ;;  %v4858_v42 = vadd.f32 %v4826_v5, %v26838_v16  ;;  %v26840_v5 = vld [vmem:[#allocation176_spill] sm:$0xff] }
 0x3b0   : > { %v22411_v31 = vsel %vm2381_vm5, %v7816_v6, %v26830_v13  ;;  %v5643_v55 = vadd.f32 %v26835_v54, %v4855_v28  ;;  %13055 = vst.msk [vmem:[%s22275_s24 + $0x20] sm:$0xff] %vm1446_vm4, %v4855_v28  ;;  %v4825_v6 = vadd.f32 %v22238_v30, %v4788_v41  ;;  %v26836_v13 = vld [vmem:[#allocation248_spill] sm:$0xff]  ;;  %16252 = vmatmul.mubr.msk.f32.gmra.mrb[150].mxu0 %vm1446_vm4, %v26837_v50  ;;  %v22427_v43 = vld [vmem:[#allocation2 + $0x30] sm:$0xff]  ;;  %v26841_v36 = vld [vmem:[#allocation263_spill] sm:$0xff] }
 0x3b1   : > { %26831 = vst [vmem:[#allocation230_spill] sm:$0xff] %v22411_v31  ;;  %v16875_v1 = vadd.f32 %v4626_v0, %v26836_v13  ;;  %8765 = vst.msk [vmem:[#allocation2 + $0x70] sm:$0xff] %vm1446_vm4, %v5644_v48  ;;  %v4791_v28 = vmul.f32 %v16874_v52, %v22199_v27  ;;  %v26839_v49 = vld [vmem:[#allocation65_spill] sm:$0xff]  ;;  %v22437_v41 = vld [vmem:[#allocation2 + $0x28] sm:$0xff]  ;;  %v22440_v0 = vrot.slane %v22427_v43, 1  ;;  %v9110_v54 = vrot.slane %v22427_v43, 2 }
 0x3b2   : > { %14279 = vst.msk [vmem:[%s22275_s24 + $0x128] sm:$0xff] %vm1446_vm4, %v5644_v48  ;;  %16254 = vmatprep.mubr.msk.f32.mxu0 %vm1446_vm4, %v26839_v49  ;;  %10040 = vst.msk [vmem:[#allocation2 + $0x30] sm:$0xff] %vm1446_vm4, %v26674_v37  ;;  %v4857_v52 = vadd.f32 %v4825_v6, %v26840_v5  ;;  %v15935_v13 = vpop.f32.mrb[10].mxu1  ;;  %v22451_v16 = vrot.slane %v22437_v41, 1  ;;  %v22454_v26 = vrot.slane %v22437_v41, 2  ;;  %v5646_v49 = vadd.f32 %v26841_v36, %v4858_v42  ;;  %v26842_v6 = vld [vmem:[#allocation26_spill] sm:$0xff] }
 0x3b3   : > { %8764 = vst.msk [vmem:[#allocation2 + $0x68] sm:$0xff] %vm1446_vm4, %v5643_v55  ;;  %14278 = vst.msk [vmem:[%s22275_s24 + $0x120] sm:$0xff] %vm1446_vm4, %v5643_v55  ;;  %v4790_v48 = vmul.f32 %v16875_v1, %v22199_v27  ;;  %v4828_v55 = vadd.f32 %v22238_v30, %v4791_v28  ;;  %v16876_v5 = vadd.f32 %v15935_v13, %v26842_v6  ;;  %v4636_v1 = vpop.f32.mrb[11].mxu1  ;;  %v26844_v24 = vld [vmem:[#allocation47_spill] sm:$0xff]  ;;  %v26845_v63 = vld [vmem:[#allocation276_spill] sm:$0xff] }
 0x3b4   : > { %10039 = vst.msk [vmem:[#allocation2 + $0x28] sm:$0xff] %vm1446_vm4, %v26674_v37  ;;  %13058 = vst.msk [vmem:[%s22275_s24 + $0x38] sm:$0xff] %vm1446_vm4, %v4858_v42  ;;  %v22465_v50 = vadd.f32 %v22440_v0, %v22427_v43  ;;  %v5645_v20 = vadd.f32 %v26843_v44, %v4857_v52  ;;  %v16877_v36 = vadd.f32 %v4636_v1, %v26844_v24  ;;  %16255 = vmatmul.mubr.msk.f32.gmra.mrb[152].mxu0 %vm1446_vm4, %v26845_v63  ;;  %v22474_v42 = vld [vmem:[#allocation2 + $0x50] sm:$0xff]  ;;  %v26847_v24 = vld [vmem:[#allocation11_spill] sm:$0xff] }
 0x3b5   : > { %13057 = vst.msk [vmem:[%s22275_s24 + $0x30] sm:$0xff] %vm1446_vm4, %v4857_v52  ;;  %v4827_v3 = vadd.f32 %v22238_v30, %v4790_v48  ;;  %v22479_v28 = vsel %vm2769_vm6, %v22451_v16, %v22440_v0  ;;  %8767 = vst.msk [vmem:[#allocation2 + $0x90] sm:$0xff] %vm1446_vm4, %v5646_v49  ;;  %v26846_v44 = vld [vmem:[#allocation185_spill] sm:$0xff]  ;;  %v4793_v48 = vmul.f32 %v16876_v5, %v22199_v27  ;;  %16257 = vmatprep.mubr.msk.f32.mxu0 %vm1446_vm4, %v26847_v24  ;;  %v22488_v13 = vld [vmem:[#allocation2 + $0x48] sm:$0xff] }
 0x3b6   : > { %14281 = vst.msk [vmem:[%s22275_s24 + $0x138] sm:$0xff] %vm1446_vm4, %v5646_v49  ;;  %v4860_v52 = vadd.f32 %v4828_v55, %v26846_v44  ;;  %v22491_v6 = vrot.slane %v22474_v42, 1  ;;  %v9044_v1 = vadd.f32 %v22479_v28, %v22437_v41  ;;  %10044 = vst.msk [vmem:[#allocation2 + $0x50] sm:$0xff] %vm1446_vm4, %v26674_v37  ;;  %v26848_v49 = vld [vmem:[#allocation187_spill] sm:$0xff]  ;;  %v4792_v5 = vmul.f32 %v16877_v36, %v22199_v27  ;;  %v15938_v44 = vpop.f32.mrb[12].mxu1  ;;  %v26859_v40 = vld [vmem:[#allocation57_spill] sm:$0xff] }
 0x3b7   : > { %8766 = vst.msk [vmem:[#allocation2 + $0x88] sm:$0xff] %vm1446_vm4, %v5645_v20  ;;  %14280 = vst.msk [vmem:[%s22275_s24 + $0x130] sm:$0xff] %vm1446_vm4, %v5645_v20  ;;  %v4859_v55 = vadd.f32 %v4827_v3, %v26848_v49  ;;  %v22503_v24 = vrot.slane %v22488_v13, 1  ;;  %v22507_v63 = vsel %vm1088_vm1, %v22454_v26, %v9110_v54  ;;  %v26849_v9 = vld [vmem:[#allocation271_spill] sm:$0xff]  ;;  %v4830_v3 = vadd.f32 %v22238_v30, %v4793_v48  ;;  %v26850_v20 = vld [vmem:[#allocation252_spill] sm:$0xff]  ;;  %v4646_v49 = vpop.f32.mrb[13].mxu1 }
 0x3b8   : > { %10043 = vst.msk [vmem:[#allocation2 + $0x48] sm:$0xff] %vm1446_vm4, %v26674_v37  ;;  %v5648_v31 = vadd.f32 %v26849_v9, %v4860_v52  ;;  %13060 = vst.msk [vmem:[%s22275_s24 + $0x48] sm:$0xff] %vm1446_vm4, %v4860_v52  ;;  %v16878_v36 = vadd.f32 %v15938_v44, %v26850_v20  ;;  %v9048_v21 = vadd.f32 %v22491_v6, %v22474_v42  ;;  %v26853_v9 = vld [vmem:[#allocation75_spill] sm:$0xff]  ;;  %v22525_v52 = vld [vmem:[#allocation2 + $0x70] sm:$0xff] }
 0x3b9   : > { %v5647_v39 = vadd.f32 %v26851_v51, %v4859_v55  ;;  %13059 = vst.msk [vmem:[%s22275_s24 + $0x40] sm:$0xff] %vm1446_vm4, %v4859_v55  ;;  %v4829_v19 = vadd.f32 %v22238_v30, %v4792_v5  ;;  %v16879_v22 = vadd.f32 %v4646_v49, %v26852_v58  ;;  %16258 = vmatmul.mubr.msk.f32.gmra.mrb[154].mxu0 %vm1446_vm4, %v26853_v9  ;;  %v26854_v51 = vld [vmem:[#allocation191_spill] sm:$0xff]  ;;  %v26855_v58 = vld [vmem:[#allocation137_spill] sm:$0xff]  ;;  %v26856_v49 = vrot.slane %v26776_v15, 2  ;;  %v26860_v25 = vld [vmem:[#allocation100_spill] sm:$0xff] }
 0x3ba   : > { %v22530_v48 = vsel %vm2769_vm6, %v22503_v24, %v22491_v6  ;;  %8769 = vst.msk [vmem:[#allocation2 + $0xb0] sm:$0xff] %vm1446_vm4, %v5648_v31  ;;  %14283 = vst.msk [vmem:[%s22275_s24 + $0x148] sm:$0xff] %vm1446_vm4, %v5648_v31  ;;  %v4862_v55 = vadd.f32 %v4830_v3, %v26854_v51  ;;  %v4795_v5 = vmul.f32 %v16878_v36, %v22199_v27  ;;  %16260 = vmatprep.mubr.msk.f32.mxu0 %vm1446_vm4, %v26855_v58  ;;  %v22539_v44 = vld [vmem:[#allocation2 + $0x68] sm:$0xff]  ;;  %v26857_v31 = vld [vmem:[#allocation193_spill] sm:$0xff]  ;;  %v15941_v51 = vpop.f32.mrb[14].mxu1 }
 0x3bb   : > { %v9047_v20 = vadd.f32 %v22530_v48, %v22488_v13  ;;  %v22546_v9 = vsel %vm1088_vm1, %v9110_v54, %v26856_v49  ;;  %10048 = vst.msk [vmem:[#allocation2 + $0x70] sm:$0xff] %vm1446_vm4, %v26674_v37  ;;  %8768 = vst.msk [vmem:[#allocation2 + $0xa8] sm:$0xff] %vm1446_vm4, %v5647_v39  ;;  %v4861_v3 = vadd.f32 %v4829_v19, %v26857_v31  ;;  %v22556_v58 = vrot.slane %v22488_v13, 2  ;;  %v26858_v54 = vld [vmem:[#allocation184_spill] sm:$0xff]  ;;  %v4656_v31 = vpop.f32.mrb[15].mxu1  ;;  %v26861_v57 = vld [vmem:[#allocation275_spill] sm:$0xff] }
 0x3bc   : > { %14282 = vst.msk [vmem:[%s22275_s24 + $0x140] sm:$0xff] %vm1446_vm4, %v5647_v39  ;;  %v4794_v36 = vmul.f32 %v16879_v22, %v22199_v27  ;;  %v9115_v15 = vrot.slane %v22474_v42, 2  ;;  %10047 = vst.msk [vmem:[#allocation2 + $0x68] sm:$0xff] %vm1446_vm4, %v26674_v37  ;;  %v5650_v49 = vadd.f32 %v26858_v54, %v4862_v55  ;;  %v4832_v39 = vadd.f32 %v22238_v30, %v4795_v5  ;;  %v26862_v32 = vld [vmem:[#allocation13_spill] sm:$0xff] }
 0x3bd   : > { %13062 = vst.msk [vmem:[%s22275_s24 + $0x58] sm:$0xff] %vm1446_vm4, %v4862_v55  ;;  %v16880_v19 = vadd.f32 %v15941_v51, %v26859_v40  ;;  %v9236_v22 = vadd.f32 %v22507_v63, %v9044_v1  ;;  %v5649_v23 = vadd.f32 %v26860_v25, %v4861_v3  ;;  %13061 = vst.msk [vmem:[%s22275_s24 + $0x50] sm:$0xff] %vm1446_vm4, %v4861_v3  ;;  %16261 = vmatmul.mubr.msk.f32.gmra.mrb[156].mxu0 %vm1446_vm4, %v26862_v32  ;;  %v22578_v40 = vld [vmem:[#allocation2 + $0x90] sm:$0xff]  ;;  %v26863_v25 = vld [vmem:[#allocation194_spill] sm:$0xff] }
 0x3be   : > { %v4831_v8 = vadd.f32 %v22238_v30, %v4794_v36  ;;  %v16881_v10 = vadd.f32 %v4656_v31, %v26861_v57  ;;  %v22576_v55 = vsel %vm1088_vm1, %v22556_v58, %v9115_v15  ;;  %8771 = vst.msk [vmem:[#allocation2 + $0xd0] sm:$0xff] %vm1446_vm4, %v5650_v49  ;;  %14285 = vst.msk [vmem:[%s22275_s24 + $0x158] sm:$0xff] %vm1446_vm4, %v5650_v49  ;;  %v26864_v3 = vld [vmem:[#allocation289_spill] sm:$0xff]  ;;  %v26865_v57 = vrot.slane %v26790_v18, 2  ;;  %v22594_v54 = vld [vmem:[#allocation2 + $0x88] sm:$0xff] }
 0x3bf   : > { %v4864_v1 = vadd.f32 %v4832_v39, %v26863_v25  ;;  %v4797_v5 = vmul.f32 %v16880_v19, %v22199_v27  ;;  %16263 = vmatprep.mubr.msk.f32.mxu0 %vm1446_vm4, %v26864_v3  ;;  %v9237_v51 = vadd.f32 %v22546_v9, %v22465_v50  ;;  %10052 = vst.msk [vmem:[#allocation2 + $0x90] sm:$0xff] %vm1446_vm4, %v26674_v37  ;;  %8770 = vst.msk [vmem:[#allocation2 + $0xc8] sm:$0xff] %vm1446_vm4, %v5649_v23  ;;  %v26866_v49 = vld [vmem:[#allocation197_spill] sm:$0xff]  ;;  %v15944_v19 = vpop.f32.mrb[16].mxu1  ;;  %v26867_v50 = vld [vmem:[#allocation183_spill] sm:$0xff] }
 0x3c0   : > { %v22590_v36 = vsel %vm1088_vm1, %v9115_v15, %v26865_v57  ;;  %14284 = vst.msk [vmem:[%s22275_s24 + $0x150] sm:$0xff] %vm1446_vm4, %v5649_v23  ;;  %v4863_v39 = vadd.f32 %v4831_v8, %v26866_v49  ;;  %v4796_v18 = vmul.f32 %v16881_v10, %v22199_v27  ;;  %v9239_v15 = vadd.f32 %v22576_v55, %v9047_v20  ;;  %v26868_v23 = vld [vmem:[#allocation10_spill] sm:$0xff]  ;;  %v4666_v8 = vpop.f32.mrb[17].mxu1  ;;  %v26870_v32 = vld [vmem:[#allocation71_spill] sm:$0xff] }
 0x3c1   : > { %v9240_v31 = vadd.f32 %v22590_v36, %v9048_v21  ;;  %10051 = vst.msk [vmem:[#allocation2 + $0x88] sm:$0xff] %vm1446_vm4, %v26674_v37  ;;  %v5652_v25 = vadd.f32 %v26867_v50, %v4864_v1  ;;  %13064 = vst.msk [vmem:[%s22275_s24 + $0x68] sm:$0xff] %vm1446_vm4, %v4864_v1  ;;  %v4834_v57 = vadd.f32 %v22238_v30, %v4797_v5  ;;  %v26869_v49 = vld [vmem:[#allocation182_spill] sm:$0xff]  ;;  %v26871_v50 = vld [vmem:[#allocation44_spill] sm:$0xff] }
 0x3c2   : > { %v16882_v3 = vadd.f32 %v15944_v19, %v26868_v23  ;;  %v9281_v10 = vadd.f32 %v22270_v38, %v22437_v41  ;;  %v5651_v20 = vadd.f32 %v26869_v49, %v4863_v39  ;;  %13063 = vst.msk [vmem:[%s22275_s24 + $0x60] sm:$0xff] %vm1446_vm4, %v4863_v39  ;;  %v4833_v21 = vadd.f32 %v22238_v30, %v4796_v18  ;;  %v26872_v1 = vld [vmem:[#allocation209_spill] sm:$0xff]  ;;  %v26873_v38 = vld [vmem:[#allocation18_spill] sm:$0xff]  ;;  %v26874_v18 = vld [vmem:[#allocation131_spill] sm:$0xff] }
 0x3c3   : > { %v16883_v7 = vadd.f32 %v4666_v8, %v26870_v32  ;;  %16264 = vmatmul.mubr.msk.f32.gmra.mrb[158].mxu0 %vm1446_vm4, %v26871_v50  ;;  %v9282_v5 = vadd.f32 %v26872_v1, %v22427_v43  ;;  %v22623_v19 = vld [vmem:[#allocation2 + $0xb0] sm:$0xff]  ;;  %8773 = vst.msk [vmem:[#allocation2 + $0xf0] sm:$0xff] %vm1446_vm4, %v5652_v25  ;;  %14287 = vst.msk [vmem:[%s22275_s24 + $0x168] sm:$0xff] %vm1446_vm4, %v5652_v25  ;;  %v4866_v41 = vadd.f32 %v4834_v57, %v26873_v38  ;;  %v22634_v8 = vld [vmem:[#allocation2 + $0xa8] sm:$0xff]  ;;  %v15947_v57 = vpop.f32.mrb[18].mxu1 }
 0x3c4   : > { %v4799_v39 = vmul.f32 %v16882_v3, %v22199_v27  ;;  %16268 = vmatprep.mubr.msk.f32.mxu0 %vm1446_vm4, %v26874_v18  ;;  %v9284_v32 = vadd.f32 %v9236_v22, %v22488_v13  ;;  %v9285_v23 = vadd.f32 %v9237_v51, %v22474_v42  ;;  %10056 = vst.msk [vmem:[#allocation2 + $0xb0] sm:$0xff] %vm1446_vm4, %v26674_v37  ;;  %8772 = vst.msk [vmem:[#allocation2 + $0xe8] sm:$0xff] %vm1446_vm4, %v5651_v20  ;;  %v26875_v43 = vld [vmem:[#allocation202_spill] sm:$0xff]  ;;  %v26876_v51 = vld [vmem:[#allocation36_spill] sm:$0xff] }
 0x3c5   : > { %14286 = vst.msk [vmem:[%s22275_s24 + $0x160] sm:$0xff] %vm1446_vm4, %v5651_v20  ;;  %v4865_v25 = vadd.f32 %v4833_v21, %v26875_v43  ;;  %v4798_v3 = vmul.f32 %v16883_v7, %v22199_v27  ;;  %v22644_v49 = vadd.f32 %v9239_v15, %v22539_v44  ;;  %v22647_v22 = vadd.f32 %v9240_v31, %v22525_v52  ;;  %v26877_v21 = vld [vmem:[#allocation278_spill] sm:$0xff]  ;;  %v4676_v7 = vpop.f32.mrb[19].mxu1  ;;  %v22659_v15 = vld [vmem:[%s25395_s8 + $0x88] sm:$0xff] }
 0x3c6   : > { %10055 = vst.msk [vmem:[#allocation2 + $0xa8] sm:$0xff] %vm1446_vm4, %v26674_v37  ;;  %v5654_v1 = vadd.f32 %v26876_v51, %v4866_v41  ;;  %13066 = vst.msk [vmem:[%s22275_s24 + $0x78] sm:$0xff] %vm1446_vm4, %v4866_v41  ;;  %v4836_v20 = vadd.f32 %v22238_v30, %v4799_v39  ;;  %v16884_v38 = vadd.f32 %v15947_v57, %v26877_v21  ;;  %v26879_v18 = vld [vmem:[#allocation204_spill] sm:$0xff]  ;;  %v26881_v39 = vld [vmem:[#allocation135_spill] sm:$0xff] }
 0x3c7   : > { %26878 = vst [vmem:[#allocation69_spill] sm:$0xff] %v22659_v15  ;;  %v9337_v31 = vadd.f32 %v9281_v10, %v22479_v28  ;;  %v5653_v43 = vadd.f32 %v26879_v18, %v4865_v25  ;;  %13065 = vst.msk [vmem:[%s22275_s24 + $0x70] sm:$0xff] %vm1446_vm4, %v4865_v25  ;;  %v4835_v51 = vadd.f32 %v22238_v30, %v4798_v3  ;;  %v26880_v50 = vld [vmem:[#allocation12_spill] sm:$0xff]  ;;  %16269 = vmatmul.mubr.msk.f32.vlgmr.msra.gmra.mrb[128].mxu0 %vm1446_vm4, %v26881_v39  ;;  %v22670_v21 = vld [vmem:[#allocation2 + $0xd0] sm:$0xff] }
 0x3c8   : > { %v16885_v41 = vadd.f32 %v4676_v7, %v26880_v50  ;;  %v9338_v57 = vadd.f32 %v9282_v5, %v22440_v0  ;;  %26882 = vst [vmem:[#allocation134_spill] sm:$0xff] %v22670_v21  ;;  %8775 = vst.msk [vmem:[#allocation2 + $0x110] sm:$0xff] %vm1446_vm4, %v5654_v1  ;;  %v26883_v28 = vld [vmem:[#allocation208_spill] sm:$0xff]  ;;  %v4801_v25 = vmul.f32 %v16884_v38, %v22199_v27  ;;  %v26884_v18 = vld [vmem:[#allocation215_spill] sm:$0xff]  ;;  %v22682_v0 = vrot.slane %v22539_v44, 1  ;;  %v15950_v7 = vpop.f32.mrb[20].mxu1 }
 0x3c9   : > { %14289 = vst.msk [vmem:[%s22275_s24 + $0x178] sm:$0xff] %vm1446_vm4, %v5654_v1  ;;  %v4868_v10 = vadd.f32 %v4836_v20, %v26883_v28  ;;  %16317 = vmatpush3.msra.mxu0 %v26884_v18  ;;  %v26885_v3 = vld [vmem:[#allocation136_spill] sm:$0xff]  ;;  %v9340_v50 = vadd.f32 %v9284_v32, %v22530_v48  ;;  %10060 = vst.msk [vmem:[#allocation2 + $0xd0] sm:$0xff] %vm1446_vm4, %v26674_v37  ;;  %v26887_v1 = vld [vmem:[#allocation115_spill] sm:$0xff]  ;;  %v9341_v32 = vadd.f32 %v9285_v23, %v22491_v6 }
 0x3ca   : > { %16271 = vmatprep.mubr.msk.f32.mxu0 %vm1446_vm4, %v26885_v3  ;;  %v22684_v5 = vld [vmem:[#allocation2 + $0xc8] sm:$0xff]  ;;  %8774 = vst.msk [vmem:[#allocation2 + $0x108] sm:$0xff] %vm1446_vm4, %v5653_v43  ;;  %14288 = vst.msk [vmem:[%s22275_s24 + $0x170] sm:$0xff] %vm1446_vm4, %v5653_v43  ;;  %v4867_v20 = vadd.f32 %v4835_v51, %v26887_v1  ;;  %v4800_v38 = vmul.f32 %v16885_v41, %v22199_v27  ;;  %16366 = vmatprep.subr.mxu0 %v22659_v15  ;;  %v26888_v28 = vld [vmem:[#allocation210_spill] sm:$0xff]  ;;  %v4686_v41 = vpop.f32.mrb[21].mxu1 }
 0x3cb   : > { %26886 = vst [vmem:[#allocation68_spill] sm:$0xff] %v22684_v5  ;;  %v9394_v39 = vadd.f32 %v9337_v31, %v22507_v63  ;;  %10059 = vst.msk [vmem:[#allocation2 + $0xc8] sm:$0xff] %vm1446_vm4, %v26674_v37  ;;  %v5656_v18 = vadd.f32 %v26888_v28, %v4868_v10  ;;  %v4838_v43 = vadd.f32 %v22238_v30, %v4801_v25  ;;  %v26889_v51 = vld [vmem:[#allocation81_spill] sm:$0xff]  ;;  %v26890_v15 = vld [vmem:[#allocation42_spill] sm:$0xff] }
 0x3cc   : > { %13068 = vst.msk [vmem:[%s22275_s24 + $0x88] sm:$0xff] %vm1446_vm4, %v4868_v10  ;;  %v16886_v3 = vadd.f32 %v15950_v7, %v26889_v51  ;;  %v9395_v1 = vadd.f32 %v9338_v57, %v22546_v9  ;;  %v5655_v21 = vadd.f32 %v26890_v15, %v4867_v20  ;;  %13067 = vst.msk [vmem:[%s22275_s24 + $0x80] sm:$0xff] %vm1446_vm4, %v4867_v20  ;;  %v26891_v23 = vld [vmem:[#allocation280_spill] sm:$0xff]  ;;  %v26892_v5 = vld [vmem:[#allocation139_spill] sm:$0xff] }
 0x3cd   : > { %v4837_v63 = vadd.f32 %v22238_v30, %v4800_v38  ;;  %v16887_v31 = vadd.f32 %v4686_v41, %v26891_v23  ;;  %16272 = vmatmul.mubr.msk.f32.gmra.mrb[130].mxu0 %vm1446_vm4, %v26892_v5  ;;  %v22712_v10 = vadd.f32 %v9340_v50, %v22576_v55  ;;  %v22714_v25 = vld [vmem:[#allocation2 + $0xf0] sm:$0xff]  ;;  %8777 = vst.msk [vmem:[#allocation2 + $0x130] sm:$0xff] %vm1446_vm4, %v5656_v18  ;;  %14291 = vst.msk [vmem:[%s22275_s24 + $0x188] sm:$0xff] %vm1446_vm4, %v5656_v18  ;;  %v26894_v20 = vld [vmem:[#allocation140_spill] sm:$0xff] }
 0x3ce   : > { %v26893_v9 = vld [vmem:[#allocation213_spill] sm:$0xff]  ;;  %v4803_v57 = vmul.f32 %v16886_v3, %v22199_v27  ;;  %16274 = vmatprep.mubr.msk.f32.mxu0 %vm1446_vm4, %v26894_v20  ;;  %v22724_v38 = vadd.f32 %v9341_v32, %v22590_v36  ;;  %v9442_v50 = vadd.f32 %v9394_v39, %v22488_v13  ;;  %v22727_v5 = vld [vmem:[#allocation2 + $0xe8] sm:$0xff]  ;;  %10064 = vst.msk [vmem:[#allocation2 + $0xf0] sm:$0xff] %vm1446_vm4, %v26674_v37  ;;  %8776 = vst.msk [vmem:[#allocation2 + $0x128] sm:$0xff] %vm1446_vm4, %v5655_v21 }
 0x3cf   : > { %v4870_v15 = vadd.f32 %v4838_v43, %v26893_v9  ;;  %14290 = vst.msk [vmem:[%s22275_s24 + $0x180] sm:$0xff] %vm1446_vm4, %v5655_v21  ;;  %v26895_v7 = vld [vmem:[#allocation217_spill] sm:$0xff]  ;;  %v4802_v18 = vmul.f32 %v16887_v31, %v22199_v27  ;;  %v15953_v43 = vpop.f32.mrb[22].mxu1  ;;  %v9443_v32 = vadd.f32 %v9395_v1, %v22474_v42  ;;  %v9336_v13 = vadd.f32 %v22284_v34, %v22451_v16  ;;  %v26896_v51 = vld [vmem:[#allocation87_spill] sm:$0xff]  ;;  %v26897_v1 = vld [vmem:[#allocation14_spill] sm:$0xff] }
 0x3d0   : > { %v4869_v28 = vadd.f32 %v4837_v63, %v26895_v7  ;;  %10063 = vst.msk [vmem:[#allocation2 + $0xe8] sm:$0xff] %vm1446_vm4, %v26674_v37  ;;  %v4840_v21 = vadd.f32 %v22238_v30, %v4803_v57  ;;  %v16888_v3 = vadd.f32 %v15953_v43, %v26896_v51  ;;  %v4696_v41 = vpop.f32.mrb[23].mxu1  ;;  %v9498_v63 = vadd.f32 %v9442_v50, %v22530_v48  ;;  %v26898_v31 = vld [vmem:[#allocation143_spill] sm:$0xff]  ;;  %v22755_v9 = vld [vmem:[#allocation2 + $0x110] sm:$0xff]  ;;  %v26899_v48 = vld [vmem:[#allocation218_spill] sm:$0xff] }
 0x3d1   : > { %v5658_v39 = vadd.f32 %v22131_v45, %v4870_v15  ;;  %13070 = vst.msk [vmem:[%s22275_s24 + $0x98] sm:$0xff] %vm1446_vm4, %v4870_v15  ;;  %v4839_v34 = vadd.f32 %v22238_v30, %v4802_v18  ;;  %v16889_v23 = vadd.f32 %v4696_v41, %v26897_v1  ;;  %16275 = vmatmul.mubr.msk.f32.gmra.mrb[132].mxu0 %vm1446_vm4, %v26898_v31  ;;  %v26900_v57 = vld [vmem:[#allocation144_spill] sm:$0xff]  ;;  %10068 = vst.msk [vmem:[#allocation2 + $0x110] sm:$0xff] %vm1446_vm4, %v26674_v37  ;;  %v15956_v43 = vpop.f32.mrb[24].mxu1 }
 0x3d2   : > { %v5657_v42 = vadd.f32 %v22139_v61, %v4869_v28  ;;  %13069 = vst.msk [vmem:[%s22275_s24 + $0x90] sm:$0xff] %vm1446_vm4, %v4869_v28  ;;  %v9499_v45 = vadd.f32 %v9443_v32, %v22491_v6  ;;  %v4872_v61 = vadd.f32 %v4840_v21, %v26899_v48  ;;  %v4805_v15 = vmul.f32 %v16888_v3, %v22199_v27  ;;  %v22766_v7 = vld [vmem:[#allocation2 + $0x108] sm:$0xff]  ;;  %v26901_v6 = vld [vmem:[#allocation123_spill] sm:$0xff]  ;;  %v26902_v21 = vld [vmem:[#allocation282_spill] sm:$0xff]  ;;  %v4706_v3 = vpop.f32.mrb[25].mxu1 }
 0x3d3   : > { %8779 = vst.msk [vmem:[#allocation2 + $0x150] sm:$0xff] %vm1446_vm4, %v5658_v39  ;;  %14293 = vst.msk [vmem:[%s22275_s24 + $0x198] sm:$0xff] %vm1446_vm4, %v5658_v39  ;;  %16277 = vmatprep.mubr.msk.f32.mxu0 %vm1446_vm4, %v26900_v57  ;;  %v9555_v20 = vadd.f32 %v9498_v63, %v22576_v55  ;;  %v9393_v50 = vadd.f32 %v9336_v13, %v22454_v26  ;;  %v4871_v28 = vadd.f32 %v4839_v34, %v26901_v6  ;;  %v26907_v48 = vld [vmem:[#allocation149_spill] sm:$0xff] }
 0x3d4   : > { %8778 = vst.msk [vmem:[#allocation2 + $0x148] sm:$0xff] %vm1446_vm4, %v5657_v42  ;;  %14292 = vst.msk [vmem:[%s22275_s24 + $0x190] sm:$0xff] %vm1446_vm4, %v5657_v42  ;;  %v4804_v18 = vmul.f32 %v16889_v23, %v22199_v27  ;;  %v9556_v32 = vadd.f32 %v9499_v45, %v22590_v36  ;;  %v22777_v55 = vrot.slane %v22525_v52, 1  ;;  %v5660_v13 = vadd.f32 %v22152_v35, %v4872_v61  ;;  %v26903_v42 = vld [vmem:[#allocation91_spill] sm:$0xff]  ;;  %v26904_v35 = vld [vmem:[#allocation148_spill] sm:$0xff] }
 0x3d5   : > { %10067 = vst.msk [vmem:[#allocation2 + $0x108] sm:$0xff] %vm1446_vm4, %v26674_v37  ;;  %13072 = vst.msk [vmem:[%s22275_s24 + $0xa8] sm:$0xff] %vm1446_vm4, %v4872_v61  ;;  %v4842_v39 = vadd.f32 %v22238_v30, %v4805_v15  ;;  %v16890_v51 = vadd.f32 %v15956_v43, %v26902_v21  ;;  %v22787_v41 = vmul.f32 %v22300_v14, %v9555_v20  ;;  %16278 = vmatmul.mubr.msk.f32.gmra.mrb[134].mxu0 %vm1446_vm4, %v26904_v35  ;;  %v22798_v31 = vld [vmem:[#allocation2 + $0x130] sm:$0xff]  ;;  %v26908_v15 = vld [vmem:[#allocation35_spill] sm:$0xff] }
 0x3d6   : > { %v5659_v36 = vadd.f32 %v22160_v47, %v4871_v28  ;;  %13071 = vst.msk [vmem:[%s22275_s24 + $0xa0] sm:$0xff] %vm1446_vm4, %v4871_v28  ;;  %v4841_v63 = vadd.f32 %v22238_v30, %v4804_v18  ;;  %v16891_v34 = vadd.f32 %v4706_v3, %v26903_v42  ;;  %v26905_v1 = vrot.slane %v22219_v2, 1  ;;  %8781 = vst.msk [vmem:[#allocation2 + $0x170] sm:$0xff] %vm1446_vm4, %v5660_v13  ;;  %v26906_v47 = vld [vmem:[#allocation222_spill] sm:$0xff]  ;;  %v22809_v2 = vld [vmem:[#allocation2 + $0x128] sm:$0xff]  ;;  %v15959_v18 = vpop.f32.mrb[26].mxu1 }
 0x3d7   : > { %14295 = vst.msk [vmem:[%s22275_s24 + $0x1a8] sm:$0xff] %vm1446_vm4, %v5660_v13  ;;  %v4874_v14 = vadd.f32 %v4842_v39, %v26906_v47  ;;  %v4807_v45 = vmul.f32 %v16890_v51, %v22199_v27  ;;  %16280 = vmatprep.mubr.msk.f32.mxu0 %vm1446_vm4, %v26907_v48  ;;  %v9859_v61 = vrot.slane %v22787_v41, 7  ;;  %v9441_v57 = vadd.f32 %v9393_v50, %v26908_v15  ;;  %v26909_v20 = vld [vmem:[#allocation225_spill] sm:$0xff]  ;;  %v26910_v39 = vld [vmem:[#allocation15_spill] sm:$0xff]  ;;  %v4716_v51 = vpop.f32.mrb[27].mxu1  ;;  %v26911_v42 = vld [vmem:[#allocation284_spill] sm:$0xff] }
 0x3d8   : > { %v9764_v23 = vmul.f32 %v26905_v1, %v9556_v32  ;;  %10072 = vst.msk [vmem:[#allocation2 + $0x130] sm:$0xff] %vm1446_vm4, %v26674_v37  ;;  %8780 = vst.msk [vmem:[#allocation2 + $0x168] sm:$0xff] %vm1446_vm4, %v5659_v36  ;;  %v4873_v6 = vadd.f32 %v4841_v63, %v26909_v20  ;;  %v4806_v28 = vmul.f32 %v16891_v34, %v22199_v27  ;;  %v26912_v35 = vld [vmem:[#allocation156_spill] sm:$0xff]  ;;  %v26927_v41 = vld [vmem:[#allocation235_spill] sm:$0xff] }
 0x3d9   : > { %14294 = vst.msk [vmem:[%s22275_s24 + $0x1a0] sm:$0xff] %vm1446_vm4, %v5659_v36  ;;  %v22821_v50 = vsel %vm2769_vm6, %v22682_v0, %v22777_v55  ;;  %10071 = vst.msk [vmem:[#allocation2 + $0x128] sm:$0xff] %vm1446_vm4, %v26674_v37  ;;  %v5662_v32 = vadd.f32 %v22167_v29, %v4874_v14  ;;  %v4844_v13 = vadd.f32 %v22238_v30, %v4807_v45  ;;  %16281 = vmatmul.mubr.msk.f32.gmra.mrb[136].mxu0 %vm1446_vm4, %v26912_v35  ;;  %v26915_v20 = vld [vmem:[#allocation228_spill] sm:$0xff] }
 0x3da   : > { %v9861_v43 = vrot.slane %v9764_v23, 7  ;;  %13074 = vst.msk [vmem:[%s22275_s24 + $0xb8] sm:$0xff] %vm1446_vm4, %v4874_v14  ;;  %v16892_v21 = vadd.f32 %v15959_v18, %v26910_v39  ;;  %v9497_v3 = vadd.f32 %v9441_v57, %v22503_v24  ;;  %v5661_v36 = vadd.f32 %v22188_v56, %v4873_v6  ;;  %13073 = vst.msk [vmem:[%s22275_s24 + $0xb0] sm:$0xff] %vm1446_vm4, %v4873_v6  ;;  %v22843_v1 = vld [vmem:[#allocation2 + $0x150] sm:$0xff]  ;;  %v26913_v56 = vld [vmem:[#allocation227_spill] sm:$0xff]  ;;  %v15962_v18 = vpop.f32.mrb[28].mxu1 }
 0x3db   : > { %v4843_v63 = vadd.f32 %v22238_v30, %v4806_v28  ;;  %v16893_v34 = vadd.f32 %v4716_v51, %v26911_v42  ;;  %8783 = vst.msk [vmem:[#allocation2 + $0x190] sm:$0xff] %vm1446_vm4, %v5662_v32  ;;  %14297 = vst.msk [vmem:[%s22275_s24 + $0x1b8] sm:$0xff] %vm1446_vm4, %v5662_v32  ;;  %v4876_v23 = vadd.f32 %v4844_v13, %v26913_v56  ;;  %v26914_v14 = vld [vmem:[#allocation243_spill] sm:$0xff]  ;;  %v22855_v57 = vld [vmem:[#allocation2 + $0x148] sm:$0xff]  ;;  %v22867_v32 = vrot.slane %v22539_v44, 2 }
 0x3dc   : > { %v22841_v29 = vsel %vm2381_vm5, %v9859_v61, %v9861_v43  ;;  %v4809_v47 = vmul.f32 %v16892_v21, %v22199_v27  ;;  %16283 = vmatprep.mubr.msk.f32.mxu0 %vm1446_vm4, %v26914_v14  ;;  %v9554_v45 = vadd.f32 %v9497_v3, %v22556_v58  ;;  %v9050_v48 = vadd.f32 %v22821_v50, %v22539_v44  ;;  %v26916_v21 = vld [vmem:[#allocation94_spill] sm:$0xff]  ;;  %v4726_v3 = vpop.f32.mrb[29].mxu1  ;;  %v26918_v35 = vld [vmem:[#allocation16_spill] sm:$0xff] }
 0x3dd   : > { %10076 = vst.msk [vmem:[#allocation2 + $0x150] sm:$0xff] %vm1446_vm4, %v26674_v37  ;;  %8782 = vst.msk [vmem:[#allocation2 + $0x188] sm:$0xff] %vm1446_vm4, %v5661_v36  ;;  %v4875_v6 = vadd.f32 %v4843_v63, %v26915_v20  ;;  %v4808_v28 = vmul.f32 %v16893_v34, %v22199_v27  ;;  %v9051_v43 = vadd.f32 %v22777_v55, %v22525_v52 }
 0x3de   : > { %14296 = vst.msk [vmem:[%s22275_s24 + $0x1b0] sm:$0xff] %vm1446_vm4, %v5661_v36  ;;  %10075 = vst.msk [vmem:[#allocation2 + $0x148] sm:$0xff] %vm1446_vm4, %v26674_v37  ;;  %v5664_v13 = vadd.f32 %v22191_v53, %v4876_v23  ;;  %v4846_v39 = vadd.f32 %v22238_v30, %v4809_v47  ;;  %v16894_v51 = vadd.f32 %v15962_v18, %v26916_v21  ;;  %v26917_v36 = vrot.slane %v22214_v11, 1  ;;  %v26919_v53 = vld [vmem:[#allocation157_spill] sm:$0xff]  ;;  %v26920_v11 = vld [vmem:[#allocation132_spill] sm:$0xff]  ;;  %v15965_v21 = vpop.f32.mrb[30].mxu1 }
 0x3df   : > { %13076 = vst.msk [vmem:[%s22275_s24 + $0xc8] sm:$0xff] %vm1446_vm4, %v4876_v23  ;;  %v5663_v42 = vadd.f32 %v22202_v17, %v4875_v6  ;;  %13075 = vst.msk [vmem:[%s22275_s24 + $0xc0] sm:$0xff] %vm1446_vm4, %v4875_v6  ;;  %v4845_v34 = vadd.f32 %v22238_v30, %v4808_v28  ;;  %v16895_v56 = vadd.f32 %v4726_v3, %v26918_v35  ;;  %16284 = vmatmul.mubr.msk.f32.gmra.mrb[138].mxu0 %vm1446_vm4, %v26919_v53  ;;  %v22886_v47 = vld [vmem:[#allocation2 + $0x170] sm:$0xff]  ;;  %v22897_v28 = vld [vmem:[#allocation2 + $0x168] sm:$0xff]  ;;  %v4736_v35 = vpop.f32.mrb[31].mxu1 }
 0x3e0   : > { %v9762_v63 = vmul.f32 %v26917_v36, %v9554_v45  ;;  %v9120_v23 = vrot.slane %v22525_v52, 2  ;;  %8785 = vst.msk [vmem:[#allocation2 + $0x1b0] sm:$0xff] %vm1446_vm4, %v5664_v13  ;;  %14299 = vst.msk [vmem:[%s22275_s24 + $0x1c8] sm:$0xff] %vm1446_vm4, %v5664_v13  ;;  %v4878_v17 = vadd.f32 %v4846_v39, %v26920_v11  ;;  %v4811_v14 = vmul.f32 %v16894_v51, %v22199_v27  ;;  %v26921_v45 = vld [vmem:[#allocation164_spill] sm:$0xff]  ;;  %v26922_v18 = vld [vmem:[#allocation234_spill] sm:$0xff] }
 0x3e1   : > { %16286 = vmatprep.mubr.msk.f32.mxu0 %vm1446_vm4, %v26921_v45  ;;  %v9343_v6 = vadd.f32 %v22644_v49, %v22821_v50  ;;  %10080 = vst.msk [vmem:[#allocation2 + $0x170] sm:$0xff] %vm1446_vm4, %v26674_v37  ;;  %8784 = vst.msk [vmem:[#allocation2 + $0x1a8] sm:$0xff] %vm1446_vm4, %v5663_v42  ;;  %v4877_v13 = vadd.f32 %v4845_v34, %v26922_v18  ;;  %v4810_v39 = vmul.f32 %v16895_v56, %v22199_v27  ;;  %v26926_v11 = vld [vmem:[#allocation200_spill] sm:$0xff]  ;;  %v26928_v45 = vld [vmem:[#allocation165_spill] sm:$0xff] }
 0x3e2   : > { %v9858_v20 = vrot.slane %v9762_v63, 7  ;;  %14298 = vst.msk [vmem:[%s22275_s24 + $0x1c0] sm:$0xff] %vm1446_vm4, %v5663_v42  ;;  %v22908_v51 = vsel %vm1088_vm1, %v22867_v32, %v9120_v23  ;;  %v26923_v49 = vrot.slane %v26795_v4, 2  ;;  %10079 = vst.msk [vmem:[#allocation2 + $0x168] sm:$0xff] %vm1446_vm4, %v26674_v37  ;;  %v5666_v36 = vadd.f32 %v22205_v62, %v4878_v17  ;;  %v26924_v42 = vld [vmem:[#allocation286_spill] sm:$0xff]  ;;  %v26925_v62 = vld [vmem:[#allocation97_spill] sm:$0xff] }
 0x3e3   : > { %13078 = vst.msk [vmem:[%s22275_s24 + $0xd8] sm:$0xff] %vm1446_vm4, %v4878_v17  ;;  %v4848_v63 = vadd.f32 %v22238_v30, %v4811_v14  ;;  %v16896_v34 = vadd.f32 %v15965_v21, %v26924_v42  ;;  %v5665_v56 = vadd.f32 %v22208_v60, %v4877_v13  ;;  %13077 = vst.msk [vmem:[%s22275_s24 + $0xd0] sm:$0xff] %vm1446_vm4, %v4877_v13  ;;  %16287 = vmatmul.mubr.msk.f32.gmra.mrb[140].mxu0 %vm1446_vm4, %v26926_v11  ;;  %v22935_v14 = vld [vmem:[#allocation2 + $0x190] sm:$0xff] }
 0x3e4   : > { %v22913_v3 = vsel %vm1088_vm1, %v9120_v23, %v26923_v49  ;;  %v22925_v4 = vsel %vm2381_vm5, %v9858_v20, %v9859_v61  ;;  %v4847_v53 = vadd.f32 %v22238_v30, %v4810_v39  ;;  %v16897_v23 = vadd.f32 %v4736_v35, %v26925_v62  ;;  %8787 = vst.msk [vmem:[#allocation2 + $0x1d0] sm:$0xff] %vm1446_vm4, %v5666_v36  ;;  %v26929_v13 = vld [vmem:[#allocation141_spill] sm:$0xff]  ;;  %v26932_v62 = vld [vmem:[#allocation20_spill] sm:$0xff] }
 0x3e5   : > { %v9242_v17 = vadd.f32 %v22908_v51, %v9050_v48  ;;  %14301 = vst.msk [vmem:[%s22275_s24 + $0x1d8] sm:$0xff] %vm1446_vm4, %v5666_v36  ;;  %v4880_v60 = vadd.f32 %v4848_v63, %v26927_v41  ;;  %v4813_v61 = vmul.f32 %v16896_v34, %v22199_v27  ;;  %16289 = vmatprep.mubr.msk.f32.mxu0 %vm1446_vm4, %v26928_v45  ;;  %v22947_v48 = vld [vmem:[#allocation2 + $0x188] sm:$0xff]  ;;  %10084 = vst.msk [vmem:[#allocation2 + $0x190] sm:$0xff] %vm1446_vm4, %v26674_v37  ;;  %v26930_v34 = vld [vmem:[#allocation174_spill] sm:$0xff] }
 0x3e6   : > { %v9243_v20 = vadd.f32 %v22913_v3, %v9051_v43  ;;  %v9344_v18 = vadd.f32 %v22647_v22, %v22777_v55  ;;  %8786 = vst.msk [vmem:[#allocation2 + $0x1c8] sm:$0xff] %vm1446_vm4, %v5665_v56  ;;  %14300 = vst.msk [vmem:[%s22275_s24 + $0x1d0] sm:$0xff] %vm1446_vm4, %v5665_v56  ;;  %v4879_v39 = vadd.f32 %v4847_v53, %v26929_v13  ;;  %v26935_v45 = vld [vmem:[#allocation175_spill] sm:$0xff]  ;;  %v26936_v13 = vld [vmem:[#allocation25_spill] sm:$0xff] }
 0x3e7   : > { %v4812_v21 = vmul.f32 %v16897_v23, %v22199_v27  ;;  %v9290_v49 = vadd.f32 %v9242_v17, %v22594_v54  ;;  %v9400_v43 = vadd.f32 %v9343_v6, %v22908_v51  ;;  %10083 = vst.msk [vmem:[#allocation2 + $0x188] sm:$0xff] %vm1446_vm4, %v26674_v37  ;;  %v5668_v22 = vadd.f32 %v22244_v33, %v4880_v60  ;;  %v22976_v56 = vld [vmem:[#allocation2 + $0x1b0] sm:$0xff] }
 0x3e8   : > { %13080 = vst.msk [vmem:[%s22275_s24 + $0xe8] sm:$0xff] %vm1446_vm4, %v4880_v60  ;;  %v4850_v36 = vadd.f32 %v22238_v30, %v4813_v61  ;;  %v9291_v63 = vadd.f32 %v9243_v20, %v22578_v40  ;;  %v9401_v42 = vadd.f32 %v9344_v18, %v22913_v3  ;;  %v5667_v27 = vadd.f32 %v22257_v46, %v4879_v39  ;;  %v26931_v46 = vld [vmem:[#allocation4_spill] sm:$0xff] }
 0x3e9   : > { %13079 = vst.msk [vmem:[%s22275_s24 + $0xe0] sm:$0xff] %vm1446_vm4, %v4879_v39  ;;  %v4849_v6 = vadd.f32 %v22238_v30, %v4812_v21  ;;  %16290 = vmatmul.mubr.msk.f32.gmra.mrb[142].mxu0 %vm1446_vm4, %v26930_v34  ;;  %v9445_v33 = vadd.f32 %v22712_v10, %v22539_v44  ;;  %v9446_v35 = vadd.f32 %v22724_v38, %v22525_v52  ;;  %8789 = vst.msk [vmem:[#allocation2 + $0x1f0] sm:$0xff] %vm1446_vm4, %v5668_v22  ;;  %v22990_v10 = vld [vmem:[#allocation2 + $0x1a8] sm:$0xff]  ;;  %v26933_v38 = vld [vmem:[#allocation5_spill] sm:$0xff] }
 0x3ea   : > { %14303 = vst.msk [vmem:[%s22275_s24 + $0x1e8] sm:$0xff] %vm1446_vm4, %v5668_v22  ;;  %v4882_v53 = vadd.f32 %v4850_v36, %v26931_v46  ;;  %16292 = vmatprep.mubr.msk.f32.mxu0 %vm1446_vm4, %v26932_v62  ;;  %v9043_v30 = vadd.f32 %v22451_v16, %v26791_v59  ;;  %v22987_v44 = vrot.slane %v22594_v54, 1  ;;  %v8957_v52 = vrot.slane %v22578_v40, 1  ;;  %10088 = vst.msk [vmem:[#allocation2 + $0x1b0] sm:$0xff] %vm1446_vm4, %v26674_v37  ;;  %v26934_v61 = vld [vmem:[#allocation56_spill] sm:$0xff] }
 0x3eb   : > { %8788 = vst.msk [vmem:[#allocation2 + $0x1e8] sm:$0xff] %vm1446_vm4, %v5667_v27  ;;  %14302 = vst.msk [vmem:[%s22275_s24 + $0x1e0] sm:$0xff] %vm1446_vm4, %v5667_v27  ;;  %v4881_v23 = vadd.f32 %v4849_v6, %v26933_v38  ;;  %v9501_v11 = vadd.f32 %v9445_v33, %v22821_v50  ;;  %v9502_v59 = vadd.f32 %v9446_v35, %v22777_v55  ;;  %v23001_v16 = vrot.slane %v22594_v54, 2  ;;  %v26938_v6 = vld [vmem:[#allocation268_spill] sm:$0xff] }
 0x3ec   : > { %10087 = vst.msk [vmem:[#allocation2 + $0x1a8] sm:$0xff] %vm1446_vm4, %v26674_v37  ;;  %v5670_v17 = vadd.f32 %v22262_v12, %v4882_v53  ;;  %13082 = vst.msk [vmem:[%s22275_s24 + $0xf8] sm:$0xff] %vm1446_vm4, %v4882_v53  ;;  %v9235_v41 = vadd.f32 %v22454_v26, %v9043_v30  ;;  %v8958_v60 = vsel %vm2769_vm6, %v22987_v44, %v8957_v52  ;;  %v23020_v26 = vld [vmem:[#allocation2 + $0x1d0] sm:$0xff]  ;;  %v9125_v21 = vrot.slane %v22578_v40, 2  ;;  %v26940_v53 = vld [vmem:[#allocation106_spill] sm:$0xff] }
 0x3ed   : > { %v9054_v50 = vadd.f32 %v8957_v52, %v22578_v40  ;;  %v5669_v55 = vadd.f32 %v26934_v61, %v4881_v23  ;;  %13081 = vst.msk [vmem:[%s22275_s24 + $0xf0] sm:$0xff] %vm1446_vm4, %v4881_v23  ;;  %16293 = vmatmul.mubr.msk.f32.gmra.mrb[144].mxu0 %vm1446_vm4, %v26935_v45  ;;  %v9558_v20 = vadd.f32 %v9501_v11, %v22908_v51  ;;  %v23029_v51 = vld [vmem:[#allocation2 + $0x1c8] sm:$0xff]  ;;  %10092 = vst.msk [vmem:[#allocation2 + $0x1d0] sm:$0xff] %vm1446_vm4, %v26674_v37  ;;  %v26942_v23 = vld [vmem:[#allocation99_spill] sm:$0xff] }
 0x3ee   : > { %v9559_v12 = vadd.f32 %v9502_v59, %v22913_v3  ;;  %v9053_v18 = vadd.f32 %v8958_v60, %v22594_v54  ;;  %8791 = vst.msk [vmem:[#allocation2 + $0x210] sm:$0xff] %vm1446_vm4, %v5670_v17  ;;  %14305 = vst.msk [vmem:[%s22275_s24 + $0x1f8] sm:$0xff] %vm1446_vm4, %v5670_v17  ;;  %16295 = vmatprep.mubr.msk.f32.mxu0 %vm1446_vm4, %v26936_v13  ;;  %v9283_v39 = vadd.f32 %v9235_v41, %v26908_v15  ;;  %v26937_v3 = vld [vmem:[#allocation54_spill] sm:$0xff]  ;;  %v26943_v59 = vld [vmem:[#allocation31_spill] sm:$0xff] }
 0x3ef   : > { %v9346_v22 = vadd.f32 %v9290_v49, %v8958_v60  ;;  %v9347_v36 = vadd.f32 %v9291_v63, %v8957_v52  ;;  %8790 = vst.msk [vmem:[#allocation2 + $0x208] sm:$0xff] %vm1446_vm4, %v5669_v55  ;;  %14304 = vst.msk [vmem:[%s22275_s24 + $0x1f0] sm:$0xff] %vm1446_vm4, %v5669_v55  ;;  %v23037_v27 = vmul.f32 %v26937_v3, %v9558_v20  ;;  %v26939_v34 = vrot.slane %v26938_v6, 1 }
 0x3f0   : > { %v9448_v35 = vadd.f32 %v9400_v43, %v22594_v54  ;;  %v9449_v49 = vadd.f32 %v9401_v42, %v22578_v40  ;;  %10091 = vst.msk [vmem:[#allocation2 + $0x1c8] sm:$0xff] %vm1446_vm4, %v26674_v37  ;;  %v9339_v63 = vadd.f32 %v9283_v39, %v22503_v24  ;;  %v9126_v46 = vsel %vm1088_vm1, %v23001_v16, %v9125_v21  ;;  %v23056_v11 = vld [vmem:[#allocation2 + $0x1f0] sm:$0xff] }
 0x3f1   : > { %v9767_v33 = vmul.f32 %v26939_v34, %v9559_v12  ;;  %v26941_v62 = vrot.slane %v26940_v53, 2  ;;  %v9046_v38 = vadd.f32 %v22503_v24, %v26908_v15  ;;  %16296 = vmatmul.mubr.msk.f32.gmra.mrb[146].mxu0 %vm1446_vm4, %v26942_v23  ;;  %v9864_v40 = vrot.slane %v23037_v27, 7  ;;  %10096 = vst.msk [vmem:[#allocation2 + $0x1f0] sm:$0xff] %vm1446_vm4, %v26674_v37  ;;  %v26944_v12 = vld [vmem:[#allocation38_spill] sm:$0xff]  ;;  %v26947_v34 = vld [vmem:[#allocation104_spill] sm:$0xff] }
 0x3f2   : > { %v9245_v43 = vadd.f32 %v9126_v46, %v9053_v18  ;;  %16298 = vmatprep.mubr.msk.f32.mxu0 %vm1446_vm4, %v26943_v59  ;;  %v9396_v17 = vadd.f32 %v9339_v63, %v22556_v58  ;;  %v9403_v41 = vadd.f32 %v9346_v22, %v9126_v46  ;;  %v9504_v55 = vadd.f32 %v9448_v35, %v8958_v60  ;;  %v23061_v45 = vld [vmem:[#allocation2 + $0x1e8] sm:$0xff]  ;;  %v26950_v53 = vld [vmem:[#allocation266_spill] sm:$0xff] }
 0x3f3   : > { %v9128_v30 = vsel %vm1088_vm1, %v9125_v21, %v26941_v62  ;;  %v9866_v54 = vrot.slane %v9767_v33, 7  ;;  %v9505_v20 = vadd.f32 %v9449_v49, %v8957_v52  ;;  %10095 = vst.msk [vmem:[#allocation2 + $0x1e8] sm:$0xff] %vm1446_vm4, %v26674_v37  ;;  %v9238_v13 = vadd.f32 %v22556_v58, %v9046_v38  ;;  %v26945_v21 = vld [vmem:[#allocation98_spill] sm:$0xff]  ;;  %v26948_v33 = vld [vmem:[#allocation223_spill] sm:$0xff] }
 0x3f4   : > { %v9246_v42 = vadd.f32 %v9128_v30, %v9054_v50  ;;  %v9404_v61 = vadd.f32 %v9347_v36, %v9128_v30  ;;  %v9293_v15 = vadd.f32 %v9245_v43, %v22634_v8  ;;  %v9444_v60 = vadd.f32 %v9396_v17, %v26944_v12 }
 0x3f5   : > { %v23068_v24 = vsel %vm2381_vm5, %v9864_v40, %v9866_v54  ;;  %v9561_v18 = vadd.f32 %v9504_v55, %v9126_v46  ;;  %v23077_v39 = vrot.slane %v22634_v8, 1  ;;  %16299 = vmatmul.mubr.msk.f32.gmra.mrb[148].mxu0 %vm1446_vm4, %v26945_v21  ;;  %v9562_v22 = vadd.f32 %v9505_v20, %v9128_v30  ;;  %v23086_v6 = vld [vmem:[#allocation2 + $0x210] sm:$0xff] }
 0x3f6   : > { %v9294_v50 = vadd.f32 %v9246_v42, %v22623_v19  ;;  %v8960_v36 = vrot.slane %v22623_v19, 1  ;;  %v23083_v3 = vrot.slane %v22634_v8, 2  ;;  %v9130_v52 = vrot.slane %v22623_v19, 2  ;;  %26946 = vst [vmem:[#allocation66_spill] sm:$0xff] %v23086_v6  ;;  %16301 = vmatprep.mubr.msk.f32.mxu0 %vm1446_vm4, %v26947_v34  ;;  %v23096_v46 = vld [vmem:[#allocation2 + $0x208] sm:$0xff]  ;;  %10100 = vst.msk [vmem:[#allocation2 + $0x210] sm:$0xff] %vm1446_vm4, %v26674_v37 }
 0x3f7   : > { %v9500_v58 = vadd.f32 %v9444_v60, %v22682_v0  ;;  %v23092_v35 = vmul.f32 %v26948_v33, %v9561_v18  ;;  %v9286_v49 = vadd.f32 %v9238_v13, %v26944_v12  ;;  %v9451_v63 = vadd.f32 %v9403_v41, %v22634_v8  ;;  %26949 = vst [vmem:[#allocation74_spill] sm:$0xff] %v23096_v46  ;;  %v26952_v41 = vld [vmem:[#allocation37_spill] sm:$0xff] }
 0x3f8   : > { %v26951_v62 = vrot.slane %v26950_v53, 1  ;;  %v8961_v38 = vsel %vm2769_vm6, %v23077_v39, %v8960_v36  ;;  %v9057_v23 = vadd.f32 %v8960_v36, %v22623_v19  ;;  %v9131_v54 = vsel %vm1088_vm1, %v23083_v3, %v9130_v52  ;;  %10099 = vst.msk [vmem:[#allocation2 + $0x208] sm:$0xff] %vm1446_vm4, %v26674_v37  ;;  %v26953_v20 = vld [vmem:[#allocation109_spill] sm:$0xff]  ;;  %v26956_v37 = vld [vmem:[#allocation120_spill] sm:$0xff] }
 0x3f9   : > { %v9557_v43 = vadd.f32 %v9500_v58, %v22867_v32  ;;  %v25863_v42 = vrot.slane %v23092_v35, 7  ;;  %v9342_v59 = vadd.f32 %v9286_v49, %v22682_v0  ;;  %v9056_v17 = vadd.f32 %v8961_v38, %v22634_v8  ;;  %16302 = vmatmul.mubr.msk.f32.gmra.mrb[150].mxu0 %vm1446_vm4, %v26952_v41 }
 0x3fa   : > { %v9770_v30 = vmul.f32 %v26951_v62, %v9562_v22  ;;  %v26954_v60 = vrot.slane %v26953_v20, 2  ;;  %v9349_v13 = vadd.f32 %v9293_v15, %v8961_v38  ;;  %v9350_v21 = vadd.f32 %v9294_v50, %v8960_v36  ;;  %v26955_v22 = vld [vmem:[#allocation103_spill] sm:$0xff]  ;;  %v26960_v20 = vld [vmem:[#allocation68_spill] sm:$0xff] }
 0x3fb   : > { %16304 = vmatprep.mubr.msk.f32.mxu0 %vm1446_vm4, %v26955_v22  ;;  %v26957_v34 = vrot.slane %v26956_v37, 1  ;;  %v9399_v33 = vadd.f32 %v9342_v59, %v22867_v32  ;;  %v9248_v49 = vadd.f32 %v9131_v54, %v9056_v17  ;;  %v9452_v15 = vadd.f32 %v9404_v61, %v22623_v19  ;;  %v26961_v22 = vld [vmem:[#allocation134_spill] sm:$0xff]  ;;  %v26962_v37 = vld [vmem:[#allocation108_spill] sm:$0xff] }
 0x3fc   : > { %v9871_v55 = vrot.slane %v9770_v30, 7  ;;  %v9133_v18 = vsel %vm1088_vm1, %v9130_v52, %v26954_v60  ;;  %v9406_v62 = vadd.f32 %v9349_v13, %v9131_v54  ;;  %v26959_v52 = vld [vmem:[#allocation260_spill] sm:$0xff]  ;;  %v9049_v17 = vadd.f32 %v22682_v0, %v26944_v12  ;;  %v26963_v13 = vld [vmem:[#allocation43_spill] sm:$0xff] }
 0x3fd   : > { %v9765_v58 = vmul.f32 %v26957_v34, %v9557_v43  ;;  %v9249_v8 = vadd.f32 %v9133_v18, %v9057_v23  ;;  %v9407_v30 = vadd.f32 %v9350_v21, %v9133_v18  ;;  %v9447_v41 = vadd.f32 %v9399_v33, %v26959_v52  ;;  %16305 = vmatmul.mubr.msk.f32.gmra.mrb[152].mxu0 %vm1446_vm4, %v26962_v37  ;;  %v26965_v33 = vld [vmem:[#allocation112_spill] sm:$0xff] }
 0x3fe   : > { %v23126_v53 = vsel %vm2381_vm5, %v25863_v42, %v9871_v55  ;;  %v9296_v60 = vadd.f32 %v9248_v49, %v26960_v20  ;;  %v9507_v23 = vadd.f32 %v9451_v63, %v8961_v38  ;;  %v9508_v59 = vadd.f32 %v9452_v15, %v8960_v36  ;;  %16307 = vmatprep.mubr.msk.f32.mxu0 %vm1446_vm4, %v26963_v13  ;;  %v26966_v49 = vld [vmem:[#allocation63_spill] sm:$0xff]  ;;  %v26970_v37 = vld [vmem:[#allocation220_spill] sm:$0xff]  ;;  %v26977_v42 = vld [vmem:[#allocation45_spill] sm:$0xff] }
 0x3ff   : > { %26958 = vst [vmem:[#allocation72_spill] sm:$0xff] %v23126_v53  ;;  %v9863_v50 = vrot.slane %v9765_v58, 7  ;;  %v9297_v43 = vadd.f32 %v9249_v8, %v26961_v22  ;;  %v23137_v55 = vrot.slane %v26960_v20, 1  ;;  %v9503_v61 = vadd.f32 %v9447_v41, %v22987_v44  ;;  %v26969_v41 = vld [vmem:[#allocation17_spill] sm:$0xff] }
 0x400   : > { %v8963_v21 = vrot.slane %v26961_v22, 1  ;;  %v23149_v36 = vrot.slane %v26960_v20, 2  ;;  %v9564_v63 = vadd.f32 %v9507_v23, %v9131_v54  ;;  %v9565_v0 = vadd.f32 %v9508_v59, %v9133_v18  ;;  %v26967_v54 = vld [vmem:[#allocation269_spill] sm:$0xff] }
 0x401   : > { %v23144_v19 = vsel %vm2381_vm5, %v9863_v50, %v9864_v40  ;;  %v9241_v12 = vadd.f32 %v22867_v32, %v9049_v17  ;;  %v9135_v38 = vrot.slane %v26961_v22, 2  ;;  %v9560_v34 = vadd.f32 %v9503_v61, %v23001_v16  ;;  %16308 = vmatmul.mubr.msk.f32.gmra.mrb[154].mxu0 %vm1446_vm4, %v26965_v33  ;;  %v26972_v17 = vld [vmem:[#allocation110_spill] sm:$0xff]  ;;  %v26994_v53 = vld [vmem:[#allocation69_spill] sm:$0xff] }
 0x402   : > { %26964 = vst [vmem:[#allocation22_spill] sm:$0xff] %v23144_v19  ;;  %v8964_v27 = vsel %vm2769_vm6, %v23137_v55, %v8963_v21  ;;  %v9060_v40 = vadd.f32 %v8963_v21, %v26961_v22  ;;  %v9353_v58 = vadd.f32 %v9297_v43, %v8963_v21  ;;  %v23160_v8 = vmul.f32 %v26966_v49, %v9564_v63 }
 0x403   : > { %v26968_v18 = vrot.slane %v26967_v54, 1  ;;  %v9289_v32 = vadd.f32 %v9241_v12, %v26959_v52  ;;  %v9059_v50 = vadd.f32 %v8964_v27, %v26960_v20  ;;  %16310 = vmatprep.mubr.msk.f32.mxu0 %vm1446_vm4, %v26969_v41  ;;  %v26971_v23 = vrot.slane %v26970_v37, 1 }
 0x404   : > { %v9136_v43 = vsel %vm1088_vm1, %v23149_v36, %v9135_v38  ;;  %v26973_v13 = vrot.slane %v26972_v17, 2  ;;  %v9352_v63 = vadd.f32 %v9296_v60, %v8964_v27  ;;  %v9454_v6 = vadd.f32 %v9406_v62, %v26960_v20  ;;  %v13976_v62 = vld [vmem:[%s25395_s8 + $0x98] sm:$0xff] }
 0x405   : > { %v9773_v15 = vmul.f32 %v26968_v18, %v9565_v0  ;;  %v9768_v59 = vmul.f32 %v26971_v23, %v9560_v34  ;;  %v25864_v0 = vrot.slane %v23160_v8, 7  ;;  %v9345_v12 = vadd.f32 %v9289_v32, %v22987_v44  ;;  %v26974_v34 = vld [vmem:[#allocation288_spill] sm:$0xff]  ;;  %v26980_v32 = vld [vmem:[#allocation230_spill] sm:$0xff]  ;;  %16416 = vmatprep.subr.mxu1 %v13976_v62 }
 0x406   : > { %v9138_v61 = vsel %vm1088_vm1, %v9135_v38, %v26973_v13  ;;  %v9251_v49 = vadd.f32 %v9136_v43, %v9059_v50  ;;  %v23177_v41 = vadd.f32 %v9352_v63, %v9136_v43  ;;  %16311 = vmatmul.mubr.msk.f32.gmra.mrb[156].mxu0 %vm1446_vm4, %v26974_v34  ;;  %v26975_v23 = vld [vmem:[#allocation48_spill] sm:$0xff]  ;;  %v26978_v38 = vrot.slane %v26977_v42, 7  ;;  %16417 = vmatpush3.msra.mxu1 %v13976_v62  ;;  %v26990_v62 = vld [vmem:[#allocation189_spill] sm:$0xff] }
 0x407   : > { %v9876_v33 = vrot.slane %v9773_v15, 7  ;;  %v9868_v54 = vrot.slane %v9768_v59, 7  ;;  %v9252_v18 = vadd.f32 %v9138_v61, %v9060_v40  ;;  %v23179_v37 = vadd.f32 %v9353_v58, %v9138_v61  ;;  %v23197_v58 = vld [vmem:[%s25398_s11 + $0x58] sm:$0xff]  ;;  %16313 = vmatprep.mubr.msk.f32.mxu0 %vm1446_vm4, %v26980_v32 }
 0x408   : > { %v26976_v17 = vrot.slane %v26975_v23, 7  ;;  %v9402_v40 = vadd.f32 %v9345_v12, %v23001_v16  ;;  %v26981_v50 = vrot.slane %v23092_v35, 7  ;;  %v9299_v13 = vadd.f32 %v9251_v49, %v22727_v5  ;;  %v26985_v12 = vld [vmem:[#allocation64_spill] sm:$0xff]  ;;  %v26988_v35 = vld [vmem:[#allocation113_spill] sm:$0xff] }
 0x409   : > { %v23191_v15 = vsel %vm2381_vm5, %v25864_v0, %v9876_v33  ;;  %v9300_v63 = vadd.f32 %v9252_v18, %v22714_v25  ;;  %v26983_v33 = vld [vmem:[#allocation62_spill] sm:$0xff]  ;;  %v26987_v0 = vld [vmem:[#allocation264_spill] sm:$0xff]  ;;  %v9455_v32 = vadd.f32 %v9407_v30, %v26961_v22  ;;  %v9142_v46 = vrot.slane %v26988_v35, 2 }
 0x40a   : > { %v7820_v60 = vsel %vm2381_vm5, %v26978_v38, %v26976_v17  ;;  %26979 = vst [vmem:[#allocation80_spill] sm:$0xff] %v23191_v15  ;;  %v23204_v59 = vsel %vm2381_vm5, %v9868_v54, %v26981_v50  ;;  %v26984_v34 = vrot.slane %v26983_v33, 1  ;;  %v26986_v17 = vrot.slane %v26985_v12, 1 }
 0x40b   : > { %26982 = vst [vmem:[#allocation237_spill] sm:$0xff] %v23204_v59  ;;  %v9450_v15 = vadd.f32 %v9402_v40, %v26987_v0  ;;  %v9052_v54 = vadd.f32 %v22987_v44, %v26959_v52  ;;  %v23220_v49 = vrot.slane %v22727_v5, 1  ;;  %v8966_v18 = vrot.slane %v22714_v25, 1  ;;  %16314 = vmatmul.mubr.msk.f32.gmra.mrb[158].mxu0 %vm1446_vm4, %v7820_v60  ;;  %v26989_v44 = vld [vmem:[#allocation190_spill] sm:$0xff] }
 0x40c   : > { %v9680_v38 = vsel %vm2769_vm6, %v26986_v17, %v26984_v34  ;;  %v9510_v20 = vadd.f32 %v9454_v6, %v8964_v27  ;;  %v9511_v22 = vadd.f32 %v9455_v32, %v8963_v21  ;;  %v23230_v40 = vrot.slane %v22727_v5, 2  ;;  %16318 = vmatprep.mubr.msk.f32.mxu0 %vm1446_vm4, %v26989_v44  ;;  %v23244_v32 = vld [vmem:[%s25398_s11 + $0x50] sm:$0xff] }
 0x40d   : > { %v9506_v30 = vadd.f32 %v9450_v15, %v23077_v39  ;;  %v9244_v52 = vadd.f32 %v23001_v16, %v9052_v54  ;;  %v8967_v60 = vsel %vm2769_vm6, %v23220_v49, %v8966_v18  ;;  %v9063_v34 = vadd.f32 %v8966_v18, %v22714_v25 }
 0x40e   : > { %v9140_v17 = vrot.slane %v22714_v25, 2  ;;  %v9567_v21 = vadd.f32 %v9510_v20, %v9136_v43  ;;  %v9568_v27 = vadd.f32 %v9511_v22, %v9138_v61  ;;  %v9062_v15 = vadd.f32 %v8967_v60, %v22727_v5  ;;  %v26991_v43 = vld [vmem:[#allocation59_spill] sm:$0xff] }
 0x40f   : > { %v9563_v6 = vadd.f32 %v9506_v30, %v23083_v3  ;;  %v9292_v16 = vadd.f32 %v9244_v52, %v26987_v0  ;;  %v9355_v44 = vadd.f32 %v9299_v13, %v8967_v60  ;;  %16319 = vmatmul.mubr.msk.f32.vlgmr.msra.gmra.mrb[128].mxu0 %vm1446_vm4, %v26990_v62  ;;  %v26992_v61 = vrot.slane %v26991_v43, 1  ;;  %v26995_v52 = vld [vmem:[#allocation28_spill] sm:$0xff] }
 0x410   : > { %v9141_v35 = vsel %vm1088_vm1, %v23230_v40, %v9140_v17  ;;  %v9143_v54 = vsel %vm1088_vm1, %v9140_v17, %v9142_v46  ;;  %v23254_v20 = vmul.f32 %v9680_v38, %v9567_v21  ;;  %v26993_v22 = vrot.slane %v26983_v33, 1  ;;  %16367 = vmatpush3.msra.mxu0 %v26994_v53  ;;  %16321 = vmatprep.mubr.msk.f32.mxu0 %vm1446_vm4, %v26995_v52  ;;  %v26996_v43 = vld [vmem:[#allocation24_spill] sm:$0xff] }
 0x411   : > { %v9771_v30 = vmul.f32 %v26992_v61, %v9563_v6  ;;  %v9254_v59 = vadd.f32 %v9141_v35, %v9062_v15  ;;  %v9348_v46 = vadd.f32 %v9292_v16, %v23077_v39  ;;  %v9255_v13 = vadd.f32 %v9143_v54, %v9063_v34  ;;  %v26999_v61 = vld [vmem:[#allocation270_spill] sm:$0xff] }
 0x412   : > { %v9776_v50 = vmul.f32 %v26993_v22, %v9568_v27  ;;  %v9356_v17 = vadd.f32 %v9300_v63, %v8966_v18  ;;  %v9681_v62 = vrot.slane %v23244_v32, 1  ;;  %v9879_v6 = vrot.slane %v23254_v20, 7 }
 0x413   : > { %v9873_v19 = vrot.slane %v9771_v30, 7  ;;  %v9302_v21 = vadd.f32 %v9254_v59, %v22766_v7  ;;  %v9405_v33 = vadd.f32 %v9348_v46, %v23083_v3  ;;  %v9412_v27 = vadd.f32 %v9355_v44, %v9141_v35  ;;  %16322 = vmatmul.mubr.msk.f32.gmra.mrb[130].mxu0 %vm1446_vm4, %v26996_v43  ;;  %v26998_v44 = vld [vmem:[#allocation199_spill] sm:$0xff] }
 0x414   : > { %v9881_v38 = vrot.slane %v9776_v50, 7  ;;  %v9413_v15 = vadd.f32 %v9356_v17, %v9143_v54  ;;  %v23267_v53 = vrot.slane %v22766_v7, 1  ;;  %v26997_v63 = vrot.slane %v23160_v8, 7  ;;  %16324 = vmatprep.mubr.msk.f32.mxu0 %vm1446_vm4, %v26998_v44 }
 0x415   : > { %v9457_v59 = vadd.f32 %v23177_v41, %v22727_v5  ;;  %v9458_v50 = vadd.f32 %v23179_v37, %v22714_v25  ;;  %v9453_v30 = vadd.f32 %v9405_v33, %v26999_v61  ;;  %v9055_v8 = vadd.f32 %v23077_v39, %v26987_v0  ;;  %v9615_v41 = vld [vmem:[%s25398_s11 + $0x68] sm:$0xff]  ;;  %v23316_v33 = vld [vmem:[%s25398_s11 + $0x60] sm:$0xff] }
 0x416   : > { %v23274_v34 = vsel %vm2381_vm5, %v9873_v19, %v26997_v63  ;;  %v23277_v16 = vsel %vm2381_vm5, %v9879_v6, %v9881_v38  ;;  %v23289_v19 = vrot.slane %v22755_v9, 1  ;;  %v23292_v20 = vrot.slane %v22766_v7, 2 }
 0x417   : > { %v9513_v22 = vadd.f32 %v9457_v59, %v8967_v60  ;;  %v9514_v52 = vadd.f32 %v9458_v50, %v8966_v18  ;;  %v9145_v5 = vrot.slane %v22755_v9, 2  ;;  %v9460_v25 = vadd.f32 %v9412_v27, %v22766_v7  ;;  %v27001_v60 = vld [vmem:[#allocation198_spill] sm:$0xff]  ;;  %v27002_v27 = vld [vmem:[#allocation207_spill] sm:$0xff] }
 0x418   : > { %v9509_v37 = vadd.f32 %v9453_v30, %v23137_v55  ;;  %v27000_v39 = vrot.slane %v23197_v58, 1  ;;  %v9247_v46 = vadd.f32 %v23083_v3, %v9055_v8  ;;  %16325 = vmatmul.mubr.msk.f32.gmra.mrb[132].mxu0 %vm1446_vm4, %v27001_v60  ;;  %v23311_v38 = vsel %vm2769_vm6, %v23267_v53, %v23289_v19 }
 0x419   : > { %v9570_v18 = vadd.f32 %v9513_v22, %v9141_v35  ;;  %v9571_v17 = vadd.f32 %v9514_v52, %v9143_v54  ;;  %16327 = vmatprep.mubr.msk.f32.mxu0 %vm1446_vm4, %v27002_v27  ;;  %v9358_v35 = vadd.f32 %v9302_v21, %v23311_v38  ;;  %v9685_v54 = vrot.slane %v9615_v41, 1  ;;  %v27005_v41 = vld [vmem:[#allocation206_spill] sm:$0xff] }
 0x41a   : > { %v9683_v0 = vsel %vm2769_vm6, %v9681_v62, %v27000_v39  ;;  %v9566_v3 = vadd.f32 %v9509_v37, %v23149_v36  ;;  %v9295_v43 = vadd.f32 %v9247_v46, %v26999_v61  ;;  %v9303_v63 = vadd.f32 %v9255_v13, %v22755_v9  ;;  %v27007_v46 = vld [vmem:[#allocation46_spill] sm:$0xff] }
 0x41b   : > { %v23324_v59 = vmul.f32 %v9683_v0, %v9570_v18  ;;  %v27003_v50 = vmov %v27000_v39  ;;  %v23330_v30 = vsel %vm1088_vm1, %v23292_v20, %v9145_v5  ;;  %v27004_v8 = vrot.slane %v26985_v12, 1  ;;  %v27006_v39 = vld [vmem:[#allocation114_spill] sm:$0xff] }
 0x41c   : > { %v9779_v44 = vmul.f32 %v27003_v50, %v9571_v17  ;;  %v9351_v52 = vadd.f32 %v9295_v43, %v23137_v55  ;;  %v9415_v37 = vadd.f32 %v9358_v35, %v23330_v30  ;;  %v9684_v21 = vrot.slane %v23316_v33, 1  ;;  %16328 = vmatmul.mubr.msk.f32.gmra.mrb[134].mxu0 %vm1446_vm4, %v27005_v41  ;;  %v27021_v33 = vld [vmem:[#allocation277_spill] sm:$0xff] }
 0x41d   : > { %v9774_v22 = vmul.f32 %v27004_v8, %v9566_v3  ;;  %v9884_v13 = vrot.slane %v23324_v59, 7  ;;  %v9147_v0 = vrot.slane %v27006_v39, 2  ;;  %16330 = vmatprep.mubr.msk.f32.mxu0 %vm1446_vm4, %v27007_v46  ;;  %v9461_v18 = vadd.f32 %v9413_v15, %v22755_v9  ;;  %v27008_v59 = vld [vmem:[#allocation274_spill] sm:$0xff]  ;;  %v27009_v8 = vld [vmem:[#allocation212_spill] sm:$0xff] }
 0x41e   : > { %v9886_v58 = vrot.slane %v9779_v44, 7  ;;  %v9408_v12 = vadd.f32 %v9351_v52, %v23149_v36  ;;  %v9359_v27 = vadd.f32 %v9303_v63, %v23289_v19  ;;  %v9516_v3 = vadd.f32 %v9460_v25, %v23311_v38  ;;  %v23374_v52 = vld [vmem:[%s25398_s11 + $0x70] sm:$0xff] }
 0x41f   : > { %v9878_v60 = vrot.slane %v9774_v22, 7  ;;  %v9058_v43 = vadd.f32 %v23137_v55, %v26999_v61  ;;  %v9517_v44 = vadd.f32 %v9461_v18, %v23289_v19  ;;  %v9686_v15 = vsel %vm2769_vm6, %v9684_v21, %v9685_v54 }
 0x420   : > { %v23346_v17 = vsel %vm2381_vm5, %v9884_v13, %v9886_v58  ;;  %v9456_v50 = vadd.f32 %v9408_v12, %v27008_v59  ;;  %16331 = vmatmul.mubr.msk.f32.gmra.mrb[136].mxu0 %vm1446_vm4, %v27009_v8  ;;  %v23363_v63 = vsel %vm1088_vm1, %v9145_v5, %v9147_v0  ;;  %v9573_v25 = vadd.f32 %v9516_v3, %v23330_v30  ;;  %v9617_v5 = vld [vmem:[%s25398_s11 + $0x78] sm:$0xff]  ;;  %v27011_v12 = vld [vmem:[#allocation124_spill] sm:$0xff] }
 0x421   : > { %v23353_v35 = vsel %vm2381_vm5, %v9878_v60, %v9879_v6  ;;  %v9250_v55 = vadd.f32 %v23149_v36, %v9058_v43  ;;  %v27010_v6 = vld [vmem:[#allocation52_spill] sm:$0xff]  ;;  %v9574_v22 = vadd.f32 %v9517_v44, %v23363_v63  ;;  %v9416_v41 = vadd.f32 %v9359_v27, %v23363_v63 }
 0x422   : > { %16333 = vmatprep.mubr.msk.f32.mxu0 %vm1446_vm4, %v27010_v6  ;;  %v9512_v61 = vadd.f32 %v9456_v50, %v23220_v49  ;;  %v9781_v58 = vmul.f32 %v9686_v15, %v9573_v25  ;;  %v23383_v46 = vrot.slane %v22809_v2, 1  ;;  %v23386_v60 = vrot.slane %v22798_v31, 1  ;;  %v27012_v50 = vld [vmem:[#allocation58_spill] sm:$0xff] }
 0x423   : > { %v9298_v36 = vadd.f32 %v9250_v55, %v27008_v59  ;;  %v9782_v0 = vmul.f32 %v9685_v54, %v9574_v22  ;;  %v9687_v27 = vrot.slane %v23374_v52, 1  ;;  %v9688_v43 = vrot.slane %v9617_v5, 1  ;;  %v27013_v55 = vld [vmem:[#allocation117_spill] sm:$0xff] }
 0x424   : > { %v9569_v39 = vadd.f32 %v9512_v61, %v23230_v40  ;;  %16334 = vmatmul.mubr.msk.f32.gmra.mrb[138].mxu0 %vm1446_vm4, %v27011_v12  ;;  %v9889_v18 = vrot.slane %v9781_v58, 7  ;;  %v23397_v15 = vrot.slane %v22809_v2, 2  ;;  %v9150_v8 = vrot.slane %v22798_v31, 2  ;;  %v27014_v5 = vld [vmem:[#allocation129_spill] sm:$0xff]  ;;  %v27015_v58 = vld [vmem:[#allocation128_spill] sm:$0xff] }
 0x425   : > { %v9354_v3 = vadd.f32 %v9298_v36, %v23220_v49  ;;  %16336 = vmatprep.mubr.msk.f32.mxu0 %vm1446_vm4, %v27012_v50  ;;  %v9891_v44 = vrot.slane %v9782_v0, 7  ;;  %v9152_v6 = vrot.slane %v27013_v55, 2  ;;  %v9463_v61 = vadd.f32 %v9415_v37, %v22809_v2  ;;  %v27016_v0 = vld [vmem:[#allocation226_spill] sm:$0xff] }
 0x426   : > { %v9777_v54 = vmul.f32 %v9681_v62, %v9569_v39  ;;  %v23409_v32 = vsel %vm2769_vm6, %v23383_v46, %v23386_v60  ;;  %v9464_v62 = vadd.f32 %v9416_v41, %v22798_v31  ;;  %v9061_v37 = vadd.f32 %v23220_v49, %v27008_v59 }
 0x427   : > { %v9411_v25 = vadd.f32 %v9354_v3, %v23230_v40  ;;  %v23404_v52 = vsel %vm2381_vm5, %v9889_v18, %v9891_v44  ;;  %v9519_v39 = vadd.f32 %v9463_v61, %v23409_v32  ;;  %v23425_v3 = vsel %vm1088_vm1, %v23397_v15, %v9150_v8 }
 0x428   : > { %v9883_v22 = vrot.slane %v9777_v54, 7  ;;  %16337 = vmatmul.mubr.msk.f32.gmra.mrb[140].mxu0 %vm1446_vm4, %v27014_v5  ;;  %v9520_v41 = vadd.f32 %v9464_v62, %v23386_v60  ;;  %v9689_v50 = vsel %vm2769_vm6, %v9687_v27, %v9688_v43  ;;  %v23431_v44 = vsel %vm1088_vm1, %v9150_v8, %v9152_v6  ;;  %v27018_v62 = vld [vmem:[#allocation70_spill] sm:$0xff] }
 0x429   : > { %v9459_v36 = vadd.f32 %v9411_v25, %v27015_v58  ;;  %16339 = vmatprep.mubr.msk.f32.mxu0 %vm1446_vm4, %v27016_v0  ;;  %v9576_v49 = vadd.f32 %v9519_v39, %v23425_v3  ;;  %v9253_v59 = vadd.f32 %v23230_v40, %v9061_v37  ;;  %v27017_v25 = vld [vmem:[#allocation133_spill] sm:$0xff]  ;;  %v27019_v39 = vld [vmem:[#allocation232_spill] sm:$0xff] }
 0x42a   : > { %v23421_v12 = vsel %vm2381_vm5, %v9883_v22, %v9884_v13  ;;  %v9577_v13 = vadd.f32 %v9520_v41, %v23431_v44  ;;  %v27020_v41 = vld [vmem:[#allocation76_spill] sm:$0xff] }
 0x42b   : > { %v9515_v54 = vadd.f32 %v9459_v36, %v23267_v53  ;;  %v9784_v61 = vmul.f32 %v9689_v50, %v9576_v49  ;;  %v9301_v22 = vadd.f32 %v9253_v59, %v27015_v58  ;;  %v27023_v59 = vld [vmem:[#allocation238_spill] sm:$0xff] }
 0x42c   : > { %16340 = vmatmul.mubr.msk.f32.gmra.mrb[142].mxu0 %vm1446_vm4, %v27017_v25  ;;  %v9785_v5 = vmul.f32 %v9688_v43, %v9577_v13  ;;  %v27024_v25 = vld [vmem:[#allocation146_spill] sm:$0xff] }
 0x42d   : > { %v9572_v55 = vadd.f32 %v9515_v54, %v23292_v20  ;;  %16342 = vmatprep.mubr.msk.f32.mxu0 %vm1446_vm4, %v27018_v62  ;;  %v9894_v6 = vrot.slane %v9784_v61, 7  ;;  %v9357_v40 = vadd.f32 %v9301_v22, %v23267_v53  ;;  %v27022_v54 = vld [vmem:[#allocation142_spill] sm:$0xff]  ;;  %v27025_v61 = vld [vmem:[#allocation92_spill] sm:$0xff]  ;;  %v27026_v22 = vld [vmem:[#allocation153_spill] sm:$0xff] }
 0x42e   : > { %v9896_v36 = vrot.slane %v9785_v5, 7  ;;  %v27027_v5 = vld [vmem:[#allocation244_spill] sm:$0xff] }
 0x42f   : > { %v9780_v8 = vmul.f32 %v9684_v21, %v9572_v55  ;;  %v9414_v0 = vadd.f32 %v9357_v40, %v23292_v20  ;;  %v27029_v40 = vld [vmem:[#allocation8_spill] sm:$0xff] }
 0x430   : > { %16343 = vmatmul.mubr.msk.f32.gmra.mrb[144].mxu0 %vm1446_vm4, %v27019_v39  ;;  %v23451_v50 = vsel %vm2381_vm5, %v9894_v6, %v9896_v36  ;;  %v27031_v36 = vld [vmem:[#allocation32_spill] sm:$0xff]  ;;  %v27032_v39 = vld [vmem:[#allocation259_spill] sm:$0xff] }
 0x431   : > { %v9888_v37 = vrot.slane %v9780_v8, 7  ;;  %16345 = vmatprep.mubr.msk.f32.mxu0 %vm1446_vm4, %v27020_v41  ;;  %v9462_v21 = vadd.f32 %v9414_v0, %v27021_v33  ;;  %v27028_v8 = vld [vmem:[#allocation242_spill] sm:$0xff]  ;;  %v27035_v0 = vld [vmem:[#allocation61_spill] sm:$0xff]  ;;  %v27036_v41 = vld [vmem:[#allocation67_spill] sm:$0xff] }
 0x433   : > { %v23454_v43 = vsel %vm2381_vm5, %v9888_v37, %v9889_v18  ;;  %v9518_v49 = vadd.f32 %v9462_v21, %v23383_v46  ;;  %v27034_v37 = vld [vmem:[#allocation55_spill] sm:$0xff]  ;;  %v27037_v21 = vld [vmem:[#allocation73_spill] sm:$0xff] }
 0x434   : > { %16346 = vmatmul.mubr.msk.f32.gmra.mrb[146].mxu0 %vm1446_vm4, %v27022_v54  ;;  %v27038_v54 = vld [vmem:[#allocation79_spill] sm:$0xff] }
 0x435   : > { %16348 = vmatprep.mubr.msk.f32.mxu0 %vm1446_vm4, %v27023_v59  ;;  %v9575_v13 = vadd.f32 %v9518_v49, %v23397_v15  ;;  %v27039_v49 = vld [vmem:[#allocation84_spill] sm:$0xff]  ;;  %v27040_v59 = vld [vmem:[#allocation93_spill] sm:$0xff] }
 0x437   : > { %v9783_v55 = vmul.f32 %v9687_v27, %v9575_v13  ;;  %v27030_v27 = vld [vmem:[#allocation245_spill] sm:$0xff] }
 0x438   : > { %16349 = vmatmul.mubr.msk.f32.gmra.mrb[148].mxu0 %vm1446_vm4, %v27024_v25  ;;  %v27041_v13 = vld [vmem:[#allocation173_spill] sm:$0xff]  ;;  %v27042_v25 = vld [vmem:[#allocation160_spill] sm:$0xff] }
 0x439   : > { %16351 = vmatprep.mubr.msk.f32.mxu0 %vm1446_vm4, %v27025_v61  ;;  %v9893_v18 = vrot.slane %v9783_v55, 7  ;;  %v27043_v55 = vld [vmem:[#allocation158_spill] sm:$0xff] }
 0x43a   : > { %v27044_v61 = vld [vmem:[#allocation166_spill] sm:$0xff] }
 0x43b   : > { %v23470_v62 = vsel %vm2381_vm5, %v9893_v18, %v9894_v6  ;;  %v27033_v6 = vld [vmem:[#allocation116_spill] sm:$0xff]  ;;  %v27045_v18 = vld [vmem:[#allocation201_spill] sm:$0xff] }
 0x43c   : > { %16352 = vmatmul.mubr.msk.f32.gmra.mrb[150].mxu0 %vm1446_vm4, %v27026_v22  ;;  %v27046_v22 = vld [vmem:[#allocation27_spill] sm:$0xff] }
 0x43d   : > { %16354 = vmatprep.mubr.msk.f32.mxu0 %vm1446_vm4, %v27027_v5  ;;  %v27047_v5 = vld [vmem:[#allocation29_spill] sm:$0xff] }
 0x440   : > { %16355 = vmatmul.mubr.msk.f32.gmra.mrb[152].mxu0 %vm1446_vm4, %v27028_v8  ;;  %v27048_v8 = vld [vmem:[#allocation247_spill] sm:$0xff] }
 0x441   : > { %16357 = vmatprep.mubr.msk.f32.mxu0 %vm1446_vm4, %v27029_v40  ;;  %v27049_v40 = vld [vmem:[#allocation41_spill] sm:$0xff] }
 0x444   : > { %16358 = vmatmul.mubr.msk.f32.gmra.mrb[154].mxu0 %vm1446_vm4, %v27030_v27  ;;  %v27050_v27 = vld [vmem:[#allocation250_spill] sm:$0xff] }
 0x445   : > { %16360 = vmatprep.mubr.msk.f32.mxu0 %vm1446_vm4, %v27031_v36  ;;  %v27051_v36 = vld [vmem:[#allocation256_spill] sm:$0xff] }
 0x448   : > { %16361 = vmatmul.mubr.msk.f32.gmra.mrb[156].mxu0 %vm1446_vm4, %v27032_v39  ;;  %v27052_v39 = vld [vmem:[#allocation51_spill] sm:$0xff] }
 0x449   : > { %16363 = vmatprep.mubr.msk.f32.mxu0 %vm1446_vm4, %v26977_v42 }
 0x44c   : > { %16364 = vmatmul.mubr.msk.f32.gmra.mrb[158].mxu0 %vm1446_vm4, %v26975_v23 }
 0x44d   : > { %16368 = vmatprep.mubr.msk.f32.mxu0 %vm1446_vm4, %v27033_v6  ;;  %v27053_v6 = vld [vmem:[#allocation272_spill] sm:$0xff] }
 0x450   : > { %16369 = vmatmul.mubr.msk.f32.vlgmr.msra.gmra.mrb[128].mxu0 %vm1446_vm4, %v27034_v37  ;;  %v27054_v37 = vld [vmem:[#allocation273_spill] sm:$0xff] }
 0x451   : > { %16371 = vmatprep.mubr.msk.f32.mxu0 %vm1446_vm4, %v27035_v0  ;;  %v27055_v0 = vld [vmem:[#allocation65_spill] sm:$0xff] }
 0x454   : > { %16372 = vmatmul.mubr.msk.f32.gmra.mrb[130].mxu0 %vm1446_vm4, %v27036_v41  ;;  %v27056_v41 = vld [vmem:[#allocation276_spill] sm:$0xff] }
 0x455   : > { %16374 = vmatprep.mubr.msk.f32.mxu0 %vm1446_vm4, %v27037_v21  ;;  %v27057_v21 = vld [vmem:[#allocation11_spill] sm:$0xff] }
 0x458   : > { %16375 = vmatmul.mubr.msk.f32.gmra.mrb[132].mxu0 %vm1446_vm4, %v27038_v54  ;;  %v27058_v54 = vld [vmem:[#allocation75_spill] sm:$0xff] }
 0x459   : > { %16377 = vmatprep.mubr.msk.f32.mxu0 %vm1446_vm4, %v27039_v49  ;;  %v27059_v49 = vld [vmem:[#allocation137_spill] sm:$0xff] }
 0x45c   : > { %16378 = vmatmul.mubr.msk.f32.gmra.mrb[134].mxu0 %vm1446_vm4, %v27040_v59  ;;  %v8348_v59 = vrot.slane %v26977_v42, 1  ;;  %v10139_v42 = vld [vmem:[#allocation2 + $0x8] sm:$0xff] }
 0x45d   : > { %16380 = vmatprep.mubr.msk.f32.mxu0 %vm1446_vm4, %v27041_v13  ;;  %v8349_v13 = vrot.slane %v26975_v23, 1  ;;  %v13975_v23 = vld [vmem:[%s25395_s8 + $0x90] sm:$0xff]  ;;  %16418 = vmatprep.mubr.msk.f32.mxu1 %vm1446_vm4, %v10139_v42 }
 0x45e   : > { %16466 = vmatprep.subr.mxu1 %v13975_v23 }
 0x460   : > { %16381 = vmatmul.mubr.msk.f32.gmra.mrb[136].mxu0 %vm1446_vm4, %v27042_v25  ;;  %v27060_v25 = vld [vmem:[#allocation13_spill] sm:$0xff] }
 0x461   : > { %16383 = vmatprep.mubr.msk.f32.mxu0 %vm1446_vm4, %v27043_v55  ;;  %v27061_v55 = vld [vmem:[#allocation289_spill] sm:$0xff] }
 0x464   : > { %16384 = vmatmul.mubr.msk.f32.gmra.mrb[138].mxu0 %vm1446_vm4, %v27044_v61  ;;  %v27062_v61 = vld [vmem:[#allocation262_spill] sm:$0xff] }
 0x465   : > { %16386 = vmatprep.mubr.msk.f32.mxu0 %vm1446_vm4, %v27045_v18  ;;  %v8351_v18 = vrot.slane %v27062_v61, 1  ;;  %v23602_v61 = vld [vmem:[%s25398_s11 + $0x80] sm:$0xff] }
 0x468   : > { %16387 = vmatmul.mubr.msk.f32.gmra.mrb[140].mxu0 %vm1446_vm4, %v27046_v22  ;;  %v8350_v22 = vsel %vm2769_vm6, %v8348_v59, %v8349_v13 }
 0x469   : > { %16389 = vmatprep.mubr.msk.f32.mxu0 %vm1446_vm4, %v27047_v5  ;;  %v27063_v5 = vld [vmem:[#allocation44_spill] sm:$0xff] }
 0x46c   : > { %16390 = vmatmul.mubr.msk.f32.gmra.mrb[142].mxu0 %vm1446_vm4, %v27048_v8  ;;  %v8352_v8 = vsel %vm2769_vm6, %v8349_v13, %v8351_v18  ;;  %v23588_v13 = vrot.slane %v22855_v57, 2 }
 0x46d   : > { %16392 = vmatprep.mubr.msk.f32.mxu0 %vm1446_vm4, %v27049_v40  ;;  %v10140_v40 = vld [vmem:[#allocation2 + $0x10] sm:$0xff] }
 0x46e   : > { %16419 = vmatmul.mubr.msk.f32.vlgmr.msra.gmra.mrb[32].mxu1 %vm1446_vm4, %v10140_v40 }
 0x46f   : > { %16467 = vmatpush3.msra.mxu1 %v13975_v23 }
 0x470   : > { %16393 = vmatmul.mubr.msk.f32.gmra.mrb[144].mxu0 %vm1446_vm4, %v27050_v27  ;;  %v9065_v27 = vadd.f32 %v23311_v38, %v22766_v7  ;;  %v23574_v7 = vrot.slane %v22855_v57, 1 }
 0x471   : > { %16395 = vmatprep.mubr.msk.f32.mxu0 %vm1446_vm4, %v27051_v36  ;;  %v9066_v36 = vadd.f32 %v23289_v19, %v22755_v9  ;;  %v8975_v9 = vrot.slane %v22843_v1, 1 }
 0x473   : > { %v9072_v18 = vadd.f32 %v8975_v9, %v22843_v1 }
 0x474   : > { %16396 = vmatmul.mubr.msk.f32.gmra.mrb[146].mxu0 %vm1446_vm4, %v27052_v39  ;;  %v9257_v39 = vadd.f32 %v23330_v30, %v9065_v27  ;;  %v9064_v30 = vadd.f32 %v23267_v53, %v27015_v58  ;;  %v14041_v58 = vld [vmem:[%s25395_s8 + $0xa0] sm:$0xff] }
 0x475   : > { %16398 = vmatprep.mubr.msk.f32.mxu0 %vm1446_vm4, %v27053_v6  ;;  %v9258_v6 = vadd.f32 %v23363_v63, %v9066_v36  ;;  %16516 = vmatprep.subr.mxu1 %v14041_v58  ;;  %v9690_v36 = vrot.slane %v23602_v61, 1  ;;  %v23639_v58 = vrot.slane %v22947_v48, 1  ;;  %v9170_v61 = vrot.slane %v22976_v56, 2 }
 0x476   : > { %v9256_v53 = vadd.f32 %v23292_v20, %v9064_v30  ;;  %v9619_v20 = vld [vmem:[%s25398_s11 + $0x88] sm:$0xff] }
 0x478   : > { %16399 = vmatmul.mubr.msk.f32.gmra.mrb[148].mxu0 %vm1446_vm4, %v27054_v37  ;;  %v9305_v37 = vadd.f32 %v9257_v39, %v22809_v2  ;;  %v9304_v40 = vadd.f32 %v9256_v53, %v27021_v33  ;;  %v9691_v39 = vrot.slane %v9619_v20, 1 }
 0x479   : > { %16401 = vmatprep.mubr.msk.f32.mxu0 %vm1446_vm4, %v27055_v0  ;;  %v9306_v0 = vadd.f32 %v9258_v6, %v22798_v31 }
 0x47a   : > { %v9692_v30 = vsel %vm2769_vm6, %v9690_v36, %v9691_v39 }
 0x47b   : > { %v9362_v19 = vadd.f32 %v9306_v0, %v23386_v60 }
 0x47c   : > { %16402 = vmatmul.mubr.msk.f32.gmra.mrb[150].mxu0 %vm1446_vm4, %v27056_v41  ;;  %v9361_v41 = vadd.f32 %v9305_v37, %v23409_v32 }
 0x47d   : > { %16404 = vmatprep.mubr.msk.f32.mxu0 %vm1446_vm4, %v27057_v21  ;;  %v9068_v21 = vadd.f32 %v23409_v32, %v22809_v2  ;;  %v8976_v2 = vsel %vm2769_vm6, %v23574_v7, %v8975_v9  ;;  %v27064_v32 = vld [vmem:[#allocation118_spill] sm:$0xff] }
 0x47e   : > { %v9418_v38 = vadd.f32 %v9361_v41, %v23425_v3  ;;  %v9157_v59 = vrot.slane %v27064_v32, 2 }
 0x47f   : > { %v9260_v63 = vadd.f32 %v23425_v3, %v9068_v21  ;;  %v9071_v3 = vadd.f32 %v8976_v2, %v22855_v57  ;;  %v9067_v21 = vadd.f32 %v23383_v46, %v27021_v33 }
 0x480   : > { %16405 = vmatmul.mubr.msk.f32.gmra.mrb[152].mxu0 %vm1446_vm4, %v27058_v54  ;;  %v9069_v54 = vadd.f32 %v23386_v60, %v22798_v31  ;;  %v9419_v31 = vadd.f32 %v9362_v19, %v23431_v44  ;;  %v9155_v60 = vrot.slane %v22843_v1, 2  ;;  %v9360_v19 = vadd.f32 %v9304_v40, %v23383_v46 }
 0x481   : > { %16407 = vmatprep.mubr.msk.f32.mxu0 %vm1446_vm4, %v27059_v49 }
 0x482   : > { %v9261_v49 = vadd.f32 %v23431_v44, %v9069_v54  ;;  %v9308_v44 = vadd.f32 %v9260_v63, %v22855_v57  ;;  %v9158_v42 = vsel %vm1088_vm1, %v9155_v60, %v9157_v59  ;;  %v23628_v63 = vrot.slane %v22897_v28, 2 }
 0x483   : > { %v9417_v53 = vadd.f32 %v9360_v19, %v23397_v15 }
 0x484   : > { %16408 = vmatmul.mubr.msk.f32.gmra.mrb[154].mxu0 %vm1446_vm4, %v27060_v25  ;;  %v9466_v25 = vadd.f32 %v9418_v38, %v22855_v57  ;;  %v8978_v57 = vrot.slane %v22886_v47, 1  ;;  %v9364_v6 = vadd.f32 %v9308_v44, %v8976_v2 }
 0x485   : > { %16410 = vmatprep.mubr.msk.f32.mxu0 %vm1446_vm4, %v27061_v55  ;;  %v9309_v55 = vadd.f32 %v9261_v49, %v22843_v1 }
 0x486   : > { %v9522_v23 = vadd.f32 %v9466_v25, %v8976_v2  ;;  %v9075_v44 = vadd.f32 %v8978_v57, %v22886_v47 }
 0x487   : > { %v9365_v37 = vadd.f32 %v9309_v55, %v8975_v9 }
 0x488   : > { %16411 = vmatmul.mubr.msk.f32.gmra.mrb[156].mxu0 %vm1446_vm4, %v27063_v5  ;;  %v23610_v5 = vrot.slane %v22897_v28, 1 }
 0x489   : > { %16413 = vmatprep.mubr.msk.f32.mxu0 %vm1446_vm4, %v8350_v22  ;;  %v9467_v22 = vadd.f32 %v9419_v31, %v22843_v1  ;;  %v9264_v1 = vadd.f32 %v9158_v42, %v9072_v18  ;;  %v27065_v31 = vld [vmem:[#allocation121_spill] sm:$0xff]  ;;  %v9422_v59 = vadd.f32 %v9365_v37, %v9158_v42  ;;  %v27066_v18 = vld [vmem:[#allocation138_spill] sm:$0xff] }
 0x48a   : > { %v8979_v41 = vsel %vm2769_vm6, %v23610_v5, %v8978_v57  ;;  %v9162_v32 = vrot.slane %v27065_v31, 2 }
 0x48b   : > { %v9523_v0 = vadd.f32 %v9467_v22, %v8975_v9  ;;  %v9160_v9 = vrot.slane %v22886_v47, 2  ;;  %v9074_v2 = vadd.f32 %v8979_v41, %v22897_v28  ;;  %v9312_v33 = vadd.f32 %v9264_v1, %v22886_v47 }
 0x48c   : > { %16414 = vmatmul.mubr.msk.f32.gmra.mrb[158].mxu0 %vm1446_vm4, %v8352_v8  ;;  %v9156_v8 = vsel %vm1088_vm1, %v23588_v13, %v9155_v60  ;;  %v9259_v60 = vadd.f32 %v23397_v15, %v9067_v21  ;;  %v9070_v22 = vadd.f32 %v23574_v7, %v27066_v18  ;;  %v9470_v37 = vadd.f32 %v9422_v59, %v22886_v47 }
 0x48d   : > { %v9263_v27 = vadd.f32 %v9156_v8, %v9071_v3  ;;  %v9579_v54 = vadd.f32 %v9522_v23, %v9156_v8  ;;  %v9421_v49 = vadd.f32 %v9364_v6, %v9156_v8  ;;  %v9580_v46 = vadd.f32 %v9523_v0, %v9158_v42 }
 0x48e   : > { %v23642_v3 = vrot.slane %v22935_v14, 1  ;;  %v9161_v55 = vsel %vm1088_vm1, %v23628_v63, %v9160_v9  ;;  %v9163_v8 = vsel %vm1088_vm1, %v9160_v9, %v9162_v32  ;;  %v9307_v40 = vadd.f32 %v9259_v60, %v27066_v18  ;;  %v27067_v9 = vld [vmem:[#allocation122_spill] sm:$0xff] }
 0x48f   : > { %v9311_v38 = vadd.f32 %v9263_v27, %v22897_v28  ;;  %v23635_v25 = vmul.f32 %v9692_v30, %v9579_v54  ;;  %v9266_v42 = vadd.f32 %v9161_v55, %v9074_v2  ;;  %v9788_v23 = vmul.f32 %v9691_v39, %v9580_v46  ;;  %v23661_v39 = vld [vmem:[%s25398_s11 + $0x90] sm:$0xff] }
 0x490   : > { %v9469_v15 = vadd.f32 %v9421_v49, %v22897_v28  ;;  %v9465_v6 = vadd.f32 %v9417_v53, %v27066_v18  ;;  %v8982_v1 = vsel %vm2769_vm6, %v23639_v58, %v23642_v3  ;;  %v9267_v0 = vadd.f32 %v9163_v8, %v9075_v44  ;;  %v9621_v28 = vld [vmem:[%s25398_s11 + $0x98] sm:$0xff] }
 0x491   : > { %v9367_v20 = vadd.f32 %v9311_v38, %v8979_v41  ;;  %v9899_v27 = vrot.slane %v23635_v25, 7  ;;  %v9368_v21 = vadd.f32 %v9312_v33, %v8978_v57  ;;  %v9262_v19 = vadd.f32 %v23588_v13, %v9070_v22  ;;  %v27068_v22 = vld [vmem:[#allocation279_spill] sm:$0xff] }
 0x492   : > { %v9314_v47 = vadd.f32 %v9266_v42, %v22947_v48  ;;  %v23669_v38 = vrot.slane %v22947_v48, 2  ;;  %v9165_v30 = vrot.slane %v22935_v14, 2  ;;  %v9167_v49 = vrot.slane %v27067_v9, 2  ;;  %v23785_v25 = vld [vmem:[%s25398_s11 + $0xc0] sm:$0xff] }
 0x493   : > { %v9424_v54 = vadd.f32 %v9367_v20, %v9161_v55  ;;  %v9901_v2 = vrot.slane %v9788_v23, 7  ;;  %v9525_v31 = vadd.f32 %v9469_v15, %v8979_v41  ;;  %v9363_v32 = vadd.f32 %v9307_v40, %v23574_v7 }
 0x494   : > { %v9077_v33 = vadd.f32 %v8982_v1, %v22947_v48  ;;  %v9521_v59 = vadd.f32 %v9465_v6, %v23574_v7  ;;  %v9526_v46 = vadd.f32 %v9470_v37, %v8978_v57  ;;  %v9693_v60 = vrot.slane %v23661_v39, 1 }
 0x495   : > { %v9694_v53 = vrot.slane %v9621_v28, 1  ;;  %v9315_v44 = vadd.f32 %v9267_v0, %v22935_v14  ;;  %v9425_v20 = vadd.f32 %v9368_v21, %v9163_v8  ;;  %v9078_v18 = vadd.f32 %v23642_v3, %v22935_v14 }
 0x496   : > { %v9310_v42 = vadd.f32 %v9262_v19, %v27068_v22  ;;  %v9166_v41 = vsel %vm1088_vm1, %v23669_v38, %v9165_v30  ;;  %v9168_v23 = vsel %vm1088_vm1, %v9165_v30, %v9167_v49  ;;  %v9370_v15 = vadd.f32 %v9314_v47, %v8982_v1 }
 0x497   : > { %v9472_v7 = vadd.f32 %v9424_v54, %v22947_v48  ;;  %v23688_v57 = vsel %vm2381_vm5, %v9899_v27, %v9901_v2  ;;  %v9582_v40 = vadd.f32 %v9525_v31, %v9161_v55  ;;  %v9420_v6 = vadd.f32 %v9363_v32, %v23588_v13  ;;  %v23698_v48 = vld [vmem:[%s25398_s11 + $0xa0] sm:$0xff]  ;;  %v9623_v54 = vld [vmem:[%s25398_s11 + $0xa8] sm:$0xff] }
 0x498   : > { %v9269_v37 = vadd.f32 %v9166_v41, %v9077_v33  ;;  %v9578_v0 = vadd.f32 %v9521_v59, %v23588_v13  ;;  %v9583_v21 = vadd.f32 %v9526_v46, %v9163_v8  ;;  %v9695_v28 = vsel %vm2769_vm6, %v9693_v60, %v9694_v53 }
 0x499   : > { %v9073_v55 = vadd.f32 %v23610_v5, %v27068_v22  ;;  %v9270_v19 = vadd.f32 %v9168_v23, %v9078_v18  ;;  %v9371_v13 = vadd.f32 %v9315_v44, %v23642_v3  ;;  %v9473_v8 = vadd.f32 %v9425_v20, %v22935_v14 }
 0x49a   : > { %v9366_v47 = vadd.f32 %v9310_v42, %v23610_v5  ;;  %v9427_v30 = vadd.f32 %v9370_v15, %v9166_v41  ;;  %v9528_v9 = vadd.f32 %v9472_v7, %v8982_v1  ;;  %v23709_v49 = vrot.slane %v22990_v10, 1 }
 0x49b   : > { %v8984_v2 = vrot.slane %v22976_v56, 1  ;;  %v9468_v31 = vadd.f32 %v9420_v6, %v27068_v22  ;;  %v9317_v32 = vadd.f32 %v9269_v37, %v22990_v10  ;;  %v25867_v33 = vrot.slane %v23698_v48, 1 }
 0x49c   : > { %v9697_v59 = vrot.slane %v9623_v54, 1  ;;  %v9786_v46 = vmul.f32 %v9690_v36, %v9578_v0  ;;  %v23717_v14 = vmul.f32 %v9695_v28, %v9582_v40  ;;  %v9791_v44 = vmul.f32 %v9694_v53, %v9583_v21  ;;  %v27069_v0 = vld [vmem:[#allocation126_spill] sm:$0xff]  ;;  %v27070_v28 = vld [vmem:[#allocation281_spill] sm:$0xff] }
 0x49d   : > { %v9265_v1 = vadd.f32 %v23628_v63, %v9073_v55  ;;  %v9318_v20 = vadd.f32 %v9270_v19, %v22976_v56  ;;  %v9428_v18 = vadd.f32 %v9371_v13, %v9168_v23  ;;  %v9529_v42 = vadd.f32 %v9473_v8, %v23642_v3  ;;  %v23743_v8 = vld [vmem:[%s25398_s11 + $0xb0] sm:$0xff] }
 0x49e   : > { %v9423_v22 = vadd.f32 %v9366_v47, %v23628_v63  ;;  %v9585_v15 = vadd.f32 %v9528_v9, %v9166_v41  ;;  %v8985_v7 = vsel %vm2769_vm6, %v23709_v49, %v8984_v2  ;;  %v23726_v6 = vrot.slane %v22990_v10, 2  ;;  %v9625_v47 = vld [vmem:[%s25398_s11 + $0xb8] sm:$0xff] }
 0x49f   : > { %v9524_v36 = vadd.f32 %v9468_v31, %v23610_v5  ;;  %v9698_v53 = vsel %vm2769_vm6, %v25867_v33, %v9697_v59  ;;  %v9373_v40 = vadd.f32 %v9317_v32, %v8985_v7  ;;  %v9475_v3 = vadd.f32 %v9427_v30, %v22990_v10 }
 0x4a0   : > { %v9904_v37 = vrot.slane %v23717_v14, 7  ;;  %v9906_v41 = vrot.slane %v9791_v44, 7  ;;  %v9172_v21 = vrot.slane %v27069_v0, 2  ;;  %v9313_v54 = vadd.f32 %v9265_v1, %v27070_v28  ;;  %v23850_v14 = vld [vmem:[%s25397_s10 + $0x1] ss:$0 sm:$0xff] }
 0x4a1   : > { %v9586_v55 = vadd.f32 %v9529_v42, %v9168_v23  ;;  %v9471_v19 = vadd.f32 %v9423_v22, %v27070_v28  ;;  %v9080_v13 = vadd.f32 %v8985_v7, %v22990_v10  ;;  %v9476_v5 = vadd.f32 %v9428_v18, %v22976_v56 }
 0x4a2   : > { %v9898_v30 = vrot.slane %v9786_v46, 7  ;;  %v23748_v9 = vmul.f32 %v9698_v53, %v9585_v15  ;;  %v9171_v23 = vsel %vm1088_vm1, %v23726_v6, %v9170_v61  ;;  %v9374_v31 = vadd.f32 %v9318_v20, %v8984_v2 }
 0x4a3   : > { %v9581_v10 = vadd.f32 %v9524_v36, %v23628_v63  ;;  %v9081_v32 = vadd.f32 %v8984_v2, %v22976_v56  ;;  %v9430_v44 = vadd.f32 %v9373_v40, %v9171_v23  ;;  %v9531_v1 = vadd.f32 %v9475_v3, %v8985_v7 }
 0x4a4   : > { %v9173_v18 = vsel %vm1088_vm1, %v9170_v61, %v9172_v21  ;;  %v9699_v42 = vrot.slane %v23743_v8, 1  ;;  %v9700_v22 = vrot.slane %v9625_v47, 1  ;;  %v9369_v0 = vadd.f32 %v9313_v54, %v23639_v58 }
 0x4a5   : > { %v9794_v46 = vmul.f32 %v9697_v59, %v9586_v55  ;;  %v9527_v15 = vadd.f32 %v9471_v19, %v23639_v58  ;;  %v9272_v53 = vadd.f32 %v9171_v23, %v9080_v13  ;;  %v9532_v33 = vadd.f32 %v9476_v5, %v8984_v2 }
 0x4a6   : > { %v23761_v63 = vsel %vm2381_vm5, %v9904_v37, %v9906_v41  ;;  %v9431_v56 = vadd.f32 %v9374_v31, %v9173_v18  ;;  %v23764_v20 = vrot.slane %v23029_v51, 1  ;;  %v8987_v7 = vrot.slane %v23020_v26, 1  ;;  %v27071_v31 = vld [vmem:[#allocation283_spill] sm:$0xff] }
 0x4a7   : > { %v9789_v61 = vmul.f32 %v9693_v60, %v9581_v10  ;;  %v9273_v36 = vadd.f32 %v9173_v18, %v9081_v32  ;;  %v9588_v59 = vadd.f32 %v9531_v1, %v9171_v23  ;;  %v9478_v40 = vadd.f32 %v9430_v44, %v23029_v51  ;;  %v27072_v32 = vld [vmem:[#allocation127_spill] sm:$0xff] }
 0x4a8   : > { %v23773_v2 = vsel %vm2381_vm5, %v9898_v30, %v9899_v27  ;;  %v9909_v3 = vrot.slane %v23748_v9, 7  ;;  %v9701_v41 = vsel %vm2769_vm6, %v9699_v42, %v9700_v22  ;;  %v9426_v21 = vadd.f32 %v9369_v0, %v23669_v38  ;;  %v9627_v27 = vld [vmem:[%s25398_s11 + $0xc8] sm:$0xff] }
 0x4a9   : > { %v9911_v54 = vrot.slane %v9794_v46, 7  ;;  %v9584_v39 = vadd.f32 %v9527_v15, %v23669_v38  ;;  %v9320_v60 = vadd.f32 %v9272_v53, %v23029_v51  ;;  %v9589_v55 = vadd.f32 %v9532_v33, %v9173_v18 }
 0x4aa   : > { %v8988_v19 = vsel %vm2769_vm6, %v23764_v20, %v8987_v7  ;;  %v23793_v13 = vrot.slane %v23029_v51, 2  ;;  %v9175_v5 = vrot.slane %v23020_v26, 2  ;;  %v9479_v47 = vadd.f32 %v9431_v56, %v23020_v26 }
 0x4ab   : > { %v9903_v33 = vrot.slane %v9789_v61, 7  ;;  %v9321_v30 = vadd.f32 %v9273_v36, %v23020_v26  ;;  %v23798_v9 = vmul.f32 %v9701_v41, %v9588_v59  ;;  %v9534_v23 = vadd.f32 %v9478_v40, %v8988_v19 }
 0x4ac   : > { %v9474_v10 = vadd.f32 %v9426_v21, %v27071_v31  ;;  %v9177_v44 = vrot.slane %v27072_v32, 2  ;;  %v9702_v1 = vrot.slane %v23785_v25, 1  ;;  %v9703_v18 = vrot.slane %v9627_v27, 1 }
 0x4ad   : > { %v27073_v0 = vrot.slane %v23698_v48, 1  ;;  %v9797_v15 = vmul.f32 %v9700_v22, %v9589_v55  ;;  %v9083_v53 = vadd.f32 %v8988_v19, %v23029_v51  ;;  %v9076_v56 = vadd.f32 %v23639_v58, %v27070_v28 }
 0x4ae   : > { %v9084_v61 = vadd.f32 %v8987_v7, %v23020_v26  ;;  %v9176_v36 = vsel %vm1088_vm1, %v23793_v13, %v9175_v5  ;;  %v9376_v59 = vadd.f32 %v9320_v60, %v8988_v19  ;;  %v9535_v40 = vadd.f32 %v9479_v47, %v8987_v7  ;;  %v23830_v19 = vld [vmem:[%s25396_s9 + $0x1] ss:$0 sm:$0xff] }
 0x4af   : > { %v9792_v46 = vmul.f32 %v27073_v0, %v9584_v39  ;;  %v9914_v41 = vrot.slane %v23798_v9, 7  ;;  %v9591_v21 = vadd.f32 %v9534_v23, %v9176_v36  ;;  %v23813_v27 = vrot.slane %v23061_v45, 1  ;;  %v27078_v9 = vld [vmem:[#allocation237_spill] sm:$0xff] }
 0x4b0   : > { %v23816_v48 = vrot.slane %v23056_v11, 1  ;;  %v23819_v51 = vsel %vm2381_vm5, %v9909_v3, %v9911_v54  ;;  %v9530_v58 = vadd.f32 %v9474_v10, %v23709_v49  ;;  %v9178_v26 = vsel %vm1088_vm1, %v9175_v5, %v9177_v44 }
 0x4b1   : > { %v9704_v28 = vsel %vm2769_vm6, %v9702_v1, %v9703_v18  ;;  %v9908_v22 = vrot.slane %v9792_v46, 7  ;;  %v9916_v39 = vrot.slane %v9797_v15, 7  ;;  %v9275_v60 = vadd.f32 %v9176_v36, %v9083_v53 }
 0x4b2   : > { %v9268_v55 = vadd.f32 %v23669_v38, %v9076_v56  ;;  %v23835_v54 = vsel %vm2381_vm5, %v9903_v33, %v9904_v37  ;;  %v9377_v5 = vadd.f32 %v9321_v30, %v8987_v7  ;;  %v9433_v47 = vadd.f32 %v9376_v59, %v9176_v36  ;;  %v27074_v30 = vld [vmem:[#allocation130_spill] sm:$0xff] }
 0x4b3   : > { %v9592_v23 = vadd.f32 %v9535_v40, %v9178_v26  ;;  %v23840_v10 = vsel %vm2381_vm5, %v9914_v41, %v9916_v39  ;;  %v9276_v32 = vadd.f32 %v9178_v26, %v9084_v61  ;;  %v23842_v38 = vmul.f32 %v9704_v28, %v9591_v21 }
 0x4b4   : > { %v8991_v44 = vsel %vm2769_vm6, %v23813_v27, %v23816_v48  ;;  %v9587_v37 = vadd.f32 %v9530_v58, %v23726_v6  ;;  %v23854_v7 = vrot.slane %v23061_v45, 2  ;;  %v9180_v33 = vrot.slane %v23056_v11, 2 }
 0x4b5   : > { %v9182_v46 = vrot.slane %v27074_v30, 2  ;;  %v23860_v56 = vsel %vm2381_vm5, %v9908_v22, %v9909_v3  ;;  %v9323_v61 = vadd.f32 %v9275_v60, %v23061_v45  ;;  %v9316_v36 = vadd.f32 %v9268_v55, %v27071_v31 }
 0x4b6   : > { %v9434_v40 = vadd.f32 %v9377_v5, %v9178_v26  ;;  %v9800_v21 = vmul.f32 %v9703_v18, %v9592_v23  ;;  %v9086_v58 = vadd.f32 %v8991_v44, %v23061_v45  ;;  %v9324_v39 = vadd.f32 %v9276_v32, %v23056_v11 }
 0x4b7   : > { %v9087_v3 = vadd.f32 %v23816_v48, %v23056_v11  ;;  %v9795_v55 = vmul.f32 %v9699_v42, %v9587_v37  ;;  %v9181_v18 = vsel %vm1088_vm1, %v23854_v7, %v9180_v33  ;;  %v23877_v26 = vsel %vm1088_vm1, %v9180_v33, %v9182_v46 }
 0x4b8   : > { %v9372_v30 = vadd.f32 %v9316_v36, %v23709_v49  ;;  %v9921_v42 = vrot.slane %v9800_v21, 7  ;;  %v9278_v37 = vadd.f32 %v9181_v18, %v9086_v58  ;;  %v9380_v21 = vadd.f32 %v9324_v39, %v23816_v48  ;;  %v23896_v58 = vld [vmem:[%s25398_s11 + $0xd0] sm:$0xff]  ;;  %v23907_v39 = vld [vmem:[%s25398_s11 + $0xd8] sm:$0xff] }
 0x4b9   : > { %v9279_v46 = vadd.f32 %v23877_v26, %v9087_v3 }
 0x523   : > { %v16370_v0 = vpop.f32.mrb[128].mxu0 }
 0x524   : > { %v8620_v15 = vmul.f32 %v16370_v0, %v23830_v19  ;;  %v8423_v53 = vpop.f32.mrb[129].mxu0  ;;  %v9919_v0 = vrot.slane %v23842_v38, 7 }
 0x525   : > { %v8619_v59 = vmul.f32 %v23830_v19, %v8423_v53 }
 0x526   : > { %v8657_v28 = vadd.f32 %v23850_v14, %v8620_v15  ;;  %v9379_v15 = vadd.f32 %v9323_v61, %v8991_v44 }
 0x527   : > { %v8656_v22 = vadd.f32 %v23850_v14, %v8619_v59  ;;  %v16373_v60 = vpop.f32.mrb[130].mxu0 }
 0x528   : > { %v9971_v5 = vadd.f32 %v22841_v29, %v8657_v28  ;;  %v8622_v23 = vmul.f32 %v16373_v60, %v23830_v19  ;;  %v8433_v32 = vpop.f32.mrb[131].mxu0  ;;  %v9481_v29 = vadd.f32 %v9433_v47, %v23061_v45  ;;  %v23902_v60 = vadd.f32 %v9379_v15, %v9181_v18 }
 0x529   : > { %v9970_v53 = vadd.f32 %v22925_v4, %v8656_v22  ;;  %v8621_v8 = vmul.f32 %v23830_v19, %v8433_v32  ;;  %v9913_v4 = vrot.slane %v9795_v55, 7  ;;  %v9429_v22 = vadd.f32 %v9372_v30, %v23726_v6  ;;  %v27075_v55 = vld [vmem:[#allocation22_spill] sm:$0xff] }
 0x52a   : > { %v10003_v59 = vmax.f32 %v9971_v5, 0.0  ;;  %14307 = vst.msk [vmem:[%s22275_s24 + $0x208] sm:$0xff] %vm1446_vm4, %v9971_v5  ;;  %v8659_v33 = vadd.f32 %v23850_v14, %v8622_v23  ;;  %v9482_v32 = vadd.f32 %v9434_v40, %v23056_v11  ;;  %v9706_v11 = vrot.slane %v23907_v39, 1  ;;  %v27076_v40 = vld [vmem:[#allocation72_spill] sm:$0xff] }
 0x52b   : > { %v10002_v28 = vmax.f32 %v9970_v53, 0.0  ;;  %14306 = vst.msk [vmem:[%s22275_s24 + $0x200] sm:$0xff] %vm1446_vm4, %v9970_v53  ;;  %v8658_v61 = vadd.f32 %v23850_v14, %v8621_v8  ;;  %v16376_v36 = vpop.f32.mrb[132].mxu0  ;;  %v9537_v53 = vadd.f32 %v9481_v29, %v8991_v44  ;;  %v9705_v8 = vrot.slane %v23896_v58, 1 }
 0x52c   : > { %10107 = vst.msk [vmem:[#allocation2 + $0x30] sm:$0xff] %vm1446_vm4, %v10003_v59  ;;  %v9973_v3 = vadd.f32 %v23068_v24, %v8659_v33  ;;  %v8624_v45 = vmul.f32 %v16376_v36, %v23830_v19  ;;  %v8443_v47 = vpop.f32.mrb[133].mxu0  ;;  %v23915_v24 = vsel %vm2381_vm5, %v9919_v0, %v9921_v42  ;;  %v23928_v42 = vsel %vm2381_vm5, %v9913_v4, %v9914_v41  ;;  %v27077_v36 = vld [vmem:[#allocation285_spill] sm:$0xff] }
 0x52d   : > { %10106 = vst.msk [vmem:[#allocation2 + $0x28] sm:$0xff] %vm1446_vm4, %v10002_v28  ;;  %v9972_v5 = vadd.f32 %v27075_v55, %v8658_v61  ;;  %v8623_v23 = vmul.f32 %v23830_v19, %v8443_v47  ;;  %v9538_v47 = vadd.f32 %v9482_v32, %v23816_v48  ;;  %v9079_v55 = vadd.f32 %v23709_v49, %v27071_v31  ;;  %v27080_v31 = vld [vmem:[#allocation66_spill] sm:$0xff] }
 0x52e   : > { %v10005_v30 = vmax.f32 %v9973_v3, 0.0  ;;  %14309 = vst.msk [vmem:[%s22275_s24 + $0x218] sm:$0xff] %vm1446_vm4, %v9973_v3  ;;  %v8661_v15 = vadd.f32 %v23850_v14, %v8624_v45  ;;  %v9477_v3 = vadd.f32 %v9429_v22, %v27077_v36  ;;  %v23936_v45 = vadd.f32 %v9380_v21, %v23877_v26 }
 0x52f   : > { %v10004_v59 = vmax.f32 %v9972_v5, 0.0  ;;  %14308 = vst.msk [vmem:[%s22275_s24 + $0x210] sm:$0xff] %vm1446_vm4, %v9972_v5  ;;  %v8660_v33 = vadd.f32 %v23850_v14, %v8623_v23  ;;  %v16379_v28 = vpop.f32.mrb[134].mxu0  ;;  %v9594_v22 = vadd.f32 %v9537_v53, %v9181_v18  ;;  %v9707_v49 = vsel %vm2769_vm6, %v9705_v8, %v9706_v11  ;;  %v27081_v18 = vld [vmem:[#allocation80_spill] sm:$0xff] }
 0x530   : > { %10109 = vst.msk [vmem:[#allocation2 + $0x50] sm:$0xff] %vm1446_vm4, %v10005_v30  ;;  %v9975_v44 = vadd.f32 %v27076_v40, %v8661_v15  ;;  %v8626_v29 = vmul.f32 %v16379_v28, %v23830_v19  ;;  %v8453_v61 = vpop.f32.mrb[135].mxu0  ;;  %v27079_v30 = vld [vmem:[#allocation74_spill] sm:$0xff]  ;;  %v23957_v48 = vadd.f32 %v9279_v46, %v27080_v31  ;;  %v9533_v40 = vadd.f32 %v9477_v3, %v23764_v20 }
 0x531   : > { %10108 = vst.msk [vmem:[#allocation2 + $0x48] sm:$0xff] %vm1446_vm4, %v10004_v59  ;;  %v9974_v41 = vadd.f32 %v27078_v9, %v8660_v33  ;;  %v8625_v4 = vmul.f32 %v23830_v19, %v8453_v61  ;;  %v9326_v21 = vadd.f32 %v9278_v37, %v27079_v30  ;;  %v9595_v9 = vadd.f32 %v9538_v47, %v23877_v26 }
 0x532   : > { %v10007_v5 = vmax.f32 %v9975_v44, 0.0  ;;  %14311 = vst.msk [vmem:[%s22275_s24 + $0x228] sm:$0xff] %vm1446_vm4, %v9975_v44  ;;  %v8663_v23 = vadd.f32 %v23850_v14, %v8626_v29  ;;  %v23966_v44 = vrot.slane %v27079_v30, 1 }
 0x533   : > { %v10006_v15 = vmax.f32 %v9974_v41, 0.0  ;;  %14310 = vst.msk [vmem:[%s22275_s24 + $0x220] sm:$0xff] %vm1446_vm4, %v9974_v41  ;;  %v8662_v59 = vadd.f32 %v23850_v14, %v8625_v4  ;;  %v16382_v33 = vpop.f32.mrb[136].mxu0  ;;  %v23973_v61 = vld [vmem:[#allocation2 + $0x30] sm:$0xff]  ;;  %v9271_v41 = vadd.f32 %v23726_v6, %v9079_v55  ;;  %v23991_v6 = vrot.slane %v27079_v30, 2 }
 0x534   : > { %10111 = vst.msk [vmem:[#allocation2 + $0x70] sm:$0xff] %vm1446_vm4, %v10007_v5  ;;  %v9977_v37 = vadd.f32 %v27081_v18, %v8663_v23  ;;  %v8628_v32 = vmul.f32 %v16382_v33, %v23830_v19  ;;  %v8463_v53 = vpop.f32.mrb[137].mxu0  ;;  %v23962_v28 = vld [vmem:[#allocation2 + $0x28] sm:$0xff]  ;;  %v23985_v5 = vrot.slane %v27080_v31, 1  ;;  %v9386_v55 = vrot.slane %v27080_v31, 2 }
 0x535   : > { %10110 = vst.msk [vmem:[#allocation2 + $0x68] sm:$0xff] %vm1446_vm4, %v10006_v15  ;;  %v9976_v46 = vadd.f32 %v23274_v34, %v8662_v59  ;;  %v8627_v29 = vmul.f32 %v23830_v19, %v8463_v53  ;;  %16421 = vmatprep.mubr.msk.f32.mxu1 %vm1446_vm4, %v23962_v28  ;;  %v23982_v34 = vmul.f32 %v9707_v49, %v9594_v22  ;;  %v27082_v49 = vld [vmem:[#allocation83_spill] sm:$0xff] }
 0x536   : > { %v10009_v3 = vmax.f32 %v9977_v37, 0.0  ;;  %14313 = vst.msk [vmem:[%s22275_s24 + $0x238] sm:$0xff] %vm1446_vm4, %v9977_v37  ;;  %v8665_v4 = vadd.f32 %v23850_v14, %v8628_v32  ;;  %16422 = vmatmul.mubr.msk.f32.gmra.mrb[34].mxu1 %vm1446_vm4, %v23973_v61  ;;  %v9388_v18 = vrot.slane %v27082_v49, 2  ;;  %v9082_v37 = vadd.f32 %v23764_v20, %v27077_v36 }
 0x537   : > { %v10008_v23 = vmax.f32 %v9976_v46, 0.0  ;;  %14312 = vst.msk [vmem:[%s22275_s24 + $0x230] sm:$0xff] %vm1446_vm4, %v9976_v46  ;;  %v8664_v26 = vadd.f32 %v23850_v14, %v8627_v29  ;;  %v16385_v47 = vpop.f32.mrb[138].mxu0  ;;  %v9590_v46 = vadd.f32 %v9533_v40, %v23793_v13  ;;  %v9319_v29 = vadd.f32 %v9271_v41, %v27077_v36 }
 0x538   : > { %10113 = vst.msk [vmem:[#allocation2 + $0x90] sm:$0xff] %vm1446_vm4, %v10009_v3  ;;  %v9979_v22 = vadd.f32 %v23277_v16, %v8665_v4  ;;  %v8630_v15 = vmul.f32 %v16385_v47, %v23830_v19  ;;  %v8473_v59 = vpop.f32.mrb[139].mxu0  ;;  %v23997_v33 = vld [vmem:[#allocation2 + $0x48] sm:$0xff]  ;;  %v24007_v16 = vld [vmem:[#allocation2 + $0x50] sm:$0xff] }
 0x539   : > { %10112 = vst.msk [vmem:[#allocation2 + $0x88] sm:$0xff] %vm1446_vm4, %v10008_v23  ;;  %v9978_v32 = vadd.f32 %v23353_v35, %v8664_v26  ;;  %v8629_v53 = vmul.f32 %v23830_v19, %v8473_v59  ;;  %16424 = vmatprep.mubr.msk.f32.mxu1 %vm1446_vm4, %v23997_v33  ;;  %v24018_v35 = vmul.f32 %v9706_v11, %v9595_v9  ;;  %v27083_v59 = vld [vmem:[#allocation287_spill] sm:$0xff] }
 0x53a   : > { %v10011_v3 = vmax.f32 %v9979_v22, 0.0  ;;  %14315 = vst.msk [vmem:[%s22275_s24 + $0x248] sm:$0xff] %vm1446_vm4, %v9979_v22  ;;  %v8667_v4 = vadd.f32 %v23850_v14, %v8630_v15  ;;  %16425 = vmatmul.mubr.msk.f32.gmra.mrb[36].mxu1 %vm1446_vm4, %v24007_v16  ;;  %v24023_v23 = vsel %vm2769_vm6, %v23966_v44, %v23985_v5  ;;  %v9274_v15 = vadd.f32 %v23793_v13, %v9082_v37 }
 0x53b   : > { %v10010_v40 = vmax.f32 %v9978_v32, 0.0  ;;  %14314 = vst.msk [vmem:[%s22275_s24 + $0x240] sm:$0xff] %vm1446_vm4, %v9978_v32  ;;  %v8666_v36 = vadd.f32 %v23850_v14, %v8629_v53  ;;  %v16388_v41 = vpop.f32.mrb[140].mxu0  ;;  %v9382_v47 = vadd.f32 %v24023_v23, %v9326_v21  ;;  %v9085_v49 = vadd.f32 %v23813_v27, %v27083_v59 }
 0x53c   : > { %10115 = vst.msk [vmem:[#allocation2 + $0xb0] sm:$0xff] %vm1446_vm4, %v10011_v3  ;;  %v9981_v39 = vadd.f32 %v23346_v17, %v8667_v4  ;;  %v8632_v11 = vmul.f32 %v16388_v41, %v23830_v19  ;;  %v8483_v9 = vpop.f32.mrb[141].mxu0  ;;  %v24033_v22 = vld [vmem:[#allocation2 + $0x68] sm:$0xff]  ;;  %v24043_v17 = vld [vmem:[#allocation2 + $0x70] sm:$0xff]  ;;  %v9375_v53 = vadd.f32 %v9319_v29, %v23764_v20  ;;  %v9383_v37 = vadd.f32 %v23985_v5, %v23957_v48 }
 0x53d   : > { %10114 = vst.msk [vmem:[#allocation2 + $0xa8] sm:$0xff] %vm1446_vm4, %v10010_v40  ;;  %v9980_v21 = vadd.f32 %v23421_v12, %v8666_v36  ;;  %v8631_v32 = vmul.f32 %v23830_v19, %v8483_v9  ;;  %16427 = vmatprep.mubr.msk.f32.mxu1 %vm1446_vm4, %v24033_v22  ;;  %v9798_v12 = vmul.f32 %v9702_v1, %v9590_v46  ;;  %v9926_v29 = vrot.slane %v24018_v35, 7 }
 0x53e   : > { %v10013_v3 = vmax.f32 %v9981_v39, 0.0  ;;  %14317 = vst.msk [vmem:[%s22275_s24 + $0x258] sm:$0xff] %vm1446_vm4, %v9981_v39  ;;  %v8669_v4 = vadd.f32 %v23850_v14, %v8632_v11  ;;  %16428 = vmatmul.mubr.msk.f32.gmra.mrb[38].mxu1 %vm1446_vm4, %v24043_v17  ;;  %v24057_v40 = vsel %vm1088_vm1, %v23991_v6, %v9386_v55  ;;  %v24064_v41 = vsel %vm1088_vm1, %v9386_v55, %v9388_v18 }
 0x53f   : > { %v10012_v36 = vmax.f32 %v9980_v21, 0.0  ;;  %14316 = vst.msk [vmem:[%s22275_s24 + $0x250] sm:$0xff] %vm1446_vm4, %v9980_v21  ;;  %v8668_v20 = vadd.f32 %v23850_v14, %v8631_v32  ;;  %v16391_v48 = vpop.f32.mrb[142].mxu0  ;;  %v9322_v11 = vadd.f32 %v9274_v15, %v27083_v59  ;;  %v9277_v9 = vadd.f32 %v23854_v7, %v9085_v49 }
 0x540   : > { %10117 = vst.msk [vmem:[#allocation2 + $0xd0] sm:$0xff] %vm1446_vm4, %v10013_v3  ;;  %v9983_v25 = vadd.f32 %v23404_v52, %v8669_v4  ;;  %v8634_v1 = vmul.f32 %v16391_v48, %v23830_v19  ;;  %v8493_v46 = vpop.f32.mrb[143].mxu0  ;;  %v24069_v39 = vld [vmem:[#allocation2 + $0x88] sm:$0xff]  ;;  %v24078_v52 = vld [vmem:[#allocation2 + $0x90] sm:$0xff]  ;;  %v9432_v21 = vadd.f32 %v9375_v53, %v23793_v13  ;;  %v9439_v32 = vadd.f32 %v24057_v40, %v9382_v47  ;;  %v24094_v13 = vld [vmem:[%s25398_s11 + $0xe0] sm:$0xff] }
 0x541   : > { %10116 = vst.msk [vmem:[#allocation2 + $0xc8] sm:$0xff] %vm1446_vm4, %v10012_v36  ;;  %v9982_v55 = vadd.f32 %v23454_v43, %v8668_v20  ;;  %v8633_v18 = vmul.f32 %v23830_v19, %v8493_v46  ;;  %16430 = vmatprep.mubr.msk.f32.mxu1 %vm1446_vm4, %v24069_v39  ;;  %v9484_v43 = vadd.f32 %v23902_v60, %v27079_v30  ;;  %v9918_v36 = vrot.slane %v9798_v12, 7  ;;  %v24108_v48 = vld [vmem:[%s25398_s11 + $0xe8] sm:$0xff]  ;;  %v27084_v12 = vld [vmem:[#allocation107_spill] sm:$0xff] }
 0x542   : > { %v10015_v3 = vmax.f32 %v9983_v25, 0.0  ;;  %14319 = vst.msk [vmem:[%s22275_s24 + $0x268] sm:$0xff] %vm1446_vm4, %v9983_v25  ;;  %v8671_v15 = vadd.f32 %v23850_v14, %v8634_v1  ;;  %16431 = vmatmul.mubr.msk.f32.gmra.mrb[40].mxu1 %vm1446_vm4, %v24078_v52  ;;  %v9485_v49 = vadd.f32 %v23936_v45, %v27080_v31  ;;  %v9440_v20 = vadd.f32 %v24064_v41, %v9383_v37 }
 0x543   : > { %v10014_v47 = vmax.f32 %v9982_v55, 0.0  ;;  %14318 = vst.msk [vmem:[%s22275_s24 + $0x260] sm:$0xff] %vm1446_vm4, %v9982_v55  ;;  %v8670_v53 = vadd.f32 %v23850_v14, %v8633_v18  ;;  %v16394_v4 = vpop.f32.mrb[144].mxu0  ;;  %v9378_v25 = vadd.f32 %v9322_v11, %v23813_v27  ;;  %v9325_v37 = vadd.f32 %v9277_v9, %v27084_v12  ;;  %v24117_v46 = vld [vmem:[#allocation2 + $0xb0] sm:$0xff] }
 0x544   : > { %10119 = vst.msk [vmem:[#allocation2 + $0xf0] sm:$0xff] %vm1446_vm4, %v10015_v3  ;;  %v9985_v60 = vadd.f32 %v23451_v50, %v8671_v15  ;;  %v8636_v45 = vmul.f32 %v16394_v4, %v23830_v19  ;;  %v8503_v30 = vpop.f32.mrb[145].mxu0  ;;  %v24103_v31 = vld [vmem:[#allocation2 + $0xa8] sm:$0xff]  ;;  %v9480_v55 = vadd.f32 %v9432_v21, %v27083_v59  ;;  %v9708_v18 = vrot.slane %v24094_v13, 1 }
 0x545   : > { %10118 = vst.msk [vmem:[#allocation2 + $0xe8] sm:$0xff] %vm1446_vm4, %v10014_v47  ;;  %v9984_v1 = vadd.f32 %v23470_v62, %v8670_v53  ;;  %v8635_v50 = vmul.f32 %v23830_v19, %v8503_v30  ;;  %16433 = vmatprep.mubr.msk.f32.mxu1 %vm1446_vm4, %v24103_v31  ;;  %v9540_v62 = vadd.f32 %v9484_v43, %v24023_v23  ;;  %v9709_v53 = vrot.slane %v24108_v48, 1 }
 0x546   : > { %v10017_v3 = vmax.f32 %v9985_v60, 0.0  ;;  %14321 = vst.msk [vmem:[%s22275_s24 + $0x278] sm:$0xff] %vm1446_vm4, %v9985_v60  ;;  %v8673_v11 = vadd.f32 %v23850_v14, %v8636_v45  ;;  %16434 = vmatmul.mubr.msk.f32.gmra.mrb[42].mxu1 %vm1446_vm4, %v24117_v46  ;;  %v9541_v9 = vadd.f32 %v9485_v49, %v23985_v5  ;;  %v24134_v21 = vsel %vm2381_vm5, %v9918_v36, %v9919_v0  ;;  %v27085_v45 = vld [vmem:[#allocation53_spill] sm:$0xff] }
 0x547   : > { %v10016_v15 = vmax.f32 %v9984_v1, 0.0  ;;  %14320 = vst.msk [vmem:[%s22275_s24 + $0x270] sm:$0xff] %vm1446_vm4, %v9984_v1  ;;  %v8672_v47 = vadd.f32 %v23850_v14, %v8635_v50  ;;  %v16397_v59 = vpop.f32.mrb[146].mxu0  ;;  %v9435_v4 = vadd.f32 %v9378_v25, %v23854_v7  ;;  %v9381_v38 = vadd.f32 %v23966_v44, %v9325_v37  ;;  %v27086_v37 = vld [vmem:[#allocation265_spill] sm:$0xff] }
 0x548   : > { %10121 = vst.msk [vmem:[#allocation2 + $0x110] sm:$0xff] %vm1446_vm4, %v10017_v3  ;;  %v9987_v23 = vadd.f32 %v23688_v57, %v8673_v11  ;;  %v8638_v5 = vmul.f32 %v16397_v59, %v23830_v19  ;;  %v8513_v43 = vpop.f32.mrb[147].mxu0  ;;  %v24140_v49 = vld [vmem:[#allocation2 + $0xc8] sm:$0xff]  ;;  %v24149_v57 = vld [vmem:[#allocation2 + $0xd0] sm:$0xff]  ;;  %v9536_v60 = vadd.f32 %v9480_v55, %v23813_v27  ;;  %v9487_v30 = vadd.f32 %v9439_v32, %v27085_v45 }
 0x549   : > { %10120 = vst.msk [vmem:[#allocation2 + $0x108] sm:$0xff] %vm1446_vm4, %v10016_v15  ;;  %v9986_v0 = vadd.f32 %v23773_v2, %v8672_v47  ;;  %v8637_v36 = vmul.f32 %v23830_v19, %v8513_v43  ;;  %16436 = vmatprep.mubr.msk.f32.mxu1 %vm1446_vm4, %v24140_v49  ;;  %v9491_v2 = vrot.slane %v27085_v45, 1  ;;  %v9492_v50 = vrot.slane %v27086_v37, 1 }
 0x54a   : > { %v10019_v1 = vmax.f32 %v9987_v23, 0.0  ;;  %14323 = vst.msk [vmem:[%s22275_s24 + $0x288] sm:$0xff] %vm1446_vm4, %v9987_v23  ;;  %v8675_v25 = vadd.f32 %v23850_v14, %v8638_v5  ;;  %16437 = vmatmul.mubr.msk.f32.gmra.mrb[44].mxu1 %vm1446_vm4, %v24149_v57  ;;  %v24164_v32 = vadd.f32 %v9540_v62, %v24057_v40  ;;  %v24167_v55 = vadd.f32 %v9440_v20, %v27086_v37 }
 0x54b   : > { %v10018_v3 = vmax.f32 %v9986_v0, 0.0  ;;  %14322 = vst.msk [vmem:[%s22275_s24 + $0x280] sm:$0xff] %vm1446_vm4, %v9986_v0  ;;  %v8674_v11 = vadd.f32 %v23850_v14, %v8637_v36  ;;  %v16400_v27 = vpop.f32.mrb[148].mxu0  ;;  %v9483_v5 = vadd.f32 %v9435_v4, %v27084_v12  ;;  %v9438_v43 = vadd.f32 %v23991_v6, %v9381_v38 }
 0x54c   : > { %10123 = vst.msk [vmem:[#allocation2 + $0x130] sm:$0xff] %vm1446_vm4, %v10019_v1  ;;  %v9989_v15 = vadd.f32 %v23761_v63, %v8675_v25  ;;  %v8640_v47 = vmul.f32 %v16400_v27, %v23830_v19  ;;  %v8523_v59 = vpop.f32.mrb[149].mxu0  ;;  %v24172_v23 = vld [vmem:[#allocation2 + $0xe8] sm:$0xff]  ;;  %v24181_v63 = vld [vmem:[#allocation2 + $0xf0] sm:$0xff]  ;;  %v24184_v62 = vadd.f32 %v9541_v9, %v24064_v41  ;;  %v9546_v0 = vrot.slane %v27085_v45, 2 }
 0x54d   : > { %10122 = vst.msk [vmem:[#allocation2 + $0x128] sm:$0xff] %vm1446_vm4, %v10018_v3  ;;  %v9988_v40 = vadd.f32 %v23835_v54, %v8674_v11  ;;  %v8639_v20 = vmul.f32 %v23830_v19, %v8523_v59  ;;  %16439 = vmatprep.mubr.msk.f32.mxu1 %vm1446_vm4, %v24172_v23  ;;  %v9593_v54 = vadd.f32 %v9536_v60, %v23854_v7  ;;  %v9547_v7 = vrot.slane %v27086_v37, 2  ;;  %v27087_v59 = vld [vmem:[#allocation181_spill] sm:$0xff] }
 0x54e   : > { %v10021_v12 = vmax.f32 %v9989_v15, 0.0  ;;  %14325 = vst.msk [vmem:[%s22275_s24 + $0x298] sm:$0xff] %vm1446_vm4, %v9989_v15  ;;  %v8677_v4 = vadd.f32 %v23850_v14, %v8640_v47  ;;  %16440 = vmatmul.mubr.msk.f32.gmra.mrb[46].mxu1 %vm1446_vm4, %v24181_v63  ;;  %v9493_v38 = vsel %vm2769_vm6, %v9491_v2, %v9492_v50  ;;  %v9710_v1 = vsel %vm2769_vm6, %v9708_v18, %v9709_v53  ;;  %v24216_v15 = vld [vmem:[%s25398_s11 + $0xf0] sm:$0xff]  ;;  %v24221_v47 = vld [vmem:[%s25398_s11 + $0xf8] sm:$0xff] }
 0x54f   : > { %v10020_v41 = vmax.f32 %v9988_v40, 0.0  ;;  %14324 = vst.msk [vmem:[%s22275_s24 + $0x290] sm:$0xff] %vm1446_vm4, %v9988_v40  ;;  %v8676_v9 = vadd.f32 %v23850_v14, %v8639_v20  ;;  %v16403_v36 = vpop.f32.mrb[150].mxu0  ;;  %v9539_v27 = vadd.f32 %v9483_v5, %v23966_v44  ;;  %v24229_v44 = vld [vmem:[#allocation2 + $0x110] sm:$0xff]  ;;  %v9543_v5 = vadd.f32 %v9493_v38, %v9487_v30 }
 0x550   : > { %10125 = vst.msk [vmem:[#allocation2 + $0x150] sm:$0xff] %vm1446_vm4, %v10021_v12  ;;  %v9991_v60 = vadd.f32 %v23819_v51, %v8677_v4  ;;  %v8642_v25 = vmul.f32 %v16403_v36, %v23830_v19  ;;  %v8533_v3 = vpop.f32.mrb[151].mxu0  ;;  %v24210_v11 = vld [vmem:[#allocation2 + $0x108] sm:$0xff]  ;;  %v9486_v51 = vadd.f32 %v9438_v43, %v27087_v59  ;;  %v27088_v12 = vld [vmem:[#allocation258_spill] sm:$0xff]  ;;  %v9548_v43 = vsel %vm1088_vm1, %v9546_v0, %v9547_v7 }
 0x551   : > { %10124 = vst.msk [vmem:[#allocation2 + $0x148] sm:$0xff] %vm1446_vm4, %v10020_v41  ;;  %v9990_v40 = vadd.f32 %v23860_v56, %v8676_v9  ;;  %v8641_v20 = vmul.f32 %v23830_v19, %v8533_v3  ;;  %16442 = vmatprep.mubr.msk.f32.mxu1 %vm1446_vm4, %v24210_v11  ;;  %v9549_v4 = vrot.slane %v27088_v12, 2  ;;  %v9801_v56 = vmul.f32 %v9705_v8, %v9593_v54 }
 0x552   : > { %v10023_v36 = vmax.f32 %v9991_v60, 0.0  ;;  %14327 = vst.msk [vmem:[%s22275_s24 + $0x2a8] sm:$0xff] %vm1446_vm4, %v9991_v60  ;;  %v8679_v26 = vadd.f32 %v23850_v14, %v8642_v25  ;;  %16443 = vmatmul.mubr.msk.f32.gmra.mrb[48].mxu1 %vm1446_vm4, %v24229_v44  ;;  %v9711_v9 = vrot.slane %v24216_v15, 1  ;;  %v9712_v60 = vrot.slane %v24221_v47, 1 }
 0x553   : > { %v10022_v41 = vmax.f32 %v9990_v40, 0.0  ;;  %14326 = vst.msk [vmem:[%s22275_s24 + $0x2a0] sm:$0xff] %vm1446_vm4, %v9990_v40  ;;  %v8678_v30 = vadd.f32 %v23850_v14, %v8641_v20  ;;  %v16406_v38 = vpop.f32.mrb[152].mxu0  ;;  %v9596_v3 = vadd.f32 %v9539_v27, %v23991_v6  ;;  %v9542_v59 = vadd.f32 %v9491_v2, %v9486_v51 }
 0x554   : > { %10127 = vst.msk [vmem:[#allocation2 + $0x170] sm:$0xff] %vm1446_vm4, %v10023_v36  ;;  %v9993_v58 = vadd.f32 %v23840_v10, %v8679_v26  ;;  %v8644_v8 = vmul.f32 %v16406_v38, %v23830_v19  ;;  %v8543_v54 = vpop.f32.mrb[153].mxu0  ;;  %v24250_v25 = vld [vmem:[#allocation2 + $0x128] sm:$0xff]  ;;  %v24260_v10 = vld [vmem:[#allocation2 + $0x130] sm:$0xff]  ;;  %v24263_v26 = vmul.f32 %v9710_v1, %v24164_v32  ;;  %v9544_v6 = vadd.f32 %v9492_v50, %v24167_v55 }
 0x555   : > { %10126 = vst.msk [vmem:[#allocation2 + $0x168] sm:$0xff] %vm1446_vm4, %v10022_v41  ;;  %v9992_v15 = vadd.f32 %v23928_v42, %v8678_v30  ;;  %v8643_v40 = vmul.f32 %v23830_v19, %v8543_v54  ;;  %16445 = vmatprep.mubr.msk.f32.mxu1 %vm1446_vm4, %v24250_v25  ;;  %v9550_v42 = vsel %vm1088_vm1, %v9547_v7, %v9549_v4  ;;  %v9923_v12 = vrot.slane %v9801_v56, 7 }
 0x556   : > { %v10025_v27 = vmax.f32 %v9993_v58, 0.0  ;;  %14329 = vst.msk [vmem:[%s22275_s24 + $0x2b8] sm:$0xff] %vm1446_vm4, %v9993_v58  ;;  %v8681_v2 = vadd.f32 %v23850_v14, %v8644_v8  ;;  %16446 = vmatmul.mubr.msk.f32.gmra.mrb[50].mxu1 %vm1446_vm4, %v24260_v10  ;;  %v9600_v51 = vadd.f32 %v9548_v43, %v9543_v5  ;;  %v9713_v37 = vsel %vm2769_vm6, %v9711_v9, %v9712_v60 }
 0x557   : > { %v10024_v20 = vmax.f32 %v9992_v15, 0.0  ;;  %14328 = vst.msk [vmem:[%s22275_s24 + $0x2b0] sm:$0xff] %vm1446_vm4, %v9992_v15  ;;  %v8680_v32 = vadd.f32 %v23850_v14, %v8643_v40  ;;  %v16409_v1 = vpop.f32.mrb[154].mxu0  ;;  %v9804_v4 = vmul.f32 %v9708_v18, %v9596_v3  ;;  %v9599_v36 = vadd.f32 %v9546_v0, %v9542_v59 }
 0x558   : > { %10129 = vst.msk [vmem:[#allocation2 + $0x190] sm:$0xff] %vm1446_vm4, %v10025_v27  ;;  %v9995_v50 = vadd.f32 %v23915_v24, %v8681_v2  ;;  %v8646_v55 = vmul.f32 %v16409_v1, %v23830_v19  ;;  %v8553_v7 = vpop.f32.mrb[155].mxu0  ;;  %v24283_v5 = vld [vmem:[#allocation2 + $0x148] sm:$0xff]  ;;  %v24294_v24 = vld [vmem:[#allocation2 + $0x150] sm:$0xff]  ;;  %v9806_v13 = vmul.f32 %v9709_v53, %v24184_v62  ;;  %v9601_v18 = vadd.f32 %v9550_v42, %v9544_v6 }
 0x559   : > { %10128 = vst.msk [vmem:[#allocation2 + $0x188] sm:$0xff] %vm1446_vm4, %v10024_v20  ;;  %v9994_v56 = vadd.f32 %v24134_v21, %v8680_v32  ;;  %v8645_v43 = vmul.f32 %v23830_v19, %v8553_v7  ;;  %16448 = vmatprep.mubr.msk.f32.mxu1 %vm1446_vm4, %v24283_v5  ;;  %v27089_v21 = vrot.slane %v23982_v34, 7  ;;  %v9929_v30 = vrot.slane %v24263_v26, 7 }
 0x55a   : > { %v10027_v41 = vmax.f32 %v9995_v50, 0.0  ;;  %14331 = vst.msk [vmem:[%s22275_s24 + $0x2c8] sm:$0xff] %vm1446_vm4, %v9995_v50  ;;  %v8683_v45 = vadd.f32 %v23850_v14, %v8646_v55  ;;  %16449 = vmatmul.mubr.msk.f32.gmra.mrb[52].mxu1 %vm1446_vm4, %v24294_v24  ;;  %v9808_v35 = vmul.f32 %v9713_v37, %v9600_v51  ;;  %v9928_v3 = vrot.slane %v9804_v4, 7 }
 0x55b   : > { %v9927_v0 = vsel %vm2381_vm5, %v27089_v21, %v9926_v29  ;;  %v10026_v38 = vmax.f32 %v9994_v56, 0.0  ;;  %14330 = vst.msk [vmem:[%s22275_s24 + $0x2c0] sm:$0xff] %vm1446_vm4, %v9994_v56  ;;  %v8682_v48 = vadd.f32 %v23850_v14, %v8645_v43  ;;  %v27090_v53 = vmov %v27089_v21  ;;  %v16412_v58 = vpop.f32.mrb[156].mxu0  ;;  %v24324_v6 = vld [vmem:[#allocation2 + $0x170] sm:$0xff] }
 0x55c   : > { %v9925_v62 = vsel %vm2381_vm5, %v9923_v12, %v27090_v53  ;;  %10131 = vst.msk [vmem:[#allocation2 + $0x1b0] sm:$0xff] %vm1446_vm4, %v10027_v41  ;;  %v9997_v29 = vadd.f32 %v9927_v0, %v8683_v45  ;;  %v8648_v8 = vmul.f32 %v16412_v58, %v23830_v19  ;;  %v8563_v54 = vpop.f32.mrb[157].mxu0  ;;  %v24318_v59 = vld [vmem:[#allocation2 + $0x168] sm:$0xff]  ;;  %v9807_v15 = vmul.f32 %v9711_v9, %v9599_v36 }
 0x55d   : > { %10130 = vst.msk [vmem:[#allocation2 + $0x1a8] sm:$0xff] %vm1446_vm4, %v10026_v38  ;;  %v9996_v40 = vadd.f32 %v9925_v62, %v8682_v48  ;;  %v9931_v34 = vrot.slane %v9806_v13, 7  ;;  %v8647_v26 = vmul.f32 %v23830_v19, %v8563_v54  ;;  %16451 = vmatprep.mubr.msk.f32.mxu1 %vm1446_vm4, %v24318_v59  ;;  %v9809_v27 = vmul.f32 %v9712_v60, %v9601_v18  ;;  %v10138_v48 = vld [vmem:[#allocation2] sm:$0xff]  ;;  %v24372_v62 = vld [vmem:[#allocation2 + $0x8] sm:$0xff]  ;;  %v24385_v54 = vld [vmem:[#allocation2 + $0x10] sm:$0xff] }
 0x55e   : > { %v10029_v2 = vmax.f32 %v9997_v29, 0.0  ;;  %14333 = vst.msk [vmem:[%s22275_s24 + $0x2d8] sm:$0xff] %vm1446_vm4, %v9997_v29  ;;  %v8685_v42 = vadd.f32 %v23850_v14, %v8648_v8  ;;  %16452 = vmatmul.mubr.msk.f32.gmra.mrb[54].mxu1 %vm1446_vm4, %v24324_v6  ;;  %v9934_v1 = vrot.slane %v9808_v35, 7  ;;  %v9930_v60 = vsel %vm2381_vm5, %v9928_v3, %v9929_v30 }
 0x55f   : > { %v10028_v9 = vmax.f32 %v9996_v40, 0.0  ;;  %14332 = vst.msk [vmem:[%s22275_s24 + $0x2d0] sm:$0xff] %vm1446_vm4, %v9996_v40  ;;  %v9932_v51 = vsel %vm2381_vm5, %v9929_v30, %v9931_v34  ;;  %v8684_v20 = vadd.f32 %v23850_v14, %v8647_v26  ;;  %v16415_v32 = vpop.f32.mrb[158].mxu0  ;;  %v9933_v50 = vrot.slane %v9807_v15, 7  ;;  %v24346_v56 = vld [vmem:[#allocation2 + $0x190] sm:$0xff]  ;;  %v10142_v15 = vld [vmem:[#allocation2 + $0x20] sm:$0xff] }
 0x560   : > { %10133 = vst.msk [vmem:[#allocation2 + $0x1d0] sm:$0xff] %vm1446_vm4, %v10029_v2  ;;  %v9999_v47 = vadd.f32 %v9932_v51, %v8685_v42  ;;  %v8650_v12 = vmul.f32 %v16415_v32, %v23830_v19  ;;  %v8573_v37 = vpop.f32.mrb[159].mxu0  ;;  %v24340_v55 = vld [vmem:[#allocation2 + $0x188] sm:$0xff]  ;;  %v9936_v4 = vrot.slane %v9809_v27, 7  ;;  %v10552_v58 = vrot.slane %v24372_v62, 7 }
 0x561   : > { %10132 = vst.msk [vmem:[#allocation2 + $0x1c8] sm:$0xff] %vm1446_vm4, %v10028_v9  ;;  %v9998_v7 = vadd.f32 %v9930_v60, %v8684_v20  ;;  %v8649_v36 = vmul.f32 %v23830_v19, %v8573_v37  ;;  %16454 = vmatprep.mubr.msk.f32.mxu1 %vm1446_vm4, %v24340_v55  ;;  %v9935_v21 = vsel %vm2381_vm5, %v9933_v50, %v9934_v1  ;;  %v10551_v29 = vrot.slane %v10138_v48, 7  ;;  %v10146_v9 = vld [vmem:[#allocation2 + $0x40] sm:$0xff]  ;;  %v24404_v20 = vld [vmem:[%s25395_s8 + $0xa8] sm:$0xff] }
 0x562   : > { %v10031_v43 = vmax.f32 %v9999_v47, 0.0  ;;  %14335 = vst.msk [vmem:[%s22275_s24 + $0x2e8] sm:$0xff] %vm1446_vm4, %v9999_v47  ;;  %v8687_v13 = vadd.f32 %v23850_v14, %v8650_v12  ;;  %16455 = vmatmul.mubr.msk.f32.gmra.mrb[56].mxu1 %vm1446_vm4, %v24346_v56  ;;  %v9937_v19 = vsel %vm2381_vm5, %v9934_v1, %v9936_v4  ;;  %v10554_v3 = vrot.slane %v24385_v54, 7  ;;  %v17651_v60 = vld [vmem:[%s25395_s8 + $0xa0] sm:$0xff] }
 0x563   : > { %v10030_v18 = vmax.f32 %v9998_v7, 0.0  ;;  %14334 = vst.msk [vmem:[%s22275_s24 + $0x2e0] sm:$0xff] %vm1446_vm4, %v9998_v7  ;;  %v8686_v41 = vadd.f32 %v23850_v14, %v8649_v36  ;;  %v24364_v38 = vld [vmem:[#allocation2 + $0x1b0] sm:$0xff]  ;;  %v10553_v34 = vsel %vm2381_vm5, %v10551_v29, %v10552_v58  ;;  %v10557_v27 = vrot.slane %v23962_v28, 7  ;;  %v10150_v12 = vld [vmem:[#allocation2 + $0x60] sm:$0xff] }
 0x564   : > { %10135 = vst.msk [vmem:[#allocation2 + $0x1f0] sm:$0xff] %vm1446_vm4, %v10031_v43  ;;  %v10001_v45 = vadd.f32 %v9937_v19, %v8687_v13  ;;  %v24359_v0 = vld [vmem:[#allocation2 + $0x1a8] sm:$0xff]  ;;  %v10556_v2 = vrot.slane %v10142_v15, 7  ;;  %v10555_v42 = vsel %vm2381_vm5, %v10552_v58, %v10554_v3  ;;  %v10559_v51 = vrot.slane %v23973_v61, 7  ;;  %v10154_v43 = vld [vmem:[#allocation2 + $0x80] sm:$0xff] }
 0x565   : > { %10134 = vst.msk [vmem:[#allocation2 + $0x1e8] sm:$0xff] %vm1446_vm4, %v10030_v18  ;;  %v10000_v30 = vadd.f32 %v9935_v21, %v8686_v41  ;;  %16457 = vmatprep.mubr.msk.f32.mxu1 %vm1446_vm4, %v24359_v0  ;;  %v10561_v1 = vrot.slane %v10146_v9, 7  ;;  %v10562_v47 = vrot.slane %v23997_v33, 7  ;;  %v10564_v50 = vrot.slane %v24007_v16, 7  ;;  %v10158_v21 = vld [vmem:[#allocation2 + $0xa0] sm:$0xff] }
 0x566   : > { %v10033_v53 = vmax.f32 %v10001_v45, 0.0  ;;  %14337 = vst.msk [vmem:[%s22275_s24 + $0x2f8] sm:$0xff] %vm1446_vm4, %v10001_v45  ;;  %16458 = vmatmul.mubr.msk.f32.gmra.mrb[58].mxu1 %vm1446_vm4, %v24364_v38  ;;  %v24408_v32 = vsel %vm2381_vm5, %v10556_v2, %v10557_v27  ;;  %v24418_v37 = vsel %vm2381_vm5, %v10557_v27, %v10559_v51  ;;  %v10566_v4 = vrot.slane %v10150_v12, 7  ;;  %v10162_v29 = vld [vmem:[#allocation2 + $0xc0] sm:$0xff] }
 0x567   : > { %v10032_v14 = vmax.f32 %v10000_v30, 0.0  ;;  %14336 = vst.msk [vmem:[%s22275_s24 + $0x2f0] sm:$0xff] %vm1446_vm4, %v10000_v30  ;;  %v24381_v8 = vld [vmem:[#allocation2 + $0x1d0] sm:$0xff]  ;;  %v24424_v7 = vsel %vm2381_vm5, %v10561_v1, %v10562_v47  ;;  %v10567_v36 = vrot.slane %v24033_v22, 7  ;;  %v24430_v13 = vsel %vm2381_vm5, %v10562_v47, %v10564_v50  ;;  %v10170_v12 = vld [vmem:[#allocation2 + $0x100] sm:$0xff] }
 0x568   : > { %10137 = vst.msk [vmem:[#allocation2 + $0x210] sm:$0xff] %vm1446_vm4, %v10033_v53  ;;  %v24376_v35 = vld [vmem:[#allocation2 + $0x1c8] sm:$0xff]  ;;  %v10569_v18 = vrot.slane %v24043_v17, 7  ;;  %v10571_v41 = vrot.slane %v10154_v43, 7  ;;  %v10572_v45 = vrot.slane %v24069_v39, 7  ;;  %v10574_v48 = vrot.slane %v24078_v52, 7 }
 0x569   : > { %10136 = vst.msk [vmem:[#allocation2 + $0x208] sm:$0xff] %vm1446_vm4, %v10032_v14  ;;  %16460 = vmatprep.mubr.msk.f32.mxu1 %vm1446_vm4, %v24376_v35  ;;  %v24436_v19 = vsel %vm2381_vm5, %v10566_v4, %v10567_v36  ;;  %v10576_v14 = vrot.slane %v10158_v21, 7  ;;  %v10577_v58 = vrot.slane %v24103_v31, 7  ;;  %v10579_v15 = vrot.slane %v24117_v46, 7 }
 0x56a   : > { %16461 = vmatmul.mubr.msk.f32.gmra.mrb[60].mxu1 %vm1446_vm4, %v24381_v8  ;;  %v24442_v30 = vsel %vm2381_vm5, %v10567_v36, %v10569_v18  ;;  %v24448_v53 = vsel %vm2381_vm5, %v10571_v41, %v10572_v45  ;;  %v24454_v3 = vsel %vm2381_vm5, %v10572_v45, %v10574_v48  ;;  %v10581_v27 = vrot.slane %v10162_v29, 7  ;;  %v10174_v41 = vld [vmem:[#allocation2 + $0x120] sm:$0xff] }
 0x56b   : > { %v24393_v26 = vld [vmem:[#allocation2 + $0x1f0] sm:$0xff]  ;;  %v10582_v2 = vrot.slane %v24140_v49, 7  ;;  %v24466_v9 = vsel %vm2381_vm5, %v10577_v58, %v10579_v15  ;;  %v10584_v51 = vrot.slane %v24149_v57, 7  ;;  %v10589_v4 = vrot.slane %v24181_v63, 7  ;;  %v10178_v29 = vld [vmem:[#allocation2 + $0x140] sm:$0xff] }
 0x56c   : > { %v24388_v40 = vld [vmem:[#allocation2 + $0x1e8] sm:$0xff]  ;;  %v10591_v43 = vrot.slane %v10170_v12, 7  ;;  %v10592_v18 = vrot.slane %v24210_v11, 7  ;;  %v10594_v21 = vrot.slane %v24229_v44, 7  ;;  %v10604_v12 = vrot.slane %v24294_v24, 7 }
 0x56d   : > { %16463 = vmatprep.mubr.msk.f32.mxu1 %vm1446_vm4, %v24388_v40  ;;  %v24472_v1 = vsel %vm2381_vm5, %v10581_v27, %v10582_v2  ;;  %v24478_v50 = vsel %vm2381_vm5, %v10582_v2, %v10584_v51  ;;  %v10599_v27 = vrot.slane %v24260_v10, 7  ;;  %v10602_v51 = vrot.slane %v24283_v5, 7 }
 0x56e   : > { %16464 = vmatmul.mubr.msk.f32.gmra.mrb[62].mxu1 %vm1446_vm4, %v24393_v26  ;;  %v24496_v48 = vsel %vm2381_vm5, %v10591_v43, %v10592_v18  ;;  %v24502_v15 = vsel %vm2381_vm5, %v10592_v18, %v10594_v21  ;;  %v10607_v18 = vrot.slane %v24318_v59, 7 }
 0x56f   : > { %16468 = vmatprep.mubr.msk.f32.mxu1 %vm1446_vm4, %v10553_v34  ;;  %v24460_v34 = vsel %vm2381_vm5, %v10576_v14, %v10577_v58  ;;  %v10596_v14 = vrot.slane %v10174_v41, 7  ;;  %v10597_v58 = vrot.slane %v24250_v25, 7  ;;  %v10186_v41 = vld [vmem:[#allocation2 + $0x180] sm:$0xff]  ;;  %v24526_v21 = vsel %vm2381_vm5, %v10602_v51, %v10604_v12 }
 0x570   : > { %27092 = vst [vmem:[#allocation77_spill] sm:$0xff] %v24526_v21 }
 0x571   : > { %v24508_v2 = vsel %vm2381_vm5, %v10596_v14, %v10597_v58  ;;  %v10609_v14 = vrot.slane %v24324_v6, 7 }
 0x572   : > { %16469 = vmatmul.mubr.msk.f32.vlgmr.msra.gmra.mrb[32].mxu1 %vm1446_vm4, %v10555_v42  ;;  %v10166_v42 = vld [vmem:[#allocation2 + $0xe0] sm:$0xff] }
 0x573   : > { %16517 = vmatpush3.msra.mxu1 %v17651_v60  ;;  %16471 = vmatprep.mubr.msk.f32.mxu1 %vm1446_vm4, %v24408_v32  ;;  %v10586_v47 = vrot.slane %v10166_v42, 7  ;;  %v10587_v60 = vrot.slane %v24172_v23, 7  ;;  %v10601_v42 = vrot.slane %v10178_v29, 7  ;;  %v10611_v29 = vrot.slane %v10186_v41, 7 }
 0x574   : > { %16566 = vmatprep.subr.mxu1 %v24404_v20  ;;  %v10617_v41 = vrot.slane %v24359_v0, 7 }
 0x575   : > { %v24484_v36 = vsel %vm2381_vm5, %v10586_v47, %v10587_v60  ;;  %v24490_v45 = vsel %vm2381_vm5, %v10587_v60, %v10589_v4  ;;  %v10182_v47 = vld [vmem:[#allocation2 + $0x160] sm:$0xff]  ;;  %v24514_v60 = vsel %vm2381_vm5, %v10597_v58, %v10599_v27  ;;  %v24520_v4 = vsel %vm2381_vm5, %v10601_v42, %v10602_v51 }
 0x576   : > { %16472 = vmatmul.mubr.msk.f32.gmra.mrb[34].mxu1 %vm1446_vm4, %v24418_v37  ;;  %27091 = vst [vmem:[#allocation21_spill] sm:$0xff] %v24520_v4  ;;  %v10606_v43 = vrot.slane %v10182_v47, 7  ;;  %v10612_v27 = vrot.slane %v24340_v55, 7  ;;  %v10190_v42 = vld [vmem:[#allocation2 + $0x1a0] sm:$0xff]  ;;  %v24538_v47 = vsel %vm2381_vm5, %v10607_v18, %v10609_v14  ;;  %v10614_v51 = vrot.slane %v24346_v56, 7 }
 0x577   : > { %16474 = vmatprep.mubr.msk.f32.mxu1 %vm1446_vm4, %v24424_v7  ;;  %27094 = vst [vmem:[#allocation145_spill] sm:$0xff] %v24538_v47 }
 0x578   : > { %v24532_v58 = vsel %vm2381_vm5, %v10606_v43, %v10607_v18  ;;  %v24544_v12 = vsel %vm2381_vm5, %v10611_v29, %v10612_v27  ;;  %v10616_v43 = vrot.slane %v10190_v42, 7  ;;  %v10619_v18 = vrot.slane %v24364_v38, 7 }
 0x579   : > { %27093 = vst [vmem:[#allocation85_spill] sm:$0xff] %v24532_v58  ;;  %27095 = vst [vmem:[#allocation240_spill] sm:$0xff] %v24544_v12  ;;  %v10622_v42 = vrot.slane %v24376_v35, 7 }
 0x57a   : > { %16475 = vmatmul.mubr.msk.f32.gmra.mrb[36].mxu1 %vm1446_vm4, %v24430_v13  ;;  %v24556_v14 = vsel %vm2381_vm5, %v10616_v43, %v10617_v41 }
 0x57b   : > { %16477 = vmatprep.mubr.msk.f32.mxu1 %vm1446_vm4, %v24436_v19  ;;  %27097 = vst [vmem:[#allocation49_spill] sm:$0xff] %v24556_v14 }
 0x57e   : > { %16478 = vmatmul.mubr.msk.f32.gmra.mrb[38].mxu1 %vm1446_vm4, %v24442_v30 }
 0x57f   : > { %16480 = vmatprep.mubr.msk.f32.mxu1 %vm1446_vm4, %v24448_v53 }
 0x582   : > { %16481 = vmatmul.mubr.msk.f32.gmra.mrb[40].mxu1 %vm1446_vm4, %v24454_v3 }
 0x583   : > { %16483 = vmatprep.mubr.msk.f32.mxu1 %vm1446_vm4, %v24460_v34 }
 0x586   : > { %16484 = vmatmul.mubr.msk.f32.gmra.mrb[42].mxu1 %vm1446_vm4, %v24466_v9 }
 0x587   : > { %16486 = vmatprep.mubr.msk.f32.mxu1 %vm1446_vm4, %v24472_v1 }
 0x58a   : > { %16487 = vmatmul.mubr.msk.f32.gmra.mrb[44].mxu1 %vm1446_vm4, %v24478_v50 }
 0x58b   : > { %16489 = vmatprep.mubr.msk.f32.mxu1 %vm1446_vm4, %v24484_v36 }
 0x58e   : > { %16490 = vmatmul.mubr.msk.f32.gmra.mrb[46].mxu1 %vm1446_vm4, %v24490_v45 }
 0x58f   : > { %16492 = vmatprep.mubr.msk.f32.mxu1 %vm1446_vm4, %v24496_v48 }
 0x592   : > { %16493 = vmatmul.mubr.msk.f32.gmra.mrb[48].mxu1 %vm1446_vm4, %v24502_v15 }
 0x593   : > { %16495 = vmatprep.mubr.msk.f32.mxu1 %vm1446_vm4, %v24508_v2 }
 0x596   : > { %16496 = vmatmul.mubr.msk.f32.gmra.mrb[50].mxu1 %vm1446_vm4, %v24514_v60 }
 0x597   : > { %16498 = vmatprep.mubr.msk.f32.mxu1 %vm1446_vm4, %v24520_v4  ;;  %v10629_v4 = vrot.slane %v24393_v26, 7 }
 0x59a   : > { %16499 = vmatmul.mubr.msk.f32.gmra.mrb[52].mxu1 %vm1446_vm4, %v24526_v21  ;;  %v10194_v21 = vld [vmem:[#allocation2 + $0x1c0] sm:$0xff] }
 0x59b   : > { %16501 = vmatprep.mubr.msk.f32.mxu1 %vm1446_vm4, %v24532_v58  ;;  %v24550_v58 = vsel %vm2381_vm5, %v10612_v27, %v10614_v51  ;;  %v10621_v29 = vrot.slane %v10194_v21, 7  ;;  %v10624_v27 = vrot.slane %v24381_v8, 7  ;;  %v10627_v21 = vrot.slane %v24388_v40, 7 }
 0x59c   : > { %27096 = vst [vmem:[#allocation89_spill] sm:$0xff] %v24550_v58 }
 0x59d   : > { %v24568_v51 = vsel %vm2381_vm5, %v10621_v29, %v10622_v42 }
 0x59e   : > { %16502 = vmatmul.mubr.msk.f32.gmra.mrb[54].mxu1 %vm1446_vm4, %v24538_v47  ;;  %v10198_v47 = vld [vmem:[#allocation2 + $0x1e0] sm:$0xff]  ;;  %27098 = vst [vmem:[#allocation82_spill] sm:$0xff] %v24568_v51 }
 0x59f   : > { %16504 = vmatprep.mubr.msk.f32.mxu1 %vm1446_vm4, %v24544_v12  ;;  %v24562_v12 = vsel %vm2381_vm5, %v10617_v41, %v10619_v18  ;;  %v10626_v43 = vrot.slane %v10198_v47, 7  ;;  %v10141_v41 = vld [vmem:[#allocation2 + $0x18] sm:$0xff]  ;;  %v24576_v18 = vsel %vm2381_vm5, %v10622_v42, %v10624_v27  ;;  %v10943_v42 = vrot.slane %v23962_v28, 1 }
 0x5a0   : > { %27099 = vst [vmem:[#allocation111_spill] sm:$0xff] %v24576_v18  ;;  %v10941_v29 = vrot.slane %v10141_v41, 1  ;;  %v10944_v27 = vrot.slane %v23973_v61, 1  ;;  %v10948_v61 = vrot.slane %v23997_v33, 1  ;;  %v10953_v33 = vrot.slane %v24033_v22, 1 }
 0x5a1   : > { %v24582_v47 = vsel %vm2381_vm5, %v10626_v43, %v10627_v21  ;;  %v10959_v22 = vrot.slane %v24078_v52, 1 }
 0x5a2   : > { %16505 = vmatmul.mubr.msk.f32.gmra.mrb[56].mxu1 %vm1446_vm4, %v24550_v58  ;;  %v10939_v58 = vrot.slane %v24385_v54, 1  ;;  %27100 = vst [vmem:[#allocation86_spill] sm:$0xff] %v24582_v47  ;;  %v24588_v54 = vsel %vm2381_vm5, %v10627_v21, %v10629_v4  ;;  %v24603_v28 = vsel %vm2769_vm6, %v10943_v42, %v10944_v27  ;;  %v10949_v4 = vrot.slane %v24007_v16, 1  ;;  %v10149_v21 = vld [vmem:[#allocation2 + $0x58] sm:$0xff] }
 0x5a3   : > { %16507 = vmatprep.mubr.msk.f32.mxu1 %vm1446_vm4, %v24556_v14  ;;  %v10938_v14 = vrot.slane %v24372_v62, 1  ;;  %27101 = vst [vmem:[#allocation6_spill] sm:$0xff] %v24588_v54  ;;  %v10951_v41 = vrot.slane %v10149_v21, 1  ;;  %v10954_v16 = vrot.slane %v24043_v17, 1  ;;  %v10958_v42 = vrot.slane %v24069_v39, 1  ;;  %v10161_v21 = vld [vmem:[#allocation2 + $0xb8] sm:$0xff] }
 0x5a4   : > { %v10942_v43 = vsel %vm2769_vm6, %v10939_v58, %v10941_v29  ;;  %v10964_v39 = vrot.slane %v24117_v46, 1 }
 0x5a5   : > { %v10940_v62 = vsel %vm2769_vm6, %v10938_v14, %v10939_v58  ;;  %v24599_v14 = vld [vmem:[%s25395_s8 + $0xb0] sm:$0xff]  ;;  %v24624_v29 = vsel %vm2769_vm6, %v10949_v4, %v10951_v41  ;;  %v10966_v41 = vrot.slane %v10161_v21, 1  ;;  %v10978_v21 = vrot.slane %v24210_v11, 1 }
 0x5a6   : > { %16508 = vmatmul.mubr.msk.f32.gmra.mrb[58].mxu1 %vm1446_vm4, %v24562_v12 }
 0x5a7   : > { %16510 = vmatprep.mubr.msk.f32.mxu1 %vm1446_vm4, %v24568_v51  ;;  %v24660_v46 = vsel %vm2769_vm6, %v10964_v39, %v10966_v41  ;;  %v10979_v41 = vrot.slane %v24229_v44, 1 }
 0x5aa   : > { %16511 = vmatmul.mubr.msk.f32.gmra.mrb[60].mxu1 %vm1446_vm4, %v24576_v18  ;;  %v10145_v18 = vld [vmem:[#allocation2 + $0x38] sm:$0xff] }
 0x5ab   : > { %16513 = vmatprep.mubr.msk.f32.mxu1 %vm1446_vm4, %v24582_v47  ;;  %v10946_v51 = vrot.slane %v10145_v18, 1  ;;  %v24617_v18 = vsel %vm2769_vm6, %v10948_v61, %v10949_v4  ;;  %v24641_v61 = vsel %vm2769_vm6, %v10958_v42, %v10959_v22  ;;  %v10963_v4 = vrot.slane %v24103_v31, 1 }
 0x5ac   : > { %v10969_v31 = vrot.slane %v24149_v57, 1 }
 0x5ad   : > { %v24612_v58 = vsel %vm2769_vm6, %v10944_v27, %v10946_v51  ;;  %v10157_v27 = vld [vmem:[#allocation2 + $0x98] sm:$0xff] }
 0x5ae   : > { %16514 = vmatmul.mubr.msk.f32.gmra.mrb[62].mxu1 %vm1446_vm4, %v24588_v54 }
 0x5af   : > { %16518 = vmatprep.mubr.msk.f32.mxu1 %vm1446_vm4, %v10940_v62  ;;  %v24629_v62 = vsel %vm2769_vm6, %v10953_v33, %v10954_v16  ;;  %v24653_v33 = vsel %vm2769_vm6, %v10963_v4, %v10964_v39 }
 0x5b2   : > { %16519 = vmatmul.mubr.msk.f32.vlgmr.msra.gmra.mrb[32].mxu1 %vm1446_vm4, %v10942_v43  ;;  %v10961_v43 = vrot.slane %v10157_v27, 1  ;;  %v10169_v27 = vld [vmem:[#allocation2 + $0xf8] sm:$0xff] }
 0x5b3   : > { %16567 = vmatpush3.msra.mxu1 %v24404_v20  ;;  %16521 = vmatprep.mubr.msk.f32.mxu1 %vm1446_vm4, %v24603_v28  ;;  %v10153_v20 = vld [vmem:[#allocation2 + $0x78] sm:$0xff]  ;;  %v10976_v4 = vrot.slane %v10169_v27, 1  ;;  %v10984_v27 = vrot.slane %v24260_v10, 1 }
 0x5b4   : > { %16616 = vmatprep.subr.mxu1 %v24599_v14  ;;  %v10956_v51 = vrot.slane %v10153_v20, 1  ;;  %v24648_v52 = vsel %vm2769_vm6, %v10959_v22, %v10961_v43  ;;  %v10165_v20 = vld [vmem:[#allocation2 + $0xd8] sm:$0xff]  ;;  %v10973_v22 = vrot.slane %v24172_v23, 1 }
 0x5b6   : > { %16522 = vmatmul.mubr.msk.f32.gmra.mrb[34].mxu1 %vm1446_vm4, %v24612_v58  ;;  %v24636_v17 = vsel %vm2769_vm6, %v10954_v16, %v10956_v51  ;;  %v10968_v16 = vrot.slane %v24140_v49, 1  ;;  %v10971_v51 = vrot.slane %v10165_v20, 1  ;;  %v10974_v49 = vrot.slane %v24181_v63, 1 }
 0x5b7   : > { %16524 = vmatprep.mubr.msk.f32.mxu1 %vm1446_vm4, %v24617_v18 }
 0x5b8   : > { %v24665_v42 = vsel %vm2769_vm6, %v10968_v16, %v10969_v31  ;;  %v24672_v43 = vsel %vm2769_vm6, %v10969_v31, %v10971_v51  ;;  %v24677_v39 = vsel %vm2769_vm6, %v10973_v22, %v10974_v49  ;;  %v10173_v16 = vld [vmem:[#allocation2 + $0x118] sm:$0xff]  ;;  %v24684_v20 = vsel %vm2769_vm6, %v10974_v49, %v10976_v4 }
 0x5b9   : > { %27102 = vst [vmem:[#allocation241_spill] sm:$0xff] %v24672_v43  ;;  %27103 = vst [vmem:[#allocation90_spill] sm:$0xff] %v24677_v39  ;;  %v10981_v31 = vrot.slane %v10173_v16, 1  ;;  %v24689_v51 = vsel %vm2769_vm6, %v10978_v21, %v10979_v41  ;;  %v10983_v22 = vrot.slane %v24250_v25, 1  ;;  %v10988_v21 = vrot.slane %v24283_v5, 1 }
 0x5ba   : > { %16525 = vmatmul.mubr.msk.f32.gmra.mrb[36].mxu1 %vm1446_vm4, %v24624_v29  ;;  %27104 = vst [vmem:[#allocation95_spill] sm:$0xff] %v24684_v20  ;;  %27105 = vst [vmem:[#allocation125_spill] sm:$0xff] %v24689_v51  ;;  %v10989_v16 = vrot.slane %v24294_v24, 1 }
 0x5bb   : > { %16527 = vmatprep.mubr.msk.f32.mxu1 %vm1446_vm4, %v24629_v62  ;;  %v24701_v4 = vsel %vm2769_vm6, %v10983_v22, %v10984_v27  ;;  %v10994_v22 = vrot.slane %v24324_v6, 1 }
 0x5bc   : > { %27107 = vst [vmem:[#allocation254_spill] sm:$0xff] %v24701_v4 }
 0x5be   : > { %16528 = vmatmul.mubr.msk.f32.gmra.mrb[38].mxu1 %vm1446_vm4, %v24636_v17 }
 0x5bf   : > { %16530 = vmatprep.mubr.msk.f32.mxu1 %vm1446_vm4, %v24641_v61 }
 0x5c2   : > { %16531 = vmatmul.mubr.msk.f32.gmra.mrb[40].mxu1 %vm1446_vm4, %v24648_v52 }
 0x5c3   : > { %16533 = vmatprep.mubr.msk.f32.mxu1 %vm1446_vm4, %v24653_v33 }
 0x5c6   : > { %16534 = vmatmul.mubr.msk.f32.gmra.mrb[42].mxu1 %vm1446_vm4, %v24660_v46 }
 0x5c7   : > { %16536 = vmatprep.mubr.msk.f32.mxu1 %vm1446_vm4, %v24665_v42 }
 0x5ca   : > { %16537 = vmatmul.mubr.msk.f32.gmra.mrb[44].mxu1 %vm1446_vm4, %v24672_v43  ;;  %v10177_v43 = vld [vmem:[#allocation2 + $0x138] sm:$0xff] }
 0x5cb   : > { %16539 = vmatprep.mubr.msk.f32.mxu1 %vm1446_vm4, %v24677_v39  ;;  %v24696_v39 = vsel %vm2769_vm6, %v10979_v41, %v10981_v31  ;;  %v10986_v49 = vrot.slane %v10177_v43, 1  ;;  %v24713_v43 = vsel %vm2769_vm6, %v10988_v21, %v10989_v16  ;;  %v10993_v31 = vrot.slane %v24318_v59, 1 }
 0x5cc   : > { %27106 = vst [vmem:[#allocation253_spill] sm:$0xff] %v24696_v39  ;;  %27109 = vst [vmem:[#allocation39_spill] sm:$0xff] %v24713_v43  ;;  %v10999_v21 = vrot.slane %v24346_v56, 1 }
 0x5ce   : > { %16540 = vmatmul.mubr.msk.f32.gmra.mrb[46].mxu1 %vm1446_vm4, %v24684_v20  ;;  %v10181_v20 = vld [vmem:[#allocation2 + $0x158] sm:$0xff] }
 0x5cf   : > { %16542 = vmatprep.mubr.msk.f32.mxu1 %vm1446_vm4, %v24689_v51  ;;  %v24708_v51 = vsel %vm2769_vm6, %v10984_v27, %v10986_v49  ;;  %v10991_v41 = vrot.slane %v10181_v20, 1  ;;  %v24725_v20 = vsel %vm2769_vm6, %v10993_v31, %v10994_v22  ;;  %v10998_v49 = vrot.slane %v24340_v55, 1 }
 0x5d0   : > { %27108 = vst [vmem:[#allocation255_spill] sm:$0xff] %v24708_v51  ;;  %27111 = vst [vmem:[#allocation88_spill] sm:$0xff] %v24725_v20  ;;  %v11004_v31 = vrot.slane %v24364_v38, 1 }
 0x5d2   : > { %16543 = vmatmul.mubr.msk.f32.gmra.mrb[48].mxu1 %vm1446_vm4, %v24696_v39  ;;  %v10185_v39 = vld [vmem:[#allocation2 + $0x178] sm:$0xff] }
 0x5d3   : > { %16545 = vmatprep.mubr.msk.f32.mxu1 %vm1446_vm4, %v24701_v4  ;;  %v24720_v4 = vsel %vm2769_vm6, %v10989_v16, %v10991_v41  ;;  %v10996_v27 = vrot.slane %v10185_v39, 1  ;;  %v24737_v39 = vsel %vm2769_vm6, %v10998_v49, %v10999_v21  ;;  %v11003_v41 = vrot.slane %v24359_v0, 1 }
 0x5d4   : > { %27110 = vst [vmem:[#allocation101_spill] sm:$0xff] %v24720_v4  ;;  %27113 = vst [vmem:[#allocation150_spill] sm:$0xff] %v24737_v39  ;;  %v11009_v49 = vrot.slane %v24381_v8, 1 }
 0x5d6   : > { %16546 = vmatmul.mubr.msk.f32.gmra.mrb[50].mxu1 %vm1446_vm4, %v24708_v51  ;;  %v10189_v51 = vld [vmem:[#allocation2 + $0x198] sm:$0xff] }
 0x5d7   : > { %16548 = vmatprep.mubr.msk.f32.mxu1 %vm1446_vm4, %v24713_v43  ;;  %v24732_v43 = vsel %vm2769_vm6, %v10994_v22, %v10996_v27  ;;  %v11001_v16 = vrot.slane %v10189_v51, 1  ;;  %v24749_v51 = vsel %vm2769_vm6, %v11003_v41, %v11004_v31  ;;  %v11008_v27 = vrot.slane %v24376_v35, 1 }
 0x5d8   : > { %27112 = vst [vmem:[#allocation96_spill] sm:$0xff] %v24732_v43  ;;  %27115 = vst [vmem:[#allocation102_spill] sm:$0xff] %v24749_v51  ;;  %v11014_v41 = vrot.slane %v24393_v26, 1 }
 0x5da   : > { %16549 = vmatmul.mubr.msk.f32.gmra.mrb[52].mxu1 %vm1446_vm4, %v24720_v4  ;;  %v10193_v4 = vld [vmem:[#allocation2 + $0x1b8] sm:$0xff] }
 0x5db   : > { %16551 = vmatprep.mubr.msk.f32.mxu1 %vm1446_vm4, %v24725_v20  ;;  %v24744_v20 = vsel %vm2769_vm6, %v10999_v21, %v11001_v16  ;;  %v11006_v22 = vrot.slane %v10193_v4, 1  ;;  %v24761_v4 = vsel %vm2769_vm6, %v11008_v27, %v11009_v49  ;;  %v11013_v16 = vrot.slane %v24388_v40, 1  ;;  %v27121_v27 = vld [vmem:[#allocation145_spill] sm:$0xff] }
 0x5dc   : > { %27114 = vst [vmem:[#allocation171_spill] sm:$0xff] %v24744_v20 }
 0x5de   : > { %16552 = vmatmul.mubr.msk.f32.gmra.mrb[54].mxu1 %vm1446_vm4, %v24732_v43  ;;  %v10197_v43 = vld [vmem:[#allocation2 + $0x1d8] sm:$0xff] }
 0x5df   : > { %16554 = vmatprep.mubr.msk.f32.mxu1 %vm1446_vm4, %v24737_v39  ;;  %v24756_v39 = vsel %vm2769_vm6, %v11004_v31, %v11006_v22  ;;  %v11011_v21 = vrot.slane %v10197_v43, 1  ;;  %v24773_v43 = vsel %vm2769_vm6, %v11013_v16, %v11014_v41  ;;  %v27124_v16 = vld [vmem:[#allocation49_spill] sm:$0xff] }
 0x5e0   : > { %27116 = vst [vmem:[#allocation249_spill] sm:$0xff] %v24756_v39 }
 0x5e2   : > { %16555 = vmatmul.mubr.msk.f32.gmra.mrb[56].mxu1 %vm1446_vm4, %v24744_v20  ;;  %v10201_v20 = vld [vmem:[#allocation2 + $0x1f8] sm:$0xff] }
 0x5e3   : > { %16557 = vmatprep.mubr.msk.f32.mxu1 %vm1446_vm4, %v24749_v51  ;;  %v24768_v51 = vsel %vm2769_vm6, %v11009_v49, %v11011_v21  ;;  %v11016_v31 = vrot.slane %v10201_v20, 1  ;;  %v14140_v20 = vld [vmem:[%s25395_s8 + $0xb8] sm:$0xff]  ;;  %v27122_v49 = vld [vmem:[#allocation240_spill] sm:$0xff]  ;;  %v27123_v21 = vld [vmem:[#allocation89_spill] sm:$0xff] }
 0x5e4   : > { %27117 = vst [vmem:[#allocation147_spill] sm:$0xff] %v24768_v51 }
 0x5e5   : > { %v24778_v22 = vsel %vm2769_vm6, %v11014_v41, %v11016_v31  ;;  %v27125_v41 = vld [vmem:[#allocation82_spill] sm:$0xff]  ;;  %v10202_v31 = vld [vmem:[#allocation2 + $0x200] sm:$0xff] }
 0x5e6   : > { %16558 = vmatmul.mubr.msk.f32.gmra.mrb[58].mxu1 %vm1446_vm4, %v24756_v39 }
 0x5e7   : > { %16560 = vmatprep.mubr.msk.f32.mxu1 %vm1446_vm4, %v24761_v4 }
 0x5ea   : > { %16561 = vmatmul.mubr.msk.f32.gmra.mrb[60].mxu1 %vm1446_vm4, %v24768_v51 }
 0x5eb   : > { %16563 = vmatprep.mubr.msk.f32.mxu1 %vm1446_vm4, %v24773_v43 }
 0x5ee   : > { %16564 = vmatmul.mubr.msk.f32.gmra.mrb[62].mxu1 %vm1446_vm4, %v24778_v22 }
 0x5ef   : > { %16568 = vmatprep.mubr.msk.f32.mxu1 %vm1446_vm4, %v24408_v32  ;;  %v27118_v32 = vld [vmem:[#allocation21_spill] sm:$0xff] }
 0x5f2   : > { %16569 = vmatmul.mubr.msk.f32.vlgmr.msra.gmra.mrb[32].mxu1 %vm1446_vm4, %v24418_v37  ;;  %v27119_v37 = vld [vmem:[#allocation77_spill] sm:$0xff] }
 0x5f3   : > { %16617 = vmatpush3.msra.mxu1 %v24599_v14  ;;  %16571 = vmatprep.mubr.msk.f32.mxu1 %vm1446_vm4, %v24424_v7  ;;  %v27120_v14 = vld [vmem:[#allocation85_spill] sm:$0xff] }
 0x5f4   : > { %16666 = vmatprep.subr.mxu1 %v14140_v20 }
 0x5f6   : > { %16572 = vmatmul.mubr.msk.f32.gmra.mrb[34].mxu1 %vm1446_vm4, %v24430_v13 }
 0x5f7   : > { %16574 = vmatprep.mubr.msk.f32.mxu1 %vm1446_vm4, %v24436_v19 }
 0x5fa   : > { %16575 = vmatmul.mubr.msk.f32.gmra.mrb[36].mxu1 %vm1446_vm4, %v24442_v30 }
 0x5fb   : > { %16577 = vmatprep.mubr.msk.f32.mxu1 %vm1446_vm4, %v24448_v53 }
 0x5fe   : > { %16578 = vmatmul.mubr.msk.f32.gmra.mrb[38].mxu1 %vm1446_vm4, %v24454_v3 }
 0x5ff   : > { %16580 = vmatprep.mubr.msk.f32.mxu1 %vm1446_vm4, %v24460_v34 }
 0x602   : > { %16581 = vmatmul.mubr.msk.f32.gmra.mrb[40].mxu1 %vm1446_vm4, %v24466_v9 }
 0x603   : > { %16583 = vmatprep.mubr.msk.f32.mxu1 %vm1446_vm4, %v24472_v1 }
 0x606   : > { %16584 = vmatmul.mubr.msk.f32.gmra.mrb[42].mxu1 %vm1446_vm4, %v24478_v50 }
 0x607   : > { %16586 = vmatprep.mubr.msk.f32.mxu1 %vm1446_vm4, %v24484_v36 }
 0x60a   : > { %16587 = vmatmul.mubr.msk.f32.gmra.mrb[44].mxu1 %vm1446_vm4, %v24490_v45 }
 0x60b   : > { %16589 = vmatprep.mubr.msk.f32.mxu1 %vm1446_vm4, %v24496_v48 }
 0x60e   : > { %16590 = vmatmul.mubr.msk.f32.gmra.mrb[46].mxu1 %vm1446_vm4, %v24502_v15 }
 0x60f   : > { %16592 = vmatprep.mubr.msk.f32.mxu1 %vm1446_vm4, %v24508_v2 }
 0x612   : > { %16593 = vmatmul.mubr.msk.f32.gmra.mrb[48].mxu1 %vm1446_vm4, %v24514_v60 }
 0x613   : > { %16595 = vmatprep.mubr.msk.f32.mxu1 %vm1446_vm4, %v27118_v32  ;;  %v24845_v32 = vld [vmem:[#allocation2 + $0x210] sm:$0xff] }
 0x616   : > { %16596 = vmatmul.mubr.msk.f32.gmra.mrb[50].mxu1 %vm1446_vm4, %v27119_v37  ;;  %v27126_v37 = vld [vmem:[#allocation111_spill] sm:$0xff] }
 0x617   : > { %16598 = vmatprep.mubr.msk.f32.mxu1 %vm1446_vm4, %v27120_v14  ;;  %v24840_v14 = vld [vmem:[#allocation2 + $0x208] sm:$0xff] }
 0x61a   : > { %16599 = vmatmul.mubr.msk.f32.gmra.mrb[52].mxu1 %vm1446_vm4, %v27121_v27  ;;  %v11344_v27 = vrot.slane %v10202_v31, 7 }
 0x61b   : > { %16601 = vmatprep.mubr.msk.f32.mxu1 %vm1446_vm4, %v27122_v49  ;;  %v11345_v49 = vrot.slane %v24840_v14, 7 }
 0x61e   : > { %16602 = vmatmul.mubr.msk.f32.gmra.mrb[54].mxu1 %vm1446_vm4, %v27123_v21 }
 0x61f   : > { %16604 = vmatprep.mubr.msk.f32.mxu1 %vm1446_vm4, %v27124_v16  ;;  %v11347_v16 = vrot.slane %v24845_v32, 7 }
 0x621   : > { %v24858_v31 = vsel %vm2381_vm5, %v11345_v49, %v11347_v16  ;;  %v24879_v16 = vld [vmem:[#allocation2 + $0x70] sm:$0xff] }
 0x622   : > { %16605 = vmatmul.mubr.msk.f32.gmra.mrb[56].mxu1 %vm1446_vm4, %v24562_v12  ;;  %27129 = vst [vmem:[#allocation119_spill] sm:$0xff] %v24879_v16 }
 0x623   : > { %16607 = vmatprep.mubr.msk.f32.mxu1 %vm1446_vm4, %v27125_v41  ;;  %v24853_v41 = vsel %vm2381_vm5, %v11344_v27, %v11345_v49  ;;  %v24867_v27 = vld [vmem:[#allocation2 + $0x48] sm:$0xff]  ;;  %v24871_v49 = vld [vmem:[#allocation2 + $0x50] sm:$0xff] }
 0x624   : > { %27127 = vst [vmem:[#allocation105_spill] sm:$0xff] %v24871_v49 }
 0x626   : > { %16608 = vmatmul.mubr.msk.f32.gmra.mrb[58].mxu1 %vm1446_vm4, %v27126_v37  ;;  %v17652_v37 = vld [vmem:[#allocation2 + $0x28] sm:$0xff] }
 0x627   : > { %16610 = vmatprep.mubr.msk.f32.mxu1 %vm1446_vm4, %v24582_v47  ;;  %v14173_v47 = vld [vmem:[%s25395_s8 + $0xc0] sm:$0xff] }
 0x62a   : > { %16611 = vmatmul.mubr.msk.f32.gmra.mrb[60].mxu1 %vm1446_vm4, %v24588_v54  ;;  %v17653_v54 = vld [vmem:[#allocation2 + $0x30] sm:$0xff] }
 0x62b   : > { %16613 = vmatprep.mubr.msk.f32.mxu1 %vm1446_vm4, %v24853_v41 }
 0x62e   : > { %16614 = vmatmul.mubr.msk.f32.gmra.mrb[62].mxu1 %vm1446_vm4, %v24858_v31 }
 0x62f   : > { %16618 = vmatprep.mubr.msk.f32.mxu1 %vm1446_vm4, %v17652_v37  ;;  %v24875_v37 = vld [vmem:[#allocation2 + $0x68] sm:$0xff] }
 0x630   : > { %27128 = vst [vmem:[#allocation151_spill] sm:$0xff] %v24875_v37 }
 0x632   : > { %16619 = vmatmul.mubr.msk.f32.vlgmr.msra.gmra.mrb[32].mxu1 %vm1446_vm4, %v17653_v54  ;;  %v24883_v54 = vld [vmem:[#allocation2 + $0x88] sm:$0xff] }
 0x633   : > { %16667 = vmatpush3.msra.mxu1 %v14140_v20  ;;  %16621 = vmatprep.mubr.msk.f32.mxu1 %vm1446_vm4, %v24867_v27  ;;  %v24887_v20 = vld [vmem:[#allocation2 + $0x90] sm:$0xff] }
 0x634   : > { %16716 = vmatprep.subr.mxu1 %v14173_v47 }
 0x636   : > { %16622 = vmatmul.mubr.msk.f32.gmra.mrb[34].mxu1 %vm1446_vm4, %v24871_v49  ;;  %v24891_v49 = vld [vmem:[#allocation2 + $0xa8] sm:$0xff] }
 0x637   : > { %16624 = vmatprep.mubr.msk.f32.mxu1 %vm1446_vm4, %v24875_v37  ;;  %v24895_v37 = vld [vmem:[#allocation2 + $0xb0] sm:$0xff] }
 0x63a   : > { %16625 = vmatmul.mubr.msk.f32.gmra.mrb[36].mxu1 %vm1446_vm4, %v24879_v16  ;;  %v24899_v16 = vld [vmem:[#allocation2 + $0xc8] sm:$0xff] }
 0x63b   : > { %16627 = vmatprep.mubr.msk.f32.mxu1 %vm1446_vm4, %v24883_v54 }
 0x63e   : > { %16628 = vmatmul.mubr.msk.f32.gmra.mrb[38].mxu1 %vm1446_vm4, %v24887_v20 }
 0x63f   : > { %16630 = vmatprep.mubr.msk.f32.mxu1 %vm1446_vm4, %v24891_v49 }
 0x642   : > { %16631 = vmatmul.mubr.msk.f32.gmra.mrb[40].mxu1 %vm1446_vm4, %v24895_v37 }
 0x643   : > { %16633 = vmatprep.mubr.msk.f32.mxu1 %vm1446_vm4, %v24899_v16 }
 0x646   : > { %16634 = vmatmul.mubr.msk.f32.gmra.mrb[42].mxu1 %vm1446_vm4, %v24149_v57  ;;  %v14206_v57 = vld [vmem:[%s25395_s8 + $0xc8] sm:$0xff] }
 0x647   : > { %16636 = vmatprep.mubr.msk.f32.mxu1 %vm1446_vm4, %v24172_v23  ;;  %v27130_v23 = vld [vmem:[#allocation241_spill] sm:$0xff] }
 0x64a   : > { %16637 = vmatmul.mubr.msk.f32.gmra.mrb[44].mxu1 %vm1446_vm4, %v24181_v63  ;;  %v27131_v63 = vld [vmem:[#allocation90_spill] sm:$0xff] }
 0x64b   : > { %16639 = vmatprep.mubr.msk.f32.mxu1 %vm1446_vm4, %v24210_v11  ;;  %v27132_v11 = vld [vmem:[#allocation95_spill] sm:$0xff] }
 0x64e   : > { %16640 = vmatmul.mubr.msk.f32.gmra.mrb[46].mxu1 %vm1446_vm4, %v24229_v44  ;;  %v27133_v44 = vld [vmem:[#allocation125_spill] sm:$0xff] }
 0x64f   : > { %16642 = vmatprep.mubr.msk.f32.mxu1 %vm1446_vm4, %v24250_v25  ;;  %v27134_v25 = vld [vmem:[#allocation253_spill] sm:$0xff] }
 0x652   : > { %16643 = vmatmul.mubr.msk.f32.gmra.mrb[48].mxu1 %vm1446_vm4, %v24260_v10  ;;  %v27135_v10 = vld [vmem:[#allocation254_spill] sm:$0xff] }
 0x653   : > { %16645 = vmatprep.mubr.msk.f32.mxu1 %vm1446_vm4, %v24283_v5  ;;  %v27136_v5 = vld [vmem:[#allocation255_spill] sm:$0xff] }
 0x656   : > { %16646 = vmatmul.mubr.msk.f32.gmra.mrb[50].mxu1 %vm1446_vm4, %v24294_v24  ;;  %v27137_v24 = vld [vmem:[#allocation39_spill] sm:$0xff] }
 0x657   : > { %16648 = vmatprep.mubr.msk.f32.mxu1 %vm1446_vm4, %v24318_v59 }
 0x65a   : > { %16649 = vmatmul.mubr.msk.f32.gmra.mrb[52].mxu1 %vm1446_vm4, %v24324_v6 }
 0x65b   : > { %16651 = vmatprep.mubr.msk.f32.mxu1 %vm1446_vm4, %v24340_v55 }
 0x65e   : > { %16652 = vmatmul.mubr.msk.f32.gmra.mrb[54].mxu1 %vm1446_vm4, %v24346_v56 }
 0x65f   : > { %16654 = vmatprep.mubr.msk.f32.mxu1 %vm1446_vm4, %v24359_v0 }
 0x662   : > { %16655 = vmatmul.mubr.msk.f32.gmra.mrb[56].mxu1 %vm1446_vm4, %v24364_v38 }
 0x663   : > { %16657 = vmatprep.mubr.msk.f32.mxu1 %vm1446_vm4, %v24376_v35 }
 0x666   : > { %16658 = vmatmul.mubr.msk.f32.gmra.mrb[58].mxu1 %vm1446_vm4, %v24381_v8 }
 0x667   : > { %16660 = vmatprep.mubr.msk.f32.mxu1 %vm1446_vm4, %v24388_v40 }
 0x66a   : > { %16661 = vmatmul.mubr.msk.f32.gmra.mrb[60].mxu1 %vm1446_vm4, %v24393_v26 }
 0x66b   : > { %16663 = vmatprep.mubr.msk.f32.mxu1 %vm1446_vm4, %v24840_v14 }
 0x66e   : > { %16664 = vmatmul.mubr.msk.f32.gmra.mrb[62].mxu1 %vm1446_vm4, %v24845_v32 }
 0x66f   : > { %16668 = vmatprep.mubr.msk.f32.mxu1 %vm1446_vm4, %v24603_v28  ;;  %v27139_v28 = vld [vmem:[#allocation88_spill] sm:$0xff] }
 0x672   : > { %16669 = vmatmul.mubr.msk.f32.vlgmr.msra.gmra.mrb[32].mxu1 %vm1446_vm4, %v24612_v58  ;;  %v27140_v58 = vld [vmem:[#allocation96_spill] sm:$0xff] }
 0x673   : > { %16717 = vmatpush3.msra.mxu1 %v14173_v47  ;;  %16671 = vmatprep.mubr.msk.f32.mxu1 %vm1446_vm4, %v24617_v18  ;;  %v27138_v47 = vld [vmem:[#allocation101_spill] sm:$0xff] }
 0x674   : > { %16766 = vmatprep.subr.mxu1 %v14206_v57 }
 0x676   : > { %16672 = vmatmul.mubr.msk.f32.gmra.mrb[34].mxu1 %vm1446_vm4, %v24624_v29 }
 0x677   : > { %16674 = vmatprep.mubr.msk.f32.mxu1 %vm1446_vm4, %v24629_v62 }
 0x67a   : > { %16675 = vmatmul.mubr.msk.f32.gmra.mrb[36].mxu1 %vm1446_vm4, %v24636_v17 }
 0x67b   : > { %16677 = vmatprep.mubr.msk.f32.mxu1 %vm1446_vm4, %v24641_v61 }
 0x67e   : > { %16678 = vmatmul.mubr.msk.f32.gmra.mrb[38].mxu1 %vm1446_vm4, %v24648_v52 }
 0x67f   : > { %16680 = vmatprep.mubr.msk.f32.mxu1 %vm1446_vm4, %v24653_v33 }
 0x682   : > { %16681 = vmatmul.mubr.msk.f32.gmra.mrb[40].mxu1 %vm1446_vm4, %v24660_v46 }
 0x683   : > { %16683 = vmatprep.mubr.msk.f32.mxu1 %vm1446_vm4, %v24665_v42 }
 0x686   : > { %16684 = vmatmul.mubr.msk.f32.gmra.mrb[42].mxu1 %vm1446_vm4, %v27130_v23 }
 0x687   : > { %16686 = vmatprep.mubr.msk.f32.mxu1 %vm1446_vm4, %v27131_v63 }
 0x68a   : > { %16687 = vmatmul.mubr.msk.f32.gmra.mrb[44].mxu1 %vm1446_vm4, %v27132_v11 }
 0x68b   : > { %16689 = vmatprep.mubr.msk.f32.mxu1 %vm1446_vm4, %v27133_v44  ;;  %v27141_v44 = vld [vmem:[#allocation150_spill] sm:$0xff] }
 0x68e   : > { %16690 = vmatmul.mubr.msk.f32.gmra.mrb[46].mxu1 %vm1446_vm4, %v27134_v25  ;;  %v27142_v25 = vld [vmem:[#allocation171_spill] sm:$0xff] }
 0x68f   : > { %16692 = vmatprep.mubr.msk.f32.mxu1 %vm1446_vm4, %v27135_v10  ;;  %v27143_v10 = vld [vmem:[#allocation102_spill] sm:$0xff] }
 0x692   : > { %16693 = vmatmul.mubr.msk.f32.gmra.mrb[48].mxu1 %vm1446_vm4, %v27136_v5 }
 0x693   : > { %16695 = vmatprep.mubr.msk.f32.mxu1 %vm1446_vm4, %v27137_v24 }
 0x696   : > { %16696 = vmatmul.mubr.msk.f32.gmra.mrb[50].mxu1 %vm1446_vm4, %v27138_v47 }
 0x697   : > { %16698 = vmatprep.mubr.msk.f32.mxu1 %vm1446_vm4, %v27139_v28  ;;  %v11877_v28 = vrot.slane %v24845_v32, 1 }
 0x69a   : > { %16699 = vmatmul.mubr.msk.f32.gmra.mrb[52].mxu1 %vm1446_vm4, %v27140_v58  ;;  %v11876_v58 = vrot.slane %v24840_v14, 1 }
 0x69b   : > { %16701 = vmatprep.mubr.msk.f32.mxu1 %vm1446_vm4, %v27141_v44  ;;  %v10205_v44 = vld [vmem:[#allocation2 + $0x218] sm:$0xff] }
 0x69e   : > { %16702 = vmatmul.mubr.msk.f32.gmra.mrb[54].mxu1 %vm1446_vm4, %v27142_v25  ;;  %v11879_v25 = vrot.slane %v10205_v44, 1  ;;  %v14239_v44 = vld [vmem:[%s25395_s8 + $0xd0] sm:$0xff] }
 0x69f   : > { %16704 = vmatprep.mubr.msk.f32.mxu1 %vm1446_vm4, %v27143_v10 }
 0x6a2   : > { %16705 = vmatmul.mubr.msk.f32.gmra.mrb[56].mxu1 %vm1446_vm4, %v24756_v39  ;;  %v25011_v39 = vsel %vm2769_vm6, %v11876_v58, %v11877_v28  ;;  %v17671_v58 = vld [vmem:[#allocation2 + $0x150] sm:$0xff] }
 0x6a3   : > { %16707 = vmatprep.mubr.msk.f32.mxu1 %vm1446_vm4, %v24761_v4 }
 0x6a6   : > { %16708 = vmatmul.mubr.msk.f32.gmra.mrb[58].mxu1 %vm1446_vm4, %v24768_v51  ;;  %v25016_v51 = vsel %vm2769_vm6, %v11877_v28, %v11879_v25  ;;  %v27156_v25 = vld [vmem:[#allocation119_spill] sm:$0xff]  ;;  %v17665_v28 = vld [vmem:[#allocation2 + $0xf0] sm:$0xff] }
 0x6a7   : > { %16710 = vmatprep.mubr.msk.f32.mxu1 %vm1446_vm4, %v24773_v43 }
 0x6aa   : > { %16711 = vmatmul.mubr.msk.f32.gmra.mrb[60].mxu1 %vm1446_vm4, %v24778_v22 }
 0x6ab   : > { %16713 = vmatprep.mubr.msk.f32.mxu1 %vm1446_vm4, %v25011_v39 }
 0x6ae   : > { %16714 = vmatmul.mubr.msk.f32.gmra.mrb[62].mxu1 %vm1446_vm4, %v25016_v51 }
 0x6af   : > { %16718 = vmatprep.mubr.msk.f32.mxu1 %vm1446_vm4, %v24424_v7  ;;  %v27144_v7 = vld [vmem:[#allocation21_spill] sm:$0xff] }
 0x6b2   : > { %16719 = vmatmul.mubr.msk.f32.vlgmr.msra.gmra.mrb[32].mxu1 %vm1446_vm4, %v24430_v13  ;;  %v27145_v13 = vld [vmem:[#allocation77_spill] sm:$0xff] }
 0x6b3   : > { %16767 = vmatpush3.msra.mxu1 %v14206_v57  ;;  %16721 = vmatprep.mubr.msk.f32.mxu1 %vm1446_vm4, %v24436_v19  ;;  %v27146_v19 = vld [vmem:[#allocation85_spill] sm:$0xff] }
 0x6b4   : > { %16816 = vmatprep.subr.mxu1 %v14239_v44  ;;  %v27154_v57 = vld [vmem:[#allocation105_spill] sm:$0xff] }
 0x6b6   : > { %16722 = vmatmul.mubr.msk.f32.gmra.mrb[34].mxu1 %vm1446_vm4, %v24442_v30  ;;  %v27147_v30 = vld [vmem:[#allocation145_spill] sm:$0xff] }
 0x6b7   : > { %16724 = vmatprep.mubr.msk.f32.mxu1 %vm1446_vm4, %v24448_v53  ;;  %v27148_v53 = vld [vmem:[#allocation240_spill] sm:$0xff] }
 0x6ba   : > { %16725 = vmatmul.mubr.msk.f32.gmra.mrb[36].mxu1 %vm1446_vm4, %v24454_v3  ;;  %v27149_v3 = vld [vmem:[#allocation49_spill] sm:$0xff] }
 0x6bb   : > { %16727 = vmatprep.mubr.msk.f32.mxu1 %vm1446_vm4, %v24460_v34  ;;  %v27150_v34 = vld [vmem:[#allocation82_spill] sm:$0xff] }
 0x6be   : > { %16728 = vmatmul.mubr.msk.f32.gmra.mrb[38].mxu1 %vm1446_vm4, %v24466_v9  ;;  %v10206_v9 = vld [vmem:[#allocation2 + $0x220] sm:$0xff] }
 0x6bf   : > { %16730 = vmatprep.mubr.msk.f32.mxu1 %vm1446_vm4, %v24472_v1  ;;  %v25073_v1 = vld [vmem:[#allocation2 + $0x228] sm:$0xff] }
 0x6c2   : > { %16731 = vmatmul.mubr.msk.f32.gmra.mrb[40].mxu1 %vm1446_vm4, %v24478_v50  ;;  %v27151_v50 = vld [vmem:[#allocation111_spill] sm:$0xff] }
 0x6c3   : > { %16733 = vmatprep.mubr.msk.f32.mxu1 %vm1446_vm4, %v24484_v36  ;;  %v27152_v36 = vld [vmem:[#allocation86_spill] sm:$0xff] }
 0x6c6   : > { %16734 = vmatmul.mubr.msk.f32.gmra.mrb[42].mxu1 %vm1446_vm4, %v24490_v45  ;;  %v12147_v45 = vrot.slane %v10206_v9, 7 }
 0x6c7   : > { %16736 = vmatprep.mubr.msk.f32.mxu1 %vm1446_vm4, %v24496_v48  ;;  %v12148_v48 = vrot.slane %v25073_v1, 7 }
 0x6ca   : > { %16737 = vmatmul.mubr.msk.f32.gmra.mrb[44].mxu1 %vm1446_vm4, %v24502_v15  ;;  %v25080_v15 = vld [vmem:[#allocation2 + $0x230] sm:$0xff] }
 0x6cb   : > { %16739 = vmatprep.mubr.msk.f32.mxu1 %vm1446_vm4, %v24508_v2  ;;  %v27153_v2 = vld [vmem:[#allocation6_spill] sm:$0xff] }
 0x6ce   : > { %16740 = vmatmul.mubr.msk.f32.gmra.mrb[46].mxu1 %vm1446_vm4, %v24514_v60  ;;  %v12150_v60 = vrot.slane %v25080_v15, 7 }
 0x6cf   : > { %16742 = vmatprep.mubr.msk.f32.mxu1 %vm1446_vm4, %v27144_v7  ;;  %v27168_v7 = vld [vmem:[#allocation159_spill] sm:$0xff] }
 0x6d2   : > { %16743 = vmatmul.mubr.msk.f32.gmra.mrb[48].mxu1 %vm1446_vm4, %v27145_v13 }
 0x6d3   : > { %16745 = vmatprep.mubr.msk.f32.mxu1 %vm1446_vm4, %v27146_v19 }
 0x6d6   : > { %16746 = vmatmul.mubr.msk.f32.gmra.mrb[50].mxu1 %vm1446_vm4, %v27147_v30 }
 0x6d7   : > { %16748 = vmatprep.mubr.msk.f32.mxu1 %vm1446_vm4, %v27148_v53  ;;  %v27169_v53 = vld [vmem:[#allocation162_spill] sm:$0xff] }
 0x6da   : > { %16749 = vmatmul.mubr.msk.f32.gmra.mrb[52].mxu1 %vm1446_vm4, %v27123_v21  ;;  %v12151_v21 = vsel %vm2381_vm5, %v12148_v48, %v12150_v60 }
 0x6db   : > { %16751 = vmatprep.mubr.msk.f32.mxu1 %vm1446_vm4, %v27149_v3 }
 0x6de   : > { %16752 = vmatmul.mubr.msk.f32.gmra.mrb[54].mxu1 %vm1446_vm4, %v24562_v12  ;;  %v12149_v12 = vsel %vm2381_vm5, %v12147_v45, %v12148_v48 }
 0x6df   : > { %16754 = vmatprep.mubr.msk.f32.mxu1 %vm1446_vm4, %v27150_v34 }
 0x6e2   : > { %16755 = vmatmul.mubr.msk.f32.gmra.mrb[56].mxu1 %vm1446_vm4, %v27151_v50 }
 0x6e3   : > { %16757 = vmatprep.mubr.msk.f32.mxu1 %vm1446_vm4, %v27152_v36  ;;  %v27170_v36 = vld [vmem:[#allocation168_spill] sm:$0xff] }
 0x6e6   : > { %16758 = vmatmul.mubr.msk.f32.gmra.mrb[58].mxu1 %vm1446_vm4, %v27153_v2  ;;  %v27171_v2 = vld [vmem:[#allocation170_spill] sm:$0xff] }
 0x6e7   : > { %16760 = vmatprep.mubr.msk.f32.mxu1 %vm1446_vm4, %v24853_v41  ;;  %v27155_v41 = vld [vmem:[#allocation151_spill] sm:$0xff] }
 0x6ea   : > { %16761 = vmatmul.mubr.msk.f32.gmra.mrb[60].mxu1 %vm1446_vm4, %v24858_v31  ;;  %v17663_v31 = vld [vmem:[#allocation2 + $0xd0] sm:$0xff] }
 0x6eb   : > { %16763 = vmatprep.mubr.msk.f32.mxu1 %vm1446_vm4, %v12149_v12 }
 0x6ee   : > { %16764 = vmatmul.mubr.msk.f32.gmra.mrb[62].mxu1 %vm1446_vm4, %v12151_v21 }
 0x6ef   : > { %16768 = vmatprep.mubr.msk.f32.mxu1 %vm1446_vm4, %v24867_v27  ;;  %v17664_v27 = vld [vmem:[#allocation2 + $0xe8] sm:$0xff] }
 0x6f2   : > { %16769 = vmatmul.mubr.msk.f32.vlgmr.msra.gmra.mrb[32].mxu1 %vm1446_vm4, %v27154_v57 }
 0x6f3   : > { %16817 = vmatpush3.msra.mxu1 %v14239_v44  ;;  %16771 = vmatprep.mubr.msk.f32.mxu1 %vm1446_vm4, %v27155_v41 }
 0x6f6   : > { %16772 = vmatmul.mubr.msk.f32.gmra.mrb[34].mxu1 %vm1446_vm4, %v27156_v25  ;;  %v27172_v25 = vld [vmem:[#allocation177_spill] sm:$0xff] }
 0x6f7   : > { %16774 = vmatprep.mubr.msk.f32.mxu1 %vm1446_vm4, %v24883_v54  ;;  %v17666_v54 = vld [vmem:[#allocation2 + $0x108] sm:$0xff] }
 0x6fa   : > { %16775 = vmatmul.mubr.msk.f32.gmra.mrb[36].mxu1 %vm1446_vm4, %v24887_v20  ;;  %v17667_v20 = vld [vmem:[#allocation2 + $0x110] sm:$0xff] }
 0x6fb   : > { %16777 = vmatprep.mubr.msk.f32.mxu1 %vm1446_vm4, %v24891_v49  ;;  %v17668_v49 = vld [vmem:[#allocation2 + $0x128] sm:$0xff] }
 0x6fe   : > { %16778 = vmatmul.mubr.msk.f32.gmra.mrb[38].mxu1 %vm1446_vm4, %v24895_v37  ;;  %v17669_v37 = vld [vmem:[#allocation2 + $0x130] sm:$0xff] }
 0x6ff   : > { %16780 = vmatprep.mubr.msk.f32.mxu1 %vm1446_vm4, %v24899_v16  ;;  %v17670_v16 = vld [vmem:[#allocation2 + $0x148] sm:$0xff] }
 0x702   : > { %16781 = vmatmul.mubr.msk.f32.gmra.mrb[40].mxu1 %vm1446_vm4, %v17663_v31 }
 0x703   : > { %16783 = vmatprep.mubr.msk.f32.mxu1 %vm1446_vm4, %v17664_v27 }
 0x706   : > { %16784 = vmatmul.mubr.msk.f32.gmra.mrb[42].mxu1 %vm1446_vm4, %v17665_v28 }
 0x707   : > { %16786 = vmatprep.mubr.msk.f32.mxu1 %vm1446_vm4, %v17666_v54  ;;  %v27173_v54 = vld [vmem:[#allocation178_spill] sm:$0xff] }
 0x70a   : > { %16787 = vmatmul.mubr.msk.f32.gmra.mrb[44].mxu1 %vm1446_vm4, %v17667_v20 }
 0x70b   : > { %16789 = vmatprep.mubr.msk.f32.mxu1 %vm1446_vm4, %v17668_v49 }
 0x70e   : > { %16790 = vmatmul.mubr.msk.f32.gmra.mrb[46].mxu1 %vm1446_vm4, %v17669_v37 }
 0x70f   : > { %16792 = vmatprep.mubr.msk.f32.mxu1 %vm1446_vm4, %v17670_v16 }
 0x712   : > { %16793 = vmatmul.mubr.msk.f32.gmra.mrb[48].mxu1 %vm1446_vm4, %v17671_v58 }
 0x713   : > { %16795 = vmatprep.mubr.msk.f32.mxu1 %vm1446_vm4, %v24318_v59  ;;  %v27157_v59 = vld [vmem:[#allocation125_spill] sm:$0xff] }
 0x716   : > { %16796 = vmatmul.mubr.msk.f32.gmra.mrb[50].mxu1 %vm1446_vm4, %v24324_v6  ;;  %v27158_v6 = vld [vmem:[#allocation253_spill] sm:$0xff] }
 0x717   : > { %16798 = vmatprep.mubr.msk.f32.mxu1 %vm1446_vm4, %v24340_v55  ;;  %v27159_v55 = vld [vmem:[#allocation254_spill] sm:$0xff] }
 0x71a   : > { %16799 = vmatmul.mubr.msk.f32.gmra.mrb[52].mxu1 %vm1446_vm4, %v24346_v56  ;;  %v27160_v56 = vld [vmem:[#allocation88_spill] sm:$0xff] }
 0x71b   : > { %16801 = vmatprep.mubr.msk.f32.mxu1 %vm1446_vm4, %v24359_v0  ;;  %v27161_v0 = vld [vmem:[#allocation96_spill] sm:$0xff] }
 0x71e   : > { %16802 = vmatmul.mubr.msk.f32.gmra.mrb[54].mxu1 %vm1446_vm4, %v24364_v38  ;;  %v27162_v38 = vld [vmem:[#allocation150_spill] sm:$0xff] }
 0x71f   : > { %16804 = vmatprep.mubr.msk.f32.mxu1 %vm1446_vm4, %v24376_v35  ;;  %v27163_v35 = vld [vmem:[#allocation171_spill] sm:$0xff] }
 0x722   : > { %16805 = vmatmul.mubr.msk.f32.gmra.mrb[56].mxu1 %vm1446_vm4, %v24381_v8  ;;  %v27164_v8 = vld [vmem:[#allocation249_spill] sm:$0xff] }
 0x723   : > { %16807 = vmatprep.mubr.msk.f32.mxu1 %vm1446_vm4, %v24388_v40  ;;  %v27165_v40 = vld [vmem:[#allocation147_spill] sm:$0xff] }
 0x726   : > { %16808 = vmatmul.mubr.msk.f32.gmra.mrb[58].mxu1 %vm1446_vm4, %v24393_v26  ;;  %v12679_v26 = vrot.slane %v25073_v1, 1 }
 0x727   : > { %16810 = vmatprep.mubr.msk.f32.mxu1 %vm1446_vm4, %v24840_v14 }
 0x72a   : > { %16811 = vmatmul.mubr.msk.f32.gmra.mrb[60].mxu1 %vm1446_vm4, %v24845_v32  ;;  %v27166_v32 = vld [vmem:[#allocation152_spill] sm:$0xff] }
 0x72b   : > { %16813 = vmatprep.mubr.msk.f32.mxu1 %vm1446_vm4, %v25073_v1 }
 0x72e   : > { %16814 = vmatmul.mubr.msk.f32.gmra.mrb[62].mxu1 %vm1446_vm4, %v25080_v15 }
 0x72f   : > { %16818 = vmatprep.mubr.msk.f32.mxu1 %vm1446_vm4, %v24617_v18  ;;  %v12680_v18 = vrot.slane %v25080_v15, 1 }
 0x732   : > { %16819 = vmatmul.mubr.msk.f32.vlgmr.msra.gmra.mrb[32].mxu1 %vm1446_vm4, %v24624_v29  ;;  %v10209_v29 = vld [vmem:[#allocation2 + $0x238] sm:$0xff] }
 0x733   : > { %16821 = vmatprep.mubr.msk.f32.mxu1 %vm1446_vm4, %v24629_v62  ;;  %v12682_v62 = vrot.slane %v10209_v29, 1 }
 0x736   : > { %16822 = vmatmul.mubr.msk.f32.gmra.mrb[34].mxu1 %vm1446_vm4, %v24636_v17  ;;  %v12681_v17 = vsel %vm2769_vm6, %v12679_v26, %v12680_v18 }
 0x737   : > { %16824 = vmatprep.mubr.msk.f32.mxu1 %vm1446_vm4, %v24641_v61  ;;  %v12683_v61 = vsel %vm2769_vm6, %v12680_v18, %v12682_v62  ;;  %v27176_v18 = vld [vmem:[#allocation186_spill] sm:$0xff] }
 0x73a   : > { %16825 = vmatmul.mubr.msk.f32.gmra.mrb[36].mxu1 %vm1446_vm4, %v24648_v52  ;;  %v25217_v52 = vld [vmem:[%s25396_s9 + $0x2] ss:$0 sm:$0xff] }
 0x73b   : > { %16827 = vmatprep.mubr.msk.f32.mxu1 %vm1446_vm4, %v24653_v33 }
 0x73e   : > { %16828 = vmatmul.mubr.msk.f32.gmra.mrb[38].mxu1 %vm1446_vm4, %v24660_v46  ;;  %v25222_v46 = vld [vmem:[%s25397_s10 + $0x2] ss:$0 sm:$0xff] }
 0x73f   : > { %16830 = vmatprep.mubr.msk.f32.mxu1 %vm1446_vm4, %v24665_v42 }
 0x742   : > { %16831 = vmatmul.mubr.msk.f32.gmra.mrb[40].mxu1 %vm1446_vm4, %v27130_v23 }
 0x743   : > { %16833 = vmatprep.mubr.msk.f32.mxu1 %vm1446_vm4, %v27131_v63 }
 0x746   : > { %16834 = vmatmul.mubr.msk.f32.gmra.mrb[42].mxu1 %vm1446_vm4, %v27132_v11  ;;  %v27167_v11 = vld [vmem:[#allocation155_spill] sm:$0xff] }
 0x747   : > { %16836 = vmatprep.mubr.msk.f32.mxu1 %vm1446_vm4, %v27157_v59  ;;  %v27174_v59 = vld [vmem:[#allocation179_spill] sm:$0xff] }
 0x74a   : > { %16837 = vmatmul.mubr.msk.f32.gmra.mrb[44].mxu1 %vm1446_vm4, %v27158_v6 }
 0x74b   : > { %16839 = vmatprep.mubr.msk.f32.mxu1 %vm1446_vm4, %v27159_v55 }
 0x74e   : > { %16840 = vmatmul.mubr.msk.f32.gmra.mrb[46].mxu1 %vm1446_vm4, %v27136_v5 }
 0x74f   : > { %16842 = vmatprep.mubr.msk.f32.mxu1 %vm1446_vm4, %v27137_v24 }
 0x752   : > { %16843 = vmatmul.mubr.msk.f32.gmra.mrb[48].mxu1 %vm1446_vm4, %v27138_v47 }
 0x753   : > { %16845 = vmatprep.mubr.msk.f32.mxu1 %vm1446_vm4, %v27160_v56 }
 0x756   : > { %16846 = vmatmul.mubr.msk.f32.gmra.mrb[50].mxu1 %vm1446_vm4, %v27161_v0  ;;  %v27175_v0 = vld [vmem:[#allocation180_spill] sm:$0xff] }
 0x757   : > { %16848 = vmatprep.mubr.msk.f32.mxu1 %vm1446_vm4, %v27162_v38 }
 0x75a   : > { %16849 = vmatmul.mubr.msk.f32.gmra.mrb[52].mxu1 %vm1446_vm4, %v27163_v35 }
 0x75b   : > { %16851 = vmatprep.mubr.msk.f32.mxu1 %vm1446_vm4, %v27143_v10 }
 0x75e   : > { %16852 = vmatmul.mubr.msk.f32.gmra.mrb[54].mxu1 %vm1446_vm4, %v27164_v8 }
 0x75f   : > { %16854 = vmatprep.mubr.msk.f32.mxu1 %vm1446_vm4, %v24761_v4 }
 0x762   : > { %16855 = vmatmul.mubr.msk.f32.gmra.mrb[56].mxu1 %vm1446_vm4, %v27165_v40 }
 0x763   : > { %16857 = vmatprep.mubr.msk.f32.mxu1 %vm1446_vm4, %v24773_v43 }
 0x766   : > { %16858 = vmatmul.mubr.msk.f32.gmra.mrb[58].mxu1 %vm1446_vm4, %v24778_v22 }
 0x767   : > { %16860 = vmatprep.mubr.msk.f32.mxu1 %vm1446_vm4, %v25011_v39 }
 0x76a   : > { %16861 = vmatmul.mubr.msk.f32.gmra.mrb[60].mxu1 %vm1446_vm4, %v25016_v51 }
 0x76b   : > { %16863 = vmatprep.mubr.msk.f32.mxu1 %vm1446_vm4, %v12681_v17 }
 0x76e   : > { %16864 = vmatmul.mubr.msk.f32.gmra.mrb[62].mxu1 %vm1446_vm4, %v12683_v61  ;;  %v27177_v61 = vld [vmem:[#allocation188_spill] sm:$0xff] }
 0x805   : > { %v16820_v33 = vpop.f32.mrb[32].mxu1 }
 0x806   : > { %v12951_v42 = vmul.f32 %v16820_v33, %v25217_v52  ;;  %v12754_v39 = vpop.f32.mrb[33].mxu1 }
 0x807   : > { %v12950_v51 = vmul.f32 %v25217_v52, %v12754_v39 }
 0x808   : > { %v12988_v4 = vadd.f32 %v25222_v46, %v12951_v42 }
 0x809   : > { %v12987_v43 = vadd.f32 %v25222_v46, %v12950_v51  ;;  %v16823_v22 = vpop.f32.mrb[34].mxu1 }
 0x80a   : > { %v13020_v14 = vadd.f32 %v12988_v4, %v27166_v32  ;;  %v12953_v23 = vmul.f32 %v16823_v22, %v25217_v52  ;;  %v12764_v63 = vpop.f32.mrb[35].mxu1 }
 0x80b   : > { %v13019_v10 = vadd.f32 %v12987_v43, %v27167_v11  ;;  %v12952_v5 = vmul.f32 %v25217_v52, %v12764_v63  ;;  %v27178_v43 = vld [vmem:[#allocation23_spill] sm:$0xff] }
 0x80c   : > { %14339 = vst.msk [vmem:[%s22275_s24 + $0x308] sm:$0xff] %vm1446_vm4, %v13020_v14  ;;  %v12990_v24 = vadd.f32 %v25222_v46, %v12953_v23  ;;  %v27179_v23 = vld [vmem:[#allocation192_spill] sm:$0xff] }
 0x80d   : > { %14338 = vst.msk [vmem:[%s22275_s24 + $0x300] sm:$0xff] %vm1446_vm4, %v13019_v10  ;;  %v12989_v47 = vadd.f32 %v25222_v46, %v12952_v5  ;;  %v16826_v44 = vpop.f32.mrb[36].mxu1 }
 0x80e   : > { %v13022_v13 = vadd.f32 %v12990_v24, %v27168_v7  ;;  %v12955_v19 = vmul.f32 %v16826_v44, %v25217_v52  ;;  %v12774_v30 = vpop.f32.mrb[37].mxu1 }
 0x80f   : > { %v13021_v3 = vadd.f32 %v12989_v47, %v27169_v53  ;;  %v12954_v34 = vmul.f32 %v25217_v52, %v12774_v30  ;;  %v27180_v47 = vld [vmem:[#allocation30_spill] sm:$0xff] }
 0x810   : > { %14341 = vst.msk [vmem:[%s22275_s24 + $0x318] sm:$0xff] %vm1446_vm4, %v13022_v13  ;;  %v12992_v9 = vadd.f32 %v25222_v46, %v12955_v19  ;;  %v27181_v19 = vld [vmem:[#allocation196_spill] sm:$0xff] }
 0x811   : > { %14340 = vst.msk [vmem:[%s22275_s24 + $0x310] sm:$0xff] %vm1446_vm4, %v13021_v3  ;;  %v12991_v1 = vadd.f32 %v25222_v46, %v12954_v34  ;;  %v16829_v50 = vpop.f32.mrb[38].mxu1 }
 0x812   : > { %v13024_v45 = vadd.f32 %v12992_v9, %v27170_v36  ;;  %v12957_v48 = vmul.f32 %v16829_v50, %v25217_v52  ;;  %v12784_v15 = vpop.f32.mrb[39].mxu1 }
 0x813   : > { %v13023_v60 = vadd.f32 %v12991_v1, %v27171_v2  ;;  %v12956_v12 = vmul.f32 %v25217_v52, %v12784_v15  ;;  %v27182_v1 = vld [vmem:[#allocation34_spill] sm:$0xff] }
 0x814   : > { %14343 = vst.msk [vmem:[%s22275_s24 + $0x328] sm:$0xff] %vm1446_vm4, %v13024_v45  ;;  %v12994_v21 = vadd.f32 %v25222_v46, %v12957_v48  ;;  %v27183_v48 = vld [vmem:[#allocation205_spill] sm:$0xff] }
 0x815   : > { %14342 = vst.msk [vmem:[%s22275_s24 + $0x320] sm:$0xff] %vm1446_vm4, %v13023_v60  ;;  %v12993_v57 = vadd.f32 %v25222_v46, %v12956_v12  ;;  %v16832_v41 = vpop.f32.mrb[40].mxu1 }
 0x816   : > { %v13026_v31 = vadd.f32 %v12994_v21, %v27172_v25  ;;  %v12959_v27 = vmul.f32 %v16832_v41, %v25217_v52  ;;  %v12794_v28 = vpop.f32.mrb[41].mxu1 }
 0x817   : > { %v13025_v20 = vadd.f32 %v12993_v57, %v27173_v54  ;;  %v12958_v49 = vmul.f32 %v25217_v52, %v12794_v28  ;;  %v27184_v57 = vld [vmem:[#allocation40_spill] sm:$0xff] }
 0x818   : > { %14345 = vst.msk [vmem:[%s22275_s24 + $0x338] sm:$0xff] %vm1446_vm4, %v13026_v31  ;;  %v12996_v37 = vadd.f32 %v25222_v46, %v12959_v27  ;;  %v27185_v27 = vld [vmem:[#allocation211_spill] sm:$0xff] }
 0x819   : > { %14344 = vst.msk [vmem:[%s22275_s24 + $0x330] sm:$0xff] %vm1446_vm4, %v13025_v20  ;;  %v12995_v16 = vadd.f32 %v25222_v46, %v12958_v49  ;;  %v16835_v58 = vpop.f32.mrb[42].mxu1 }
 0x81a   : > { %v13028_v6 = vadd.f32 %v12996_v37, %v27174_v59  ;;  %v12961_v55 = vmul.f32 %v16835_v58, %v25217_v52  ;;  %v12804_v56 = vpop.f32.mrb[43].mxu1 }
 0x81b   : > { %v13027_v38 = vadd.f32 %v12995_v16, %v27175_v0  ;;  %v12960_v35 = vmul.f32 %v25217_v52, %v12804_v56  ;;  %v27186_v16 = vld [vmem:[#allocation214_spill] sm:$0xff] }
 0x81c   : > { %14347 = vst.msk [vmem:[%s22275_s24 + $0x348] sm:$0xff] %vm1446_vm4, %v13028_v6  ;;  %v12998_v8 = vadd.f32 %v25222_v46, %v12961_v55  ;;  %v27187_v55 = vld [vmem:[#allocation216_spill] sm:$0xff] }
 0x81d   : > { %14346 = vst.msk [vmem:[%s22275_s24 + $0x340] sm:$0xff] %vm1446_vm4, %v13027_v38  ;;  %v12997_v40 = vadd.f32 %v25222_v46, %v12960_v35  ;;  %v16838_v26 = vpop.f32.mrb[44].mxu1 }
 0x81e   : > { %v13030_v29 = vadd.f32 %v12998_v8, %v27176_v18  ;;  %v12963_v62 = vmul.f32 %v16838_v26, %v25217_v52  ;;  %v12814_v17 = vpop.f32.mrb[45].mxu1 }
 0x81f   : > { %v13029_v33 = vadd.f32 %v12997_v40, %v27177_v61  ;;  %v12962_v42 = vmul.f32 %v25217_v52, %v12814_v17  ;;  %v27188_v40 = vld [vmem:[#allocation219_spill] sm:$0xff] }
 0x820   : > { %14349 = vst.msk [vmem:[%s22275_s24 + $0x358] sm:$0xff] %vm1446_vm4, %v13030_v29  ;;  %v13000_v39 = vadd.f32 %v25222_v46, %v12963_v62  ;;  %v27189_v62 = vld [vmem:[#allocation221_spill] sm:$0xff] }
 0x821   : > { %14348 = vst.msk [vmem:[%s22275_s24 + $0x350] sm:$0xff] %vm1446_vm4, %v13029_v33  ;;  %v12999_v51 = vadd.f32 %v25222_v46, %v12962_v42  ;;  %v16841_v4 = vpop.f32.mrb[46].mxu1 }
 0x822   : > { %v13032_v22 = vadd.f32 %v13000_v39, %v27178_v43  ;;  %v12965_v32 = vmul.f32 %v16841_v4, %v25217_v52  ;;  %v12824_v14 = vpop.f32.mrb[47].mxu1 }
 0x823   : > { %v13031_v63 = vadd.f32 %v12999_v51, %v27179_v23  ;;  %v12964_v11 = vmul.f32 %v25217_v52, %v12824_v14  ;;  %v27190_v51 = vld [vmem:[#allocation60_spill] sm:$0xff] }
 0x824   : > { %14351 = vst.msk [vmem:[%s22275_s24 + $0x368] sm:$0xff] %vm1446_vm4, %v13032_v22  ;;  %v13002_v10 = vadd.f32 %v25222_v46, %v12965_v32  ;;  %v27191_v32 = vld [vmem:[#allocation224_spill] sm:$0xff] }
 0x825   : > { %14350 = vst.msk [vmem:[%s22275_s24 + $0x360] sm:$0xff] %vm1446_vm4, %v13031_v63  ;;  %v13001_v5 = vadd.f32 %v25222_v46, %v12964_v11  ;;  %v16844_v24 = vpop.f32.mrb[48].mxu1 }
 0x826   : > { %v13034_v44 = vadd.f32 %v13002_v10, %v27180_v47  ;;  %v12967_v7 = vmul.f32 %v16844_v24, %v25217_v52  ;;  %v12834_v13 = vpop.f32.mrb[49].mxu1 }
 0x827   : > { %v13033_v30 = vadd.f32 %v13001_v5, %v27181_v19  ;;  %v12966_v53 = vmul.f32 %v25217_v52, %v12834_v13  ;;  %v27192_v5 = vld [vmem:[#allocation229_spill] sm:$0xff] }
 0x828   : > { %14353 = vst.msk [vmem:[%s22275_s24 + $0x378] sm:$0xff] %vm1446_vm4, %v13034_v44  ;;  %v13004_v3 = vadd.f32 %v25222_v46, %v12967_v7  ;;  %v27193_v7 = vld [vmem:[#allocation231_spill] sm:$0xff] }
 0x829   : > { %14352 = vst.msk [vmem:[%s22275_s24 + $0x370] sm:$0xff] %vm1446_vm4, %v13033_v30  ;;  %v13003_v34 = vadd.f32 %v25222_v46, %v12966_v53  ;;  %v16847_v9 = vpop.f32.mrb[50].mxu1 }
 0x82a   : > { %v13036_v50 = vadd.f32 %v13004_v3, %v27182_v1  ;;  %v12969_v36 = vmul.f32 %v16847_v9, %v25217_v52  ;;  %v12844_v45 = vpop.f32.mrb[51].mxu1 }
 0x82b   : > { %v13035_v15 = vadd.f32 %v13003_v34, %v27183_v48  ;;  %v12968_v2 = vmul.f32 %v25217_v52, %v12844_v45  ;;  %v27194_v34 = vld [vmem:[#allocation3_spill] sm:$0xff] }
 0x82c   : > { %14355 = vst.msk [vmem:[%s22275_s24 + $0x388] sm:$0xff] %vm1446_vm4, %v13036_v50  ;;  %v13006_v60 = vadd.f32 %v25222_v46, %v12969_v36  ;;  %v27195_v36 = vld [vmem:[#allocation233_spill] sm:$0xff] }
 0x82d   : > { %14354 = vst.msk [vmem:[%s22275_s24 + $0x380] sm:$0xff] %vm1446_vm4, %v13035_v15  ;;  %v13005_v12 = vadd.f32 %v25222_v46, %v12968_v2  ;;  %v16850_v21 = vpop.f32.mrb[52].mxu1 }
 0x82e   : > { %v13038_v41 = vadd.f32 %v13006_v60, %v27184_v57  ;;  %v12971_v25 = vmul.f32 %v16850_v21, %v25217_v52  ;;  %v12854_v31 = vpop.f32.mrb[53].mxu1  ;;  %v27196_v60 = vld [vmem:[#allocation78_spill] sm:$0xff]  ;;  %v27197_v21 = vld [vmem:[#allocation236_spill] sm:$0xff] }
 0x82f   : > { %v13037_v28 = vadd.f32 %v13005_v12, %v27185_v27  ;;  %v12970_v54 = vmul.f32 %v25217_v52, %v12854_v31 }
 0x830   : > { %14357 = vst.msk [vmem:[%s22275_s24 + $0x398] sm:$0xff] %vm1446_vm4, %v13038_v41  ;;  %v13008_v20 = vadd.f32 %v25222_v46, %v12971_v25 }
 0x831   : > { %14356 = vst.msk [vmem:[%s22275_s24 + $0x390] sm:$0xff] %vm1446_vm4, %v13037_v28  ;;  %v13007_v49 = vadd.f32 %v25222_v46, %v12970_v54  ;;  %v16853_v37 = vpop.f32.mrb[54].mxu1 }
 0x832   : > { %v13040_v58 = vadd.f32 %v13008_v20, %v27186_v16  ;;  %v12973_v59 = vmul.f32 %v16853_v37, %v25217_v52  ;;  %v12864_v6 = vpop.f32.mrb[55].mxu1 }
 0x833   : > { %v13039_v56 = vadd.f32 %v13007_v49, %v27187_v55  ;;  %v12972_v0 = vmul.f32 %v25217_v52, %v12864_v6 }
 0x834   : > { %14359 = vst.msk [vmem:[%s22275_s24 + $0x3a8] sm:$0xff] %vm1446_vm4, %v13040_v58  ;;  %v13010_v38 = vadd.f32 %v25222_v46, %v12973_v59 }
 0x835   : > { %14358 = vst.msk [vmem:[%s22275_s24 + $0x3a0] sm:$0xff] %vm1446_vm4, %v13039_v56  ;;  %v13009_v35 = vadd.f32 %v25222_v46, %v12972_v0  ;;  %v16856_v8 = vpop.f32.mrb[56].mxu1 }
 0x836   : > { %v13042_v26 = vadd.f32 %v13010_v38, %v27188_v40  ;;  %v12975_v18 = vmul.f32 %v16856_v8, %v25217_v52  ;;  %v12874_v29 = vpop.f32.mrb[57].mxu1 }
 0x837   : > { %v13041_v17 = vadd.f32 %v13009_v35, %v27189_v62  ;;  %v12974_v61 = vmul.f32 %v25217_v52, %v12874_v29 }
 0x838   : > { %14361 = vst.msk [vmem:[%s22275_s24 + $0x3b8] sm:$0xff] %vm1446_vm4, %v13042_v26  ;;  %v13012_v33 = vadd.f32 %v25222_v46, %v12975_v18 }
 0x839   : > { %14360 = vst.msk [vmem:[%s22275_s24 + $0x3b0] sm:$0xff] %vm1446_vm4, %v13041_v17  ;;  %v13011_v42 = vadd.f32 %v25222_v46, %v12974_v61  ;;  %v16859_v39 = vpop.f32.mrb[58].mxu1 }
 0x83a   : > { %v13044_v4 = vadd.f32 %v13012_v33, %v27190_v51  ;;  %v12977_v43 = vmul.f32 %v16859_v39, %v25217_v52  ;;  %v12884_v22 = vpop.f32.mrb[59].mxu1 }
 0x83b   : > { %v13043_v14 = vadd.f32 %v13011_v42, %v27191_v32  ;;  %v12976_v23 = vmul.f32 %v25217_v52, %v12884_v22 }
 0x83c   : > { %14363 = vst.msk [vmem:[%s22275_s24 + $0x3c8] sm:$0xff] %vm1446_vm4, %v13044_v4  ;;  %v13014_v63 = vadd.f32 %v25222_v46, %v12977_v43 }
 0x83d   : > { %14362 = vst.msk [vmem:[%s22275_s24 + $0x3c0] sm:$0xff] %vm1446_vm4, %v13043_v14  ;;  %v13013_v11 = vadd.f32 %v25222_v46, %v12976_v23  ;;  %v16862_v10 = vpop.f32.mrb[60].mxu1 }
 0x83e   : > { %v13046_v24 = vadd.f32 %v13014_v63, %v27192_v5  ;;  %v12979_v47 = vmul.f32 %v16862_v10, %v25217_v52  ;;  %v12894_v44 = vpop.f32.mrb[61].mxu1 }
 0x83f   : > { %v13045_v13 = vadd.f32 %v13013_v11, %v27193_v7  ;;  %v12978_v19 = vmul.f32 %v25217_v52, %v12894_v44 }
 0x840   : > { %14365 = vst.msk [vmem:[%s22275_s24 + $0x3d8] sm:$0xff] %vm1446_vm4, %v13046_v24  ;;  %v13016_v30 = vadd.f32 %v25222_v46, %v12979_v47 }
 0x841   : > { %14364 = vst.msk [vmem:[%s22275_s24 + $0x3d0] sm:$0xff] %vm1446_vm4, %v13045_v13  ;;  %v13015_v53 = vadd.f32 %v25222_v46, %v12978_v19  ;;  %v16865_v3 = vpop.f32.mrb[62].mxu1 }
 0x842   : > { %v13048_v9 = vadd.f32 %v13016_v30, %v27194_v34  ;;  %v12981_v1 = vmul.f32 %v16865_v3, %v25217_v52  ;;  %v12904_v50 = vpop.f32.mrb[63].mxu1 }
 0x843   : > { %v13047_v45 = vadd.f32 %v13015_v53, %v27195_v36  ;;  %v12980_v48 = vmul.f32 %v25217_v52, %v12904_v50 }
 0x844   : > { %14367 = vst.msk [vmem:[%s22275_s24 + $0x3e8] sm:$0xff] %vm1446_vm4, %v13048_v9  ;;  %v13018_v15 = vadd.f32 %v25222_v46, %v12981_v1 }
 0x845   : > { %14366 = vst.msk [vmem:[%s22275_s24 + $0x3e0] sm:$0xff] %vm1446_vm4, %v13047_v45  ;;  %v13017_v2 = vadd.f32 %v25222_v46, %v12980_v48 }
 0x846   : > { %v13050_v12 = vadd.f32 %v13018_v15, %v27196_v60 }
 0x847   : > { %v13049_v57 = vadd.f32 %v13017_v2, %v27197_v21 }
 0x848   : > { %14369 = vst.msk [vmem:[%s22275_s24 + $0x3f8] sm:$0xff] %vm1446_vm4, %v13050_v12 }
 0x849   : > { %14368 = vst.msk [vmem:[%s22275_s24 + $0x3f0] sm:$0xff] %vm1446_vm4, %v13049_v57 }
 0x84a PF: > { %s22_s21 = sadd.s32 1, %s17678_s21  }
 0x84b   : > { %p19_p5 = scmp.ge.s32.totalorder %s22_s21, 4  }
 0x84d   :  { %21 = sbr.rel (!%p19_p5) target bundleno = 1 (0x1), region = 134 }

</bundles_post_ra>
